<compile_context>
chip_gen: v7x
topology: tpu7x:2x2x1
jax: 0.10.0
libtpu: 0.0.40
codegen_flags: <defaults>
</compile_context>

<pallas_src>
import jax
import jax.numpy as jnp
from jax.experimental import pallas as pl
from jax.experimental.pallas import tpu as pltpu

# Logical (PyTorch) dims.
D_IN, D_H1, D_H2, D_OUT = 2852, 1300, 600, 6
# Lane-aligned (padded) dims used inside the kernel (input K stays unpadded).
D_H1_P, D_H2_P, D_OUT_P = 1408, 640, 128   # 11*128, 5*128, 1*128


def _round_up(n, m):
    return (n + m - 1) // m * m


def _masked_softmax(z, valid):
    """Numerically-stable softmax over the last axis; columns >= `valid` are
    zero-padding and are excluded from the normalization (exact division)."""
    if valid < z.shape[-1]:
        col = jax.lax.broadcasted_iota(jnp.int32, z.shape, 1)
        z = jnp.where(col < valid, z, -jnp.inf)
    m = jnp.max(z, axis=-1, keepdims=True)
    e = jnp.exp(z - m)
    return e / jnp.sum(e, axis=-1, keepdims=True)


def _mlp_kernel(x_ref, w1_ref, b1_ref, w2_ref, b2_ref, w3_ref, b3_ref, o_ref):
    # Layer 1: cast f32 activations to bf16 in-kernel (no wrapper HBM pass);
    # bf16 x bf16 MXU matmul with f32 accumulate.
    x = x_ref[...].astype(jnp.bfloat16)
    h1 = jnp.dot(x, w1_ref[...], preferred_element_type=jnp.float32) + b1_ref[...]
    h1 = _masked_softmax(h1, D_H1)          # f32, padded cols exactly 0

    # Layers 2/3: cast activations to bf16 so the MXU stays on its single-pass
    # bf16 path (mixed f32 x bf16 would force the slow multi-pass f32 mode).
    h2 = jnp.dot(h1.astype(jnp.bfloat16), w2_ref[...],
                 preferred_element_type=jnp.float32) + b2_ref[...]
    h2 = _masked_softmax(h2, D_H2)

    h3 = jnp.dot(h2.astype(jnp.bfloat16), w3_ref[...],
                 preferred_element_type=jnp.float32) + b3_ref[...]
    # Lane-dense 128-wide store; only the first D_OUT columns are meaningful.
    o_ref[...] = _masked_softmax(h3, D_OUT).astype(o_ref.dtype)


def prepare_params(w1, b1, w2, b2, w3, b3):
    """Pad weights/biases to lane-aligned output shapes, cast weights to bf16.

    Inputs are in (in, out) layout (== PyTorch weight.T) and f32. Do this once
    at model-load time; the padded/cast tensors are what gets streamed from HBM.
    The K dim of W1 stays at 2852 (x is read unpadded).
    """
    w1p = jnp.pad(w1, ((0, 0), (0, D_H1_P - D_H1))).astype(jnp.bfloat16)
    b1p = jnp.pad(b1, ((0, 0), (0, D_H1_P - D_H1))).astype(jnp.float32)
    w2p = jnp.pad(w2, ((0, D_H1_P - D_H1), (0, D_H2_P - D_H2))).astype(jnp.bfloat16)
    b2p = jnp.pad(b2, ((0, 0), (0, D_H2_P - D_H2))).astype(jnp.float32)
    w3p = jnp.pad(w3, ((0, D_H2_P - D_H2), (0, D_OUT_P - D_OUT))).astype(jnp.bfloat16)
    b3p = jnp.pad(b3, ((0, 0), (0, D_OUT_P - D_OUT))).astype(jnp.float32)
    return w1p, b1p, w2p, b2p, w3p, b3p


def _resident_spec(shape):
    """Grid-invariant (VMEM-resident) operand: constant index_map + single buffer."""
    index_map = lambda i: (0, 0)
    try:
        return pl.BlockSpec(shape, index_map, pipeline_mode=pl.Buffered(1))
    except TypeError:  # older jax without pipeline_mode kwarg
        return pl.BlockSpec(shape, index_map)


@jax.jit
def speaker_context_party_nn_forward(x, params):
    """x: (B, 2852) f32.  params: output of prepare_params (padded, bf16 weights)."""
    w1, b1, w2, b2, w3, b3 = params
    B = x.shape[0]

    # Batch tile: 512 rows at large B (amortize per-grid-step overhead and keep
    # the MXU fed); small batches round to a multiple of 16.
    if B >= 512:
        TB = 512
    elif B >= 256:
        TB = 256
    else:
        TB = _round_up(B, 16)
    B_pad = _round_up(B, TB)
    n_tiles = B_pad // TB

    xp = x.astype(jnp.float32)
    if B_pad != B:
        xp = jnp.pad(xp, ((0, B_pad - B), (0, 0)))

    # --- footprint / cost bookkeeping -------------------------------------
    weight_vmem = 2 * (D_IN * D_H1_P + D_H1_P * D_H2_P + D_H2_P * D_OUT_P) \
        + 4 * 8 * (D_H1_P + D_H2_P + D_OUT_P)          # biases (sublane-padded)
    x_tile = TB * D_IN * 4
    out_tile = TB * D_OUT_P * 4
    temporaries = TB * (D_IN * 2 + D_H1_P * 6 + D_H2_P * 6 + D_OUT_P * 8)
    vmem_limit = min(
        weight_vmem + 2 * (x_tile + out_tile) + temporaries + (8 << 20),
        56 * 1024 * 1024,
    )

    cost = pl.CostEstimate(
        flops=2 * B_pad * (D_IN * D_H1_P + D_H1_P * D_H2_P + D_H2_P * D_OUT_P),
        transcendentals=B_pad * (D_H1_P + D_H2_P + D_OUT_P),
        bytes_accessed=weight_vmem + B_pad * D_IN * 4 + B_pad * D_OUT_P * 4,
    )

    out = pl.pallas_call(
        _mlp_kernel,
        out_shape=jax.ShapeDtypeStruct((B_pad, D_OUT_P), jnp.float32),
        grid=(n_tiles,),
        in_specs=[
            pl.BlockSpec((TB, D_IN), lambda i: (i, 0)),   # x: f32, tiled over batch
            _resident_spec((D_IN, D_H1_P)),               # W1 (bf16, VMEM-resident)
            _resident_spec((1, D_H1_P)),                  # b1
            _resident_spec((D_H1_P, D_H2_P)),             # W2 (bf16, VMEM-resident)
            _resident_spec((1, D_H2_P)),                  # b2
            _resident_spec((D_H2_P, D_OUT_P)),            # W3 (bf16, VMEM-resident)
            _resident_spec((1, D_OUT_P)),                 # b3
        ],
        out_specs=pl.BlockSpec((TB, D_OUT_P), lambda i: (i, 0)),
        compiler_params=pltpu.CompilerParams(
            dimension_semantics=("parallel",),
            vmem_limit_bytes=int(vmem_limit),
        ),
        cost_estimate=cost,
    )(xp, w1, b1, w2, b2, w3, b3)

    return out[:B, :D_OUT]


def _init_params(key):
    """Deterministic init mimicking nn.Linear's U(-1/sqrt(fan_in), 1/sqrt(fan_in))."""
    ks = jax.random.split(key, 6)

    def lin(kw, kb, fan_in, fan_out):
        bound = 1.0 / jnp.sqrt(jnp.float32(fan_in))
        # Stored directly in (in, out) layout (== PyTorch weight.T).
        w = jax.random.uniform(kw, (fan_in, fan_out), jnp.float32, -bound, bound)
        b = jax.random.uniform(kb, (1, fan_out), jnp.float32, -bound, bound)
        return w, b

    w1, b1 = lin(ks[0], ks[1], D_IN, D_H1)
    w2, b2 = lin(ks[2], ks[3], D_H1, D_H2)
    w3, b3 = lin(ks[4], ks[5], D_H2, D_OUT)
    return w1, b1, w2, b2, w3, b3


@jax.jit
def _reference(x, w1, b1, w2, b2, w3, b3):
    """Precision-matched JAX reference: bf16 operands, f32 accum, exact softmax."""
    bf = lambda a: a.astype(jnp.bfloat16)
    sm = lambda z: jax.nn.softmax(z, axis=-1)
    h1 = sm(jnp.dot(bf(x), bf(w1), preferred_element_type=jnp.float32) + b1)
    h2 = sm(jnp.dot(bf(h1), bf(w2), preferred_element_type=jnp.float32) + b2)
    return sm(jnp.dot(bf(h2), bf(w3), preferred_element_type=jnp.float32) + b3)


if __name__ == "__main__":
    key = jax.random.PRNGKey(0)
    k_x, k_p = jax.random.split(key)

    B = 8
    x = jax.random.normal(k_x, (B, D_IN), jnp.float32)
    raw_params = _init_params(k_p)
    params = prepare_params(*raw_params)

    out = speaker_context_party_nn_forward(x, params)
    out = jax.block_until_ready(out)

    ref = _reference(x, *raw_params)
    assert out.shape == (B, D_OUT)
    assert bool(jnp.all(jnp.isfinite(out)))
    assert jnp.allclose(jnp.sum(out, axis=-1), 1.0, atol=1e-3), "rows must sum to 1"
    assert jnp.allclose(out, ref, atol=2e-3, rtol=2e-3), "mismatch vs. JAX reference"

    print("KERNEL_OK")
</pallas_src>

<mosaic_0001>
module attributes {stable_mosaic.version = 11 : i64} {
  func.func @_mlp_kernel(%arg0: i32, %arg1: memref<16x2852xf32, #tpu.memory_space<vmem>>, %arg2: memref<2852x1408xbf16, #tpu.memory_space<vmem>>, %arg3: memref<1x1408xf32, #tpu.memory_space<vmem>>, %arg4: memref<1408x640xbf16, #tpu.memory_space<vmem>>, %arg5: memref<1x640xf32, #tpu.memory_space<vmem>>, %arg6: memref<640x128xbf16, #tpu.memory_space<vmem>>, %arg7: memref<1x128xf32, #tpu.memory_space<vmem>>, %arg8: memref<16x128xf32, #tpu.memory_space<vmem>>) attributes {dimension_semantics = [#tpu.dimension_semantics<parallel>], iteration_bounds = array<i64: 1>, scalar_prefetch = 0 : i64, scratch_operands = 0 : i64, tpu.core_type = #tpu.core_type<tc>, window_params = [{transform_indices = @transform_0, window_bounds = array<i64: 16, 2852>}, {pipeline_mode = #tpu.pipeline_mode<synchronous>, transform_indices = @transform_1, window_bounds = array<i64: 2852, 1408>}, {pipeline_mode = #tpu.pipeline_mode<synchronous>, transform_indices = @transform_2, window_bounds = array<i64: 1, 1408>}, {pipeline_mode = #tpu.pipeline_mode<synchronous>, transform_indices = @transform_3, window_bounds = array<i64: 1408, 640>}, {pipeline_mode = #tpu.pipeline_mode<synchronous>, transform_indices = @transform_4, window_bounds = array<i64: 1, 640>}, {pipeline_mode = #tpu.pipeline_mode<synchronous>, transform_indices = @transform_5, window_bounds = array<i64: 640, 128>}, {pipeline_mode = #tpu.pipeline_mode<synchronous>, transform_indices = @transform_6, window_bounds = array<i64: 1, 128>}, {transform_indices = @transform_7, window_bounds = array<i64: 16, 128>}]} {
    %c0 = arith.constant 0 : index
    %c0_0 = arith.constant 0 : index
    %0 = vector.load %arg1[%c0, %c0_0] : memref<16x2852xf32, #tpu.memory_space<vmem>>, vector<16x2852xf32>
    %1 = arith.truncf %0 : vector<16x2852xf32> to vector<16x2852xbf16>
    %c0_1 = arith.constant 0 : index
    %c0_2 = arith.constant 0 : index
    %2 = vector.load %arg2[%c0_1, %c0_2] : memref<2852x1408xbf16, #tpu.memory_space<vmem>>, vector<2852x1408xbf16>
    %cst = arith.constant dense<0.000000e+00> : vector<16x1408xf32>
    %3 = tpu.matmul %1, %2, %cst {dimension_numbers = #tpu.dot_dimension_numbers<[1], [0], [0], [1], [0, 0, 1, 1], [], []>} : vector<16x2852xbf16>, vector<2852x1408xbf16>, vector<16x1408xf32> -> vector<16x1408xf32>
    %c0_3 = arith.constant 0 : index
    %c0_4 = arith.constant 0 : index
    %4 = vector.load %arg3[%c0_3, %c0_4] : memref<1x1408xf32, #tpu.memory_space<vmem>>, vector<1x1408xf32>
    %5 = vector.broadcast %4 : vector<1x1408xf32> to vector<16x1408xf32>
    %6 = arith.addf %3, %5 : vector<16x1408xf32>
    %7 = tpu.iota {dimensions = array<i32: 1>} : vector<16x1408xi32>
    %c1300_i32 = arith.constant 1300 : i32
    %8 = vector.broadcast %c1300_i32 : i32 to vector<16x1408xi32>
    %9 = arith.cmpi slt, %7, %8 : vector<16x1408xi32>
    %cst_5 = arith.constant 0xFF800000 : f32
    %10 = vector.broadcast %cst_5 : f32 to vector<16x1408xf32>
    %11 = arith.select %9, %6, %10 : vector<16x1408xi1>, vector<16x1408xf32>
    %cst_6 = arith.constant dense<0xFF800000> : vector<16xf32>
    %12 = vector.multi_reduction <maximumf>, %11, %cst_6 [1] : vector<16x1408xf32> to vector<16xf32>
    %13 = vector.shape_cast %12 : vector<16xf32> to vector<16x1xf32>
    %14 = vector.broadcast %13 : vector<16x1xf32> to vector<16x1408xf32>
    %15 = arith.subf %11, %14 : vector<16x1408xf32>
    %16 = math.exp %15 : vector<16x1408xf32>
    %cst_7 = arith.constant dense<0.000000e+00> : vector<16xf32>
    %17 = vector.multi_reduction <add>, %16, %cst_7 [1] : vector<16x1408xf32> to vector<16xf32>
    %18 = vector.shape_cast %17 : vector<16xf32> to vector<16x1xf32>
    %19 = vector.broadcast %18 : vector<16x1xf32> to vector<16x1408xf32>
    %20 = arith.divf %16, %19 : vector<16x1408xf32>
    %21 = arith.truncf %20 : vector<16x1408xf32> to vector<16x1408xbf16>
    %c0_8 = arith.constant 0 : index
    %c0_9 = arith.constant 0 : index
    %22 = vector.load %arg4[%c0_8, %c0_9] : memref<1408x640xbf16, #tpu.memory_space<vmem>>, vector<1408x640xbf16>
    %cst_10 = arith.constant dense<0.000000e+00> : vector<16x640xf32>
    %23 = tpu.matmul %21, %22, %cst_10 {dimension_numbers = #tpu.dot_dimension_numbers<[1], [0], [0], [1], [0, 0, 1, 1], [], []>} : vector<16x1408xbf16>, vector<1408x640xbf16>, vector<16x640xf32> -> vector<16x640xf32>
    %c0_11 = arith.constant 0 : index
    %c0_12 = arith.constant 0 : index
    %24 = vector.load %arg5[%c0_11, %c0_12] : memref<1x640xf32, #tpu.memory_space<vmem>>, vector<1x640xf32>
    %25 = vector.broadcast %24 : vector<1x640xf32> to vector<16x640xf32>
    %26 = arith.addf %23, %25 : vector<16x640xf32>
    %27 = tpu.iota {dimensions = array<i32: 1>} : vector<16x640xi32>
    %c600_i32 = arith.constant 600 : i32
    %28 = vector.broadcast %c600_i32 : i32 to vector<16x640xi32>
    %29 = arith.cmpi slt, %27, %28 : vector<16x640xi32>
    %cst_13 = arith.constant 0xFF800000 : f32
    %30 = vector.broadcast %cst_13 : f32 to vector<16x640xf32>
    %31 = arith.select %29, %26, %30 : vector<16x640xi1>, vector<16x640xf32>
    %cst_14 = arith.constant dense<0xFF800000> : vector<16xf32>
    %32 = vector.multi_reduction <maximumf>, %31, %cst_14 [1] : vector<16x640xf32> to vector<16xf32>
    %33 = vector.shape_cast %32 : vector<16xf32> to vector<16x1xf32>
    %34 = vector.broadcast %33 : vector<16x1xf32> to vector<16x640xf32>
    %35 = arith.subf %31, %34 : vector<16x640xf32>
    %36 = math.exp %35 : vector<16x640xf32>
    %cst_15 = arith.constant dense<0.000000e+00> : vector<16xf32>
    %37 = vector.multi_reduction <add>, %36, %cst_15 [1] : vector<16x640xf32> to vector<16xf32>
    %38 = vector.shape_cast %37 : vector<16xf32> to vector<16x1xf32>
    %39 = vector.broadcast %38 : vector<16x1xf32> to vector<16x640xf32>
    %40 = arith.divf %36, %39 : vector<16x640xf32>
    %41 = arith.truncf %40 : vector<16x640xf32> to vector<16x640xbf16>
    %c0_16 = arith.constant 0 : index
    %c0_17 = arith.constant 0 : index
    %42 = vector.load %arg6[%c0_16, %c0_17] : memref<640x128xbf16, #tpu.memory_space<vmem>>, vector<640x128xbf16>
    %cst_18 = arith.constant dense<0.000000e+00> : vector<16x128xf32>
    %43 = tpu.matmul %41, %42, %cst_18 {dimension_numbers = #tpu.dot_dimension_numbers<[1], [0], [0], [1], [0, 0, 1, 1], [], []>} : vector<16x640xbf16>, vector<640x128xbf16>, vector<16x128xf32> -> vector<16x128xf32>
    %c0_19 = arith.constant 0 : index
    %c0_20 = arith.constant 0 : index
    %44 = vector.load %arg7[%c0_19, %c0_20] : memref<1x128xf32, #tpu.memory_space<vmem>>, vector<1x128xf32>
    %45 = vector.broadcast %44 : vector<1x128xf32> to vector<16x128xf32>
    %46 = arith.addf %43, %45 : vector<16x128xf32>
    %47 = tpu.iota {dimensions = array<i32: 1>} : vector<16x128xi32>
    %c6_i32 = arith.constant 6 : i32
    %48 = vector.broadcast %c6_i32 : i32 to vector<16x128xi32>
    %49 = arith.cmpi slt, %47, %48 : vector<16x128xi32>
    %cst_21 = arith.constant 0xFF800000 : f32
    %50 = vector.broadcast %cst_21 : f32 to vector<16x128xf32>
    %51 = arith.select %49, %46, %50 : vector<16x128xi1>, vector<16x128xf32>
    %cst_22 = arith.constant dense<0xFF800000> : vector<16xf32>
    %52 = vector.multi_reduction <maximumf>, %51, %cst_22 [1] : vector<16x128xf32> to vector<16xf32>
    %53 = vector.shape_cast %52 : vector<16xf32> to vector<16x1xf32>
    %54 = vector.broadcast %53 : vector<16x1xf32> to vector<16x128xf32>
    %55 = arith.subf %51, %54 : vector<16x128xf32>
    %56 = math.exp %55 : vector<16x128xf32>
    %cst_23 = arith.constant dense<0.000000e+00> : vector<16xf32>
    %57 = vector.multi_reduction <add>, %56, %cst_23 [1] : vector<16x128xf32> to vector<16xf32>
    %58 = vector.shape_cast %57 : vector<16xf32> to vector<16x1xf32>
    %59 = vector.broadcast %58 : vector<16x1xf32> to vector<16x128xf32>
    %60 = arith.divf %56, %59 : vector<16x128xf32>
    %c0_24 = arith.constant 0 : index
    %c0_25 = arith.constant 0 : index
    %61 = vector.load %arg8[%c0_24, %c0_25] : memref<16x128xf32, #tpu.memory_space<vmem>>, vector<16x128xf32>
    tpu.vector_store %arg8[%c0_24, %c0_25], %60 {strides = array<i32>} : memref<16x128xf32, #tpu.memory_space<vmem>>, vector<16x128xf32>,
    return
  }
  func.func @transform_0(%arg0: i32) -> (i32, i32) {
    %c0_i32 = arith.constant 0 : i32
    %c0_i32_0 = arith.constant 0 : i32
    return %arg0, %c0_i32 : i32, i32
  }
  func.func @transform_1(%arg0: i32) -> (i32, i32) {
    %c0_i32 = arith.constant 0 : i32
    %c0_i32_0 = arith.constant 0 : i32
    %c0_i32_1 = arith.constant 0 : i32
    return %c0_i32, %c0_i32_0 : i32, i32
  }
  func.func @transform_2(%arg0: i32) -> (i32, i32) {
    %c0_i32 = arith.constant 0 : i32
    %c0_i32_0 = arith.constant 0 : i32
    %c0_i32_1 = arith.constant 0 : i32
    return %c0_i32, %c0_i32_0 : i32, i32
  }
  func.func @transform_3(%arg0: i32) -> (i32, i32) {
    %c0_i32 = arith.constant 0 : i32
    %c0_i32_0 = arith.constant 0 : i32
    %c0_i32_1 = arith.constant 0 : i32
    return %c0_i32, %c0_i32_0 : i32, i32
  }
  func.func @transform_4(%arg0: i32) -> (i32, i32) {
    %c0_i32 = arith.constant 0 : i32
    %c0_i32_0 = arith.constant 0 : i32
    %c0_i32_1 = arith.constant 0 : i32
    return %c0_i32, %c0_i32_0 : i32, i32
  }
  func.func @transform_5(%arg0: i32) -> (i32, i32) {
    %c0_i32 = arith.constant 0 : i32
    %c0_i32_0 = arith.constant 0 : i32
    %c0_i32_1 = arith.constant 0 : i32
    return %c0_i32, %c0_i32_0 : i32, i32
  }
  func.func @transform_6(%arg0: i32) -> (i32, i32) {
    %c0_i32 = arith.constant 0 : i32
    %c0_i32_0 = arith.constant 0 : i32
    %c0_i32_1 = arith.constant 0 : i32
    return %c0_i32, %c0_i32_0 : i32, i32
  }
  func.func @transform_7(%arg0: i32) -> (i32, i32) {
    %c0_i32 = arith.constant 0 : i32
    %c0_i32_0 = arith.constant 0 : i32
    return %arg0, %c0_i32 : i32, i32
  }
}

</mosaic_0001>

<bundles_post_ra>
// kernel: speaker_context_party_nn_forward.1
= control target key start
LH: loop header
LB: loop body
LE: loop exit
PB: predicated region body
PF: predicated region fallthrough
CT: control target
= control target key end

     0   :  { %12 = vsyncpa [#allocation3], 0  ;;  %s27703_s0 = inlined_call_operand.vmem [shape: f32[16,2852], index: 0, kind: input, shape index: {}]   ;;  %s27704_s1 = inlined_call_operand.hbm [shape: bf16[2852,1408], index: 1, kind: input, shape index: {}]   ;;  %s27705_s2 = inlined_call_operand.hbm [shape: f32[1,1408], index: 2, kind: input, shape index: {}]   ;;  %s27706_s3 = inlined_call_operand.hbm [shape: bf16[1408,640], index: 3, kind: input, shape index: {}]   ;;  %s27707_s4 = inlined_call_operand.hbm [shape: f32[1,640], index: 4, kind: input, shape index: {}]   ;;  %s27708_s5 = inlined_call_operand.hbm [shape: bf16[640,128], index: 5, kind: input, shape index: {}]   ;;  %s27709_s6 = inlined_call_operand.hbm [shape: f32[1,128], index: 6, kind: input, shape index: {}]   ;;  %s27710_s7 = inlined_call_operand.vmem [shape: f32[16,128], index: 7, kind: output, shape index: {}]  }
   0x1   :  { %13 = vsyncpa [#allocation5], 0 }
   0x2   :  { %14 = vsyncpa [#allocation8], 0 }
   0x3   :  { %15 = vsyncpa [#allocation11], 0  ;;  %s26812_s24 = smov [#allocation4]   ;;  %s26813_s26 = smov [#allocation7]  }
   0x4   :  { %s36_s25 = sshll.u32 %s26812_s24, 4  ;;  %s58_s27 = sshll.u32 %s26813_s26, 4  ;;  %s37_s25 = int_to_ptr.vmem [resolvable:$true] %s36_s25  ;;  %s59_s27 = int_to_ptr.vmem [resolvable:$true] %s58_s27 }
   0x5   :  { %s26672_s30 = scalar_lea.hbm %s27705_s2, 176 }
   0x6   :  { %p26673_p0 = scmp.ne.s32.totalorder %s27705_s2, %s26672_s30  ;;  %p26676_p1 = scmp.lt.u32.totalorder %s26672_s30, %s27705_s2 }
   0x8   :  { %p26678_p2 = pnand %p26676_p1, %p26673_p0 }
   0xa   :  { %26681 = shalt.err (!%p26678_p2)
}
   0xb   :  { %s26682_s12 = scalar_lea.vmem %s37_s25, 176  ;;  %s26686_s13 = scalar_lea.vmem %s37_s25, 192 }
   0xc   :  { %p26683_p3 = scmp.ne.s32.totalorder %s37_s25, %s26682_s12  ;;  %p26687_p4 = scmp.lt.s32.totalorder %s37_s25, %s37_s25 }
   0xd   :  { %p26688_p5 = scmp.lt.s32.totalorder %s26686_s13, %s26682_s12 }
   0xf   :  { %p26689_p6 = por %p26688_p5, %p26687_p4 }
  0x11   :  { %p26690_p7 = pnand %p26689_p6, %p26683_p3 }
  0x13   :  { %26693 = shalt.err (!%p26690_p7)
}
  0x14   :  { %39 = dma.hbm_to_vmem [thread:$0]  %s27705_s2, 176, %s37_s25, [#allocation5]  }
  0x15   :  { %s26694_s18 = scalar_lea.hbm %s27707_s4, 80 }
  0x16   :  { %p26695_p8 = scmp.ne.s32.totalorder %s27707_s4, %s26694_s18  ;;  %p26698_p9 = scmp.lt.u32.totalorder %s26694_s18, %s27707_s4 }
  0x18   :  { %p26700_p10 = pnand %p26698_p9, %p26695_p8 }
  0x1a   :  { %26703 = shalt.err (!%p26700_p10)
}
  0x1b   :  { %s26704_s23 = scalar_lea.vmem %s59_s27, 80  ;;  %s26708_s24 = scalar_lea.vmem %s59_s27, 96 }
  0x1c   :  { %p26705_p11 = scmp.ne.s32.totalorder %s59_s27, %s26704_s23  ;;  %p26709_p12 = scmp.lt.s32.totalorder %s59_s27, %s59_s27 }
  0x1d   :  { %p26710_p13 = scmp.lt.s32.totalorder %s26708_s24, %s26704_s23 }
  0x1f   :  { %p26711_p0 = por %p26710_p13, %p26709_p12 }
  0x21   :  { %p26712_p1 = pnand %p26711_p0, %p26705_p11 }
  0x23   :  { %26715 = shalt.err (!%p26712_p1)
}
  0x24   :  { %61 = dma.hbm_to_vmem [thread:$0]  %s27707_s4, 80, %s59_s27, [#allocation8]  }
  0x25   :  { %s26814_s26 = smov [#allocation2]   ;;  %s26716_s8 = scalar_lea.hbm %s27704_s1, 251328 }
  0x26   :  { %s23_s28 = sshll.u32 %s26814_s26, 4  ;;  %p26717_p2 = scmp.ne.s32.totalorder %s27704_s1, %s26716_s8  ;;  %s24_s28 = int_to_ptr.vmem [resolvable:$true] %s23_s28 }
  0x27   :  { %p26720_p3 = scmp.lt.u32.totalorder %s26716_s8, %s27704_s1 }
  0x29   :  { %p26722_p4 = pnand %p26720_p3, %p26717_p2 }
  0x2b   :  { %26725 = shalt.err (!%p26722_p4)
}
  0x2c   :  { %s26726_s13 = scalar_lea.vmem %s24_s28, 251328  ;;  %p26731_p6 = scmp.lt.s32.totalorder %s24_s28, %s24_s28 }
  0x2d   :  { %p26727_p5 = scmp.ne.s32.totalorder %s24_s28, %s26726_s13  ;;  %p26732_p7 = scmp.lt.s32.totalorder %s26726_s13, %s26726_s13 }
  0x2f   :  { %p26733_p8 = por %p26732_p7, %p26731_p6 }
  0x31   :  { %p26734_p9 = pnand %p26733_p8, %p26727_p5 }
  0x33   :  { %26737 = shalt.err (!%p26734_p9)
}
  0x34   :  { %s26815_s4 = smov 704   ;;  %s26816_s27 = smov 44  }
  0x35   :  { %29 = dma.hbm_to_vmem [thread:$0]  %s27704_s1, 251328, %s24_s28, [#allocation3], %s26815_s4, %s26815_s4, %s26816_s27  }
  0x36   :  { %s26817_s16 = smov [#allocation6]   ;;  %s26738_s20 = scalar_lea.hbm %s27706_s3, 56320 }
  0x37   :  { %s45_s17 = sshll.u32 %s26817_s16, 4  ;;  %p26739_p10 = scmp.ne.s32.totalorder %s27706_s3, %s26738_s20  ;;  %s46_s17 = int_to_ptr.vmem [resolvable:$true] %s45_s17 }
  0x38   :  { %p26742_p11 = scmp.lt.u32.totalorder %s26738_s20, %s27706_s3 }
  0x3a   :  { %p26744_p12 = pnand %p26742_p11, %p26739_p10 }
  0x3c   :  { %26747 = shalt.err (!%p26744_p12)
}
  0x3d   :  { %s26748_s2 = scalar_lea.vmem %s46_s17, 56320  ;;  %p26753_p0 = scmp.lt.s32.totalorder %s46_s17, %s46_s17 }
  0x3e   :  { %p26749_p13 = scmp.ne.s32.totalorder %s46_s17, %s26748_s2  ;;  %p26754_p1 = scmp.lt.s32.totalorder %s26748_s2, %s26748_s2 }
  0x40   :  { %p26755_p2 = por %p26754_p1, %p26753_p0 }
  0x42   :  { %p26756_p3 = pnand %p26755_p2, %p26749_p13 }
  0x44   :  { %26759 = shalt.err (!%p26756_p3)
}
  0x45   :  { %s26818_s1 = smov 320   ;;  %s26819_s25 = smov 20  }
  0x46   :  { %51 = dma.hbm_to_vmem [thread:$0]  %s27706_s3, 56320, %s46_s17, [#allocation5], %s26818_s1, %s26818_s1, %s26819_s25  }
  0x47   :  { %s26820_s29 = smov [#allocation9]   ;;  %s26760_s10 = scalar_lea.hbm %s27708_s5, 5120 }
  0x48   :  { %s67_s30 = sshll.u32 %s26820_s29, 4  ;;  %p26761_p4 = scmp.ne.s32.totalorder %s27708_s5, %s26760_s10  ;;  %s68_s30 = int_to_ptr.vmem [resolvable:$true] %s67_s30 }
  0x49   :  { %p26764_p5 = scmp.lt.u32.totalorder %s26760_s10, %s27708_s5 }
  0x4b   :  { %p26766_p6 = pnand %p26764_p5, %p26761_p4 }
  0x4d   :  { %26769 = shalt.err (!%p26766_p6)
}
  0x4e   :  { %s26770_s27 = scalar_lea.vmem %s68_s30, 5120  ;;  %p26775_p8 = scmp.lt.s32.totalorder %s68_s30, %s68_s30 }
  0x4f   :  { %p26771_p7 = scmp.ne.s32.totalorder %s68_s30, %s26770_s27  ;;  %p26776_p9 = scmp.lt.s32.totalorder %s26770_s27, %s26770_s27 }
  0x51   :  { %p26777_p10 = por %p26776_p9, %p26775_p8 }
  0x53   :  { %p26778_p11 = pnand %p26777_p10, %p26771_p7 }
  0x55   :  { %26781 = shalt.err (!%p26778_p11)
}
  0x56   :  { %s26821_s3 = smov 64   ;;  %s26822_s14 = smov 4  }
  0x57   :  { %73 = dma.hbm_to_vmem [thread:$0]  %s27708_s5, 5120, %s68_s30, [#allocation8], %s26821_s3, %s26821_s3, %s26822_s14  }
  0x58   :  { %s26823_s17 = smov [#allocation10]   ;;  %s26782_s21 = scalar_lea.hbm %s27709_s6, 16 }
  0x59   :  { %s80_s18 = sshll.u32 %s26823_s17, 4  ;;  %p26783_p12 = scmp.ne.s32.totalorder %s27709_s6, %s26782_s21  ;;  %s81_s18 = int_to_ptr.vmem [resolvable:$true] %s80_s18 }
  0x5a   :  { %p26786_p13 = scmp.lt.u32.totalorder %s26782_s21, %s27709_s6 }
  0x5c   :  { %p26788_p0 = pnand %p26786_p13, %p26783_p12 }
  0x5e   :  { %26791 = shalt.err (!%p26788_p0)
}
  0x5f   :  { %s26792_s1 = scalar_lea.vmem %s81_s18, 16  ;;  %s26796_s5 = scalar_lea.vmem %s81_s18, 32 }
  0x60   :  { %p26793_p1 = scmp.ne.s32.totalorder %s81_s18, %s26792_s1  ;;  %p26797_p2 = scmp.lt.s32.totalorder %s81_s18, %s81_s18 }
  0x61   :  { %p26798_p3 = scmp.lt.s32.totalorder %s26796_s5, %s26792_s1 }
  0x63   :  { %p26799_p4 = por %p26798_p3, %p26797_p2 }
  0x65   :  { %p26800_p5 = pnand %p26799_p4, %p26793_p1 }
  0x67   :  { %26803 = shalt.err (!%p26800_p5)
}
  0x68   :  { %83 = dma.hbm_to_vmem [thread:$0]  %s27709_s6, 16, %s81_s18, [#allocation11]  }
  0x69   :  { %26804 = dma.done.wait [#allocation3], 251328  }
  0x6a   :  { %26805 = vsyncadd [#allocation3], 4294715968 }
  0x6b   :  { %26806 = dma.done.wait [#allocation5], 56496  }
  0x6c   :  { %26807 = vsyncadd [#allocation5], 4294910800 }
  0x6d   :  { %26808 = dma.done.wait [#allocation8], 5200  }
  0x6e   :  { %26809 = vsyncadd [#allocation8], 4294962096 }
  0x6f   :  { %26810 = dma.done.wait [#allocation11], 16  }
  0x70   :  { %26811 = vsyncadd [#allocation11], 4294967280  ;;  %v23077_v0 = vld [vmem:[#allocation2 + $0x4] ss:$44 sps:$4 sm:$0xff]   ;;  %v23079_v1 = vld [vmem:[#allocation2 + $0xc] ss:$44 sps:$4 sm:$0xff]  }
  0x71   :  { %12407 = vmatprep.subr.bf16.mxu0 %v23077_v0  ;;  %v23081_v2 = vld [vmem:[#allocation2] ss:$44 sps:$4 sm:$0xff]   ;;  %v23082_v3 = vld [vmem:[#allocation2 + $0x8] ss:$44 sps:$4 sm:$0xff]   ;;  %12923 = vmatprep.subr.bf16.mxu1 %v23079_v1  ;;  %v23085_v5 = vld [vmem:[#allocation2 + $0x64] ss:$44 sps:$4 sm:$0xff]  }
  0x72   :  { %v23083_v4 = vld [vmem:[#allocation2 + $0x5c] ss:$44 sps:$4 sm:$0xff]   ;;  %12408 = vmatpush1.bf16.msra.mxu0 %v23081_v2  ;;  %12924 = vmatpush1.bf16.msra.mxu1 %v23082_v3  ;;  %v23087_v6 = vld [vmem:[#allocation2 + $0x58] ss:$44 sps:$4 sm:$0xff]   ;;  %v23088_v7 = vld [vmem:[#allocation2 + $0x60] ss:$44 sps:$4 sm:$0xff]  }
  0x73   :  { %12409 = vmatprep.subr.bf16.mxu0 %v23083_v4  ;;  %12925 = vmatprep.subr.bf16.mxu1 %v23085_v5  ;;  %v23089_v8 = vld [vmem:[#allocation2 + $0xb4] ss:$44 sps:$4 sm:$0xff]   ;;  %v23091_v9 = vld [vmem:[#allocation2 + $0xbc] ss:$44 sps:$4 sm:$0xff]   ;;  %v23094_v11 = vld [vmem:[#allocation2 + $0xb8] ss:$44 sps:$4 sm:$0xff]  }
  0x74   :  { %v23093_v10 = vld [vmem:[#allocation2 + $0xb0] ss:$44 sps:$4 sm:$0xff]   ;;  %v23095_v12 = vld [vmem:[#allocation2 + $0x10c] ss:$44 sps:$4 sm:$0xff]   ;;  %v23097_v13 = vld [vmem:[#allocation2 + $0x114] ss:$44 sps:$4 sm:$0xff]  }
  0x75   :  { %v23099_v14 = vld [vmem:[#allocation2 + $0x108] ss:$44 sps:$4 sm:$0xff]   ;;  %v23100_v15 = vld [vmem:[#allocation2 + $0x110] ss:$44 sps:$4 sm:$0xff]   ;;  %v23103_v17 = vld [vmem:[#allocation2 + $0x16c] ss:$44 sps:$4 sm:$0xff]  }
  0x76   :  { %12410 = vmatpush1.bf16.msra.mxu0 %v23087_v6  ;;  %12926 = vmatpush1.bf16.msra.mxu1 %v23088_v7  ;;  %v23101_v16 = vld [vmem:[#allocation2 + $0x164] ss:$44 sps:$4 sm:$0xff]   ;;  %v23105_v18 = vld [vmem:[#allocation2 + $0x160] ss:$44 sps:$4 sm:$0xff]   ;;  %v23106_v19 = vld [vmem:[#allocation2 + $0x168] ss:$44 sps:$4 sm:$0xff]  }
  0x77   :  { %12411 = vmatprep.subr.bf16.mxu0 %v23089_v8  ;;  %12927 = vmatprep.subr.bf16.mxu1 %v23091_v9  ;;  %v23107_v20 = vld [vmem:[#allocation2 + $0x1bc] ss:$44 sps:$4 sm:$0xff]   ;;  %v23109_v21 = vld [vmem:[#allocation2 + $0x1c4] ss:$44 sps:$4 sm:$0xff]   ;;  %v23112_v23 = vld [vmem:[#allocation2 + $0x1c0] ss:$44 sps:$4 sm:$0xff]  }
  0x78   :  { %v23111_v22 = vld [vmem:[#allocation2 + $0x1b8] ss:$44 sps:$4 sm:$0xff]   ;;  %v23113_v24 = vld [vmem:[#allocation2 + $0x214] ss:$44 sps:$4 sm:$0xff]   ;;  %v23115_v25 = vld [vmem:[#allocation2 + $0x21c] ss:$44 sps:$4 sm:$0xff]  }
  0x79   :  { %v23117_v26 = vld [vmem:[#allocation2 + $0x210] ss:$44 sps:$4 sm:$0xff]   ;;  %v23118_v27 = vld [vmem:[#allocation2 + $0x218] ss:$44 sps:$4 sm:$0xff]   ;;  %v23121_v29 = vld [vmem:[#allocation2 + $0x274] ss:$44 sps:$4 sm:$0xff]  }
  0x7a   :  { %12412 = vmatpush1.bf16.msra.mxu0 %v23093_v10  ;;  %12928 = vmatpush1.bf16.msra.mxu1 %v23094_v11  ;;  %v23119_v28 = vld [vmem:[#allocation2 + $0x26c] ss:$44 sps:$4 sm:$0xff]   ;;  %v23123_v30 = vld [vmem:[#allocation2 + $0x268] ss:$44 sps:$4 sm:$0xff]   ;;  %v23124_v31 = vld [vmem:[#allocation2 + $0x270] ss:$44 sps:$4 sm:$0xff]  }
  0x7b   :  { %12413 = vmatprep.subr.bf16.mxu0 %v23095_v12  ;;  %12929 = vmatprep.subr.bf16.mxu1 %v23097_v13  ;;  %v23125_v32 = vld [vmem:[#allocation2 + $0x2c4] ss:$44 sps:$4 sm:$0xff]   ;;  %v23127_v33 = vld [vmem:[#allocation2 + $0x2cc] ss:$44 sps:$4 sm:$0xff]   ;;  %v23130_v35 = vld [vmem:[#allocation2 + $0x2c8] ss:$44 sps:$4 sm:$0xff]  }
  0x7c   :  { %v23129_v34 = vld [vmem:[#allocation2 + $0x2c0] ss:$44 sps:$4 sm:$0xff]   ;;  %v23131_v36 = vld [vmem:[#allocation2 + $0x31c] ss:$44 sps:$4 sm:$0xff]   ;;  %v23133_v37 = vld [vmem:[#allocation2 + $0x324] ss:$44 sps:$4 sm:$0xff]  }
  0x7d   :  { %v23135_v38 = vld [vmem:[#allocation2 + $0x318] ss:$44 sps:$4 sm:$0xff]   ;;  %v23136_v39 = vld [vmem:[#allocation2 + $0x320] ss:$44 sps:$4 sm:$0xff]   ;;  %v23139_v41 = vld [vmem:[#allocation2 + $0x37c] ss:$44 sps:$4 sm:$0xff]  }
  0x7e   :  { %12414 = vmatpush1.bf16.msra.mxu0 %v23099_v14  ;;  %12930 = vmatpush1.bf16.msra.mxu1 %v23100_v15  ;;  %v23137_v40 = vld [vmem:[#allocation2 + $0x374] ss:$44 sps:$4 sm:$0xff]   ;;  %v23141_v42 = vld [vmem:[#allocation2 + $0x370] ss:$44 sps:$4 sm:$0xff]   ;;  %v23142_v43 = vld [vmem:[#allocation2 + $0x378] ss:$44 sps:$4 sm:$0xff]  }
  0x7f   :  { %12415 = vmatprep.subr.bf16.mxu0 %v23101_v16  ;;  %12931 = vmatprep.subr.bf16.mxu1 %v23103_v17  ;;  %v23143_v44 = vld [vmem:[#allocation2 + $0x3cc] ss:$44 sps:$4 sm:$0xff]   ;;  %v23145_v45 = vld [vmem:[#allocation2 + $0x3d4] ss:$44 sps:$4 sm:$0xff]   ;;  %v23148_v49 = vld [vmem:[#allocation2 + $0x3d0] ss:$44 sps:$4 sm:$0xff]  }
  0x80   :  { %v104_v46 = vld [vmem:[%s27703_s0 + $0x8] sm:$0xff]  ;;  %v127_v47 = vld [vmem:[%s27703_s0 + $0xc0] sm:$0xff]  ;;  %v23165_v61 = vld [vmem:[#allocation2 + $0x4d0] ss:$44 sps:$4 sm:$0xff]   ;;  %vm12373_vm0 = vcmask 1041408   ;;  %vm12369_vm1 = vcmask 293888  }
  0x81   :  { %v23147_v48 = vld [vmem:[#allocation2 + $0x3c8] ss:$44 sps:$4 sm:$0xff]   ;;  %v26945_v50 = vpack.c.bf16 %v127_v47, %v104_v46  ;;  %v23149_v51 = vld [vmem:[#allocation2 + $0x424] ss:$44 sps:$4 sm:$0xff]   ;;  %v23151_v52 = vld [vmem:[#allocation2 + $0x42c] ss:$44 sps:$4 sm:$0xff]  }
  0x82   :  { %12416 = vmatpush1.bf16.msra.mxu0 %v23105_v18  ;;  %12932 = vmatpush1.bf16.msra.mxu1 %v23106_v19  ;;  %v23153_v53 = vld [vmem:[#allocation2 + $0x420] ss:$44 sps:$4 sm:$0xff]   ;;  %v23154_v54 = vld [vmem:[#allocation2 + $0x428] ss:$44 sps:$4 sm:$0xff]   ;;  %v23157_v56 = vld [vmem:[#allocation2 + $0x484] ss:$44 sps:$4 sm:$0xff]  }
  0x83   :  { %12417 = vmatprep.subr.bf16.mxu0 %v23107_v20  ;;  %12933 = vmatprep.subr.bf16.mxu1 %v23109_v21  ;;  %v23155_v55 = vld [vmem:[#allocation2 + $0x47c] ss:$44 sps:$4 sm:$0xff]   ;;  %v23159_v57 = vld [vmem:[#allocation2 + $0x478] ss:$44 sps:$4 sm:$0xff]   ;;  %v23160_v58 = vld [vmem:[#allocation2 + $0x480] ss:$44 sps:$4 sm:$0xff]  }
  0x84   :  { %12439 = vmatprep.mubr.bf16.mxu0 %v26945_v50  ;;  %12955 = vmatprep.mubr.bf16.mxu1 %v26945_v50  ;;  %v23161_v59 = vld [vmem:[#allocation2 + $0x4d4] ss:$44 sps:$4 sm:$0xff]   ;;  %v23163_v60 = vld [vmem:[#allocation2 + $0x4dc] ss:$44 sps:$4 sm:$0xff]   ;;  %v23166_v62 = vld [vmem:[#allocation2 + $0x4d8] ss:$44 sps:$4 sm:$0xff]  }
  0x85   :  { %v23167_v63 = vld [vmem:[#allocation2 + $0x52c] ss:$44 sps:$4 sm:$0xff]   ;;  %v23169_v0 = vld [vmem:[#allocation2 + $0x534] ss:$44 sps:$4 sm:$0xff]   ;;  %v23172_v2 = vld [vmem:[#allocation2 + $0x530] ss:$44 sps:$4 sm:$0xff]  }
  0x86   :  { %12418 = vmatpush1.bf16.msra.mxu0 %v23111_v22  ;;  %12934 = vmatpush1.bf16.msra.mxu1 %v23112_v23  ;;  %v23171_v1 = vld [vmem:[#allocation2 + $0x528] ss:$44 sps:$4 sm:$0xff]   ;;  %v23175_v3 = vld [vmem:[#allocation2 + $0x584] ss:$44 sps:$4 sm:$0xff]   ;;  %v126_v5 = vld [vmem:[%s27703_s0 + $0xb8] sm:$0xff]  ;;  %vm26826_vm2 = vmmov 0  }
  0x87   :  { %12419 = vmatprep.subr.bf16.mxu0 %v23113_v24  ;;  %12935 = vmatprep.subr.bf16.mxu1 %v23115_v25  ;;  %v103_v4 = vld [vmem:[%s27703_s0] sm:$0xff]  ;;  %v23178_v6 = vld [vmem:[#allocation2 + $0x58c] ss:$44 sps:$4 sm:$0xff]   ;;  %v23176_v8 = vld [vmem:[#allocation2 + $0x588] ss:$44 sps:$4 sm:$0xff]  }
  0x88   :  { %v23173_v7 = vld [vmem:[#allocation2 + $0x580] ss:$44 sps:$4 sm:$0xff]   ;;  %v26955_v9 = vpack.c.bf16 %v126_v5, %v103_v4  ;;  %v23181_v10 = vld [vmem:[#allocation2 + $0x5dc] ss:$44 sps:$4 sm:$0xff]   ;;  %v23184_v11 = vld [vmem:[#allocation2 + $0x5e4] ss:$44 sps:$4 sm:$0xff]  }
  0x89   :  { %v23179_v12 = vld [vmem:[#allocation2 + $0x5d8] ss:$44 sps:$4 sm:$0xff]   ;;  %v23182_v13 = vld [vmem:[#allocation2 + $0x5e0] ss:$44 sps:$4 sm:$0xff]   ;;  %v23190_v15 = vld [vmem:[#allocation2 + $0x63c] ss:$44 sps:$4 sm:$0xff]  }
  0x8a   :  { %12420 = vmatpush1.bf16.msra.mxu0 %v23117_v26  ;;  %12936 = vmatpush1.bf16.msra.mxu1 %v23118_v27  ;;  %v23187_v14 = vld [vmem:[#allocation2 + $0x634] ss:$44 sps:$4 sm:$0xff]   ;;  %v23185_v16 = vld [vmem:[#allocation2 + $0x630] ss:$44 sps:$4 sm:$0xff]   ;;  %v23188_v17 = vld [vmem:[#allocation2 + $0x638] ss:$44 sps:$4 sm:$0xff]  }
  0x8b   :  { %12421 = vmatprep.subr.bf16.mxu0 %v23119_v28  ;;  %12937 = vmatprep.subr.bf16.mxu1 %v23121_v29  ;;  %v23193_v18 = vld [vmem:[#allocation2 + $0x68c] ss:$44 sps:$4 sm:$0xff]   ;;  %v23196_v19 = vld [vmem:[#allocation2 + $0x694] ss:$44 sps:$4 sm:$0xff]   ;;  %v23194_v21 = vld [vmem:[#allocation2 + $0x690] ss:$44 sps:$4 sm:$0xff]  }
  0x8c   :  { %v23191_v20 = vld [vmem:[#allocation2 + $0x688] ss:$44 sps:$4 sm:$0xff]   ;;  %v23199_v22 = vld [vmem:[#allocation2 + $0x6e4] ss:$44 sps:$4 sm:$0xff]   ;;  %v23202_v23 = vld [vmem:[#allocation2 + $0x6ec] ss:$44 sps:$4 sm:$0xff]  }
  0x8d   :  { %v23197_v24 = vld [vmem:[#allocation2 + $0x6e0] ss:$44 sps:$4 sm:$0xff]   ;;  %v23200_v25 = vld [vmem:[#allocation2 + $0x6e8] ss:$44 sps:$4 sm:$0xff]   ;;  %v23208_v27 = vld [vmem:[#allocation2 + $0x744] ss:$44 sps:$4 sm:$0xff]  }
  0x8e   :  { %12422 = vmatpush1.bf16.msra.mxu0 %v23123_v30  ;;  %12938 = vmatpush1.bf16.msra.mxu1 %v23124_v31  ;;  %v23205_v26 = vld [vmem:[#allocation2 + $0x73c] ss:$44 sps:$4 sm:$0xff]   ;;  %v23203_v28 = vld [vmem:[#allocation2 + $0x738] ss:$44 sps:$4 sm:$0xff]   ;;  %v23206_v29 = vld [vmem:[#allocation2 + $0x740] ss:$44 sps:$4 sm:$0xff]  }
  0x8f   :  { %12423 = vmatprep.subr.bf16.mxu0 %v23125_v32  ;;  %12939 = vmatprep.subr.bf16.mxu1 %v23127_v33  ;;  %v23211_v30 = vld [vmem:[#allocation2 + $0x794] ss:$44 sps:$4 sm:$0xff]   ;;  %v23214_v31 = vld [vmem:[#allocation2 + $0x79c] ss:$44 sps:$4 sm:$0xff]   ;;  %v23232_v46 = vld [vmem:[#allocation2 + $0x8a4] ss:$44 sps:$4 sm:$0xff]  }
  0x90   :  { %v106_v32 = vld [vmem:[%s27703_s0 + $0x18] sm:$0xff]  ;;  %v129_v33 = vld [vmem:[%s27703_s0 + $0xd0] sm:$0xff] }
  0x91   :  { %v23227_v47 = vld [vmem:[#allocation2 + $0x898] ss:$44 sps:$4 sm:$0xff]   ;;  %v23257_v4 = vld [vmem:[#allocation2 + $0xa50] ss:$44 sps:$4 sm:$0xff]  }
  0x92   :  { %12424 = vmatpush1.bf16.msra.mxu0 %v23129_v34  ;;  %12940 = vmatpush1.bf16.msra.mxu1 %v23130_v35  ;;  %v23209_v34 = vld [vmem:[#allocation2 + $0x790] ss:$44 sps:$4 sm:$0xff]   ;;  %v23212_v35 = vld [vmem:[#allocation2 + $0x798] ss:$44 sps:$4 sm:$0xff]  }
  0x93   :  { %12425 = vmatprep.subr.bf16.mxu0 %v23131_v36  ;;  %12941 = vmatprep.subr.bf16.mxu1 %v23133_v37  ;;  %v26965_v36 = vpack.c.bf16 %v129_v33, %v106_v32  ;;  %v23217_v37 = vld [vmem:[#allocation2 + $0x7ec] ss:$44 sps:$4 sm:$0xff]   ;;  %v23290_v32 = vld [vmem:[#allocation2 + $0xc10] ss:$44 sps:$4 sm:$0xff]  }
  0x94   :  { %v23260_v5 = vld [vmem:[#allocation2 + $0xa58] ss:$44 sps:$4 sm:$0xff]  }
  0x95   :  { %v23295_v33 = vld [vmem:[#allocation2 + $0xc64] ss:$44 sps:$4 sm:$0xff]  }
  0x96   :  { %12426 = vmatpush1.bf16.msra.mxu0 %v23135_v38  ;;  %12942 = vmatpush1.bf16.msra.mxu1 %v23136_v39  ;;  %v23220_v38 = vld [vmem:[#allocation2 + $0x7f4] ss:$44 sps:$4 sm:$0xff]  }
  0x97   :  { %12427 = vmatprep.subr.bf16.mxu0 %v23137_v40  ;;  %12943 = vmatprep.subr.bf16.mxu1 %v23139_v41  ;;  %v23215_v39 = vld [vmem:[#allocation2 + $0x7e8] ss:$44 sps:$4 sm:$0xff]   ;;  %v23218_v40 = vld [vmem:[#allocation2 + $0x7f0] ss:$44 sps:$4 sm:$0xff]  }
  0x98   :  { %v23223_v41 = vld [vmem:[#allocation2 + $0x844] ss:$44 sps:$4 sm:$0xff]  }
  0x9a   :  { %12428 = vmatpush1.bf16.msra.mxu0 %v23141_v42  ;;  %12944 = vmatpush1.bf16.msra.mxu1 %v23142_v43  ;;  %v23226_v42 = vld [vmem:[#allocation2 + $0x84c] ss:$44 sps:$4 sm:$0xff]  }
  0x9b   :  { %12429 = vmatprep.subr.bf16.mxu0 %v23143_v44  ;;  %12945 = vmatprep.subr.bf16.mxu1 %v23145_v45  ;;  %v23221_v43 = vld [vmem:[#allocation2 + $0x840] ss:$44 sps:$4 sm:$0xff]   ;;  %v23224_v44 = vld [vmem:[#allocation2 + $0x848] ss:$44 sps:$4 sm:$0xff]  }
  0x9c   :  { %v23229_v45 = vld [vmem:[#allocation2 + $0x89c] ss:$44 sps:$4 sm:$0xff]  }
  0x9e   :  { %12430 = vmatpush1.bf16.msra.mxu0 %v23147_v48  ;;  %12946 = vmatpush1.bf16.msra.mxu1 %v23148_v49  ;;  %v23230_v48 = vld [vmem:[#allocation2 + $0x8a0] ss:$44 sps:$4 sm:$0xff]  }
  0x9f   :  { %12431 = vmatprep.subr.bf16.mxu0 %v23149_v51  ;;  %12947 = vmatprep.subr.bf16.mxu1 %v23151_v52  ;;  %v23235_v49 = vld [vmem:[#allocation2 + $0x8f4] ss:$44 sps:$4 sm:$0xff]   ;;  %v23238_v51 = vld [vmem:[#allocation2 + $0x8fc] ss:$44 sps:$4 sm:$0xff]  }
  0xa0   :  { %v23233_v52 = vld [vmem:[#allocation2 + $0x8f0] ss:$44 sps:$4 sm:$0xff]  }
  0xa2   :  { %12432 = vmatpush1.bf16.msra.mxu0 %v23153_v53  ;;  %12948 = vmatpush1.bf16.msra.mxu1 %v23154_v54  ;;  %v23236_v53 = vld [vmem:[#allocation2 + $0x8f8] ss:$44 sps:$4 sm:$0xff]  }
  0xa3   :  { %12433 = vmatprep.subr.bf16.mxu0 %v23155_v55  ;;  %12949 = vmatprep.subr.bf16.mxu1 %v23157_v56  ;;  %v23241_v54 = vld [vmem:[#allocation2 + $0x94c] ss:$44 sps:$4 sm:$0xff]   ;;  %v23244_v55 = vld [vmem:[#allocation2 + $0x954] ss:$44 sps:$4 sm:$0xff]  }
  0xa4   :  { %v23239_v56 = vld [vmem:[#allocation2 + $0x948] ss:$44 sps:$4 sm:$0xff]  }
  0xa6   :  { %12434 = vmatpush1.bf16.msra.mxu0 %v23159_v57  ;;  %12950 = vmatpush1.bf16.msra.mxu1 %v23160_v58  ;;  %v23242_v57 = vld [vmem:[#allocation2 + $0x950] ss:$44 sps:$4 sm:$0xff]  }
  0xa7   :  { %12435 = vmatprep.subr.bf16.mxu0 %v23161_v59  ;;  %12951 = vmatprep.subr.bf16.mxu1 %v23163_v60  ;;  %v23247_v58 = vld [vmem:[#allocation2 + $0x9a4] ss:$44 sps:$4 sm:$0xff]   ;;  %v23250_v59 = vld [vmem:[#allocation2 + $0x9ac] ss:$44 sps:$4 sm:$0xff]  }
  0xa8   :  { %v23245_v60 = vld [vmem:[#allocation2 + $0x9a0] ss:$44 sps:$4 sm:$0xff]  }
  0xaa   :  { %12436 = vmatpush1.bf16.msra.mxu0 %v23165_v61  ;;  %12952 = vmatpush1.bf16.msra.mxu1 %v23166_v62  ;;  %v23248_v61 = vld [vmem:[#allocation2 + $0x9a8] ss:$44 sps:$4 sm:$0xff]  }
  0xab   :  { %12437 = vmatprep.subr.bf16.mxu0 %v23167_v63  ;;  %12953 = vmatprep.subr.bf16.mxu1 %v23169_v0  ;;  %v23253_v62 = vld [vmem:[#allocation2 + $0x9fc] ss:$44 sps:$4 sm:$0xff]   ;;  %v23256_v63 = vld [vmem:[#allocation2 + $0xa04] ss:$44 sps:$4 sm:$0xff]  }
  0xac   :  { %v23251_v0 = vld [vmem:[#allocation2 + $0x9f8] ss:$44 sps:$4 sm:$0xff]  }
  0xae   :  { %12438 = vmatpush1.bf16.msra.mxu0 %v23171_v1  ;;  %12954 = vmatpush1.bf16.msra.mxu1 %v23172_v2  ;;  %v23254_v1 = vld [vmem:[#allocation2 + $0xa00] ss:$44 sps:$4 sm:$0xff]  }
  0xaf   :  { %12450 = vmatprep.subr.bf16.mxu0 %v23175_v3  ;;  %12966 = vmatprep.subr.bf16.mxu1 %v23178_v6  ;;  %v23259_v2 = vld [vmem:[#allocation2 + $0xa54] ss:$44 sps:$4 sm:$0xff]   ;;  %v23262_v3 = vld [vmem:[#allocation2 + $0xa5c] ss:$44 sps:$4 sm:$0xff]   ;;  %v23265_v6 = vld [vmem:[#allocation2 + $0xaac] ss:$44 sps:$4 sm:$0xff]  }
  0xb1   :  { %12440 = vmatmul.mubr.bf16.vlgmr.msra.gmra.mrb[0].mxu0 %v26955_v9  ;;  %12956 = vmatmul.mubr.bf16.vlgmr.msra.gmra.mrb[0].mxu1 %v26955_v9 }
  0xb2   :  { %12451 = vmatpush1.bf16.msra.mxu0 %v23173_v7  ;;  %12967 = vmatpush1.bf16.msra.mxu1 %v23176_v8  ;;  %v23268_v7 = vld [vmem:[#allocation2 + $0xab4] ss:$44 sps:$4 sm:$0xff]  }
  0xb3   :  { %12452 = vmatprep.subr.bf16.mxu0 %v23181_v10  ;;  %12968 = vmatprep.subr.bf16.mxu1 %v23184_v11  ;;  %v23263_v8 = vld [vmem:[#allocation2 + $0xaa8] ss:$44 sps:$4 sm:$0xff]   ;;  %v23266_v10 = vld [vmem:[#allocation2 + $0xab0] ss:$44 sps:$4 sm:$0xff]  }
  0xb4   :  { %12482 = vmatprep.mubr.bf16.mxu0 %v26965_v36  ;;  %12998 = vmatprep.mubr.bf16.mxu1 %v26965_v36  ;;  %v23271_v11 = vld [vmem:[#allocation2 + $0xb04] ss:$44 sps:$4 sm:$0xff]  }
  0xb6   :  { %12453 = vmatpush1.bf16.msra.mxu0 %v23179_v12  ;;  %12969 = vmatpush1.bf16.msra.mxu1 %v23182_v13  ;;  %v105_v12 = vld [vmem:[%s27703_s0 + $0x10] sm:$0xff]  ;;  %v128_v13 = vld [vmem:[%s27703_s0 + $0xc8] sm:$0xff] }
  0xb7   :  { %12454 = vmatprep.subr.bf16.mxu0 %v23187_v14  ;;  %12970 = vmatprep.subr.bf16.mxu1 %v23190_v15  ;;  %v23274_v14 = vld [vmem:[#allocation2 + $0xb0c] ss:$44 sps:$4 sm:$0xff]  }
  0xb8   :  { %v23269_v15 = vld [vmem:[#allocation2 + $0xb00] ss:$44 sps:$4 sm:$0xff]  }
  0xba   :  { %12455 = vmatpush1.bf16.msra.mxu0 %v23185_v16  ;;  %12971 = vmatpush1.bf16.msra.mxu1 %v23188_v17  ;;  %v23272_v16 = vld [vmem:[#allocation2 + $0xb08] ss:$44 sps:$4 sm:$0xff]   ;;  %v26975_v17 = vpack.c.bf16 %v128_v13, %v105_v12 }
  0xbb   :  { %12456 = vmatprep.subr.bf16.mxu0 %v23193_v18  ;;  %12972 = vmatprep.subr.bf16.mxu1 %v23196_v19  ;;  %v23277_v18 = vld [vmem:[#allocation2 + $0xb5c] ss:$44 sps:$4 sm:$0xff]   ;;  %v23280_v19 = vld [vmem:[#allocation2 + $0xb64] ss:$44 sps:$4 sm:$0xff]   ;;  %v23355_v12 = vld [vmem:[#allocation2 + $0xfd4] ss:$44 sps:$4 sm:$0xff]  }
  0xbc   :  { %v23358_v13 = vld [vmem:[#allocation2 + $0xfdc] ss:$44 sps:$4 sm:$0xff]  }
  0xbe   :  { %12457 = vmatpush1.bf16.msra.mxu0 %v23191_v20  ;;  %12973 = vmatpush1.bf16.msra.mxu1 %v23194_v21  ;;  %v108_v20 = vld [vmem:[%s27703_s0 + $0x28] sm:$0xff]  ;;  %v131_v21 = vld [vmem:[%s27703_s0 + $0xe0] sm:$0xff] }
  0xbf   :  { %12458 = vmatprep.subr.bf16.mxu0 %v23199_v22  ;;  %12974 = vmatprep.subr.bf16.mxu1 %v23202_v23  ;;  %v23275_v22 = vld [vmem:[#allocation2 + $0xb58] ss:$44 sps:$4 sm:$0xff]   ;;  %v23278_v23 = vld [vmem:[#allocation2 + $0xb60] ss:$44 sps:$4 sm:$0xff]  }
  0xc2   :  { %12459 = vmatpush1.bf16.msra.mxu0 %v23197_v24  ;;  %12975 = vmatpush1.bf16.msra.mxu1 %v23200_v25  ;;  %v26985_v24 = vpack.c.bf16 %v131_v21, %v108_v20  ;;  %v23283_v25 = vld [vmem:[#allocation2 + $0xbb4] ss:$44 sps:$4 sm:$0xff]   ;;  %v23362_v20 = vld [vmem:[#allocation2 + $0x1030] ss:$44 sps:$4 sm:$0xff]  }
  0xc3   :  { %12460 = vmatprep.subr.bf16.mxu0 %v23205_v26  ;;  %12976 = vmatprep.subr.bf16.mxu1 %v23208_v27  ;;  %v23286_v26 = vld [vmem:[#allocation2 + $0xbbc] ss:$44 sps:$4 sm:$0xff]   ;;  %v23367_v21 = vld [vmem:[#allocation2 + $0x1084] ss:$44 sps:$4 sm:$0xff]  }
  0xc4   :  { %v23281_v27 = vld [vmem:[#allocation2 + $0xbb0] ss:$44 sps:$4 sm:$0xff]  }
  0xc6   :  { %12461 = vmatpush1.bf16.msra.mxu0 %v23203_v28  ;;  %12977 = vmatpush1.bf16.msra.mxu1 %v23206_v29  ;;  %v23284_v28 = vld [vmem:[#allocation2 + $0xbb8] ss:$44 sps:$4 sm:$0xff]  }
  0xc7   :  { %12462 = vmatprep.subr.bf16.mxu0 %v23211_v30  ;;  %12978 = vmatprep.subr.bf16.mxu1 %v23214_v31  ;;  %v23289_v29 = vld [vmem:[#allocation2 + $0xc0c] ss:$44 sps:$4 sm:$0xff]   ;;  %v23292_v30 = vld [vmem:[#allocation2 + $0xc14] ss:$44 sps:$4 sm:$0xff]  }
  0xc8   :  { %v23287_v31 = vld [vmem:[#allocation2 + $0xc08] ss:$44 sps:$4 sm:$0xff]  }
  0xca   :  { %12463 = vmatpush1.bf16.msra.mxu0 %v23209_v34  ;;  %12979 = vmatpush1.bf16.msra.mxu1 %v23212_v35  ;;  %v23298_v34 = vld [vmem:[#allocation2 + $0xc6c] ss:$44 sps:$4 sm:$0xff]  }
  0xcb   :  { %12464 = vmatprep.subr.bf16.mxu0 %v23217_v37  ;;  %12980 = vmatprep.subr.bf16.mxu1 %v23220_v38  ;;  %v23293_v35 = vld [vmem:[#allocation2 + $0xc60] ss:$44 sps:$4 sm:$0xff]   ;;  %v23296_v37 = vld [vmem:[#allocation2 + $0xc68] ss:$44 sps:$4 sm:$0xff]  }
  0xcc   :  { %v23301_v38 = vld [vmem:[#allocation2 + $0xcbc] ss:$44 sps:$4 sm:$0xff]  }
  0xce   :  { %12465 = vmatpush1.bf16.msra.mxu0 %v23215_v39  ;;  %12981 = vmatpush1.bf16.msra.mxu1 %v23218_v40  ;;  %v23304_v39 = vld [vmem:[#allocation2 + $0xcc4] ss:$44 sps:$4 sm:$0xff]  }
  0xcf   :  { %12466 = vmatprep.subr.bf16.mxu0 %v23223_v41  ;;  %12982 = vmatprep.subr.bf16.mxu1 %v23226_v42  ;;  %v23299_v40 = vld [vmem:[#allocation2 + $0xcb8] ss:$44 sps:$4 sm:$0xff]   ;;  %v23302_v41 = vld [vmem:[#allocation2 + $0xcc0] ss:$44 sps:$4 sm:$0xff]  }
  0xd0   :  { %v23307_v42 = vld [vmem:[#allocation2 + $0xd14] ss:$44 sps:$4 sm:$0xff]  }
  0xd2   :  { %12467 = vmatpush1.bf16.msra.mxu0 %v23221_v43  ;;  %12983 = vmatpush1.bf16.msra.mxu1 %v23224_v44  ;;  %v23310_v43 = vld [vmem:[#allocation2 + $0xd1c] ss:$44 sps:$4 sm:$0xff]  }
  0xd3   :  { %12468 = vmatprep.subr.bf16.mxu0 %v23229_v45  ;;  %12984 = vmatprep.subr.bf16.mxu1 %v23232_v46  ;;  %v23305_v44 = vld [vmem:[#allocation2 + $0xd10] ss:$44 sps:$4 sm:$0xff]   ;;  %v23308_v45 = vld [vmem:[#allocation2 + $0xd18] ss:$44 sps:$4 sm:$0xff]  }
  0xd4   :  { %v23313_v46 = vld [vmem:[#allocation2 + $0xd6c] ss:$44 sps:$4 sm:$0xff]  }
  0xd6   :  { %12469 = vmatpush1.bf16.msra.mxu0 %v23227_v47  ;;  %12985 = vmatpush1.bf16.msra.mxu1 %v23230_v48  ;;  %v23316_v47 = vld [vmem:[#allocation2 + $0xd74] ss:$44 sps:$4 sm:$0xff]  }
  0xd7   :  { %12470 = vmatprep.subr.bf16.mxu0 %v23235_v49  ;;  %12986 = vmatprep.subr.bf16.mxu1 %v23238_v51  ;;  %v23311_v48 = vld [vmem:[#allocation2 + $0xd68] ss:$44 sps:$4 sm:$0xff]   ;;  %v23314_v49 = vld [vmem:[#allocation2 + $0xd70] ss:$44 sps:$4 sm:$0xff]  }
  0xd8   :  { %v23319_v51 = vld [vmem:[#allocation2 + $0xdc4] ss:$44 sps:$4 sm:$0xff]  }
  0xda   :  { %12471 = vmatpush1.bf16.msra.mxu0 %v23233_v52  ;;  %12987 = vmatpush1.bf16.msra.mxu1 %v23236_v53  ;;  %v23322_v52 = vld [vmem:[#allocation2 + $0xdcc] ss:$44 sps:$4 sm:$0xff]  }
  0xdb   :  { %12472 = vmatprep.subr.bf16.mxu0 %v23241_v54  ;;  %12988 = vmatprep.subr.bf16.mxu1 %v23244_v55  ;;  %v23317_v53 = vld [vmem:[#allocation2 + $0xdc0] ss:$44 sps:$4 sm:$0xff]   ;;  %v23320_v54 = vld [vmem:[#allocation2 + $0xdc8] ss:$44 sps:$4 sm:$0xff]  }
  0xdc   :  { %v23325_v55 = vld [vmem:[#allocation2 + $0xe1c] ss:$44 sps:$4 sm:$0xff]  }
  0xde   :  { %12473 = vmatpush1.bf16.msra.mxu0 %v23239_v56  ;;  %12989 = vmatpush1.bf16.msra.mxu1 %v23242_v57  ;;  %v23328_v56 = vld [vmem:[#allocation2 + $0xe24] ss:$44 sps:$4 sm:$0xff]  }
  0xdf   :  { %12474 = vmatprep.subr.bf16.mxu0 %v23247_v58  ;;  %12990 = vmatprep.subr.bf16.mxu1 %v23250_v59  ;;  %v23323_v57 = vld [vmem:[#allocation2 + $0xe18] ss:$44 sps:$4 sm:$0xff]   ;;  %v23326_v58 = vld [vmem:[#allocation2 + $0xe20] ss:$44 sps:$4 sm:$0xff]  }
  0xe0   :  { %v23331_v59 = vld [vmem:[#allocation2 + $0xe74] ss:$44 sps:$4 sm:$0xff]  }
  0xe2   :  { %12475 = vmatpush1.bf16.msra.mxu0 %v23245_v60  ;;  %12991 = vmatpush1.bf16.msra.mxu1 %v23248_v61  ;;  %v23334_v60 = vld [vmem:[#allocation2 + $0xe7c] ss:$44 sps:$4 sm:$0xff]  }
  0xe3   :  { %12476 = vmatprep.subr.bf16.mxu0 %v23253_v62  ;;  %12992 = vmatprep.subr.bf16.mxu1 %v23256_v63  ;;  %v23329_v61 = vld [vmem:[#allocation2 + $0xe70] ss:$44 sps:$4 sm:$0xff]   ;;  %v23332_v62 = vld [vmem:[#allocation2 + $0xe78] ss:$44 sps:$4 sm:$0xff]  }
  0xe4   :  { %v23337_v63 = vld [vmem:[#allocation2 + $0xecc] ss:$44 sps:$4 sm:$0xff]  }
  0xe6   :  { %12477 = vmatpush1.bf16.msra.mxu0 %v23251_v0  ;;  %12993 = vmatpush1.bf16.msra.mxu1 %v23254_v1  ;;  %v23340_v0 = vld [vmem:[#allocation2 + $0xed4] ss:$44 sps:$4 sm:$0xff]  }
  0xe7   :  { %12478 = vmatprep.subr.bf16.mxu0 %v23259_v2  ;;  %12994 = vmatprep.subr.bf16.mxu1 %v23262_v3  ;;  %v23335_v1 = vld [vmem:[#allocation2 + $0xec8] ss:$44 sps:$4 sm:$0xff]   ;;  %v23338_v2 = vld [vmem:[#allocation2 + $0xed0] ss:$44 sps:$4 sm:$0xff]  }
  0xe8   :  { %v23343_v3 = vld [vmem:[#allocation2 + $0xf24] ss:$44 sps:$4 sm:$0xff]  }
  0xea   :  { %12479 = vmatpush1.bf16.msra.mxu0 %v23257_v4  ;;  %12995 = vmatpush1.bf16.msra.mxu1 %v23260_v5  ;;  %v23346_v4 = vld [vmem:[#allocation2 + $0xf2c] ss:$44 sps:$4 sm:$0xff]  }
  0xeb   :  { %12480 = vmatprep.subr.bf16.mxu0 %v23265_v6  ;;  %12996 = vmatprep.subr.bf16.mxu1 %v23268_v7  ;;  %v23341_v5 = vld [vmem:[#allocation2 + $0xf20] ss:$44 sps:$4 sm:$0xff]   ;;  %v23344_v6 = vld [vmem:[#allocation2 + $0xf28] ss:$44 sps:$4 sm:$0xff]  }
  0xec   :  { %v23349_v7 = vld [vmem:[#allocation2 + $0xf7c] ss:$44 sps:$4 sm:$0xff]  }
  0xee   :  { %12481 = vmatpush1.bf16.msra.mxu0 %v23263_v8  ;;  %12997 = vmatpush1.bf16.msra.mxu1 %v23266_v10  ;;  %v23352_v8 = vld [vmem:[#allocation2 + $0xf84] ss:$44 sps:$4 sm:$0xff]  }
  0xef   :  { %12493 = vmatprep.subr.bf16.mxu0 %v23271_v11  ;;  %13009 = vmatprep.subr.bf16.mxu1 %v23274_v14  ;;  %v23347_v10 = vld [vmem:[#allocation2 + $0xf78] ss:$44 sps:$4 sm:$0xff]   ;;  %v23350_v11 = vld [vmem:[#allocation2 + $0xf80] ss:$44 sps:$4 sm:$0xff]   ;;  %v23353_v14 = vld [vmem:[#allocation2 + $0xfd0] ss:$44 sps:$4 sm:$0xff]  }
  0xf1   :  { %12483 = vmatmul.mubr.bf16.vlgmr.msra.gmra.mrb[0].mxu0 %v26975_v17  ;;  %12999 = vmatmul.mubr.bf16.vlgmr.msra.gmra.mrb[0].mxu1 %v26975_v17 }
  0xf2   :  { %12494 = vmatpush1.bf16.msra.mxu0 %v23269_v15  ;;  %13010 = vmatpush1.bf16.msra.mxu1 %v23272_v16  ;;  %v23356_v15 = vld [vmem:[#allocation2 + $0xfd8] ss:$44 sps:$4 sm:$0xff]  }
  0xf3   :  { %12495 = vmatprep.subr.bf16.mxu0 %v23277_v18  ;;  %13011 = vmatprep.subr.bf16.mxu1 %v23280_v19  ;;  %v23361_v16 = vld [vmem:[#allocation2 + $0x102c] ss:$44 sps:$4 sm:$0xff]   ;;  %v23364_v18 = vld [vmem:[#allocation2 + $0x1034] ss:$44 sps:$4 sm:$0xff]  }
  0xf4   :  { %12525 = vmatprep.mubr.bf16.mxu0 %v26985_v24  ;;  %13041 = vmatprep.mubr.bf16.mxu1 %v26985_v24  ;;  %v23359_v19 = vld [vmem:[#allocation2 + $0x1028] ss:$44 sps:$4 sm:$0xff]  }
  0xf6   :  { %12496 = vmatpush1.bf16.msra.mxu0 %v23275_v22  ;;  %13012 = vmatpush1.bf16.msra.mxu1 %v23278_v23  ;;  %v107_v22 = vld [vmem:[%s27703_s0 + $0x20] sm:$0xff]  ;;  %v130_v23 = vld [vmem:[%s27703_s0 + $0xd8] sm:$0xff] }
  0xf7   :  { %12497 = vmatprep.subr.bf16.mxu0 %v23283_v25  ;;  %13013 = vmatprep.subr.bf16.mxu1 %v23286_v26  ;;  %v23370_v25 = vld [vmem:[#allocation2 + $0x108c] ss:$44 sps:$4 sm:$0xff]  }
  0xf8   :  { %v23365_v26 = vld [vmem:[#allocation2 + $0x1080] ss:$44 sps:$4 sm:$0xff]  }
  0xfa   :  { %12498 = vmatpush1.bf16.msra.mxu0 %v23281_v27  ;;  %13014 = vmatpush1.bf16.msra.mxu1 %v23284_v28  ;;  %v23368_v27 = vld [vmem:[#allocation2 + $0x1088] ss:$44 sps:$4 sm:$0xff]   ;;  %v26995_v28 = vpack.c.bf16 %v130_v23, %v107_v22  ;;  %v23443_v22 = vld [vmem:[#allocation2 + $0x14f8] ss:$44 sps:$4 sm:$0xff]   ;;  %v23446_v23 = vld [vmem:[#allocation2 + $0x1500] ss:$44 sps:$4 sm:$0xff]  }
  0xfb   :  { %12499 = vmatprep.subr.bf16.mxu0 %v23289_v29  ;;  %13015 = vmatprep.subr.bf16.mxu1 %v23292_v30  ;;  %v110_v29 = vld [vmem:[%s27703_s0 + $0x38] sm:$0xff]  ;;  %v133_v30 = vld [vmem:[%s27703_s0 + $0xf0] sm:$0xff] }
  0xfe   :  { %12500 = vmatpush1.bf16.msra.mxu0 %v23287_v31  ;;  %13016 = vmatpush1.bf16.msra.mxu1 %v23290_v32  ;;  %v23373_v31 = vld [vmem:[#allocation2 + $0x10dc] ss:$44 sps:$4 sm:$0xff]   ;;  %v23376_v32 = vld [vmem:[#allocation2 + $0x10e4] ss:$44 sps:$4 sm:$0xff]  }
  0xff   :  { %12501 = vmatprep.subr.bf16.mxu0 %v23295_v33  ;;  %13017 = vmatprep.subr.bf16.mxu1 %v23298_v34  ;;  %v27003_v33 = vpack.c.bf16 %v133_v30, %v110_v29  ;;  %v23371_v34 = vld [vmem:[#allocation2 + $0x10d8] ss:$44 sps:$4 sm:$0xff]  }
 0x100   :  { %v23452_v29 = vld [vmem:[#allocation2 + $0x1558] ss:$44 sps:$4 sm:$0xff]  }
 0x101   :  { %v23457_v30 = vld [vmem:[#allocation2 + $0x15ac] ss:$44 sps:$4 sm:$0xff]  }
 0x102   :  { %12502 = vmatpush1.bf16.msra.mxu0 %v23293_v35  ;;  %13018 = vmatpush1.bf16.msra.mxu1 %v23296_v37  ;;  %v23374_v35 = vld [vmem:[#allocation2 + $0x10e0] ss:$44 sps:$4 sm:$0xff]  }
 0x103   :  { %12503 = vmatprep.subr.bf16.mxu0 %v23301_v38  ;;  %13019 = vmatprep.subr.bf16.mxu1 %v23304_v39  ;;  %v23379_v37 = vld [vmem:[#allocation2 + $0x1134] ss:$44 sps:$4 sm:$0xff]   ;;  %v23382_v38 = vld [vmem:[#allocation2 + $0x113c] ss:$44 sps:$4 sm:$0xff]  }
 0x104   :  { %v23377_v39 = vld [vmem:[#allocation2 + $0x1130] ss:$44 sps:$4 sm:$0xff]  }
 0x106   :  { %12504 = vmatpush1.bf16.msra.mxu0 %v23299_v40  ;;  %13020 = vmatpush1.bf16.msra.mxu1 %v23302_v41  ;;  %v23380_v40 = vld [vmem:[#allocation2 + $0x1138] ss:$44 sps:$4 sm:$0xff]  }
 0x107   :  { %12505 = vmatprep.subr.bf16.mxu0 %v23307_v42  ;;  %13021 = vmatprep.subr.bf16.mxu1 %v23310_v43  ;;  %v23385_v41 = vld [vmem:[#allocation2 + $0x118c] ss:$44 sps:$4 sm:$0xff]   ;;  %v23388_v42 = vld [vmem:[#allocation2 + $0x1194] ss:$44 sps:$4 sm:$0xff]  }
 0x108   :  { %v23383_v43 = vld [vmem:[#allocation2 + $0x1188] ss:$44 sps:$4 sm:$0xff]  }
 0x10a   :  { %12506 = vmatpush1.bf16.msra.mxu0 %v23305_v44  ;;  %13022 = vmatpush1.bf16.msra.mxu1 %v23308_v45  ;;  %v23386_v44 = vld [vmem:[#allocation2 + $0x1190] ss:$44 sps:$4 sm:$0xff]  }
 0x10b   :  { %12507 = vmatprep.subr.bf16.mxu0 %v23313_v46  ;;  %13023 = vmatprep.subr.bf16.mxu1 %v23316_v47  ;;  %v23391_v45 = vld [vmem:[#allocation2 + $0x11e4] ss:$44 sps:$4 sm:$0xff]   ;;  %v23394_v46 = vld [vmem:[#allocation2 + $0x11ec] ss:$44 sps:$4 sm:$0xff]  }
 0x10c   :  { %v23389_v47 = vld [vmem:[#allocation2 + $0x11e0] ss:$44 sps:$4 sm:$0xff]  }
 0x10e   :  { %12508 = vmatpush1.bf16.msra.mxu0 %v23311_v48  ;;  %13024 = vmatpush1.bf16.msra.mxu1 %v23314_v49  ;;  %v23392_v48 = vld [vmem:[#allocation2 + $0x11e8] ss:$44 sps:$4 sm:$0xff]  }
 0x10f   :  { %12509 = vmatprep.subr.bf16.mxu0 %v23319_v51  ;;  %13025 = vmatprep.subr.bf16.mxu1 %v23322_v52  ;;  %v23397_v49 = vld [vmem:[#allocation2 + $0x123c] ss:$44 sps:$4 sm:$0xff]   ;;  %v23400_v51 = vld [vmem:[#allocation2 + $0x1244] ss:$44 sps:$4 sm:$0xff]  }
 0x110   :  { %v23395_v52 = vld [vmem:[#allocation2 + $0x1238] ss:$44 sps:$4 sm:$0xff]  }
 0x112   :  { %12510 = vmatpush1.bf16.msra.mxu0 %v23317_v53  ;;  %13026 = vmatpush1.bf16.msra.mxu1 %v23320_v54  ;;  %v23398_v53 = vld [vmem:[#allocation2 + $0x1240] ss:$44 sps:$4 sm:$0xff]  }
 0x113   :  { %12511 = vmatprep.subr.bf16.mxu0 %v23325_v55  ;;  %13027 = vmatprep.subr.bf16.mxu1 %v23328_v56  ;;  %v23403_v54 = vld [vmem:[#allocation2 + $0x1294] ss:$44 sps:$4 sm:$0xff]   ;;  %v23406_v55 = vld [vmem:[#allocation2 + $0x129c] ss:$44 sps:$4 sm:$0xff]  }
 0x114   :  { %v23401_v56 = vld [vmem:[#allocation2 + $0x1290] ss:$44 sps:$4 sm:$0xff]  }
 0x116   :  { %12512 = vmatpush1.bf16.msra.mxu0 %v23323_v57  ;;  %13028 = vmatpush1.bf16.msra.mxu1 %v23326_v58  ;;  %v23404_v57 = vld [vmem:[#allocation2 + $0x1298] ss:$44 sps:$4 sm:$0xff]  }
 0x117   :  { %12513 = vmatprep.subr.bf16.mxu0 %v23331_v59  ;;  %13029 = vmatprep.subr.bf16.mxu1 %v23334_v60  ;;  %v23409_v58 = vld [vmem:[#allocation2 + $0x12ec] ss:$44 sps:$4 sm:$0xff]   ;;  %v23412_v59 = vld [vmem:[#allocation2 + $0x12f4] ss:$44 sps:$4 sm:$0xff]  }
 0x118   :  { %v23407_v60 = vld [vmem:[#allocation2 + $0x12e8] ss:$44 sps:$4 sm:$0xff]  }
 0x11a   :  { %12514 = vmatpush1.bf16.msra.mxu0 %v23329_v61  ;;  %13030 = vmatpush1.bf16.msra.mxu1 %v23332_v62  ;;  %v23410_v61 = vld [vmem:[#allocation2 + $0x12f0] ss:$44 sps:$4 sm:$0xff]  }
 0x11b   :  { %12515 = vmatprep.subr.bf16.mxu0 %v23337_v63  ;;  %13031 = vmatprep.subr.bf16.mxu1 %v23340_v0  ;;  %v23415_v62 = vld [vmem:[#allocation2 + $0x1344] ss:$44 sps:$4 sm:$0xff]   ;;  %v23418_v63 = vld [vmem:[#allocation2 + $0x134c] ss:$44 sps:$4 sm:$0xff]  }
 0x11c   :  { %v23413_v0 = vld [vmem:[#allocation2 + $0x1340] ss:$44 sps:$4 sm:$0xff]  }
 0x11e   :  { %12516 = vmatpush1.bf16.msra.mxu0 %v23335_v1  ;;  %13032 = vmatpush1.bf16.msra.mxu1 %v23338_v2  ;;  %v23416_v1 = vld [vmem:[#allocation2 + $0x1348] ss:$44 sps:$4 sm:$0xff]  }
 0x11f   :  { %12517 = vmatprep.subr.bf16.mxu0 %v23343_v3  ;;  %13033 = vmatprep.subr.bf16.mxu1 %v23346_v4  ;;  %v23421_v2 = vld [vmem:[#allocation2 + $0x139c] ss:$44 sps:$4 sm:$0xff]   ;;  %v23424_v3 = vld [vmem:[#allocation2 + $0x13a4] ss:$44 sps:$4 sm:$0xff]  }
 0x120   :  { %v23419_v4 = vld [vmem:[#allocation2 + $0x1398] ss:$44 sps:$4 sm:$0xff]  }
 0x122   :  { %12518 = vmatpush1.bf16.msra.mxu0 %v23341_v5  ;;  %13034 = vmatpush1.bf16.msra.mxu1 %v23344_v6  ;;  %v23422_v5 = vld [vmem:[#allocation2 + $0x13a0] ss:$44 sps:$4 sm:$0xff]  }
 0x123   :  { %12519 = vmatprep.subr.bf16.mxu0 %v23349_v7  ;;  %13035 = vmatprep.subr.bf16.mxu1 %v23352_v8  ;;  %v23427_v6 = vld [vmem:[#allocation2 + $0x13f4] ss:$44 sps:$4 sm:$0xff]   ;;  %v23430_v7 = vld [vmem:[#allocation2 + $0x13fc] ss:$44 sps:$4 sm:$0xff]  }
 0x124   :  { %v23425_v8 = vld [vmem:[#allocation2 + $0x13f0] ss:$44 sps:$4 sm:$0xff]  }
 0x126   :  { %12520 = vmatpush1.bf16.msra.mxu0 %v23347_v10  ;;  %13036 = vmatpush1.bf16.msra.mxu1 %v23350_v11  ;;  %v23428_v10 = vld [vmem:[#allocation2 + $0x13f8] ss:$44 sps:$4 sm:$0xff]  }
 0x127   :  { %12521 = vmatprep.subr.bf16.mxu0 %v23355_v12  ;;  %13037 = vmatprep.subr.bf16.mxu1 %v23358_v13  ;;  %v23433_v11 = vld [vmem:[#allocation2 + $0x144c] ss:$44 sps:$4 sm:$0xff]   ;;  %v23436_v12 = vld [vmem:[#allocation2 + $0x1454] ss:$44 sps:$4 sm:$0xff]  }
 0x128   :  { %v23431_v13 = vld [vmem:[#allocation2 + $0x1448] ss:$44 sps:$4 sm:$0xff]  }
 0x12a   :  { %12522 = vmatpush1.bf16.msra.mxu0 %v23353_v14  ;;  %13038 = vmatpush1.bf16.msra.mxu1 %v23356_v15  ;;  %v23434_v14 = vld [vmem:[#allocation2 + $0x1450] ss:$44 sps:$4 sm:$0xff]  }
 0x12b   :  { %12523 = vmatprep.subr.bf16.mxu0 %v23361_v16  ;;  %13039 = vmatprep.subr.bf16.mxu1 %v23364_v18  ;;  %v23439_v15 = vld [vmem:[#allocation2 + $0x14a4] ss:$44 sps:$4 sm:$0xff]   ;;  %v23442_v16 = vld [vmem:[#allocation2 + $0x14ac] ss:$44 sps:$4 sm:$0xff]  }
 0x12c   :  { %v23437_v18 = vld [vmem:[#allocation2 + $0x14a0] ss:$44 sps:$4 sm:$0xff]  }
 0x12e   :  { %12524 = vmatpush1.bf16.msra.mxu0 %v23359_v19  ;;  %13040 = vmatpush1.bf16.msra.mxu1 %v23362_v20  ;;  %v23440_v19 = vld [vmem:[#allocation2 + $0x14a8] ss:$44 sps:$4 sm:$0xff]  }
 0x12f   :  { %12536 = vmatprep.subr.bf16.mxu0 %v23367_v21  ;;  %13052 = vmatprep.subr.bf16.mxu1 %v23370_v25  ;;  %v23445_v20 = vld [vmem:[#allocation2 + $0x14fc] ss:$44 sps:$4 sm:$0xff]   ;;  %v23448_v21 = vld [vmem:[#allocation2 + $0x1504] ss:$44 sps:$4 sm:$0xff]   ;;  %v23451_v25 = vld [vmem:[#allocation2 + $0x1554] ss:$44 sps:$4 sm:$0xff]  }
 0x131   :  { %12526 = vmatmul.mubr.bf16.vlgmr.msra.gmra.mrb[0].mxu0 %v26995_v28  ;;  %13042 = vmatmul.mubr.bf16.vlgmr.msra.gmra.mrb[0].mxu1 %v26995_v28 }
 0x132   :  { %12537 = vmatpush1.bf16.msra.mxu0 %v23365_v26  ;;  %13053 = vmatpush1.bf16.msra.mxu1 %v23368_v27  ;;  %v23454_v26 = vld [vmem:[#allocation2 + $0x155c] ss:$44 sps:$4 sm:$0xff]  }
 0x133   :  { %12538 = vmatprep.subr.bf16.mxu0 %v23373_v31  ;;  %13054 = vmatprep.subr.bf16.mxu1 %v23376_v32  ;;  %v23449_v27 = vld [vmem:[#allocation2 + $0x1550] ss:$44 sps:$4 sm:$0xff]   ;;  %v23460_v31 = vld [vmem:[#allocation2 + $0x15b4] ss:$44 sps:$4 sm:$0xff]  }
 0x134   :  { %12568 = vmatprep.mubr.bf16.mxu0 %v27003_v33  ;;  %13084 = vmatprep.mubr.bf16.mxu1 %v27003_v33  ;;  %v23455_v32 = vld [vmem:[#allocation2 + $0x15a8] ss:$44 sps:$4 sm:$0xff]  }
 0x136   :  { %12539 = vmatpush1.bf16.msra.mxu0 %v23371_v34  ;;  %13055 = vmatpush1.bf16.msra.mxu1 %v23374_v35  ;;  %v23458_v34 = vld [vmem:[#allocation2 + $0x15b0] ss:$44 sps:$4 sm:$0xff]  }
 0x137   :  { %12540 = vmatprep.subr.bf16.mxu0 %v23379_v37  ;;  %13056 = vmatprep.subr.bf16.mxu1 %v23382_v38  ;;  %v23463_v35 = vld [vmem:[#allocation2 + $0x1604] ss:$44 sps:$4 sm:$0xff]   ;;  %v132_v38 = vld [vmem:[%s27703_s0 + $0xe8] sm:$0xff] }
 0x138   :  { %v109_v37 = vld [vmem:[%s27703_s0 + $0x30] sm:$0xff] }
 0x13a   :  { %12541 = vmatpush1.bf16.msra.mxu0 %v23377_v39  ;;  %13057 = vmatpush1.bf16.msra.mxu1 %v23380_v40  ;;  %v23466_v39 = vld [vmem:[#allocation2 + $0x160c] ss:$44 sps:$4 sm:$0xff]  }
 0x13b   :  { %12542 = vmatprep.subr.bf16.mxu0 %v23385_v41  ;;  %13058 = vmatprep.subr.bf16.mxu1 %v23388_v42  ;;  %v23461_v40 = vld [vmem:[#allocation2 + $0x1600] ss:$44 sps:$4 sm:$0xff]   ;;  %v23464_v41 = vld [vmem:[#allocation2 + $0x1608] ss:$44 sps:$4 sm:$0xff]   ;;  %v27015_v42 = vpack.c.bf16 %v132_v38, %v109_v37  ;;  %v23544_v38 = vld [vmem:[#allocation2 + $0x1a84] ss:$44 sps:$4 sm:$0xff]  }
 0x13c   :  { %v23541_v37 = vld [vmem:[#allocation2 + $0x1a7c] ss:$44 sps:$4 sm:$0xff]  }
 0x13e   :  { %12543 = vmatpush1.bf16.msra.mxu0 %v23383_v43  ;;  %13059 = vmatpush1.bf16.msra.mxu1 %v23386_v44  ;;  %v112_v43 = vld [vmem:[%s27703_s0 + $0x48] sm:$0xff]  ;;  %v135_v44 = vld [vmem:[%s27703_s0 + $0x100] sm:$0xff] }
 0x13f   :  { %12544 = vmatprep.subr.bf16.mxu0 %v23391_v45  ;;  %13060 = vmatprep.subr.bf16.mxu1 %v23394_v46  ;;  %v23469_v45 = vld [vmem:[#allocation2 + $0x165c] ss:$44 sps:$4 sm:$0xff]   ;;  %v23472_v46 = vld [vmem:[#allocation2 + $0x1664] ss:$44 sps:$4 sm:$0xff]  }
 0x142   :  { %12545 = vmatpush1.bf16.msra.mxu0 %v23389_v47  ;;  %13061 = vmatpush1.bf16.msra.mxu1 %v23392_v48  ;;  %v27023_v47 = vpack.c.bf16 %v135_v44, %v112_v43  ;;  %v23467_v48 = vld [vmem:[#allocation2 + $0x1658] ss:$44 sps:$4 sm:$0xff]   ;;  %v23550_v43 = vld [vmem:[#allocation2 + $0x1adc] ss:$44 sps:$4 sm:$0xff]  }
 0x143   :  { %12546 = vmatprep.subr.bf16.mxu0 %v23397_v49  ;;  %13062 = vmatprep.subr.bf16.mxu1 %v23400_v51  ;;  %v23470_v49 = vld [vmem:[#allocation2 + $0x1660] ss:$44 sps:$4 sm:$0xff]   ;;  %v23545_v44 = vld [vmem:[#allocation2 + $0x1ad0] ss:$44 sps:$4 sm:$0xff]  }
 0x144   :  { %v23475_v51 = vld [vmem:[#allocation2 + $0x16b4] ss:$44 sps:$4 sm:$0xff]  }
 0x146   :  { %12547 = vmatpush1.bf16.msra.mxu0 %v23395_v52  ;;  %13063 = vmatpush1.bf16.msra.mxu1 %v23398_v53  ;;  %v23478_v52 = vld [vmem:[#allocation2 + $0x16bc] ss:$44 sps:$4 sm:$0xff]  }
 0x147   :  { %12548 = vmatprep.subr.bf16.mxu0 %v23403_v54  ;;  %13064 = vmatprep.subr.bf16.mxu1 %v23406_v55  ;;  %v23473_v53 = vld [vmem:[#allocation2 + $0x16b0] ss:$44 sps:$4 sm:$0xff]   ;;  %v23476_v54 = vld [vmem:[#allocation2 + $0x16b8] ss:$44 sps:$4 sm:$0xff]  }
 0x148   :  { %v23481_v55 = vld [vmem:[#allocation2 + $0x170c] ss:$44 sps:$4 sm:$0xff]  }
 0x14a   :  { %12549 = vmatpush1.bf16.msra.mxu0 %v23401_v56  ;;  %13065 = vmatpush1.bf16.msra.mxu1 %v23404_v57  ;;  %v23484_v56 = vld [vmem:[#allocation2 + $0x1714] ss:$44 sps:$4 sm:$0xff]  }
 0x14b   :  { %12550 = vmatprep.subr.bf16.mxu0 %v23409_v58  ;;  %13066 = vmatprep.subr.bf16.mxu1 %v23412_v59  ;;  %v23479_v57 = vld [vmem:[#allocation2 + $0x1708] ss:$44 sps:$4 sm:$0xff]   ;;  %v23482_v58 = vld [vmem:[#allocation2 + $0x1710] ss:$44 sps:$4 sm:$0xff]  }
 0x14c   :  { %v23487_v59 = vld [vmem:[#allocation2 + $0x1764] ss:$44 sps:$4 sm:$0xff]  }
 0x14e   :  { %12551 = vmatpush1.bf16.msra.mxu0 %v23407_v60  ;;  %13067 = vmatpush1.bf16.msra.mxu1 %v23410_v61  ;;  %v23490_v60 = vld [vmem:[#allocation2 + $0x176c] ss:$44 sps:$4 sm:$0xff]  }
 0x14f   :  { %12552 = vmatprep.subr.bf16.mxu0 %v23415_v62  ;;  %13068 = vmatprep.subr.bf16.mxu1 %v23418_v63  ;;  %v23485_v61 = vld [vmem:[#allocation2 + $0x1760] ss:$44 sps:$4 sm:$0xff]   ;;  %v23488_v62 = vld [vmem:[#allocation2 + $0x1768] ss:$44 sps:$4 sm:$0xff]  }
 0x150   :  { %v23493_v63 = vld [vmem:[#allocation2 + $0x17bc] ss:$44 sps:$4 sm:$0xff]  }
 0x152   :  { %12553 = vmatpush1.bf16.msra.mxu0 %v23413_v0  ;;  %13069 = vmatpush1.bf16.msra.mxu1 %v23416_v1  ;;  %v23496_v0 = vld [vmem:[#allocation2 + $0x17c4] ss:$44 sps:$4 sm:$0xff]  }
 0x153   :  { %12554 = vmatprep.subr.bf16.mxu0 %v23421_v2  ;;  %13070 = vmatprep.subr.bf16.mxu1 %v23424_v3  ;;  %v23491_v1 = vld [vmem:[#allocation2 + $0x17b8] ss:$44 sps:$4 sm:$0xff]   ;;  %v23494_v2 = vld [vmem:[#allocation2 + $0x17c0] ss:$44 sps:$4 sm:$0xff]  }
 0x154   :  { %v23499_v3 = vld [vmem:[#allocation2 + $0x1814] ss:$44 sps:$4 sm:$0xff]  }
 0x156   :  { %12555 = vmatpush1.bf16.msra.mxu0 %v23419_v4  ;;  %13071 = vmatpush1.bf16.msra.mxu1 %v23422_v5  ;;  %v23502_v4 = vld [vmem:[#allocation2 + $0x181c] ss:$44 sps:$4 sm:$0xff]  }
 0x157   :  { %12556 = vmatprep.subr.bf16.mxu0 %v23427_v6  ;;  %13072 = vmatprep.subr.bf16.mxu1 %v23430_v7  ;;  %v23497_v5 = vld [vmem:[#allocation2 + $0x1810] ss:$44 sps:$4 sm:$0xff]   ;;  %v23500_v6 = vld [vmem:[#allocation2 + $0x1818] ss:$44 sps:$4 sm:$0xff]  }
 0x158   :  { %v23505_v7 = vld [vmem:[#allocation2 + $0x186c] ss:$44 sps:$4 sm:$0xff]  }
 0x15a   :  { %12557 = vmatpush1.bf16.msra.mxu0 %v23425_v8  ;;  %13073 = vmatpush1.bf16.msra.mxu1 %v23428_v10  ;;  %v23508_v8 = vld [vmem:[#allocation2 + $0x1874] ss:$44 sps:$4 sm:$0xff]  }
 0x15b   :  { %12558 = vmatprep.subr.bf16.mxu0 %v23433_v11  ;;  %13074 = vmatprep.subr.bf16.mxu1 %v23436_v12  ;;  %v23503_v10 = vld [vmem:[#allocation2 + $0x1868] ss:$44 sps:$4 sm:$0xff]   ;;  %v23506_v11 = vld [vmem:[#allocation2 + $0x1870] ss:$44 sps:$4 sm:$0xff]  }
 0x15c   :  { %v23511_v12 = vld [vmem:[#allocation2 + $0x18c4] ss:$44 sps:$4 sm:$0xff]  }
 0x15e   :  { %12559 = vmatpush1.bf16.msra.mxu0 %v23431_v13  ;;  %13075 = vmatpush1.bf16.msra.mxu1 %v23434_v14  ;;  %v23514_v13 = vld [vmem:[#allocation2 + $0x18cc] ss:$44 sps:$4 sm:$0xff]  }
 0x15f   :  { %12560 = vmatprep.subr.bf16.mxu0 %v23439_v15  ;;  %13076 = vmatprep.subr.bf16.mxu1 %v23442_v16  ;;  %v23509_v14 = vld [vmem:[#allocation2 + $0x18c0] ss:$44 sps:$4 sm:$0xff]   ;;  %v23512_v15 = vld [vmem:[#allocation2 + $0x18c8] ss:$44 sps:$4 sm:$0xff]  }
 0x160   :  { %v23517_v16 = vld [vmem:[#allocation2 + $0x191c] ss:$44 sps:$4 sm:$0xff]  }
 0x162   :  { %12561 = vmatpush1.bf16.msra.mxu0 %v23437_v18  ;;  %13077 = vmatpush1.bf16.msra.mxu1 %v23440_v19  ;;  %v23520_v18 = vld [vmem:[#allocation2 + $0x1924] ss:$44 sps:$4 sm:$0xff]  }
 0x163   :  { %12562 = vmatprep.subr.bf16.mxu0 %v23445_v20  ;;  %13078 = vmatprep.subr.bf16.mxu1 %v23448_v21  ;;  %v23515_v19 = vld [vmem:[#allocation2 + $0x1918] ss:$44 sps:$4 sm:$0xff]   ;;  %v23518_v20 = vld [vmem:[#allocation2 + $0x1920] ss:$44 sps:$4 sm:$0xff]  }
 0x164   :  { %v23523_v21 = vld [vmem:[#allocation2 + $0x1974] ss:$44 sps:$4 sm:$0xff]  }
 0x166   :  { %12563 = vmatpush1.bf16.msra.mxu0 %v23443_v22  ;;  %13079 = vmatpush1.bf16.msra.mxu1 %v23446_v23  ;;  %v23526_v22 = vld [vmem:[#allocation2 + $0x197c] ss:$44 sps:$4 sm:$0xff]  }
 0x167   :  { %12564 = vmatprep.subr.bf16.mxu0 %v23451_v25  ;;  %13080 = vmatprep.subr.bf16.mxu1 %v23454_v26  ;;  %v23521_v23 = vld [vmem:[#allocation2 + $0x1970] ss:$44 sps:$4 sm:$0xff]   ;;  %v23524_v25 = vld [vmem:[#allocation2 + $0x1978] ss:$44 sps:$4 sm:$0xff]  }
 0x168   :  { %v23529_v26 = vld [vmem:[#allocation2 + $0x19cc] ss:$44 sps:$4 sm:$0xff]  }
 0x16a   :  { %12565 = vmatpush1.bf16.msra.mxu0 %v23449_v27  ;;  %13081 = vmatpush1.bf16.msra.mxu1 %v23452_v29  ;;  %v23532_v27 = vld [vmem:[#allocation2 + $0x19d4] ss:$44 sps:$4 sm:$0xff]  }
 0x16b   :  { %12566 = vmatprep.subr.bf16.mxu0 %v23457_v30  ;;  %13082 = vmatprep.subr.bf16.mxu1 %v23460_v31  ;;  %v23527_v29 = vld [vmem:[#allocation2 + $0x19c8] ss:$44 sps:$4 sm:$0xff]   ;;  %v23530_v30 = vld [vmem:[#allocation2 + $0x19d0] ss:$44 sps:$4 sm:$0xff]  }
 0x16c   :  { %v23535_v31 = vld [vmem:[#allocation2 + $0x1a24] ss:$44 sps:$4 sm:$0xff]  }
 0x16e   :  { %12567 = vmatpush1.bf16.msra.mxu0 %v23455_v32  ;;  %13083 = vmatpush1.bf16.msra.mxu1 %v23458_v34  ;;  %v23538_v32 = vld [vmem:[#allocation2 + $0x1a2c] ss:$44 sps:$4 sm:$0xff]  }
 0x16f   :  { %12579 = vmatprep.subr.bf16.mxu0 %v23463_v35  ;;  %13095 = vmatprep.subr.bf16.mxu1 %v23466_v39  ;;  %v23533_v34 = vld [vmem:[#allocation2 + $0x1a20] ss:$44 sps:$4 sm:$0xff]   ;;  %v23536_v35 = vld [vmem:[#allocation2 + $0x1a28] ss:$44 sps:$4 sm:$0xff]   ;;  %v23539_v39 = vld [vmem:[#allocation2 + $0x1a78] ss:$44 sps:$4 sm:$0xff]  }
 0x171   :  { %12569 = vmatmul.mubr.bf16.vlgmr.msra.gmra.mrb[0].mxu0 %v27015_v42  ;;  %13085 = vmatmul.mubr.bf16.vlgmr.msra.gmra.mrb[0].mxu1 %v27015_v42 }
 0x172   :  { %12580 = vmatpush1.bf16.msra.mxu0 %v23461_v40  ;;  %13096 = vmatpush1.bf16.msra.mxu1 %v23464_v41  ;;  %v23542_v40 = vld [vmem:[#allocation2 + $0x1a80] ss:$44 sps:$4 sm:$0xff]  }
 0x173   :  { %12581 = vmatprep.subr.bf16.mxu0 %v23469_v45  ;;  %13097 = vmatprep.subr.bf16.mxu1 %v23472_v46  ;;  %v23547_v41 = vld [vmem:[#allocation2 + $0x1ad4] ss:$44 sps:$4 sm:$0xff]   ;;  %v23548_v45 = vld [vmem:[#allocation2 + $0x1ad8] ss:$44 sps:$4 sm:$0xff]  }
 0x174   :  { %12611 = vmatprep.mubr.bf16.mxu0 %v27023_v47  ;;  %13127 = vmatprep.mubr.bf16.mxu1 %v27023_v47  ;;  %v23553_v46 = vld [vmem:[#allocation2 + $0x1b2c] ss:$44 sps:$4 sm:$0xff]  }
 0x176   :  { %12582 = vmatpush1.bf16.msra.mxu0 %v23467_v48  ;;  %13098 = vmatpush1.bf16.msra.mxu1 %v23470_v49  ;;  %v23556_v48 = vld [vmem:[#allocation2 + $0x1b34] ss:$44 sps:$4 sm:$0xff]  }
 0x177   :  { %12583 = vmatprep.subr.bf16.mxu0 %v23475_v51  ;;  %13099 = vmatprep.subr.bf16.mxu1 %v23478_v52  ;;  %v23551_v49 = vld [vmem:[#allocation2 + $0x1b28] ss:$44 sps:$4 sm:$0xff]   ;;  %v23554_v51 = vld [vmem:[#allocation2 + $0x1b30] ss:$44 sps:$4 sm:$0xff]  }
 0x178   :  { %v23559_v52 = vld [vmem:[#allocation2 + $0x1b84] ss:$44 sps:$4 sm:$0xff]  }
 0x17a   :  { %12584 = vmatpush1.bf16.msra.mxu0 %v23473_v53  ;;  %13100 = vmatpush1.bf16.msra.mxu1 %v23476_v54  ;;  %v23562_v53 = vld [vmem:[#allocation2 + $0x1b8c] ss:$44 sps:$4 sm:$0xff]   ;;  %v111_v54 = vld [vmem:[%s27703_s0 + $0x40] sm:$0xff] }
 0x17b   :  { %12585 = vmatprep.subr.bf16.mxu0 %v23481_v55  ;;  %13101 = vmatprep.subr.bf16.mxu1 %v23484_v56  ;;  %v134_v55 = vld [vmem:[%s27703_s0 + $0xf8] sm:$0xff] }
 0x17c   :  { %v114_v56 = vld [vmem:[%s27703_s0 + $0x58] sm:$0xff] }
 0x17e   :  { %12586 = vmatpush1.bf16.msra.mxu0 %v23479_v57  ;;  %13102 = vmatpush1.bf16.msra.mxu1 %v23482_v58  ;;  %v137_v57 = vld [vmem:[%s27703_s0 + $0x110] sm:$0xff]  ;;  %v27041_v58 = vpack.c.bf16 %v134_v55, %v111_v54  ;;  %v23637_v55 = vld [vmem:[#allocation2 + $0x1ffc] ss:$44 sps:$4 sm:$0xff]  }
 0x17f   :  { %12587 = vmatprep.subr.bf16.mxu0 %v23487_v59  ;;  %13103 = vmatprep.subr.bf16.mxu1 %v23490_v60  ;;  %v23557_v59 = vld [vmem:[#allocation2 + $0x1b80] ss:$44 sps:$4 sm:$0xff]   ;;  %v23560_v60 = vld [vmem:[#allocation2 + $0x1b88] ss:$44 sps:$4 sm:$0xff]  }
 0x180   :  { %v23632_v54 = vld [vmem:[#allocation2 + $0x1fa8] ss:$44 sps:$4 sm:$0xff]  }
 0x182   :  { %12588 = vmatpush1.bf16.msra.mxu0 %v23485_v61  ;;  %13104 = vmatpush1.bf16.msra.mxu1 %v23488_v62  ;;  %v23565_v61 = vld [vmem:[#allocation2 + $0x1bdc] ss:$44 sps:$4 sm:$0xff]   ;;  %v23568_v62 = vld [vmem:[#allocation2 + $0x1be4] ss:$44 sps:$4 sm:$0xff]  }
 0x183   :  { %12589 = vmatprep.subr.bf16.mxu0 %v23493_v63  ;;  %13105 = vmatprep.subr.bf16.mxu1 %v23496_v0  ;;  %v27043_v63 = vpack.c.bf16 %v137_v57, %v114_v56  ;;  %v23563_v0 = vld [vmem:[#allocation2 + $0x1bd8] ss:$44 sps:$4 sm:$0xff]  }
 0x184   :  { %v23640_v56 = vld [vmem:[#allocation2 + $0x2004] ss:$44 sps:$4 sm:$0xff]  }
 0x185   :  { %v23635_v57 = vld [vmem:[#allocation2 + $0x1ff8] ss:$44 sps:$4 sm:$0xff]  }
 0x186   :  { %12590 = vmatpush1.bf16.msra.mxu0 %v23491_v1  ;;  %13106 = vmatpush1.bf16.msra.mxu1 %v23494_v2  ;;  %v23566_v1 = vld [vmem:[#allocation2 + $0x1be0] ss:$44 sps:$4 sm:$0xff]  }
 0x187   :  { %12591 = vmatprep.subr.bf16.mxu0 %v23499_v3  ;;  %13107 = vmatprep.subr.bf16.mxu1 %v23502_v4  ;;  %v23571_v2 = vld [vmem:[#allocation2 + $0x1c34] ss:$44 sps:$4 sm:$0xff]   ;;  %v23574_v3 = vld [vmem:[#allocation2 + $0x1c3c] ss:$44 sps:$4 sm:$0xff]  }
 0x188   :  { %v23569_v4 = vld [vmem:[#allocation2 + $0x1c30] ss:$44 sps:$4 sm:$0xff]  }
 0x18a   :  { %12592 = vmatpush1.bf16.msra.mxu0 %v23497_v5  ;;  %13108 = vmatpush1.bf16.msra.mxu1 %v23500_v6  ;;  %v23572_v5 = vld [vmem:[#allocation2 + $0x1c38] ss:$44 sps:$4 sm:$0xff]  }
 0x18b   :  { %12593 = vmatprep.subr.bf16.mxu0 %v23505_v7  ;;  %13109 = vmatprep.subr.bf16.mxu1 %v23508_v8  ;;  %v23577_v6 = vld [vmem:[#allocation2 + $0x1c8c] ss:$44 sps:$4 sm:$0xff]   ;;  %v23580_v7 = vld [vmem:[#allocation2 + $0x1c94] ss:$44 sps:$4 sm:$0xff]  }
 0x18c   :  { %v23575_v8 = vld [vmem:[#allocation2 + $0x1c88] ss:$44 sps:$4 sm:$0xff]  }
 0x18e   :  { %12594 = vmatpush1.bf16.msra.mxu0 %v23503_v10  ;;  %13110 = vmatpush1.bf16.msra.mxu1 %v23506_v11  ;;  %v23578_v10 = vld [vmem:[#allocation2 + $0x1c90] ss:$44 sps:$4 sm:$0xff]  }
 0x18f   :  { %12595 = vmatprep.subr.bf16.mxu0 %v23511_v12  ;;  %13111 = vmatprep.subr.bf16.mxu1 %v23514_v13  ;;  %v23583_v11 = vld [vmem:[#allocation2 + $0x1ce4] ss:$44 sps:$4 sm:$0xff]   ;;  %v23586_v12 = vld [vmem:[#allocation2 + $0x1cec] ss:$44 sps:$4 sm:$0xff]  }
 0x190   :  { %v23581_v13 = vld [vmem:[#allocation2 + $0x1ce0] ss:$44 sps:$4 sm:$0xff]  }
 0x192   :  { %12596 = vmatpush1.bf16.msra.mxu0 %v23509_v14  ;;  %13112 = vmatpush1.bf16.msra.mxu1 %v23512_v15  ;;  %v23584_v14 = vld [vmem:[#allocation2 + $0x1ce8] ss:$44 sps:$4 sm:$0xff]  }
 0x193   :  { %12597 = vmatprep.subr.bf16.mxu0 %v23517_v16  ;;  %13113 = vmatprep.subr.bf16.mxu1 %v23520_v18  ;;  %v23589_v15 = vld [vmem:[#allocation2 + $0x1d3c] ss:$44 sps:$4 sm:$0xff]   ;;  %v23592_v16 = vld [vmem:[#allocation2 + $0x1d44] ss:$44 sps:$4 sm:$0xff]  }
 0x194   :  { %v23587_v18 = vld [vmem:[#allocation2 + $0x1d38] ss:$44 sps:$4 sm:$0xff]  }
 0x196   :  { %12598 = vmatpush1.bf16.msra.mxu0 %v23515_v19  ;;  %13114 = vmatpush1.bf16.msra.mxu1 %v23518_v20  ;;  %v23590_v19 = vld [vmem:[#allocation2 + $0x1d40] ss:$44 sps:$4 sm:$0xff]  }
 0x197   :  { %12599 = vmatprep.subr.bf16.mxu0 %v23523_v21  ;;  %13115 = vmatprep.subr.bf16.mxu1 %v23526_v22  ;;  %v23595_v20 = vld [vmem:[#allocation2 + $0x1d94] ss:$44 sps:$4 sm:$0xff]   ;;  %v23598_v21 = vld [vmem:[#allocation2 + $0x1d9c] ss:$44 sps:$4 sm:$0xff]  }
 0x198   :  { %v23593_v22 = vld [vmem:[#allocation2 + $0x1d90] ss:$44 sps:$4 sm:$0xff]  }
 0x19a   :  { %12600 = vmatpush1.bf16.msra.mxu0 %v23521_v23  ;;  %13116 = vmatpush1.bf16.msra.mxu1 %v23524_v25  ;;  %v23596_v23 = vld [vmem:[#allocation2 + $0x1d98] ss:$44 sps:$4 sm:$0xff]  }
 0x19b   :  { %12601 = vmatprep.subr.bf16.mxu0 %v23529_v26  ;;  %13117 = vmatprep.subr.bf16.mxu1 %v23532_v27  ;;  %v23601_v25 = vld [vmem:[#allocation2 + $0x1dec] ss:$44 sps:$4 sm:$0xff]   ;;  %v23604_v26 = vld [vmem:[#allocation2 + $0x1df4] ss:$44 sps:$4 sm:$0xff]  }
 0x19c   :  { %v23599_v27 = vld [vmem:[#allocation2 + $0x1de8] ss:$44 sps:$4 sm:$0xff]  }
 0x19e   :  { %12602 = vmatpush1.bf16.msra.mxu0 %v23527_v29  ;;  %13118 = vmatpush1.bf16.msra.mxu1 %v23530_v30  ;;  %v23602_v29 = vld [vmem:[#allocation2 + $0x1df0] ss:$44 sps:$4 sm:$0xff]  }
 0x19f   :  { %12603 = vmatprep.subr.bf16.mxu0 %v23535_v31  ;;  %13119 = vmatprep.subr.bf16.mxu1 %v23538_v32  ;;  %v23607_v30 = vld [vmem:[#allocation2 + $0x1e44] ss:$44 sps:$4 sm:$0xff]   ;;  %v23610_v31 = vld [vmem:[#allocation2 + $0x1e4c] ss:$44 sps:$4 sm:$0xff]  }
 0x1a0   :  { %v23605_v32 = vld [vmem:[#allocation2 + $0x1e40] ss:$44 sps:$4 sm:$0xff]  }
 0x1a2   :  { %12604 = vmatpush1.bf16.msra.mxu0 %v23533_v34  ;;  %13120 = vmatpush1.bf16.msra.mxu1 %v23536_v35  ;;  %v23608_v34 = vld [vmem:[#allocation2 + $0x1e48] ss:$44 sps:$4 sm:$0xff]  }
 0x1a3   :  { %12605 = vmatprep.subr.bf16.mxu0 %v23541_v37  ;;  %13121 = vmatprep.subr.bf16.mxu1 %v23544_v38  ;;  %v23613_v35 = vld [vmem:[#allocation2 + $0x1e9c] ss:$44 sps:$4 sm:$0xff]   ;;  %v23616_v37 = vld [vmem:[#allocation2 + $0x1ea4] ss:$44 sps:$4 sm:$0xff]  }
 0x1a4   :  { %v23611_v38 = vld [vmem:[#allocation2 + $0x1e98] ss:$44 sps:$4 sm:$0xff]  }
 0x1a6   :  { %12606 = vmatpush1.bf16.msra.mxu0 %v23539_v39  ;;  %13122 = vmatpush1.bf16.msra.mxu1 %v23542_v40  ;;  %v23614_v39 = vld [vmem:[#allocation2 + $0x1ea0] ss:$44 sps:$4 sm:$0xff]  }
 0x1a7   :  { %12607 = vmatprep.subr.bf16.mxu0 %v23547_v41  ;;  %13123 = vmatprep.subr.bf16.mxu1 %v23550_v43  ;;  %v23619_v40 = vld [vmem:[#allocation2 + $0x1ef4] ss:$44 sps:$4 sm:$0xff]   ;;  %v23622_v41 = vld [vmem:[#allocation2 + $0x1efc] ss:$44 sps:$4 sm:$0xff]  }
 0x1a8   :  { %v23617_v43 = vld [vmem:[#allocation2 + $0x1ef0] ss:$44 sps:$4 sm:$0xff]  }
 0x1aa   :  { %12608 = vmatpush1.bf16.msra.mxu0 %v23545_v44  ;;  %13124 = vmatpush1.bf16.msra.mxu1 %v23548_v45  ;;  %v23620_v44 = vld [vmem:[#allocation2 + $0x1ef8] ss:$44 sps:$4 sm:$0xff]  }
 0x1ab   :  { %12609 = vmatprep.subr.bf16.mxu0 %v23553_v46  ;;  %13125 = vmatprep.subr.bf16.mxu1 %v23556_v48  ;;  %v23625_v45 = vld [vmem:[#allocation2 + $0x1f4c] ss:$44 sps:$4 sm:$0xff]   ;;  %v23628_v46 = vld [vmem:[#allocation2 + $0x1f54] ss:$44 sps:$4 sm:$0xff]  }
 0x1ac   :  { %v23623_v48 = vld [vmem:[#allocation2 + $0x1f48] ss:$44 sps:$4 sm:$0xff]  }
 0x1ae   :  { %12610 = vmatpush1.bf16.msra.mxu0 %v23551_v49  ;;  %13126 = vmatpush1.bf16.msra.mxu1 %v23554_v51  ;;  %v23626_v49 = vld [vmem:[#allocation2 + $0x1f50] ss:$44 sps:$4 sm:$0xff]  }
 0x1af   :  { %12622 = vmatprep.subr.bf16.mxu0 %v23559_v52  ;;  %13138 = vmatprep.subr.bf16.mxu1 %v23562_v53  ;;  %v23631_v51 = vld [vmem:[#allocation2 + $0x1fa4] ss:$44 sps:$4 sm:$0xff]   ;;  %v23634_v52 = vld [vmem:[#allocation2 + $0x1fac] ss:$44 sps:$4 sm:$0xff]  }
 0x1b0   :  { %v23629_v53 = vld [vmem:[#allocation2 + $0x1fa0] ss:$44 sps:$4 sm:$0xff]  }
 0x1b1   :  { %12612 = vmatmul.mubr.bf16.vlgmr.msra.gmra.mrb[0].mxu0 %v27041_v58  ;;  %13128 = vmatmul.mubr.bf16.vlgmr.msra.gmra.mrb[0].mxu1 %v27041_v58 }
 0x1b2   :  { %12623 = vmatpush1.bf16.msra.mxu0 %v23557_v59  ;;  %13139 = vmatpush1.bf16.msra.mxu1 %v23560_v60  ;;  %v23638_v59 = vld [vmem:[#allocation2 + $0x2000] ss:$44 sps:$4 sm:$0xff]  }
 0x1b3   :  { %12624 = vmatprep.subr.bf16.mxu0 %v23565_v61  ;;  %13140 = vmatprep.subr.bf16.mxu1 %v23568_v62  ;;  %v23643_v60 = vld [vmem:[#allocation2 + $0x2054] ss:$44 sps:$4 sm:$0xff]   ;;  %v23646_v61 = vld [vmem:[#allocation2 + $0x205c] ss:$44 sps:$4 sm:$0xff]  }
 0x1b4   :  { %12654 = vmatprep.mubr.bf16.mxu0 %v27043_v63  ;;  %13170 = vmatprep.mubr.bf16.mxu1 %v27043_v63  ;;  %v23641_v62 = vld [vmem:[#allocation2 + $0x2050] ss:$44 sps:$4 sm:$0xff]  }
 0x1b6   :  { %12625 = vmatpush1.bf16.msra.mxu0 %v23563_v0  ;;  %13141 = vmatpush1.bf16.msra.mxu1 %v23566_v1  ;;  %v23644_v0 = vld [vmem:[#allocation2 + $0x2058] ss:$44 sps:$4 sm:$0xff]  }
 0x1b7   :  { %12626 = vmatprep.subr.bf16.mxu0 %v23571_v2  ;;  %13142 = vmatprep.subr.bf16.mxu1 %v23574_v3  ;;  %v23649_v1 = vld [vmem:[#allocation2 + $0x20ac] ss:$44 sps:$4 sm:$0xff]   ;;  %v23652_v2 = vld [vmem:[#allocation2 + $0x20b4] ss:$44 sps:$4 sm:$0xff]  }
 0x1b8   :  { %v23647_v3 = vld [vmem:[#allocation2 + $0x20a8] ss:$44 sps:$4 sm:$0xff]  }
 0x1ba   :  { %12627 = vmatpush1.bf16.msra.mxu0 %v23569_v4  ;;  %13143 = vmatpush1.bf16.msra.mxu1 %v23572_v5  ;;  %v23650_v4 = vld [vmem:[#allocation2 + $0x20b0] ss:$44 sps:$4 sm:$0xff]  }
 0x1bb   :  { %12628 = vmatprep.subr.bf16.mxu0 %v23577_v6  ;;  %13144 = vmatprep.subr.bf16.mxu1 %v23580_v7  ;;  %v23655_v5 = vld [vmem:[#allocation2 + $0x2104] ss:$44 sps:$4 sm:$0xff]   ;;  %v23658_v6 = vld [vmem:[#allocation2 + $0x210c] ss:$44 sps:$4 sm:$0xff]  }
 0x1bc   :  { %v113_v7 = vld [vmem:[%s27703_s0 + $0x50] sm:$0xff] }
 0x1be   :  { %12629 = vmatpush1.bf16.msra.mxu0 %v23575_v8  ;;  %13145 = vmatpush1.bf16.msra.mxu1 %v23578_v10  ;;  %v136_v8 = vld [vmem:[%s27703_s0 + $0x108] sm:$0xff] }
 0x1bf   :  { %12630 = vmatprep.subr.bf16.mxu0 %v23583_v11  ;;  %13146 = vmatprep.subr.bf16.mxu1 %v23586_v12  ;;  %v116_v10 = vld [vmem:[%s27703_s0 + $0x68] sm:$0xff]  ;;  %v139_v11 = vld [vmem:[%s27703_s0 + $0x120] sm:$0xff]  ;;  %v27061_v12 = vpack.c.bf16 %v136_v8, %v113_v7 }
 0x1c0   :  { %v23730_v7 = vld [vmem:[#allocation2 + $0x252c] ss:$44 sps:$4 sm:$0xff]  }
 0x1c1   :  { %v23725_v8 = vld [vmem:[#allocation2 + $0x2520] ss:$44 sps:$4 sm:$0xff]  }
 0x1c2   :  { %12631 = vmatpush1.bf16.msra.mxu0 %v23581_v13  ;;  %13147 = vmatpush1.bf16.msra.mxu1 %v23584_v14  ;;  %v23653_v13 = vld [vmem:[#allocation2 + $0x2100] ss:$44 sps:$4 sm:$0xff]   ;;  %v23656_v14 = vld [vmem:[#allocation2 + $0x2108] ss:$44 sps:$4 sm:$0xff]  }
 0x1c3   :  { %12632 = vmatprep.subr.bf16.mxu0 %v23589_v15  ;;  %13148 = vmatprep.subr.bf16.mxu1 %v23592_v16  ;;  %v23661_v15 = vld [vmem:[#allocation2 + $0x215c] ss:$44 sps:$4 sm:$0xff]   ;;  %v23664_v16 = vld [vmem:[#allocation2 + $0x2164] ss:$44 sps:$4 sm:$0xff]  }
 0x1c6   :  { %12633 = vmatpush1.bf16.msra.mxu0 %v23587_v18  ;;  %13149 = vmatpush1.bf16.msra.mxu1 %v23590_v19  ;;  %v27063_v18 = vpack.c.bf16 %v139_v11, %v116_v10  ;;  %v23659_v19 = vld [vmem:[#allocation2 + $0x2158] ss:$44 sps:$4 sm:$0xff]   ;;  %v23728_v10 = vld [vmem:[#allocation2 + $0x2528] ss:$44 sps:$4 sm:$0xff]  }
 0x1c7   :  { %12634 = vmatprep.subr.bf16.mxu0 %v23595_v20  ;;  %13150 = vmatprep.subr.bf16.mxu1 %v23598_v21  ;;  %v23662_v20 = vld [vmem:[#allocation2 + $0x2160] ss:$44 sps:$4 sm:$0xff]   ;;  %v23733_v11 = vld [vmem:[#allocation2 + $0x257c] ss:$44 sps:$4 sm:$0xff]  }
 0x1c8   :  { %v23667_v21 = vld [vmem:[#allocation2 + $0x21b4] ss:$44 sps:$4 sm:$0xff]  }
 0x1ca   :  { %12635 = vmatpush1.bf16.msra.mxu0 %v23593_v22  ;;  %13151 = vmatpush1.bf16.msra.mxu1 %v23596_v23  ;;  %v23670_v22 = vld [vmem:[#allocation2 + $0x21bc] ss:$44 sps:$4 sm:$0xff]  }
 0x1cb   :  { %12636 = vmatprep.subr.bf16.mxu0 %v23601_v25  ;;  %13152 = vmatprep.subr.bf16.mxu1 %v23604_v26  ;;  %v23665_v23 = vld [vmem:[#allocation2 + $0x21b0] ss:$44 sps:$4 sm:$0xff]   ;;  %v23668_v25 = vld [vmem:[#allocation2 + $0x21b8] ss:$44 sps:$4 sm:$0xff]  }
 0x1cc   :  { %v23673_v26 = vld [vmem:[#allocation2 + $0x220c] ss:$44 sps:$4 sm:$0xff]  }
 0x1ce   :  { %12637 = vmatpush1.bf16.msra.mxu0 %v23599_v27  ;;  %13153 = vmatpush1.bf16.msra.mxu1 %v23602_v29  ;;  %v23676_v27 = vld [vmem:[#allocation2 + $0x2214] ss:$44 sps:$4 sm:$0xff]  }
 0x1cf   :  { %12638 = vmatprep.subr.bf16.mxu0 %v23607_v30  ;;  %13154 = vmatprep.subr.bf16.mxu1 %v23610_v31  ;;  %v23671_v29 = vld [vmem:[#allocation2 + $0x2208] ss:$44 sps:$4 sm:$0xff]   ;;  %v23674_v30 = vld [vmem:[#allocation2 + $0x2210] ss:$44 sps:$4 sm:$0xff]  }
 0x1d0   :  { %v23679_v31 = vld [vmem:[#allocation2 + $0x2264] ss:$44 sps:$4 sm:$0xff]  }
 0x1d2   :  { %12639 = vmatpush1.bf16.msra.mxu0 %v23605_v32  ;;  %13155 = vmatpush1.bf16.msra.mxu1 %v23608_v34  ;;  %v23682_v32 = vld [vmem:[#allocation2 + $0x226c] ss:$44 sps:$4 sm:$0xff]  }
 0x1d3   :  { %12640 = vmatprep.subr.bf16.mxu0 %v23613_v35  ;;  %13156 = vmatprep.subr.bf16.mxu1 %v23616_v37  ;;  %v23677_v34 = vld [vmem:[#allocation2 + $0x2260] ss:$44 sps:$4 sm:$0xff]   ;;  %v23680_v35 = vld [vmem:[#allocation2 + $0x2268] ss:$44 sps:$4 sm:$0xff]  }
 0x1d4   :  { %v23685_v37 = vld [vmem:[#allocation2 + $0x22bc] ss:$44 sps:$4 sm:$0xff]  }
 0x1d6   :  { %12641 = vmatpush1.bf16.msra.mxu0 %v23611_v38  ;;  %13157 = vmatpush1.bf16.msra.mxu1 %v23614_v39  ;;  %v23688_v38 = vld [vmem:[#allocation2 + $0x22c4] ss:$44 sps:$4 sm:$0xff]  }
 0x1d7   :  { %12642 = vmatprep.subr.bf16.mxu0 %v23619_v40  ;;  %13158 = vmatprep.subr.bf16.mxu1 %v23622_v41  ;;  %v23683_v39 = vld [vmem:[#allocation2 + $0x22b8] ss:$44 sps:$4 sm:$0xff]   ;;  %v23686_v40 = vld [vmem:[#allocation2 + $0x22c0] ss:$44 sps:$4 sm:$0xff]  }
 0x1d8   :  { %v23691_v41 = vld [vmem:[#allocation2 + $0x2314] ss:$44 sps:$4 sm:$0xff]  }
 0x1da   :  { %12643 = vmatpush1.bf16.msra.mxu0 %v23617_v43  ;;  %13159 = vmatpush1.bf16.msra.mxu1 %v23620_v44  ;;  %v23694_v43 = vld [vmem:[#allocation2 + $0x231c] ss:$44 sps:$4 sm:$0xff]  }
 0x1db   :  { %12644 = vmatprep.subr.bf16.mxu0 %v23625_v45  ;;  %13160 = vmatprep.subr.bf16.mxu1 %v23628_v46  ;;  %v23689_v44 = vld [vmem:[#allocation2 + $0x2310] ss:$44 sps:$4 sm:$0xff]   ;;  %v23692_v45 = vld [vmem:[#allocation2 + $0x2318] ss:$44 sps:$4 sm:$0xff]  }
 0x1dc   :  { %v23697_v46 = vld [vmem:[#allocation2 + $0x236c] ss:$44 sps:$4 sm:$0xff]  }
 0x1de   :  { %12645 = vmatpush1.bf16.msra.mxu0 %v23623_v48  ;;  %13161 = vmatpush1.bf16.msra.mxu1 %v23626_v49  ;;  %v23700_v48 = vld [vmem:[#allocation2 + $0x2374] ss:$44 sps:$4 sm:$0xff]  }
 0x1df   :  { %12646 = vmatprep.subr.bf16.mxu0 %v23631_v51  ;;  %13162 = vmatprep.subr.bf16.mxu1 %v23634_v52  ;;  %v23695_v49 = vld [vmem:[#allocation2 + $0x2368] ss:$44 sps:$4 sm:$0xff]   ;;  %v23698_v51 = vld [vmem:[#allocation2 + $0x2370] ss:$44 sps:$4 sm:$0xff]  }
 0x1e0   :  { %v23703_v52 = vld [vmem:[#allocation2 + $0x23c4] ss:$44 sps:$4 sm:$0xff]  }
 0x1e2   :  { %12647 = vmatpush1.bf16.msra.mxu0 %v23629_v53  ;;  %13163 = vmatpush1.bf16.msra.mxu1 %v23632_v54  ;;  %v23706_v53 = vld [vmem:[#allocation2 + $0x23cc] ss:$44 sps:$4 sm:$0xff]  }
 0x1e3   :  { %12648 = vmatprep.subr.bf16.mxu0 %v23637_v55  ;;  %13164 = vmatprep.subr.bf16.mxu1 %v23640_v56  ;;  %v23701_v54 = vld [vmem:[#allocation2 + $0x23c0] ss:$44 sps:$4 sm:$0xff]   ;;  %v23704_v55 = vld [vmem:[#allocation2 + $0x23c8] ss:$44 sps:$4 sm:$0xff]  }
 0x1e4   :  { %v23709_v56 = vld [vmem:[#allocation2 + $0x241c] ss:$44 sps:$4 sm:$0xff]  }
 0x1e6   :  { %12649 = vmatpush1.bf16.msra.mxu0 %v23635_v57  ;;  %13165 = vmatpush1.bf16.msra.mxu1 %v23638_v59  ;;  %v23712_v57 = vld [vmem:[#allocation2 + $0x2424] ss:$44 sps:$4 sm:$0xff]  }
 0x1e7   :  { %12650 = vmatprep.subr.bf16.mxu0 %v23643_v60  ;;  %13166 = vmatprep.subr.bf16.mxu1 %v23646_v61  ;;  %v23707_v59 = vld [vmem:[#allocation2 + $0x2418] ss:$44 sps:$4 sm:$0xff]   ;;  %v23710_v60 = vld [vmem:[#allocation2 + $0x2420] ss:$44 sps:$4 sm:$0xff]  }
 0x1e8   :  { %v23715_v61 = vld [vmem:[#allocation2 + $0x2474] ss:$44 sps:$4 sm:$0xff]  }
 0x1ea   :  { %12651 = vmatpush1.bf16.msra.mxu0 %v23641_v62  ;;  %13167 = vmatpush1.bf16.msra.mxu1 %v23644_v0  ;;  %v23718_v62 = vld [vmem:[#allocation2 + $0x247c] ss:$44 sps:$4 sm:$0xff]  }
 0x1eb   :  { %12652 = vmatprep.subr.bf16.mxu0 %v23649_v1  ;;  %13168 = vmatprep.subr.bf16.mxu1 %v23652_v2  ;;  %v23713_v0 = vld [vmem:[#allocation2 + $0x2470] ss:$44 sps:$4 sm:$0xff]   ;;  %v23716_v1 = vld [vmem:[#allocation2 + $0x2478] ss:$44 sps:$4 sm:$0xff]  }
 0x1ec   :  { %v23721_v2 = vld [vmem:[#allocation2 + $0x24cc] ss:$44 sps:$4 sm:$0xff]  }
 0x1ee   :  { %12653 = vmatpush1.bf16.msra.mxu0 %v23647_v3  ;;  %13169 = vmatpush1.bf16.msra.mxu1 %v23650_v4  ;;  %v23724_v3 = vld [vmem:[#allocation2 + $0x24d4] ss:$44 sps:$4 sm:$0xff]  }
 0x1ef   :  { %12665 = vmatprep.subr.bf16.mxu0 %v23655_v5  ;;  %13181 = vmatprep.subr.bf16.mxu1 %v23658_v6  ;;  %v23719_v4 = vld [vmem:[#allocation2 + $0x24c8] ss:$44 sps:$4 sm:$0xff]   ;;  %v23722_v5 = vld [vmem:[#allocation2 + $0x24d0] ss:$44 sps:$4 sm:$0xff]  }
 0x1f0   :  { %v23727_v6 = vld [vmem:[#allocation2 + $0x2524] ss:$44 sps:$4 sm:$0xff]  }
 0x1f1   :  { %12655 = vmatmul.mubr.bf16.vlgmr.msra.gmra.mrb[0].mxu0 %v27061_v12  ;;  %13171 = vmatmul.mubr.bf16.vlgmr.msra.gmra.mrb[0].mxu1 %v27061_v12 }
 0x1f2   :  { %12666 = vmatpush1.bf16.msra.mxu0 %v23653_v13  ;;  %13182 = vmatpush1.bf16.msra.mxu1 %v23656_v14  ;;  %v23736_v13 = vld [vmem:[#allocation2 + $0x2584] ss:$44 sps:$4 sm:$0xff]  }
 0x1f3   :  { %12667 = vmatprep.subr.bf16.mxu0 %v23661_v15  ;;  %13183 = vmatprep.subr.bf16.mxu1 %v23664_v16  ;;  %v23731_v14 = vld [vmem:[#allocation2 + $0x2578] ss:$44 sps:$4 sm:$0xff]   ;;  %v23734_v15 = vld [vmem:[#allocation2 + $0x2580] ss:$44 sps:$4 sm:$0xff]  }
 0x1f4   :  { %12697 = vmatprep.mubr.bf16.mxu0 %v27063_v18  ;;  %13213 = vmatprep.mubr.bf16.mxu1 %v27063_v18  ;;  %v23739_v16 = vld [vmem:[#allocation2 + $0x25d4] ss:$44 sps:$4 sm:$0xff]  }
 0x1f6   :  { %12668 = vmatpush1.bf16.msra.mxu0 %v23659_v19  ;;  %13184 = vmatpush1.bf16.msra.mxu1 %v23662_v20  ;;  %v23742_v19 = vld [vmem:[#allocation2 + $0x25dc] ss:$44 sps:$4 sm:$0xff]  }
 0x1f7   :  { %12669 = vmatprep.subr.bf16.mxu0 %v23667_v21  ;;  %13185 = vmatprep.subr.bf16.mxu1 %v23670_v22  ;;  %v23737_v20 = vld [vmem:[#allocation2 + $0x25d0] ss:$44 sps:$4 sm:$0xff]   ;;  %v23740_v21 = vld [vmem:[#allocation2 + $0x25d8] ss:$44 sps:$4 sm:$0xff]  }
 0x1f8   :  { %v23745_v22 = vld [vmem:[#allocation2 + $0x262c] ss:$44 sps:$4 sm:$0xff]  }
 0x1fa   :  { %12670 = vmatpush1.bf16.msra.mxu0 %v23665_v23  ;;  %13186 = vmatpush1.bf16.msra.mxu1 %v23668_v25  ;;  %v23748_v23 = vld [vmem:[#allocation2 + $0x2634] ss:$44 sps:$4 sm:$0xff]  }
 0x1fb   :  { %12671 = vmatprep.subr.bf16.mxu0 %v23673_v26  ;;  %13187 = vmatprep.subr.bf16.mxu1 %v23676_v27  ;;  %v23743_v25 = vld [vmem:[#allocation2 + $0x2628] ss:$44 sps:$4 sm:$0xff]   ;;  %v23746_v26 = vld [vmem:[#allocation2 + $0x2630] ss:$44 sps:$4 sm:$0xff]  }
 0x1fc   :  { %v23751_v27 = vld [vmem:[#allocation2 + $0x2684] ss:$44 sps:$4 sm:$0xff]  }
 0x1fe   :  { %12672 = vmatpush1.bf16.msra.mxu0 %v23671_v29  ;;  %13188 = vmatpush1.bf16.msra.mxu1 %v23674_v30  ;;  %v23754_v29 = vld [vmem:[#allocation2 + $0x268c] ss:$44 sps:$4 sm:$0xff]   ;;  %v115_v30 = vld [vmem:[%s27703_s0 + $0x60] sm:$0xff] }
 0x1ff   :  { %12673 = vmatprep.subr.bf16.mxu0 %v23679_v31  ;;  %13189 = vmatprep.subr.bf16.mxu1 %v23682_v32  ;;  %v138_v31 = vld [vmem:[%s27703_s0 + $0x118] sm:$0xff] }
 0x200   :  { %v118_v32 = vld [vmem:[%s27703_s0 + $0x78] sm:$0xff] }
 0x202   :  { %12674 = vmatpush1.bf16.msra.mxu0 %v23677_v34  ;;  %13190 = vmatpush1.bf16.msra.mxu1 %v23680_v35  ;;  %v141_v34 = vld [vmem:[%s27703_s0 + $0x130] sm:$0xff]  ;;  %v27081_v35 = vpack.c.bf16 %v138_v31, %v115_v30 }
 0x203   :  { %12675 = vmatprep.subr.bf16.mxu0 %v23685_v37  ;;  %13191 = vmatprep.subr.bf16.mxu1 %v23688_v38  ;;  %v23749_v37 = vld [vmem:[#allocation2 + $0x2680] ss:$44 sps:$4 sm:$0xff]   ;;  %v23752_v38 = vld [vmem:[#allocation2 + $0x2688] ss:$44 sps:$4 sm:$0xff]   ;;  %v23818_v30 = vld [vmem:[#allocation2 + $0x2a50] ss:$44 sps:$4 sm:$0xff]  }
 0x204   :  { %v23823_v31 = vld [vmem:[#allocation2 + $0x2aa4] ss:$44 sps:$4 sm:$0xff]  }
 0x206   :  { %12676 = vmatpush1.bf16.msra.mxu0 %v23683_v39  ;;  %13192 = vmatpush1.bf16.msra.mxu1 %v23686_v40  ;;  %v23757_v39 = vld [vmem:[#allocation2 + $0x26dc] ss:$44 sps:$4 sm:$0xff]   ;;  %v23760_v40 = vld [vmem:[#allocation2 + $0x26e4] ss:$44 sps:$4 sm:$0xff]  }
 0x207   :  { %12677 = vmatprep.subr.bf16.mxu0 %v23691_v41  ;;  %13193 = vmatprep.subr.bf16.mxu1 %v23694_v43  ;;  %v27083_v41 = vpack.c.bf16 %v141_v34, %v118_v32  ;;  %v23755_v43 = vld [vmem:[#allocation2 + $0x26d8] ss:$44 sps:$4 sm:$0xff]   ;;  %v23821_v34 = vld [vmem:[#allocation2 + $0x2aa0] ss:$44 sps:$4 sm:$0xff]  }
 0x208   :  { %v23826_v32 = vld [vmem:[#allocation2 + $0x2aac] ss:$44 sps:$4 sm:$0xff]  }
 0x20a   :  { %12678 = vmatpush1.bf16.msra.mxu0 %v23689_v44  ;;  %13194 = vmatpush1.bf16.msra.mxu1 %v23692_v45  ;;  %v23758_v44 = vld [vmem:[#allocation2 + $0x26e0] ss:$44 sps:$4 sm:$0xff]  }
 0x20b   :  { %12679 = vmatprep.subr.bf16.mxu0 %v23697_v46  ;;  %13195 = vmatprep.subr.bf16.mxu1 %v23700_v48  ;;  %v23763_v45 = vld [vmem:[#allocation2 + $0x2734] ss:$44 sps:$4 sm:$0xff]   ;;  %v23766_v46 = vld [vmem:[#allocation2 + $0x273c] ss:$44 sps:$4 sm:$0xff]  }
 0x20c   :  { %v23761_v48 = vld [vmem:[#allocation2 + $0x2730] ss:$44 sps:$4 sm:$0xff]  }
 0x20e   :  { %12680 = vmatpush1.bf16.msra.mxu0 %v23695_v49  ;;  %13196 = vmatpush1.bf16.msra.mxu1 %v23698_v51  ;;  %v23764_v49 = vld [vmem:[#allocation2 + $0x2738] ss:$44 sps:$4 sm:$0xff]  }
 0x20f   :  { %12681 = vmatprep.subr.bf16.mxu0 %v23703_v52  ;;  %13197 = vmatprep.subr.bf16.mxu1 %v23706_v53  ;;  %v23769_v51 = vld [vmem:[#allocation2 + $0x278c] ss:$44 sps:$4 sm:$0xff]   ;;  %v23772_v52 = vld [vmem:[#allocation2 + $0x2794] ss:$44 sps:$4 sm:$0xff]  }
 0x210   :  { %v23767_v53 = vld [vmem:[#allocation2 + $0x2788] ss:$44 sps:$4 sm:$0xff]  }
 0x212   :  { %12682 = vmatpush1.bf16.msra.mxu0 %v23701_v54  ;;  %13198 = vmatpush1.bf16.msra.mxu1 %v23704_v55  ;;  %v23770_v54 = vld [vmem:[#allocation2 + $0x2790] ss:$44 sps:$4 sm:$0xff]  }
 0x213   :  { %12683 = vmatprep.subr.bf16.mxu0 %v23709_v56  ;;  %13199 = vmatprep.subr.bf16.mxu1 %v23712_v57  ;;  %v23775_v55 = vld [vmem:[#allocation2 + $0x27e4] ss:$44 sps:$4 sm:$0xff]   ;;  %v23778_v56 = vld [vmem:[#allocation2 + $0x27ec] ss:$44 sps:$4 sm:$0xff]  }
 0x214   :  { %v23773_v57 = vld [vmem:[#allocation2 + $0x27e0] ss:$44 sps:$4 sm:$0xff]  }
 0x216   :  { %12684 = vmatpush1.bf16.msra.mxu0 %v23707_v59  ;;  %13200 = vmatpush1.bf16.msra.mxu1 %v23710_v60  ;;  %v23776_v59 = vld [vmem:[#allocation2 + $0x27e8] ss:$44 sps:$4 sm:$0xff]  }
 0x217   :  { %12685 = vmatprep.subr.bf16.mxu0 %v23715_v61  ;;  %13201 = vmatprep.subr.bf16.mxu1 %v23718_v62  ;;  %v23781_v60 = vld [vmem:[#allocation2 + $0x283c] ss:$44 sps:$4 sm:$0xff]   ;;  %v23784_v61 = vld [vmem:[#allocation2 + $0x2844] ss:$44 sps:$4 sm:$0xff]  }
 0x218   :  { %v23779_v62 = vld [vmem:[#allocation2 + $0x2838] ss:$44 sps:$4 sm:$0xff]  }
 0x21a   :  { %12686 = vmatpush1.bf16.msra.mxu0 %v23713_v0  ;;  %13202 = vmatpush1.bf16.msra.mxu1 %v23716_v1  ;;  %v23782_v0 = vld [vmem:[#allocation2 + $0x2840] ss:$44 sps:$4 sm:$0xff]  }
 0x21b   :  { %12687 = vmatprep.subr.bf16.mxu0 %v23721_v2  ;;  %13203 = vmatprep.subr.bf16.mxu1 %v23724_v3  ;;  %v23787_v1 = vld [vmem:[#allocation2 + $0x2894] ss:$44 sps:$4 sm:$0xff]   ;;  %v23790_v2 = vld [vmem:[#allocation2 + $0x289c] ss:$44 sps:$4 sm:$0xff]  }
 0x21c   :  { %v23785_v3 = vld [vmem:[#allocation2 + $0x2890] ss:$44 sps:$4 sm:$0xff]  }
 0x21e   :  { %12688 = vmatpush1.bf16.msra.mxu0 %v23719_v4  ;;  %13204 = vmatpush1.bf16.msra.mxu1 %v23722_v5  ;;  %v23788_v4 = vld [vmem:[#allocation2 + $0x2898] ss:$44 sps:$4 sm:$0xff]  }
 0x21f   :  { %12689 = vmatprep.subr.bf16.mxu0 %v23727_v6  ;;  %13205 = vmatprep.subr.bf16.mxu1 %v23730_v7  ;;  %v23793_v5 = vld [vmem:[#allocation2 + $0x28ec] ss:$44 sps:$4 sm:$0xff]   ;;  %v23796_v6 = vld [vmem:[#allocation2 + $0x28f4] ss:$44 sps:$4 sm:$0xff]  }
 0x220   :  { %v23791_v7 = vld [vmem:[#allocation2 + $0x28e8] ss:$44 sps:$4 sm:$0xff]  }
 0x222   :  { %12690 = vmatpush1.bf16.msra.mxu0 %v23725_v8  ;;  %13206 = vmatpush1.bf16.msra.mxu1 %v23728_v10  ;;  %v23794_v8 = vld [vmem:[#allocation2 + $0x28f0] ss:$44 sps:$4 sm:$0xff]  }
 0x223   :  { %12691 = vmatprep.subr.bf16.mxu0 %v23733_v11  ;;  %13207 = vmatprep.subr.bf16.mxu1 %v23736_v13  ;;  %v23799_v10 = vld [vmem:[#allocation2 + $0x2944] ss:$44 sps:$4 sm:$0xff]   ;;  %v23802_v11 = vld [vmem:[#allocation2 + $0x294c] ss:$44 sps:$4 sm:$0xff]  }
 0x224   :  { %v23797_v13 = vld [vmem:[#allocation2 + $0x2940] ss:$44 sps:$4 sm:$0xff]  }
 0x226   :  { %12692 = vmatpush1.bf16.msra.mxu0 %v23731_v14  ;;  %13208 = vmatpush1.bf16.msra.mxu1 %v23734_v15  ;;  %v23800_v14 = vld [vmem:[#allocation2 + $0x2948] ss:$44 sps:$4 sm:$0xff]  }
 0x227   :  { %12693 = vmatprep.subr.bf16.mxu0 %v23739_v16  ;;  %13209 = vmatprep.subr.bf16.mxu1 %v23742_v19  ;;  %v23805_v15 = vld [vmem:[#allocation2 + $0x299c] ss:$44 sps:$4 sm:$0xff]   ;;  %v23808_v16 = vld [vmem:[#allocation2 + $0x29a4] ss:$44 sps:$4 sm:$0xff]  }
 0x228   :  { %v23803_v19 = vld [vmem:[#allocation2 + $0x2998] ss:$44 sps:$4 sm:$0xff]  }
 0x22a   :  { %12694 = vmatpush1.bf16.msra.mxu0 %v23737_v20  ;;  %13210 = vmatpush1.bf16.msra.mxu1 %v23740_v21  ;;  %v23806_v20 = vld [vmem:[#allocation2 + $0x29a0] ss:$44 sps:$4 sm:$0xff]  }
 0x22b   :  { %12695 = vmatprep.subr.bf16.mxu0 %v23745_v22  ;;  %13211 = vmatprep.subr.bf16.mxu1 %v23748_v23  ;;  %v23811_v21 = vld [vmem:[#allocation2 + $0x29f4] ss:$44 sps:$4 sm:$0xff]   ;;  %v23814_v22 = vld [vmem:[#allocation2 + $0x29fc] ss:$44 sps:$4 sm:$0xff]  }
 0x22c   :  { %v23809_v23 = vld [vmem:[#allocation2 + $0x29f0] ss:$44 sps:$4 sm:$0xff]  }
 0x22e   :  { %12696 = vmatpush1.bf16.msra.mxu0 %v23743_v25  ;;  %13212 = vmatpush1.bf16.msra.mxu1 %v23746_v26  ;;  %v23812_v25 = vld [vmem:[#allocation2 + $0x29f8] ss:$44 sps:$4 sm:$0xff]  }
 0x22f   :  { %12708 = vmatprep.subr.bf16.mxu0 %v23751_v27  ;;  %13224 = vmatprep.subr.bf16.mxu1 %v23754_v29  ;;  %v23817_v26 = vld [vmem:[#allocation2 + $0x2a4c] ss:$44 sps:$4 sm:$0xff]   ;;  %v23820_v27 = vld [vmem:[#allocation2 + $0x2a54] ss:$44 sps:$4 sm:$0xff]  }
 0x230   :  { %v23815_v29 = vld [vmem:[#allocation2 + $0x2a48] ss:$44 sps:$4 sm:$0xff]  }
 0x231   :  { %12698 = vmatmul.mubr.bf16.vlgmr.msra.gmra.mrb[0].mxu0 %v27081_v35  ;;  %13214 = vmatmul.mubr.bf16.vlgmr.msra.gmra.mrb[0].mxu1 %v27081_v35 }
 0x232   :  { %12709 = vmatpush1.bf16.msra.mxu0 %v23749_v37  ;;  %13225 = vmatpush1.bf16.msra.mxu1 %v23752_v38  ;;  %v23824_v37 = vld [vmem:[#allocation2 + $0x2aa8] ss:$44 sps:$4 sm:$0xff]  }
 0x233   :  { %12710 = vmatprep.subr.bf16.mxu0 %v23757_v39  ;;  %13226 = vmatprep.subr.bf16.mxu1 %v23760_v40  ;;  %v23829_v38 = vld [vmem:[#allocation2 + $0x2afc] ss:$44 sps:$4 sm:$0xff]   ;;  %v23832_v39 = vld [vmem:[#allocation2 + $0x2b04] ss:$44 sps:$4 sm:$0xff]  }
 0x234   :  { %12740 = vmatprep.mubr.bf16.mxu0 %v27083_v41  ;;  %13256 = vmatprep.mubr.bf16.mxu1 %v27083_v41  ;;  %v23827_v40 = vld [vmem:[#allocation2 + $0x2af8] ss:$44 sps:$4 sm:$0xff]  }
 0x236   :  { %12711 = vmatpush1.bf16.msra.mxu0 %v23755_v43  ;;  %13227 = vmatpush1.bf16.msra.mxu1 %v23758_v44  ;;  %v23830_v43 = vld [vmem:[#allocation2 + $0x2b00] ss:$44 sps:$4 sm:$0xff]  }
 0x237   :  { %12712 = vmatprep.subr.bf16.mxu0 %v23763_v45  ;;  %13228 = vmatprep.subr.bf16.mxu1 %v23766_v46  ;;  %v23835_v44 = vld [vmem:[#allocation2 + $0x2b54] ss:$44 sps:$4 sm:$0xff]   ;;  %v23838_v45 = vld [vmem:[#allocation2 + $0x2b5c] ss:$44 sps:$4 sm:$0xff]  }
 0x238   :  { %v23833_v46 = vld [vmem:[#allocation2 + $0x2b50] ss:$44 sps:$4 sm:$0xff]  }
 0x23a   :  { %12713 = vmatpush1.bf16.msra.mxu0 %v23761_v48  ;;  %13229 = vmatpush1.bf16.msra.mxu1 %v23764_v49  ;;  %v23836_v48 = vld [vmem:[#allocation2 + $0x2b58] ss:$44 sps:$4 sm:$0xff]  }
 0x23b   :  { %12714 = vmatprep.subr.bf16.mxu0 %v23769_v51  ;;  %13230 = vmatprep.subr.bf16.mxu1 %v23772_v52  ;;  %v23841_v49 = vld [vmem:[#allocation2 + $0x2bac] ss:$44 sps:$4 sm:$0xff]   ;;  %v23844_v51 = vld [vmem:[#allocation2 + $0x2bb4] ss:$44 sps:$4 sm:$0xff]  }
 0x23c   :  { %v23839_v52 = vld [vmem:[#allocation2 + $0x2ba8] ss:$44 sps:$4 sm:$0xff]  }
 0x23e   :  { %12715 = vmatpush1.bf16.msra.mxu0 %v23767_v53  ;;  %13231 = vmatpush1.bf16.msra.mxu1 %v23770_v54  ;;  %v23842_v53 = vld [vmem:[#allocation2 + $0x2bb0] ss:$44 sps:$4 sm:$0xff]  }
 0x23f   :  { %12716 = vmatprep.subr.bf16.mxu0 %v23775_v55  ;;  %13232 = vmatprep.subr.bf16.mxu1 %v23778_v56  ;;  %v23847_v54 = vld [vmem:[#allocation2 + $0x2c04] ss:$44 sps:$4 sm:$0xff]   ;;  %v23850_v55 = vld [vmem:[#allocation2 + $0x2c0c] ss:$44 sps:$4 sm:$0xff]  }
 0x240   :  { %v117_v56 = vld [vmem:[%s27703_s0 + $0x70] sm:$0xff] }
 0x242   :  { %12717 = vmatpush1.bf16.msra.mxu0 %v23773_v57  ;;  %13233 = vmatpush1.bf16.msra.mxu1 %v23776_v59  ;;  %v140_v57 = vld [vmem:[%s27703_s0 + $0x128] sm:$0xff] }
 0x243   :  { %12718 = vmatprep.subr.bf16.mxu0 %v23781_v60  ;;  %13234 = vmatprep.subr.bf16.mxu1 %v23784_v61  ;;  %v120_v59 = vld [vmem:[%s27703_s0 + $0x88] sm:$0xff]  ;;  %v143_v60 = vld [vmem:[%s27703_s0 + $0x140] sm:$0xff]  ;;  %v27101_v61 = vpack.c.bf16 %v140_v57, %v117_v56 }
 0x244   :  { %v23916_v56 = vld [vmem:[#allocation2 + $0x2fd4] ss:$44 sps:$4 sm:$0xff]  }
 0x245   :  { %v23911_v57 = vld [vmem:[#allocation2 + $0x2fc8] ss:$44 sps:$4 sm:$0xff]  }
 0x246   :  { %12719 = vmatpush1.bf16.msra.mxu0 %v23779_v62  ;;  %13235 = vmatpush1.bf16.msra.mxu1 %v23782_v0  ;;  %v23845_v62 = vld [vmem:[#allocation2 + $0x2c00] ss:$44 sps:$4 sm:$0xff]   ;;  %v23848_v0 = vld [vmem:[#allocation2 + $0x2c08] ss:$44 sps:$4 sm:$0xff]  }
 0x247   :  { %12720 = vmatprep.subr.bf16.mxu0 %v23787_v1  ;;  %13236 = vmatprep.subr.bf16.mxu1 %v23790_v2  ;;  %v23853_v1 = vld [vmem:[#allocation2 + $0x2c5c] ss:$44 sps:$4 sm:$0xff]   ;;  %v23856_v2 = vld [vmem:[#allocation2 + $0x2c64] ss:$44 sps:$4 sm:$0xff]  }
 0x24a   :  { %12721 = vmatpush1.bf16.msra.mxu0 %v23785_v3  ;;  %13237 = vmatpush1.bf16.msra.mxu1 %v23788_v4  ;;  %v27103_v3 = vpack.c.bf16 %v143_v60, %v120_v59  ;;  %v23851_v4 = vld [vmem:[#allocation2 + $0x2c58] ss:$44 sps:$4 sm:$0xff]   ;;  %v23914_v59 = vld [vmem:[#allocation2 + $0x2fd0] ss:$44 sps:$4 sm:$0xff]  }
 0x24b   :  { %12722 = vmatprep.subr.bf16.mxu0 %v23793_v5  ;;  %13238 = vmatprep.subr.bf16.mxu1 %v23796_v6  ;;  %v23854_v5 = vld [vmem:[#allocation2 + $0x2c60] ss:$44 sps:$4 sm:$0xff]   ;;  %v23919_v60 = vld [vmem:[#allocation2 + $0x3024] ss:$44 sps:$4 sm:$0xff]  }
 0x24c   :  { %v23859_v6 = vld [vmem:[#allocation2 + $0x2cb4] ss:$44 sps:$4 sm:$0xff]  }
 0x24e   :  { %12723 = vmatpush1.bf16.msra.mxu0 %v23791_v7  ;;  %13239 = vmatpush1.bf16.msra.mxu1 %v23794_v8  ;;  %v23862_v7 = vld [vmem:[#allocation2 + $0x2cbc] ss:$44 sps:$4 sm:$0xff]  }
 0x24f   :  { %12724 = vmatprep.subr.bf16.mxu0 %v23799_v10  ;;  %13240 = vmatprep.subr.bf16.mxu1 %v23802_v11  ;;  %v23857_v8 = vld [vmem:[#allocation2 + $0x2cb0] ss:$44 sps:$4 sm:$0xff]   ;;  %v23860_v10 = vld [vmem:[#allocation2 + $0x2cb8] ss:$44 sps:$4 sm:$0xff]  }
 0x250   :  { %v23865_v11 = vld [vmem:[#allocation2 + $0x2d0c] ss:$44 sps:$4 sm:$0xff]  }
 0x252   :  { %12725 = vmatpush1.bf16.msra.mxu0 %v23797_v13  ;;  %13241 = vmatpush1.bf16.msra.mxu1 %v23800_v14  ;;  %v23868_v13 = vld [vmem:[#allocation2 + $0x2d14] ss:$44 sps:$4 sm:$0xff]  }
 0x253   :  { %12726 = vmatprep.subr.bf16.mxu0 %v23805_v15  ;;  %13242 = vmatprep.subr.bf16.mxu1 %v23808_v16  ;;  %v23863_v14 = vld [vmem:[#allocation2 + $0x2d08] ss:$44 sps:$4 sm:$0xff]   ;;  %v23866_v15 = vld [vmem:[#allocation2 + $0x2d10] ss:$44 sps:$4 sm:$0xff]  }
 0x254   :  { %v23871_v16 = vld [vmem:[#allocation2 + $0x2d64] ss:$44 sps:$4 sm:$0xff]  }
 0x256   :  { %12727 = vmatpush1.bf16.msra.mxu0 %v23803_v19  ;;  %13243 = vmatpush1.bf16.msra.mxu1 %v23806_v20  ;;  %v23874_v19 = vld [vmem:[#allocation2 + $0x2d6c] ss:$44 sps:$4 sm:$0xff]  }
 0x257   :  { %12728 = vmatprep.subr.bf16.mxu0 %v23811_v21  ;;  %13244 = vmatprep.subr.bf16.mxu1 %v23814_v22  ;;  %v23869_v20 = vld [vmem:[#allocation2 + $0x2d60] ss:$44 sps:$4 sm:$0xff]   ;;  %v23872_v21 = vld [vmem:[#allocation2 + $0x2d68] ss:$44 sps:$4 sm:$0xff]  }
 0x258   :  { %v23877_v22 = vld [vmem:[#allocation2 + $0x2dbc] ss:$44 sps:$4 sm:$0xff]  }
 0x25a   :  { %12729 = vmatpush1.bf16.msra.mxu0 %v23809_v23  ;;  %13245 = vmatpush1.bf16.msra.mxu1 %v23812_v25  ;;  %v23880_v23 = vld [vmem:[#allocation2 + $0x2dc4] ss:$44 sps:$4 sm:$0xff]  }
 0x25b   :  { %12730 = vmatprep.subr.bf16.mxu0 %v23817_v26  ;;  %13246 = vmatprep.subr.bf16.mxu1 %v23820_v27  ;;  %v23875_v25 = vld [vmem:[#allocation2 + $0x2db8] ss:$44 sps:$4 sm:$0xff]   ;;  %v23878_v26 = vld [vmem:[#allocation2 + $0x2dc0] ss:$44 sps:$4 sm:$0xff]  }
 0x25c   :  { %v23883_v27 = vld [vmem:[#allocation2 + $0x2e14] ss:$44 sps:$4 sm:$0xff]  }
 0x25e   :  { %12731 = vmatpush1.bf16.msra.mxu0 %v23815_v29  ;;  %13247 = vmatpush1.bf16.msra.mxu1 %v23818_v30  ;;  %v23886_v29 = vld [vmem:[#allocation2 + $0x2e1c] ss:$44 sps:$4 sm:$0xff]  }
 0x25f   :  { %12732 = vmatprep.subr.bf16.mxu0 %v23823_v31  ;;  %13248 = vmatprep.subr.bf16.mxu1 %v23826_v32  ;;  %v23881_v30 = vld [vmem:[#allocation2 + $0x2e10] ss:$44 sps:$4 sm:$0xff]   ;;  %v23884_v31 = vld [vmem:[#allocation2 + $0x2e18] ss:$44 sps:$4 sm:$0xff]  }
 0x260   :  { %v23889_v32 = vld [vmem:[#allocation2 + $0x2e6c] ss:$44 sps:$4 sm:$0xff]  }
 0x262   :  { %12733 = vmatpush1.bf16.msra.mxu0 %v23821_v34  ;;  %13249 = vmatpush1.bf16.msra.mxu1 %v23824_v37  ;;  %v23892_v34 = vld [vmem:[#allocation2 + $0x2e74] ss:$44 sps:$4 sm:$0xff]  }
 0x263   :  { %12734 = vmatprep.subr.bf16.mxu0 %v23829_v38  ;;  %13250 = vmatprep.subr.bf16.mxu1 %v23832_v39  ;;  %v23887_v37 = vld [vmem:[#allocation2 + $0x2e68] ss:$44 sps:$4 sm:$0xff]   ;;  %v23890_v38 = vld [vmem:[#allocation2 + $0x2e70] ss:$44 sps:$4 sm:$0xff]  }
 0x264   :  { %v23895_v39 = vld [vmem:[#allocation2 + $0x2ec4] ss:$44 sps:$4 sm:$0xff]  }
 0x266   :  { %12735 = vmatpush1.bf16.msra.mxu0 %v23827_v40  ;;  %13251 = vmatpush1.bf16.msra.mxu1 %v23830_v43  ;;  %v23898_v40 = vld [vmem:[#allocation2 + $0x2ecc] ss:$44 sps:$4 sm:$0xff]  }
 0x267   :  { %12736 = vmatprep.subr.bf16.mxu0 %v23835_v44  ;;  %13252 = vmatprep.subr.bf16.mxu1 %v23838_v45  ;;  %v23893_v43 = vld [vmem:[#allocation2 + $0x2ec0] ss:$44 sps:$4 sm:$0xff]   ;;  %v23896_v44 = vld [vmem:[#allocation2 + $0x2ec8] ss:$44 sps:$4 sm:$0xff]  }
 0x268   :  { %v23901_v45 = vld [vmem:[#allocation2 + $0x2f1c] ss:$44 sps:$4 sm:$0xff]  }
 0x26a   :  { %12737 = vmatpush1.bf16.msra.mxu0 %v23833_v46  ;;  %13253 = vmatpush1.bf16.msra.mxu1 %v23836_v48  ;;  %v23904_v46 = vld [vmem:[#allocation2 + $0x2f24] ss:$44 sps:$4 sm:$0xff]  }
 0x26b   :  { %12738 = vmatprep.subr.bf16.mxu0 %v23841_v49  ;;  %13254 = vmatprep.subr.bf16.mxu1 %v23844_v51  ;;  %v23899_v48 = vld [vmem:[#allocation2 + $0x2f18] ss:$44 sps:$4 sm:$0xff]   ;;  %v23902_v49 = vld [vmem:[#allocation2 + $0x2f20] ss:$44 sps:$4 sm:$0xff]  }
 0x26c   :  { %v23907_v51 = vld [vmem:[#allocation2 + $0x2f74] ss:$44 sps:$4 sm:$0xff]  }
 0x26e   :  { %12739 = vmatpush1.bf16.msra.mxu0 %v23839_v52  ;;  %13255 = vmatpush1.bf16.msra.mxu1 %v23842_v53  ;;  %v23910_v52 = vld [vmem:[#allocation2 + $0x2f7c] ss:$44 sps:$4 sm:$0xff]  }
 0x26f   :  { %12751 = vmatprep.subr.bf16.mxu0 %v23847_v54  ;;  %13267 = vmatprep.subr.bf16.mxu1 %v23850_v55  ;;  %v23905_v53 = vld [vmem:[#allocation2 + $0x2f70] ss:$44 sps:$4 sm:$0xff]   ;;  %v23908_v54 = vld [vmem:[#allocation2 + $0x2f78] ss:$44 sps:$4 sm:$0xff]  }
 0x270   :  { %v23913_v55 = vld [vmem:[#allocation2 + $0x2fcc] ss:$44 sps:$4 sm:$0xff]  }
 0x271   :  { %12741 = vmatmul.mubr.bf16.vlgmr.msra.gmra.mrb[0].mxu0 %v27101_v61  ;;  %13257 = vmatmul.mubr.bf16.vlgmr.msra.gmra.mrb[0].mxu1 %v27101_v61 }
 0x272   :  { %12752 = vmatpush1.bf16.msra.mxu0 %v23845_v62  ;;  %13268 = vmatpush1.bf16.msra.mxu1 %v23848_v0  ;;  %v23922_v62 = vld [vmem:[#allocation2 + $0x302c] ss:$44 sps:$4 sm:$0xff]  }
 0x273   :  { %12753 = vmatprep.subr.bf16.mxu0 %v23853_v1  ;;  %13269 = vmatprep.subr.bf16.mxu1 %v23856_v2  ;;  %v23917_v0 = vld [vmem:[#allocation2 + $0x3020] ss:$44 sps:$4 sm:$0xff]   ;;  %v23920_v1 = vld [vmem:[#allocation2 + $0x3028] ss:$44 sps:$4 sm:$0xff]  }
 0x274   :  { %12783 = vmatprep.mubr.bf16.mxu0 %v27103_v3  ;;  %13299 = vmatprep.mubr.bf16.mxu1 %v27103_v3  ;;  %v23925_v2 = vld [vmem:[#allocation2 + $0x307c] ss:$44 sps:$4 sm:$0xff]  }
 0x276   :  { %12754 = vmatpush1.bf16.msra.mxu0 %v23851_v4  ;;  %13270 = vmatpush1.bf16.msra.mxu1 %v23854_v5  ;;  %v23928_v4 = vld [vmem:[#allocation2 + $0x3084] ss:$44 sps:$4 sm:$0xff]  }
 0x277   :  { %12755 = vmatprep.subr.bf16.mxu0 %v23859_v6  ;;  %13271 = vmatprep.subr.bf16.mxu1 %v23862_v7  ;;  %v23923_v5 = vld [vmem:[#allocation2 + $0x3078] ss:$44 sps:$4 sm:$0xff]   ;;  %v23926_v6 = vld [vmem:[#allocation2 + $0x3080] ss:$44 sps:$4 sm:$0xff]  }
 0x278   :  { %v23931_v7 = vld [vmem:[#allocation2 + $0x30d4] ss:$44 sps:$4 sm:$0xff]  }
 0x27a   :  { %12756 = vmatpush1.bf16.msra.mxu0 %v23857_v8  ;;  %13272 = vmatpush1.bf16.msra.mxu1 %v23860_v10  ;;  %v23934_v8 = vld [vmem:[#allocation2 + $0x30dc] ss:$44 sps:$4 sm:$0xff]  }
 0x27b   :  { %12757 = vmatprep.subr.bf16.mxu0 %v23865_v11  ;;  %13273 = vmatprep.subr.bf16.mxu1 %v23868_v13  ;;  %v23929_v10 = vld [vmem:[#allocation2 + $0x30d0] ss:$44 sps:$4 sm:$0xff]   ;;  %v23932_v11 = vld [vmem:[#allocation2 + $0x30d8] ss:$44 sps:$4 sm:$0xff]  }
 0x27c   :  { %v23937_v13 = vld [vmem:[#allocation2 + $0x312c] ss:$44 sps:$4 sm:$0xff]  }
 0x27e   :  { %12758 = vmatpush1.bf16.msra.mxu0 %v23863_v14  ;;  %13274 = vmatpush1.bf16.msra.mxu1 %v23866_v15  ;;  %v23940_v14 = vld [vmem:[#allocation2 + $0x3134] ss:$44 sps:$4 sm:$0xff]  }
 0x27f   :  { %12759 = vmatprep.subr.bf16.mxu0 %v23871_v16  ;;  %13275 = vmatprep.subr.bf16.mxu1 %v23874_v19  ;;  %v23935_v15 = vld [vmem:[#allocation2 + $0x3128] ss:$44 sps:$4 sm:$0xff]   ;;  %v23938_v16 = vld [vmem:[#allocation2 + $0x3130] ss:$44 sps:$4 sm:$0xff]   ;;  %v119_v19 = vld [vmem:[%s27703_s0 + $0x80] sm:$0xff] }
 0x282   :  { %12760 = vmatpush1.bf16.msra.mxu0 %v23869_v20  ;;  %13276 = vmatpush1.bf16.msra.mxu1 %v23872_v21  ;;  %v142_v20 = vld [vmem:[%s27703_s0 + $0x138] sm:$0xff]  ;;  %v23943_v21 = vld [vmem:[#allocation2 + $0x3184] ss:$44 sps:$4 sm:$0xff]  }
 0x283   :  { %12761 = vmatprep.subr.bf16.mxu0 %v23877_v22  ;;  %13277 = vmatprep.subr.bf16.mxu1 %v23880_v23  ;;  %v23946_v22 = vld [vmem:[#allocation2 + $0x318c] ss:$44 sps:$4 sm:$0xff]   ;;  %v27115_v23 = vpack.c.bf16 %v142_v20, %v119_v19  ;;  %v24006_v19 = vld [vmem:[#allocation2 + $0x34fc] ss:$44 sps:$4 sm:$0xff]  }
 0x284   :  { %v24001_v20 = vld [vmem:[#allocation2 + $0x34f0] ss:$44 sps:$4 sm:$0xff]  }
 0x286   :  { %12762 = vmatpush1.bf16.msra.mxu0 %v23875_v25  ;;  %13278 = vmatpush1.bf16.msra.mxu1 %v23878_v26  ;;  %v122_v25 = vld [vmem:[%s27703_s0 + $0x98] sm:$0xff]  ;;  %v145_v26 = vld [vmem:[%s27703_s0 + $0x150] sm:$0xff] }
 0x287   :  { %12763 = vmatprep.subr.bf16.mxu0 %v23883_v27  ;;  %13279 = vmatprep.subr.bf16.mxu1 %v23886_v29  ;;  %v23941_v27 = vld [vmem:[#allocation2 + $0x3180] ss:$44 sps:$4 sm:$0xff]   ;;  %v23944_v29 = vld [vmem:[#allocation2 + $0x3188] ss:$44 sps:$4 sm:$0xff]  }
 0x28a   :  { %12764 = vmatpush1.bf16.msra.mxu0 %v23881_v30  ;;  %13280 = vmatpush1.bf16.msra.mxu1 %v23884_v31  ;;  %v23949_v30 = vld [vmem:[#allocation2 + $0x31dc] ss:$44 sps:$4 sm:$0xff]   ;;  %v23952_v31 = vld [vmem:[#allocation2 + $0x31e4] ss:$44 sps:$4 sm:$0xff]  }
 0x28b   :  { %12765 = vmatprep.subr.bf16.mxu0 %v23889_v32  ;;  %13281 = vmatprep.subr.bf16.mxu1 %v23892_v34  ;;  %v27123_v32 = vpack.c.bf16 %v145_v26, %v122_v25  ;;  %v23947_v34 = vld [vmem:[#allocation2 + $0x31d8] ss:$44 sps:$4 sm:$0xff]   ;;  %v24012_v25 = vld [vmem:[#allocation2 + $0x3554] ss:$44 sps:$4 sm:$0xff]  }
 0x28c   :  { %v24007_v26 = vld [vmem:[#allocation2 + $0x3548] ss:$44 sps:$4 sm:$0xff]  }
 0x28e   :  { %12766 = vmatpush1.bf16.msra.mxu0 %v23887_v37  ;;  %13282 = vmatpush1.bf16.msra.mxu1 %v23890_v38  ;;  %v23950_v37 = vld [vmem:[#allocation2 + $0x31e0] ss:$44 sps:$4 sm:$0xff]  }
 0x28f   :  { %12767 = vmatprep.subr.bf16.mxu0 %v23895_v39  ;;  %13283 = vmatprep.subr.bf16.mxu1 %v23898_v40  ;;  %v23955_v38 = vld [vmem:[#allocation2 + $0x3234] ss:$44 sps:$4 sm:$0xff]   ;;  %v23958_v39 = vld [vmem:[#allocation2 + $0x323c] ss:$44 sps:$4 sm:$0xff]  }
 0x290   :  { %v23953_v40 = vld [vmem:[#allocation2 + $0x3230] ss:$44 sps:$4 sm:$0xff]  }
 0x292   :  { %12768 = vmatpush1.bf16.msra.mxu0 %v23893_v43  ;;  %13284 = vmatpush1.bf16.msra.mxu1 %v23896_v44  ;;  %v23956_v43 = vld [vmem:[#allocation2 + $0x3238] ss:$44 sps:$4 sm:$0xff]  }
 0x293   :  { %12769 = vmatprep.subr.bf16.mxu0 %v23901_v45  ;;  %13285 = vmatprep.subr.bf16.mxu1 %v23904_v46  ;;  %v23961_v44 = vld [vmem:[#allocation2 + $0x328c] ss:$44 sps:$4 sm:$0xff]   ;;  %v23964_v45 = vld [vmem:[#allocation2 + $0x3294] ss:$44 sps:$4 sm:$0xff]  }
 0x294   :  { %v23959_v46 = vld [vmem:[#allocation2 + $0x3288] ss:$44 sps:$4 sm:$0xff]  }
 0x296   :  { %12770 = vmatpush1.bf16.msra.mxu0 %v23899_v48  ;;  %13286 = vmatpush1.bf16.msra.mxu1 %v23902_v49  ;;  %v23962_v48 = vld [vmem:[#allocation2 + $0x3290] ss:$44 sps:$4 sm:$0xff]  }
 0x297   :  { %12771 = vmatprep.subr.bf16.mxu0 %v23907_v51  ;;  %13287 = vmatprep.subr.bf16.mxu1 %v23910_v52  ;;  %v23967_v49 = vld [vmem:[#allocation2 + $0x32e4] ss:$44 sps:$4 sm:$0xff]   ;;  %v23970_v51 = vld [vmem:[#allocation2 + $0x32ec] ss:$44 sps:$4 sm:$0xff]  }
 0x298   :  { %v23965_v52 = vld [vmem:[#allocation2 + $0x32e0] ss:$44 sps:$4 sm:$0xff]  }
 0x29a   :  { %12772 = vmatpush1.bf16.msra.mxu0 %v23905_v53  ;;  %13288 = vmatpush1.bf16.msra.mxu1 %v23908_v54  ;;  %v23968_v53 = vld [vmem:[#allocation2 + $0x32e8] ss:$44 sps:$4 sm:$0xff]  }
 0x29b   :  { %12773 = vmatprep.subr.bf16.mxu0 %v23913_v55  ;;  %13289 = vmatprep.subr.bf16.mxu1 %v23916_v56  ;;  %v23973_v54 = vld [vmem:[#allocation2 + $0x333c] ss:$44 sps:$4 sm:$0xff]   ;;  %v23976_v55 = vld [vmem:[#allocation2 + $0x3344] ss:$44 sps:$4 sm:$0xff]  }
 0x29c   :  { %v23971_v56 = vld [vmem:[#allocation2 + $0x3338] ss:$44 sps:$4 sm:$0xff]  }
 0x29e   :  { %12774 = vmatpush1.bf16.msra.mxu0 %v23911_v57  ;;  %13290 = vmatpush1.bf16.msra.mxu1 %v23914_v59  ;;  %v23974_v57 = vld [vmem:[#allocation2 + $0x3340] ss:$44 sps:$4 sm:$0xff]  }
 0x29f   :  { %12775 = vmatprep.subr.bf16.mxu0 %v23919_v60  ;;  %13291 = vmatprep.subr.bf16.mxu1 %v23922_v62  ;;  %v23979_v59 = vld [vmem:[#allocation2 + $0x3394] ss:$44 sps:$4 sm:$0xff]   ;;  %v23982_v60 = vld [vmem:[#allocation2 + $0x339c] ss:$44 sps:$4 sm:$0xff]  }
 0x2a0   :  { %v23977_v62 = vld [vmem:[#allocation2 + $0x3390] ss:$44 sps:$4 sm:$0xff]  }
 0x2a2   :  { %12776 = vmatpush1.bf16.msra.mxu0 %v23917_v0  ;;  %13292 = vmatpush1.bf16.msra.mxu1 %v23920_v1  ;;  %v23980_v0 = vld [vmem:[#allocation2 + $0x3398] ss:$44 sps:$4 sm:$0xff]  }
 0x2a3   :  { %12777 = vmatprep.subr.bf16.mxu0 %v23925_v2  ;;  %13293 = vmatprep.subr.bf16.mxu1 %v23928_v4  ;;  %v23985_v1 = vld [vmem:[#allocation2 + $0x33ec] ss:$44 sps:$4 sm:$0xff]   ;;  %v23988_v2 = vld [vmem:[#allocation2 + $0x33f4] ss:$44 sps:$4 sm:$0xff]  }
 0x2a4   :  { %v23983_v4 = vld [vmem:[#allocation2 + $0x33e8] ss:$44 sps:$4 sm:$0xff]  }
 0x2a6   :  { %12778 = vmatpush1.bf16.msra.mxu0 %v23923_v5  ;;  %13294 = vmatpush1.bf16.msra.mxu1 %v23926_v6  ;;  %v23986_v5 = vld [vmem:[#allocation2 + $0x33f0] ss:$44 sps:$4 sm:$0xff]  }
 0x2a7   :  { %12779 = vmatprep.subr.bf16.mxu0 %v23931_v7  ;;  %13295 = vmatprep.subr.bf16.mxu1 %v23934_v8  ;;  %v23991_v6 = vld [vmem:[#allocation2 + $0x3444] ss:$44 sps:$4 sm:$0xff]   ;;  %v23994_v7 = vld [vmem:[#allocation2 + $0x344c] ss:$44 sps:$4 sm:$0xff]  }
 0x2a8   :  { %v23989_v8 = vld [vmem:[#allocation2 + $0x3440] ss:$44 sps:$4 sm:$0xff]  }
 0x2aa   :  { %12780 = vmatpush1.bf16.msra.mxu0 %v23929_v10  ;;  %13296 = vmatpush1.bf16.msra.mxu1 %v23932_v11  ;;  %v23992_v10 = vld [vmem:[#allocation2 + $0x3448] ss:$44 sps:$4 sm:$0xff]  }
 0x2ab   :  { %12781 = vmatprep.subr.bf16.mxu0 %v23937_v13  ;;  %13297 = vmatprep.subr.bf16.mxu1 %v23940_v14  ;;  %v23997_v11 = vld [vmem:[#allocation2 + $0x349c] ss:$44 sps:$4 sm:$0xff]   ;;  %v24000_v13 = vld [vmem:[#allocation2 + $0x34a4] ss:$44 sps:$4 sm:$0xff]  }
 0x2ac   :  { %v23995_v14 = vld [vmem:[#allocation2 + $0x3498] ss:$44 sps:$4 sm:$0xff]  }
 0x2ae   :  { %12782 = vmatpush1.bf16.msra.mxu0 %v23935_v15  ;;  %13298 = vmatpush1.bf16.msra.mxu1 %v23938_v16  ;;  %v23998_v15 = vld [vmem:[#allocation2 + $0x34a0] ss:$44 sps:$4 sm:$0xff]  }
 0x2af   :  { %12794 = vmatprep.subr.bf16.mxu0 %v23943_v21  ;;  %13310 = vmatprep.subr.bf16.mxu1 %v23946_v22  ;;  %v24003_v16 = vld [vmem:[#allocation2 + $0x34f4] ss:$44 sps:$4 sm:$0xff]   ;;  %v24004_v21 = vld [vmem:[#allocation2 + $0x34f8] ss:$44 sps:$4 sm:$0xff]  }
 0x2b0   :  { %v24009_v22 = vld [vmem:[#allocation2 + $0x354c] ss:$44 sps:$4 sm:$0xff]  }
 0x2b1   :  { %12784 = vmatmul.mubr.bf16.vlgmr.msra.gmra.mrb[0].mxu0 %v27115_v23  ;;  %13300 = vmatmul.mubr.bf16.vlgmr.msra.gmra.mrb[0].mxu1 %v27115_v23 }
 0x2b2   :  { %12795 = vmatpush1.bf16.msra.mxu0 %v23941_v27  ;;  %13311 = vmatpush1.bf16.msra.mxu1 %v23944_v29  ;;  %v24010_v27 = vld [vmem:[#allocation2 + $0x3550] ss:$44 sps:$4 sm:$0xff]  }
 0x2b3   :  { %12796 = vmatprep.subr.bf16.mxu0 %v23949_v30  ;;  %13312 = vmatprep.subr.bf16.mxu1 %v23952_v31  ;;  %v24015_v29 = vld [vmem:[#allocation2 + $0x35a4] ss:$44 sps:$4 sm:$0xff]   ;;  %v24018_v30 = vld [vmem:[#allocation2 + $0x35ac] ss:$44 sps:$4 sm:$0xff]  }
 0x2b4   :  { %12826 = vmatprep.mubr.bf16.mxu0 %v27123_v32  ;;  %13342 = vmatprep.mubr.bf16.mxu1 %v27123_v32  ;;  %v24013_v31 = vld [vmem:[#allocation2 + $0x35a0] ss:$44 sps:$4 sm:$0xff]  }
 0x2b6   :  { %12797 = vmatpush1.bf16.msra.mxu0 %v23947_v34  ;;  %13313 = vmatpush1.bf16.msra.mxu1 %v23950_v37  ;;  %v24016_v34 = vld [vmem:[#allocation2 + $0x35a8] ss:$44 sps:$4 sm:$0xff]  }
 0x2b7   :  { %12798 = vmatprep.subr.bf16.mxu0 %v23955_v38  ;;  %13314 = vmatprep.subr.bf16.mxu1 %v23958_v39  ;;  %v24021_v37 = vld [vmem:[#allocation2 + $0x35fc] ss:$44 sps:$4 sm:$0xff]   ;;  %v24024_v38 = vld [vmem:[#allocation2 + $0x3604] ss:$44 sps:$4 sm:$0xff]  }
 0x2b8   :  { %v24019_v39 = vld [vmem:[#allocation2 + $0x35f8] ss:$44 sps:$4 sm:$0xff]  }
 0x2ba   :  { %12799 = vmatpush1.bf16.msra.mxu0 %v23953_v40  ;;  %13315 = vmatpush1.bf16.msra.mxu1 %v23956_v43  ;;  %v24022_v40 = vld [vmem:[#allocation2 + $0x3600] ss:$44 sps:$4 sm:$0xff]  }
 0x2bb   :  { %12800 = vmatprep.subr.bf16.mxu0 %v23961_v44  ;;  %13316 = vmatprep.subr.bf16.mxu1 %v23964_v45  ;;  %v24027_v43 = vld [vmem:[#allocation2 + $0x3654] ss:$44 sps:$4 sm:$0xff]   ;;  %v24030_v44 = vld [vmem:[#allocation2 + $0x365c] ss:$44 sps:$4 sm:$0xff]  }
 0x2bc   :  { %v24025_v45 = vld [vmem:[#allocation2 + $0x3650] ss:$44 sps:$4 sm:$0xff]  }
 0x2be   :  { %12801 = vmatpush1.bf16.msra.mxu0 %v23959_v46  ;;  %13317 = vmatpush1.bf16.msra.mxu1 %v23962_v48  ;;  %v24028_v46 = vld [vmem:[#allocation2 + $0x3658] ss:$44 sps:$4 sm:$0xff]  }
 0x2bf   :  { %12802 = vmatprep.subr.bf16.mxu0 %v23967_v49  ;;  %13318 = vmatprep.subr.bf16.mxu1 %v23970_v51  ;;  %v24033_v48 = vld [vmem:[#allocation2 + $0x36ac] ss:$44 sps:$4 sm:$0xff]   ;;  %v24036_v49 = vld [vmem:[#allocation2 + $0x36b4] ss:$44 sps:$4 sm:$0xff]  }
 0x2c0   :  { %v24031_v51 = vld [vmem:[#allocation2 + $0x36a8] ss:$44 sps:$4 sm:$0xff]  }
 0x2c2   :  { %12803 = vmatpush1.bf16.msra.mxu0 %v23965_v52  ;;  %13319 = vmatpush1.bf16.msra.mxu1 %v23968_v53  ;;  %v24034_v52 = vld [vmem:[#allocation2 + $0x36b0] ss:$44 sps:$4 sm:$0xff]  }
 0x2c3   :  { %12804 = vmatprep.subr.bf16.mxu0 %v23973_v54  ;;  %13320 = vmatprep.subr.bf16.mxu1 %v23976_v55  ;;  %v24039_v53 = vld [vmem:[#allocation2 + $0x3704] ss:$44 sps:$4 sm:$0xff]   ;;  %v24042_v54 = vld [vmem:[#allocation2 + $0x370c] ss:$44 sps:$4 sm:$0xff]  }
 0x2c4   :  { %v121_v55 = vld [vmem:[%s27703_s0 + $0x90] sm:$0xff] }
 0x2c6   :  { %12805 = vmatpush1.bf16.msra.mxu0 %v23971_v56  ;;  %13321 = vmatpush1.bf16.msra.mxu1 %v23974_v57  ;;  %v144_v56 = vld [vmem:[%s27703_s0 + $0x148] sm:$0xff] }
 0x2c7   :  { %12806 = vmatprep.subr.bf16.mxu0 %v23979_v59  ;;  %13322 = vmatprep.subr.bf16.mxu1 %v23982_v60  ;;  %v124_v57 = vld [vmem:[%s27703_s0 + $0xa8] sm:$0xff]  ;;  %v147_v59 = vld [vmem:[%s27703_s0 + $0x160] sm:$0xff]  ;;  %v27141_v60 = vpack.c.bf16 %v144_v56, %v121_v55  ;;  %v24097_v56 = vld [vmem:[#allocation2 + $0x3a70] ss:$44 sps:$4 sm:$0xff]  }
 0x2c8   :  { %v24102_v55 = vld [vmem:[#allocation2 + $0x3a7c] ss:$44 sps:$4 sm:$0xff]  }
 0x2ca   :  { %12807 = vmatpush1.bf16.msra.mxu0 %v23977_v62  ;;  %13323 = vmatpush1.bf16.msra.mxu1 %v23980_v0  ;;  %v24037_v62 = vld [vmem:[#allocation2 + $0x3700] ss:$44 sps:$4 sm:$0xff]   ;;  %v24040_v0 = vld [vmem:[#allocation2 + $0x3708] ss:$44 sps:$4 sm:$0xff]  }
 0x2cb   :  { %12808 = vmatprep.subr.bf16.mxu0 %v23985_v1  ;;  %13324 = vmatprep.subr.bf16.mxu1 %v23988_v2  ;;  %v24045_v1 = vld [vmem:[#allocation2 + $0x375c] ss:$44 sps:$4 sm:$0xff]   ;;  %v24048_v2 = vld [vmem:[#allocation2 + $0x3764] ss:$44 sps:$4 sm:$0xff]  }
 0x2ce   :  { %12809 = vmatpush1.bf16.msra.mxu0 %v23983_v4  ;;  %13325 = vmatpush1.bf16.msra.mxu1 %v23986_v5  ;;  %v27143_v4 = vpack.c.bf16 %v147_v59, %v124_v57  ;;  %v24043_v5 = vld [vmem:[#allocation2 + $0x3758] ss:$44 sps:$4 sm:$0xff]  }
 0x2cf   :  { %12810 = vmatprep.subr.bf16.mxu0 %v23991_v6  ;;  %13326 = vmatprep.subr.bf16.mxu1 %v23994_v7  ;;  %v24046_v6 = vld [vmem:[#allocation2 + $0x3760] ss:$44 sps:$4 sm:$0xff]   ;;  %v24100_v57 = vld [vmem:[#allocation2 + $0x3a78] ss:$44 sps:$4 sm:$0xff]  }
 0x2d0   :  { %v24051_v7 = vld [vmem:[#allocation2 + $0x37b4] ss:$44 sps:$4 sm:$0xff]   ;;  %v24105_v59 = vld [vmem:[#allocation2 + $0x3acc] ss:$44 sps:$4 sm:$0xff]  }
 0x2d2   :  { %12811 = vmatpush1.bf16.msra.mxu0 %v23989_v8  ;;  %13327 = vmatpush1.bf16.msra.mxu1 %v23992_v10  ;;  %v24054_v8 = vld [vmem:[#allocation2 + $0x37bc] ss:$44 sps:$4 sm:$0xff]  }
 0x2d3   :  { %12812 = vmatprep.subr.bf16.mxu0 %v23997_v11  ;;  %13328 = vmatprep.subr.bf16.mxu1 %v24000_v13  ;;  %v24049_v10 = vld [vmem:[#allocation2 + $0x37b0] ss:$44 sps:$4 sm:$0xff]   ;;  %v24052_v11 = vld [vmem:[#allocation2 + $0x37b8] ss:$44 sps:$4 sm:$0xff]  }
 0x2d4   :  { %v24057_v13 = vld [vmem:[#allocation2 + $0x380c] ss:$44 sps:$4 sm:$0xff]  }
 0x2d6   :  { %12813 = vmatpush1.bf16.msra.mxu0 %v23995_v14  ;;  %13329 = vmatpush1.bf16.msra.mxu1 %v23998_v15  ;;  %v24060_v14 = vld [vmem:[#allocation2 + $0x3814] ss:$44 sps:$4 sm:$0xff]  }
 0x2d7   :  { %12814 = vmatprep.subr.bf16.mxu0 %v24003_v16  ;;  %13330 = vmatprep.subr.bf16.mxu1 %v24006_v19  ;;  %v24055_v15 = vld [vmem:[#allocation2 + $0x3808] ss:$44 sps:$4 sm:$0xff]   ;;  %v24058_v16 = vld [vmem:[#allocation2 + $0x3810] ss:$44 sps:$4 sm:$0xff]  }
 0x2d8   :  { %v24063_v19 = vld [vmem:[#allocation2 + $0x3864] ss:$44 sps:$4 sm:$0xff]  }
 0x2da   :  { %12815 = vmatpush1.bf16.msra.mxu0 %v24001_v20  ;;  %13331 = vmatpush1.bf16.msra.mxu1 %v24004_v21  ;;  %v24066_v20 = vld [vmem:[#allocation2 + $0x386c] ss:$44 sps:$4 sm:$0xff]  }
 0x2db   :  { %12816 = vmatprep.subr.bf16.mxu0 %v24009_v22  ;;  %13332 = vmatprep.subr.bf16.mxu1 %v24012_v25  ;;  %v24061_v21 = vld [vmem:[#allocation2 + $0x3860] ss:$44 sps:$4 sm:$0xff]   ;;  %v24064_v22 = vld [vmem:[#allocation2 + $0x3868] ss:$44 sps:$4 sm:$0xff]  }
 0x2dc   :  { %v24069_v25 = vld [vmem:[#allocation2 + $0x38bc] ss:$44 sps:$4 sm:$0xff]  }
 0x2de   :  { %12817 = vmatpush1.bf16.msra.mxu0 %v24007_v26  ;;  %13333 = vmatpush1.bf16.msra.mxu1 %v24010_v27  ;;  %v24072_v26 = vld [vmem:[#allocation2 + $0x38c4] ss:$44 sps:$4 sm:$0xff]  }
 0x2df   :  { %12818 = vmatprep.subr.bf16.mxu0 %v24015_v29  ;;  %13334 = vmatprep.subr.bf16.mxu1 %v24018_v30  ;;  %v24067_v27 = vld [vmem:[#allocation2 + $0x38b8] ss:$44 sps:$4 sm:$0xff]   ;;  %v24070_v29 = vld [vmem:[#allocation2 + $0x38c0] ss:$44 sps:$4 sm:$0xff]  }
 0x2e0   :  { %v24075_v30 = vld [vmem:[#allocation2 + $0x3914] ss:$44 sps:$4 sm:$0xff]  }
 0x2e2   :  { %12819 = vmatpush1.bf16.msra.mxu0 %v24013_v31  ;;  %13335 = vmatpush1.bf16.msra.mxu1 %v24016_v34  ;;  %v24078_v31 = vld [vmem:[#allocation2 + $0x391c] ss:$44 sps:$4 sm:$0xff]  }
 0x2e3   :  { %12820 = vmatprep.subr.bf16.mxu0 %v24021_v37  ;;  %13336 = vmatprep.subr.bf16.mxu1 %v24024_v38  ;;  %v24073_v34 = vld [vmem:[#allocation2 + $0x3910] ss:$44 sps:$4 sm:$0xff]   ;;  %v24076_v37 = vld [vmem:[#allocation2 + $0x3918] ss:$44 sps:$4 sm:$0xff]  }
 0x2e4   :  { %v24081_v38 = vld [vmem:[#allocation2 + $0x396c] ss:$44 sps:$4 sm:$0xff]  }
 0x2e6   :  { %12821 = vmatpush1.bf16.msra.mxu0 %v24019_v39  ;;  %13337 = vmatpush1.bf16.msra.mxu1 %v24022_v40  ;;  %v24084_v39 = vld [vmem:[#allocation2 + $0x3974] ss:$44 sps:$4 sm:$0xff]  }
 0x2e7   :  { %12822 = vmatprep.subr.bf16.mxu0 %v24027_v43  ;;  %13338 = vmatprep.subr.bf16.mxu1 %v24030_v44  ;;  %v24079_v40 = vld [vmem:[#allocation2 + $0x3968] ss:$44 sps:$4 sm:$0xff]   ;;  %v24082_v43 = vld [vmem:[#allocation2 + $0x3970] ss:$44 sps:$4 sm:$0xff]  }
 0x2e8   :  { %v24087_v44 = vld [vmem:[#allocation2 + $0x39c4] ss:$44 sps:$4 sm:$0xff]  }
 0x2ea   :  { %12823 = vmatpush1.bf16.msra.mxu0 %v24025_v45  ;;  %13339 = vmatpush1.bf16.msra.mxu1 %v24028_v46  ;;  %v24090_v45 = vld [vmem:[#allocation2 + $0x39cc] ss:$44 sps:$4 sm:$0xff]  }
 0x2eb   :  { %12824 = vmatprep.subr.bf16.mxu0 %v24033_v48  ;;  %13340 = vmatprep.subr.bf16.mxu1 %v24036_v49  ;;  %v24085_v46 = vld [vmem:[#allocation2 + $0x39c0] ss:$44 sps:$4 sm:$0xff]   ;;  %v24088_v48 = vld [vmem:[#allocation2 + $0x39c8] ss:$44 sps:$4 sm:$0xff]  }
 0x2ec   :  { %v24093_v49 = vld [vmem:[#allocation2 + $0x3a1c] ss:$44 sps:$4 sm:$0xff]  }
 0x2ee   :  { %12825 = vmatpush1.bf16.msra.mxu0 %v24031_v51  ;;  %13341 = vmatpush1.bf16.msra.mxu1 %v24034_v52  ;;  %v24096_v51 = vld [vmem:[#allocation2 + $0x3a24] ss:$44 sps:$4 sm:$0xff]  }
 0x2ef   :  { %12837 = vmatprep.subr.bf16.mxu0 %v24039_v53  ;;  %13353 = vmatprep.subr.bf16.mxu1 %v24042_v54  ;;  %v24091_v52 = vld [vmem:[#allocation2 + $0x3a18] ss:$44 sps:$4 sm:$0xff]   ;;  %v24094_v53 = vld [vmem:[#allocation2 + $0x3a20] ss:$44 sps:$4 sm:$0xff]  }
 0x2f0   :  { %v24099_v54 = vld [vmem:[#allocation2 + $0x3a74] ss:$44 sps:$4 sm:$0xff]  }
 0x2f1   :  { %12827 = vmatmul.mubr.bf16.vlgmr.msra.gmra.mrb[0].mxu0 %v27141_v60  ;;  %13343 = vmatmul.mubr.bf16.vlgmr.msra.gmra.mrb[0].mxu1 %v27141_v60 }
 0x2f2   :  { %12838 = vmatpush1.bf16.msra.mxu0 %v24037_v62  ;;  %13354 = vmatpush1.bf16.msra.mxu1 %v24040_v0  ;;  %v24108_v62 = vld [vmem:[#allocation2 + $0x3ad4] ss:$44 sps:$4 sm:$0xff]  }
 0x2f3   :  { %12839 = vmatprep.subr.bf16.mxu0 %v24045_v1  ;;  %13355 = vmatprep.subr.bf16.mxu1 %v24048_v2  ;;  %v24103_v0 = vld [vmem:[#allocation2 + $0x3ac8] ss:$44 sps:$4 sm:$0xff]   ;;  %v24106_v1 = vld [vmem:[#allocation2 + $0x3ad0] ss:$44 sps:$4 sm:$0xff]  }
 0x2f4   :  { %12869 = vmatprep.mubr.bf16.mxu0 %v27143_v4  ;;  %13385 = vmatprep.mubr.bf16.mxu1 %v27143_v4  ;;  %v24111_v2 = vld [vmem:[#allocation2 + $0x3b24] ss:$44 sps:$4 sm:$0xff]  }
 0x2f6   :  { %12840 = vmatpush1.bf16.msra.mxu0 %v24043_v5  ;;  %13356 = vmatpush1.bf16.msra.mxu1 %v24046_v6  ;;  %v24114_v5 = vld [vmem:[#allocation2 + $0x3b2c] ss:$44 sps:$4 sm:$0xff]  }
 0x2f7   :  { %12841 = vmatprep.subr.bf16.mxu0 %v24051_v7  ;;  %13357 = vmatprep.subr.bf16.mxu1 %v24054_v8  ;;  %v24109_v6 = vld [vmem:[#allocation2 + $0x3b20] ss:$44 sps:$4 sm:$0xff]   ;;  %v24112_v7 = vld [vmem:[#allocation2 + $0x3b28] ss:$44 sps:$4 sm:$0xff]  }
 0x2f8   :  { %v24117_v8 = vld [vmem:[#allocation2 + $0x3b7c] ss:$44 sps:$4 sm:$0xff]  }
 0x2fa   :  { %12842 = vmatpush1.bf16.msra.mxu0 %v24049_v10  ;;  %13358 = vmatpush1.bf16.msra.mxu1 %v24052_v11  ;;  %v24120_v10 = vld [vmem:[#allocation2 + $0x3b84] ss:$44 sps:$4 sm:$0xff]  }
 0x2fb   :  { %12843 = vmatprep.subr.bf16.mxu0 %v24057_v13  ;;  %13359 = vmatprep.subr.bf16.mxu1 %v24060_v14  ;;  %v24115_v11 = vld [vmem:[#allocation2 + $0x3b78] ss:$44 sps:$4 sm:$0xff]   ;;  %v24118_v13 = vld [vmem:[#allocation2 + $0x3b80] ss:$44 sps:$4 sm:$0xff]  }
 0x2fc   :  { %v24123_v14 = vld [vmem:[#allocation2 + $0x3bd4] ss:$44 sps:$4 sm:$0xff]  }
 0x2fe   :  { %12844 = vmatpush1.bf16.msra.mxu0 %v24055_v15  ;;  %13360 = vmatpush1.bf16.msra.mxu1 %v24058_v16  ;;  %v24126_v15 = vld [vmem:[#allocation2 + $0x3bdc] ss:$44 sps:$4 sm:$0xff]  }
 0x2ff   :  { %12845 = vmatprep.subr.bf16.mxu0 %v24063_v19  ;;  %13361 = vmatprep.subr.bf16.mxu1 %v24066_v20  ;;  %v24121_v16 = vld [vmem:[#allocation2 + $0x3bd0] ss:$44 sps:$4 sm:$0xff]   ;;  %v24124_v19 = vld [vmem:[#allocation2 + $0x3bd8] ss:$44 sps:$4 sm:$0xff]  }
 0x300   :  { %v24129_v20 = vld [vmem:[#allocation2 + $0x3c2c] ss:$44 sps:$4 sm:$0xff]  }
 0x302   :  { %12846 = vmatpush1.bf16.msra.mxu0 %v24061_v21  ;;  %13362 = vmatpush1.bf16.msra.mxu1 %v24064_v22  ;;  %v24132_v21 = vld [vmem:[#allocation2 + $0x3c34] ss:$44 sps:$4 sm:$0xff]  }
 0x303   :  { %12847 = vmatprep.subr.bf16.mxu0 %v24069_v25  ;;  %13363 = vmatprep.subr.bf16.mxu1 %v24072_v26  ;;  %v24127_v22 = vld [vmem:[#allocation2 + $0x3c28] ss:$44 sps:$4 sm:$0xff]   ;;  %v24130_v25 = vld [vmem:[#allocation2 + $0x3c30] ss:$44 sps:$4 sm:$0xff]   ;;  %v123_v26 = vld [vmem:[%s27703_s0 + $0xa0] sm:$0xff] }
 0x306   :  { %12848 = vmatpush1.bf16.msra.mxu0 %v24067_v27  ;;  %13364 = vmatpush1.bf16.msra.mxu1 %v24070_v29  ;;  %v146_v27 = vld [vmem:[%s27703_s0 + $0x158] sm:$0xff]  ;;  %v24135_v29 = vld [vmem:[#allocation2 + $0x3c84] ss:$44 sps:$4 sm:$0xff]  }
 0x307   :  { %12849 = vmatprep.subr.bf16.mxu0 %v24075_v30  ;;  %13365 = vmatprep.subr.bf16.mxu1 %v24078_v31  ;;  %v24138_v30 = vld [vmem:[#allocation2 + $0x3c8c] ss:$44 sps:$4 sm:$0xff]  }
 0x308   :  { %v24133_v31 = vld [vmem:[#allocation2 + $0x3c80] ss:$44 sps:$4 sm:$0xff]  }
 0x30a   :  { %12850 = vmatpush1.bf16.msra.mxu0 %v24073_v34  ;;  %13366 = vmatpush1.bf16.msra.mxu1 %v24076_v37  ;;  %v24136_v34 = vld [vmem:[#allocation2 + $0x3c88] ss:$44 sps:$4 sm:$0xff]   ;;  %v27155_v37 = vpack.c.bf16 %v146_v27, %v123_v26  ;;  %v24181_v26 = vld [vmem:[#allocation2 + $0x1cc] ss:$44 sps:$4 sm:$0xff]  }
 0x30b   :  { %12851 = vmatprep.subr.bf16.mxu0 %v24081_v38  ;;  %13367 = vmatprep.subr.bf16.mxu1 %v24084_v39  ;;  %v24141_v38 = vld [vmem:[#allocation2 + $0x3cdc] ss:$44 sps:$4 sm:$0xff]   ;;  %v24144_v39 = vld [vmem:[#allocation2 + $0x3ce4] ss:$44 sps:$4 sm:$0xff]   ;;  %v24184_v27 = vld [vmem:[#allocation2 + $0x1d4] ss:$44 sps:$4 sm:$0xff]  }
 0x30e   :  { %12852 = vmatpush1.bf16.msra.mxu0 %v24079_v40  ;;  %13368 = vmatpush1.bf16.msra.mxu1 %v24082_v43  ;;  %v2308_v40 = vld [vmem:[#allocation2 + $0x3d30] sm:$0x33]  ;;  %v2309_v43 = vld [vmem:[#allocation2 + $0x3d38] sm:$0x33] }
 0x30f   :  { %12853 = vmatprep.subr.bf16.mxu0 %v24087_v44  ;;  %13369 = vmatprep.subr.bf16.mxu1 %v24090_v45  ;;  %v24139_v44 = vld [vmem:[#allocation2 + $0x3cd8] ss:$44 sps:$4 sm:$0xff]   ;;  %v24142_v45 = vld [vmem:[#allocation2 + $0x3ce0] ss:$44 sps:$4 sm:$0xff]  }
 0x312   :  { %12854 = vmatpush1.bf16.msra.mxu0 %v24085_v46  ;;  %13370 = vmatpush1.bf16.msra.mxu1 %v24088_v48  ;;  %v21803_v46 = vcombine.low %v2308_v40, %v2308_v40  ;;  %v21804_v48 = vcombine.high %v2308_v40, %v2308_v40  ;;  %v24193_v40 = vld [vmem:[#allocation2 + $0x27c] ss:$44 sps:$4 sm:$0xff]  }
 0x313   :  { %12855 = vmatprep.subr.bf16.mxu0 %v24093_v49  ;;  %13371 = vmatprep.subr.bf16.mxu1 %v24096_v51  ;;  %v21806_v49 = vcombine.high %v2309_v43, %v2309_v43  ;;  %v21805_v51 = vcombine.low %v2309_v43, %v2309_v43  ;;  %v24196_v43 = vld [vmem:[#allocation2 + $0x284] ss:$44 sps:$4 sm:$0xff]  }
 0x316   :  { %12856 = vmatpush1.bf16.msra.mxu0 %v24091_v52  ;;  %13372 = vmatpush1.bf16.msra.mxu1 %v24094_v53  ;;  %v26824_v52 = vmov 0   ;;  %v12375_v53 = vsel %vm12373_vm0, %v21803_v46, 0  ;;  %v24199_v46 = vld [vmem:[#allocation2 + $0x2d4] ss:$44 sps:$4 sm:$0xff]  }
 0x317   :  { %12857 = vmatprep.subr.bf16.mxu0 %v24099_v54  ;;  %13373 = vmatprep.subr.bf16.mxu1 %v24102_v55  ;;  %v125_v54 = vld [vmem:[%s27703_s0 + $0xb0] sm:$0xff]  ;;  %v148_v55 = vld [vmem:[%s27703_s0 + $0x168] sm:$0xff] }
 0x31a   :  { %12858 = vmatpush1.bf16.msra.mxu0 %v24097_v56  ;;  %13374 = vmatpush1.bf16.msra.mxu1 %v24100_v57  ;;  %v12381_v56 = vsel %vm12373_vm0, %v21805_v51, 0  ;;  %v24151_v57 = vld [vmem:[#allocation2 + $0x14] ss:$44 sps:$4 sm:$0xff]   ;;  %v24200_v51 = vld [vmem:[#allocation2 + $0x2d8] ss:$44 sps:$4 sm:$0xff]  }
 0x31b   :  { %12859 = vmatprep.subr.bf16.mxu0 %v24105_v59  ;;  %13375 = vmatprep.subr.bf16.mxu1 %v24108_v62  ;;  %v24154_v59 = vld [vmem:[#allocation2 + $0x1c] ss:$44 sps:$4 sm:$0xff]   ;;  %v27171_v62 = vpack.c.bf16 %v148_v55, %v125_v54  ;;  %v24208_v54 = vld [vmem:[#allocation2 + $0x334] ss:$44 sps:$4 sm:$0xff]  }
 0x31c   :  { %v24203_v55 = vld [vmem:[#allocation2 + $0x328] ss:$44 sps:$4 sm:$0xff]  }
 0x31e   :  { %12860 = vmatpush1.bf16.msra.mxu0 %v24103_v0  ;;  %13376 = vmatpush1.bf16.msra.mxu1 %v24106_v1  ;;  %v24149_v0 = vld [vmem:[#allocation2 + $0x10] ss:$44 sps:$4 sm:$0xff]   ;;  %v24152_v1 = vld [vmem:[#allocation2 + $0x18] ss:$44 sps:$4 sm:$0xff]  }
 0x31f   :  { %12861 = vmatprep.subr.bf16.mxu0 %v24111_v2  ;;  %13377 = vmatprep.subr.bf16.mxu1 %v24114_v5  ;;  %v24157_v2 = vld [vmem:[#allocation2 + $0x6c] ss:$44 sps:$4 sm:$0xff]   ;;  %v24160_v5 = vld [vmem:[#allocation2 + $0x74] ss:$44 sps:$4 sm:$0xff]  }
 0x322   :  { %12862 = vmatpush1.bf16.msra.mxu0 %v24109_v6  ;;  %13378 = vmatpush1.bf16.msra.mxu1 %v24112_v7  ;;  %v24155_v6 = vld [vmem:[#allocation2 + $0x68] ss:$44 sps:$4 sm:$0xff]   ;;  %v24158_v7 = vld [vmem:[#allocation2 + $0x70] ss:$44 sps:$4 sm:$0xff]  }
 0x323   :  { %12863 = vmatprep.subr.bf16.mxu0 %v24117_v8  ;;  %13379 = vmatprep.subr.bf16.mxu1 %v24120_v10  ;;  %v24163_v8 = vld [vmem:[#allocation2 + $0xc4] ss:$44 sps:$4 sm:$0xff]   ;;  %v24166_v10 = vld [vmem:[#allocation2 + $0xcc] ss:$44 sps:$4 sm:$0xff]  }
 0x326   :  { %12864 = vmatpush1.bf16.msra.mxu0 %v24115_v11  ;;  %13380 = vmatpush1.bf16.msra.mxu1 %v24118_v13  ;;  %v24161_v11 = vld [vmem:[#allocation2 + $0xc0] ss:$44 sps:$4 sm:$0xff]   ;;  %v24164_v13 = vld [vmem:[#allocation2 + $0xc8] ss:$44 sps:$4 sm:$0xff]  }
 0x327   :  { %12865 = vmatprep.subr.bf16.mxu0 %v24123_v14  ;;  %13381 = vmatprep.subr.bf16.mxu1 %v24126_v15  ;;  %v24169_v14 = vld [vmem:[#allocation2 + $0x11c] ss:$44 sps:$4 sm:$0xff]   ;;  %v24172_v15 = vld [vmem:[#allocation2 + $0x124] ss:$44 sps:$4 sm:$0xff]  }
 0x32a   :  { %12866 = vmatpush1.bf16.msra.mxu0 %v24121_v16  ;;  %13382 = vmatpush1.bf16.msra.mxu1 %v24124_v19  ;;  %v24167_v16 = vld [vmem:[#allocation2 + $0x118] ss:$44 sps:$4 sm:$0xff]   ;;  %v24170_v19 = vld [vmem:[#allocation2 + $0x120] ss:$44 sps:$4 sm:$0xff]  }
 0x32b   :  { %12867 = vmatprep.subr.bf16.mxu0 %v24129_v20  ;;  %13383 = vmatprep.subr.bf16.mxu1 %v24132_v21  ;;  %v24175_v20 = vld [vmem:[#allocation2 + $0x174] ss:$44 sps:$4 sm:$0xff]   ;;  %v24178_v21 = vld [vmem:[#allocation2 + $0x17c] ss:$44 sps:$4 sm:$0xff]  }
 0x32e   :  { %12868 = vmatpush1.bf16.msra.mxu0 %v24127_v22  ;;  %13384 = vmatpush1.bf16.msra.mxu1 %v24130_v25  ;;  %v24173_v22 = vld [vmem:[#allocation2 + $0x170] ss:$44 sps:$4 sm:$0xff]   ;;  %v24176_v25 = vld [vmem:[#allocation2 + $0x178] ss:$44 sps:$4 sm:$0xff]  }
 0x32f   :  { %12880 = vmatprep.subr.bf16.mxu0 %v24135_v29  ;;  %13396 = vmatprep.subr.bf16.mxu1 %v24138_v30  ;;  %v24179_v29 = vld [vmem:[#allocation2 + $0x1c8] ss:$44 sps:$4 sm:$0xff]   ;;  %v24182_v30 = vld [vmem:[#allocation2 + $0x1d0] ss:$44 sps:$4 sm:$0xff]  }
 0x331   :  { %12870 = vmatmul.mubr.bf16.vlgmr.msra.gmra.mrb[0].mxu0 %v27155_v37  ;;  %13386 = vmatmul.mubr.bf16.vlgmr.msra.gmra.mrb[0].mxu1 %v27155_v37 }
 0x332   :  { %12881 = vmatpush1.bf16.msra.mxu0 %v24133_v31  ;;  %13397 = vmatpush1.bf16.msra.mxu1 %v24136_v34  ;;  %v24187_v31 = vld [vmem:[#allocation2 + $0x224] ss:$44 sps:$4 sm:$0xff]   ;;  %v24190_v34 = vld [vmem:[#allocation2 + $0x22c] ss:$44 sps:$4 sm:$0xff]  }
 0x333   :  { %12882 = vmatprep.subr.bf16.mxu0 %v24141_v38  ;;  %13398 = vmatprep.subr.bf16.mxu1 %v24144_v39  ;;  %v24185_v38 = vld [vmem:[#allocation2 + $0x220] ss:$44 sps:$4 sm:$0xff]   ;;  %v24188_v39 = vld [vmem:[#allocation2 + $0x228] ss:$44 sps:$4 sm:$0xff]  }
 0x334   :  { %12912 = vmatprep.mubr.bf16.mxu0 %v26824_v52  ;;  %13428 = vmatprep.mubr.bf16.mxu1 %v26824_v52 }
 0x336   :  { %12883 = vmatpush1.bf16.msra.mxu0 %v24139_v44  ;;  %13399 = vmatpush1.bf16.msra.mxu1 %v24142_v45  ;;  %v24191_v44 = vld [vmem:[#allocation2 + $0x278] ss:$44 sps:$4 sm:$0xff]   ;;  %v24194_v45 = vld [vmem:[#allocation2 + $0x280] ss:$44 sps:$4 sm:$0xff]  }
 0x337   :  { %21814 = vmatprep.subr.msk.bf16.mxu0 %vm12373_vm0, %v21804_v48  ;;  %21816 = vmatprep.subr.msk.bf16.mxu1 %vm12373_vm0, %v21806_v49  ;;  %v24202_v48 = vld [vmem:[#allocation2 + $0x2dc] ss:$44 sps:$4 sm:$0xff]  }
 0x338   :  { %v24197_v49 = vld [vmem:[#allocation2 + $0x2d0] ss:$44 sps:$4 sm:$0xff]  }
 0x33a   :  { %12885 = vmatpush1.bf16.msra.mxu0 %v12375_v53  ;;  %13401 = vmatpush1.bf16.msra.mxu1 %v12381_v56  ;;  %v24205_v53 = vld [vmem:[#allocation2 + $0x32c] ss:$44 sps:$4 sm:$0xff]   ;;  %v24206_v56 = vld [vmem:[#allocation2 + $0x330] ss:$44 sps:$4 sm:$0xff]  }
 0x33b   :  { %13439 = vmatprep.subr.bf16.mxu0 %v24151_v57  ;;  %13955 = vmatprep.subr.bf16.mxu1 %v24154_v59  ;;  %v24211_v57 = vld [vmem:[#allocation2 + $0x384] ss:$44 sps:$4 sm:$0xff]   ;;  %v24214_v59 = vld [vmem:[#allocation2 + $0x38c] ss:$44 sps:$4 sm:$0xff]  }
 0x33d   :  { %21815 = vmatmul.mubr.msk.bf16.vlgmr.msra.gmra.mrb[0].mxu0 %vm12369_vm1, %v27171_v62  ;;  %21817 = vmatmul.mubr.msk.bf16.vlgmr.msra.gmra.mrb[0].mxu1 %vm12369_vm1, %v27171_v62 }
 0x33e   :  { %13440 = vmatpush1.bf16.msra.mxu0 %v24149_v0  ;;  %13956 = vmatpush1.bf16.msra.mxu1 %v24152_v1  ;;  %v24209_v0 = vld [vmem:[#allocation2 + $0x380] ss:$44 sps:$4 sm:$0xff]   ;;  %v24212_v1 = vld [vmem:[#allocation2 + $0x388] ss:$44 sps:$4 sm:$0xff]  }
 0x33f   :  { %13441 = vmatprep.subr.bf16.mxu0 %v24157_v2  ;;  %13957 = vmatprep.subr.bf16.mxu1 %v24160_v5  ;;  %v24217_v2 = vld [vmem:[#allocation2 + $0x3dc] ss:$44 sps:$4 sm:$0xff]   ;;  %v24220_v5 = vld [vmem:[#allocation2 + $0x3e4] ss:$44 sps:$4 sm:$0xff]  }
 0x340   :  { %13471 = vmatprep.mubr.bf16.mxu0 %v26945_v50  ;;  %13987 = vmatprep.mubr.bf16.mxu1 %v26945_v50 }
 0x342   :  { %13442 = vmatpush1.bf16.msra.mxu0 %v24155_v6  ;;  %13958 = vmatpush1.bf16.msra.mxu1 %v24158_v7  ;;  %v24215_v6 = vld [vmem:[#allocation2 + $0x3d8] ss:$44 sps:$4 sm:$0xff]   ;;  %v24218_v7 = vld [vmem:[#allocation2 + $0x3e0] ss:$44 sps:$4 sm:$0xff]  }
 0x343   :  { %13443 = vmatprep.subr.bf16.mxu0 %v24163_v8  ;;  %13959 = vmatprep.subr.bf16.mxu1 %v24166_v10  ;;  %v24223_v8 = vld [vmem:[#allocation2 + $0x434] ss:$44 sps:$4 sm:$0xff]   ;;  %v24226_v10 = vld [vmem:[#allocation2 + $0x43c] ss:$44 sps:$4 sm:$0xff]  }
 0x346   :  { %13444 = vmatpush1.bf16.msra.mxu0 %v24161_v11  ;;  %13960 = vmatpush1.bf16.msra.mxu1 %v24164_v13  ;;  %v24221_v11 = vld [vmem:[#allocation2 + $0x430] ss:$44 sps:$4 sm:$0xff]   ;;  %v24224_v13 = vld [vmem:[#allocation2 + $0x438] ss:$44 sps:$4 sm:$0xff]  }
 0x347   :  { %13445 = vmatprep.subr.bf16.mxu0 %v24169_v14  ;;  %13961 = vmatprep.subr.bf16.mxu1 %v24172_v15  ;;  %v24229_v14 = vld [vmem:[#allocation2 + $0x48c] ss:$44 sps:$4 sm:$0xff]   ;;  %v24232_v15 = vld [vmem:[#allocation2 + $0x494] ss:$44 sps:$4 sm:$0xff]  }
 0x34a   :  { %13446 = vmatpush1.bf16.msra.mxu0 %v24167_v16  ;;  %13962 = vmatpush1.bf16.msra.mxu1 %v24170_v19  ;;  %v24227_v16 = vld [vmem:[#allocation2 + $0x488] ss:$44 sps:$4 sm:$0xff]   ;;  %v24230_v19 = vld [vmem:[#allocation2 + $0x490] ss:$44 sps:$4 sm:$0xff]  }
 0x34b   :  { %13447 = vmatprep.subr.bf16.mxu0 %v24175_v20  ;;  %13963 = vmatprep.subr.bf16.mxu1 %v24178_v21  ;;  %v24235_v20 = vld [vmem:[#allocation2 + $0x4e4] ss:$44 sps:$4 sm:$0xff]   ;;  %v24238_v21 = vld [vmem:[#allocation2 + $0x4ec] ss:$44 sps:$4 sm:$0xff]  }
 0x34e   :  { %13448 = vmatpush1.bf16.msra.mxu0 %v24173_v22  ;;  %13964 = vmatpush1.bf16.msra.mxu1 %v24176_v25  ;;  %v24233_v22 = vld [vmem:[#allocation2 + $0x4e0] ss:$44 sps:$4 sm:$0xff]   ;;  %v24236_v25 = vld [vmem:[#allocation2 + $0x4e8] ss:$44 sps:$4 sm:$0xff]  }
 0x34f   :  { %13449 = vmatprep.subr.bf16.mxu0 %v24181_v26  ;;  %13965 = vmatprep.subr.bf16.mxu1 %v24184_v27  ;;  %v24241_v26 = vld [vmem:[#allocation2 + $0x53c] ss:$44 sps:$4 sm:$0xff]   ;;  %v24244_v27 = vld [vmem:[#allocation2 + $0x544] ss:$44 sps:$4 sm:$0xff]  }
 0x352   :  { %13450 = vmatpush1.bf16.msra.mxu0 %v24179_v29  ;;  %13966 = vmatpush1.bf16.msra.mxu1 %v24182_v30  ;;  %v24239_v29 = vld [vmem:[#allocation2 + $0x538] ss:$44 sps:$4 sm:$0xff]   ;;  %v24242_v30 = vld [vmem:[#allocation2 + $0x540] ss:$44 sps:$4 sm:$0xff]  }
 0x353   :  { %13451 = vmatprep.subr.bf16.mxu0 %v24187_v31  ;;  %13967 = vmatprep.subr.bf16.mxu1 %v24190_v34  ;;  %v24247_v31 = vld [vmem:[#allocation2 + $0x594] ss:$44 sps:$4 sm:$0xff]   ;;  %v24250_v34 = vld [vmem:[#allocation2 + $0x59c] ss:$44 sps:$4 sm:$0xff]  }
 0x356   :  { %13452 = vmatpush1.bf16.msra.mxu0 %v24185_v38  ;;  %13968 = vmatpush1.bf16.msra.mxu1 %v24188_v39  ;;  %v24245_v38 = vld [vmem:[#allocation2 + $0x590] ss:$44 sps:$4 sm:$0xff]   ;;  %v24248_v39 = vld [vmem:[#allocation2 + $0x598] ss:$44 sps:$4 sm:$0xff]  }
 0x357   :  { %13453 = vmatprep.subr.bf16.mxu0 %v24193_v40  ;;  %13969 = vmatprep.subr.bf16.mxu1 %v24196_v43  ;;  %v24253_v40 = vld [vmem:[#allocation2 + $0x5ec] ss:$44 sps:$4 sm:$0xff]   ;;  %v24256_v43 = vld [vmem:[#allocation2 + $0x5f4] ss:$44 sps:$4 sm:$0xff]  }
 0x35a   :  { %13454 = vmatpush1.bf16.msra.mxu0 %v24191_v44  ;;  %13970 = vmatpush1.bf16.msra.mxu1 %v24194_v45  ;;  %v24251_v44 = vld [vmem:[#allocation2 + $0x5e8] ss:$44 sps:$4 sm:$0xff]   ;;  %v24254_v45 = vld [vmem:[#allocation2 + $0x5f0] ss:$44 sps:$4 sm:$0xff]  }
 0x35b   :  { %13455 = vmatprep.subr.bf16.mxu0 %v24199_v46  ;;  %13971 = vmatprep.subr.bf16.mxu1 %v24202_v48  ;;  %v24259_v46 = vld [vmem:[#allocation2 + $0x644] ss:$44 sps:$4 sm:$0xff]   ;;  %v24262_v48 = vld [vmem:[#allocation2 + $0x64c] ss:$44 sps:$4 sm:$0xff]  }
 0x35e   :  { %13456 = vmatpush1.bf16.msra.mxu0 %v24197_v49  ;;  %13972 = vmatpush1.bf16.msra.mxu1 %v24200_v51  ;;  %v24257_v49 = vld [vmem:[#allocation2 + $0x640] ss:$44 sps:$4 sm:$0xff]   ;;  %v24260_v51 = vld [vmem:[#allocation2 + $0x648] ss:$44 sps:$4 sm:$0xff]  }
 0x35f   :  { %13457 = vmatprep.subr.bf16.mxu0 %v24205_v53  ;;  %13973 = vmatprep.subr.bf16.mxu1 %v24208_v54  ;;  %v24265_v53 = vld [vmem:[#allocation2 + $0x69c] ss:$44 sps:$4 sm:$0xff]   ;;  %v24268_v54 = vld [vmem:[#allocation2 + $0x6a4] ss:$44 sps:$4 sm:$0xff]  }
 0x362   :  { %13458 = vmatpush1.bf16.msra.mxu0 %v24203_v55  ;;  %13974 = vmatpush1.bf16.msra.mxu1 %v24206_v56  ;;  %v24263_v55 = vld [vmem:[#allocation2 + $0x698] ss:$44 sps:$4 sm:$0xff]   ;;  %v24266_v56 = vld [vmem:[#allocation2 + $0x6a0] ss:$44 sps:$4 sm:$0xff]  }
 0x363   :  { %13459 = vmatprep.subr.bf16.mxu0 %v24211_v57  ;;  %13975 = vmatprep.subr.bf16.mxu1 %v24214_v59  ;;  %v24271_v57 = vld [vmem:[#allocation2 + $0x6f4] ss:$44 sps:$4 sm:$0xff]   ;;  %v24274_v59 = vld [vmem:[#allocation2 + $0x6fc] ss:$44 sps:$4 sm:$0xff]  }
 0x366   :  { %13460 = vmatpush1.bf16.msra.mxu0 %v24209_v0  ;;  %13976 = vmatpush1.bf16.msra.mxu1 %v24212_v1  ;;  %v24269_v0 = vld [vmem:[#allocation2 + $0x6f0] ss:$44 sps:$4 sm:$0xff]   ;;  %v24272_v1 = vld [vmem:[#allocation2 + $0x6f8] ss:$44 sps:$4 sm:$0xff]  }
 0x367   :  { %13461 = vmatprep.subr.bf16.mxu0 %v24217_v2  ;;  %13977 = vmatprep.subr.bf16.mxu1 %v24220_v5  ;;  %v24277_v2 = vld [vmem:[#allocation2 + $0x74c] ss:$44 sps:$4 sm:$0xff]   ;;  %v24280_v5 = vld [vmem:[#allocation2 + $0x754] ss:$44 sps:$4 sm:$0xff]  }
 0x36a   :  { %13462 = vmatpush1.bf16.msra.mxu0 %v24215_v6  ;;  %13978 = vmatpush1.bf16.msra.mxu1 %v24218_v7  ;;  %v24275_v6 = vld [vmem:[#allocation2 + $0x748] ss:$44 sps:$4 sm:$0xff]   ;;  %v24278_v7 = vld [vmem:[#allocation2 + $0x750] ss:$44 sps:$4 sm:$0xff]  }
 0x36b   :  { %13463 = vmatprep.subr.bf16.mxu0 %v24223_v8  ;;  %13979 = vmatprep.subr.bf16.mxu1 %v24226_v10  ;;  %v24283_v8 = vld [vmem:[#allocation2 + $0x7a4] ss:$44 sps:$4 sm:$0xff]   ;;  %v24286_v10 = vld [vmem:[#allocation2 + $0x7ac] ss:$44 sps:$4 sm:$0xff]  }
 0x36e   :  { %13464 = vmatpush1.bf16.msra.mxu0 %v24221_v11  ;;  %13980 = vmatpush1.bf16.msra.mxu1 %v24224_v13  ;;  %v24281_v11 = vld [vmem:[#allocation2 + $0x7a0] ss:$44 sps:$4 sm:$0xff]   ;;  %v24284_v13 = vld [vmem:[#allocation2 + $0x7a8] ss:$44 sps:$4 sm:$0xff]  }
 0x36f   :  { %13465 = vmatprep.subr.bf16.mxu0 %v24229_v14  ;;  %13981 = vmatprep.subr.bf16.mxu1 %v24232_v15  ;;  %v24289_v14 = vld [vmem:[#allocation2 + $0x7fc] ss:$44 sps:$4 sm:$0xff]   ;;  %v24292_v15 = vld [vmem:[#allocation2 + $0x804] ss:$44 sps:$4 sm:$0xff]  }
 0x372   :  { %13466 = vmatpush1.bf16.msra.mxu0 %v24227_v16  ;;  %13982 = vmatpush1.bf16.msra.mxu1 %v24230_v19  ;;  %v24287_v16 = vld [vmem:[#allocation2 + $0x7f8] ss:$44 sps:$4 sm:$0xff]   ;;  %v24290_v19 = vld [vmem:[#allocation2 + $0x800] ss:$44 sps:$4 sm:$0xff]  }
 0x373   :  { %13467 = vmatprep.subr.bf16.mxu0 %v24235_v20  ;;  %13983 = vmatprep.subr.bf16.mxu1 %v24238_v21  ;;  %v24295_v20 = vld [vmem:[#allocation2 + $0x854] ss:$44 sps:$4 sm:$0xff]   ;;  %v24298_v21 = vld [vmem:[#allocation2 + $0x85c] ss:$44 sps:$4 sm:$0xff]  }
 0x376   :  { %13468 = vmatpush1.bf16.msra.mxu0 %v24233_v22  ;;  %13984 = vmatpush1.bf16.msra.mxu1 %v24236_v25  ;;  %v24293_v22 = vld [vmem:[#allocation2 + $0x850] ss:$44 sps:$4 sm:$0xff]   ;;  %v24296_v25 = vld [vmem:[#allocation2 + $0x858] ss:$44 sps:$4 sm:$0xff]  }
 0x377   :  { %13469 = vmatprep.subr.bf16.mxu0 %v24241_v26  ;;  %13985 = vmatprep.subr.bf16.mxu1 %v24244_v27  ;;  %v24301_v26 = vld [vmem:[#allocation2 + $0x8ac] ss:$44 sps:$4 sm:$0xff]   ;;  %v24304_v27 = vld [vmem:[#allocation2 + $0x8b4] ss:$44 sps:$4 sm:$0xff]  }
 0x37a   :  { %13470 = vmatpush1.bf16.msra.mxu0 %v24239_v29  ;;  %13986 = vmatpush1.bf16.msra.mxu1 %v24242_v30  ;;  %v24299_v29 = vld [vmem:[#allocation2 + $0x8a8] ss:$44 sps:$4 sm:$0xff]   ;;  %v24302_v30 = vld [vmem:[#allocation2 + $0x8b0] ss:$44 sps:$4 sm:$0xff]  }
 0x37b   :  { %13482 = vmatprep.subr.bf16.mxu0 %v24247_v31  ;;  %13998 = vmatprep.subr.bf16.mxu1 %v24250_v34  ;;  %v24307_v31 = vld [vmem:[#allocation2 + $0x904] ss:$44 sps:$4 sm:$0xff]   ;;  %v24310_v34 = vld [vmem:[#allocation2 + $0x90c] ss:$44 sps:$4 sm:$0xff]  }
 0x37d   :  { %13472 = vmatmul.mubr.bf16.vlgmr.msra.gmra.mrb[4].mxu0 %v26955_v9  ;;  %13988 = vmatmul.mubr.bf16.vlgmr.msra.gmra.mrb[4].mxu1 %v26955_v9 }
 0x37e   :  { %13483 = vmatpush1.bf16.msra.mxu0 %v24245_v38  ;;  %13999 = vmatpush1.bf16.msra.mxu1 %v24248_v39  ;;  %v24305_v38 = vld [vmem:[#allocation2 + $0x900] ss:$44 sps:$4 sm:$0xff]   ;;  %v24308_v39 = vld [vmem:[#allocation2 + $0x908] ss:$44 sps:$4 sm:$0xff]  }
 0x37f   :  { %13484 = vmatprep.subr.bf16.mxu0 %v24253_v40  ;;  %14000 = vmatprep.subr.bf16.mxu1 %v24256_v43  ;;  %v24313_v40 = vld [vmem:[#allocation2 + $0x95c] ss:$44 sps:$4 sm:$0xff]   ;;  %v24316_v43 = vld [vmem:[#allocation2 + $0x964] ss:$44 sps:$4 sm:$0xff]  }
 0x380   :  { %13514 = vmatprep.mubr.bf16.mxu0 %v26965_v36  ;;  %14030 = vmatprep.mubr.bf16.mxu1 %v26965_v36 }
 0x382   :  { %13485 = vmatpush1.bf16.msra.mxu0 %v24251_v44  ;;  %14001 = vmatpush1.bf16.msra.mxu1 %v24254_v45  ;;  %v24311_v44 = vld [vmem:[#allocation2 + $0x958] ss:$44 sps:$4 sm:$0xff]   ;;  %v24314_v45 = vld [vmem:[#allocation2 + $0x960] ss:$44 sps:$4 sm:$0xff]  }
 0x383   :  { %13486 = vmatprep.subr.bf16.mxu0 %v24259_v46  ;;  %14002 = vmatprep.subr.bf16.mxu1 %v24262_v48  ;;  %v24319_v46 = vld [vmem:[#allocation2 + $0x9b4] ss:$44 sps:$4 sm:$0xff]   ;;  %v24322_v48 = vld [vmem:[#allocation2 + $0x9bc] ss:$44 sps:$4 sm:$0xff]  }
 0x386   :  { %13487 = vmatpush1.bf16.msra.mxu0 %v24257_v49  ;;  %14003 = vmatpush1.bf16.msra.mxu1 %v24260_v51  ;;  %v24317_v49 = vld [vmem:[#allocation2 + $0x9b0] ss:$44 sps:$4 sm:$0xff]   ;;  %v24320_v51 = vld [vmem:[#allocation2 + $0x9b8] ss:$44 sps:$4 sm:$0xff]  }
 0x387   :  { %13488 = vmatprep.subr.bf16.mxu0 %v24265_v53  ;;  %14004 = vmatprep.subr.bf16.mxu1 %v24268_v54  ;;  %v24325_v53 = vld [vmem:[#allocation2 + $0xa0c] ss:$44 sps:$4 sm:$0xff]   ;;  %v24328_v54 = vld [vmem:[#allocation2 + $0xa14] ss:$44 sps:$4 sm:$0xff]  }
 0x38a   :  { %13489 = vmatpush1.bf16.msra.mxu0 %v24263_v55  ;;  %14005 = vmatpush1.bf16.msra.mxu1 %v24266_v56  ;;  %v24323_v55 = vld [vmem:[#allocation2 + $0xa08] ss:$44 sps:$4 sm:$0xff]   ;;  %v24326_v56 = vld [vmem:[#allocation2 + $0xa10] ss:$44 sps:$4 sm:$0xff]  }
 0x38b   :  { %13490 = vmatprep.subr.bf16.mxu0 %v24271_v57  ;;  %14006 = vmatprep.subr.bf16.mxu1 %v24274_v59  ;;  %v24331_v57 = vld [vmem:[#allocation2 + $0xa64] ss:$44 sps:$4 sm:$0xff]   ;;  %v24334_v59 = vld [vmem:[#allocation2 + $0xa6c] ss:$44 sps:$4 sm:$0xff]  }
 0x38e   :  { %13491 = vmatpush1.bf16.msra.mxu0 %v24269_v0  ;;  %14007 = vmatpush1.bf16.msra.mxu1 %v24272_v1  ;;  %v24329_v0 = vld [vmem:[#allocation2 + $0xa60] ss:$44 sps:$4 sm:$0xff]   ;;  %v24332_v1 = vld [vmem:[#allocation2 + $0xa68] ss:$44 sps:$4 sm:$0xff]  }
 0x38f   :  { %13492 = vmatprep.subr.bf16.mxu0 %v24277_v2  ;;  %14008 = vmatprep.subr.bf16.mxu1 %v24280_v5  ;;  %v24337_v2 = vld [vmem:[#allocation2 + $0xabc] ss:$44 sps:$4 sm:$0xff]   ;;  %v24340_v5 = vld [vmem:[#allocation2 + $0xac4] ss:$44 sps:$4 sm:$0xff]  }
 0x392   :  { %13493 = vmatpush1.bf16.msra.mxu0 %v24275_v6  ;;  %14009 = vmatpush1.bf16.msra.mxu1 %v24278_v7  ;;  %v24335_v6 = vld [vmem:[#allocation2 + $0xab8] ss:$44 sps:$4 sm:$0xff]   ;;  %v24338_v7 = vld [vmem:[#allocation2 + $0xac0] ss:$44 sps:$4 sm:$0xff]  }
 0x393   :  { %13494 = vmatprep.subr.bf16.mxu0 %v24283_v8  ;;  %14010 = vmatprep.subr.bf16.mxu1 %v24286_v10  ;;  %v24343_v8 = vld [vmem:[#allocation2 + $0xb14] ss:$44 sps:$4 sm:$0xff]   ;;  %v24346_v10 = vld [vmem:[#allocation2 + $0xb1c] ss:$44 sps:$4 sm:$0xff]  }
 0x396   :  { %13495 = vmatpush1.bf16.msra.mxu0 %v24281_v11  ;;  %14011 = vmatpush1.bf16.msra.mxu1 %v24284_v13  ;;  %v24341_v11 = vld [vmem:[#allocation2 + $0xb10] ss:$44 sps:$4 sm:$0xff]   ;;  %v24344_v13 = vld [vmem:[#allocation2 + $0xb18] ss:$44 sps:$4 sm:$0xff]  }
 0x397   :  { %13496 = vmatprep.subr.bf16.mxu0 %v24289_v14  ;;  %14012 = vmatprep.subr.bf16.mxu1 %v24292_v15  ;;  %v24349_v14 = vld [vmem:[#allocation2 + $0xb6c] ss:$44 sps:$4 sm:$0xff]   ;;  %v24352_v15 = vld [vmem:[#allocation2 + $0xb74] ss:$44 sps:$4 sm:$0xff]  }
 0x39a   :  { %13497 = vmatpush1.bf16.msra.mxu0 %v24287_v16  ;;  %14013 = vmatpush1.bf16.msra.mxu1 %v24290_v19  ;;  %v24347_v16 = vld [vmem:[#allocation2 + $0xb68] ss:$44 sps:$4 sm:$0xff]   ;;  %v24350_v19 = vld [vmem:[#allocation2 + $0xb70] ss:$44 sps:$4 sm:$0xff]  }
 0x39b   :  { %13498 = vmatprep.subr.bf16.mxu0 %v24295_v20  ;;  %14014 = vmatprep.subr.bf16.mxu1 %v24298_v21  ;;  %v24355_v20 = vld [vmem:[#allocation2 + $0xbc4] ss:$44 sps:$4 sm:$0xff]   ;;  %v24358_v21 = vld [vmem:[#allocation2 + $0xbcc] ss:$44 sps:$4 sm:$0xff]  }
 0x39e   :  { %13499 = vmatpush1.bf16.msra.mxu0 %v24293_v22  ;;  %14015 = vmatpush1.bf16.msra.mxu1 %v24296_v25  ;;  %v24353_v22 = vld [vmem:[#allocation2 + $0xbc0] ss:$44 sps:$4 sm:$0xff]   ;;  %v24356_v25 = vld [vmem:[#allocation2 + $0xbc8] ss:$44 sps:$4 sm:$0xff]  }
 0x39f   :  { %13500 = vmatprep.subr.bf16.mxu0 %v24301_v26  ;;  %14016 = vmatprep.subr.bf16.mxu1 %v24304_v27  ;;  %v24361_v26 = vld [vmem:[#allocation2 + $0xc1c] ss:$44 sps:$4 sm:$0xff]   ;;  %v24364_v27 = vld [vmem:[#allocation2 + $0xc24] ss:$44 sps:$4 sm:$0xff]  }
 0x3a2   :  { %13501 = vmatpush1.bf16.msra.mxu0 %v24299_v29  ;;  %14017 = vmatpush1.bf16.msra.mxu1 %v24302_v30  ;;  %v24359_v29 = vld [vmem:[#allocation2 + $0xc18] ss:$44 sps:$4 sm:$0xff]   ;;  %v24362_v30 = vld [vmem:[#allocation2 + $0xc20] ss:$44 sps:$4 sm:$0xff]  }
 0x3a3   :  { %13502 = vmatprep.subr.bf16.mxu0 %v24307_v31  ;;  %14018 = vmatprep.subr.bf16.mxu1 %v24310_v34  ;;  %v24367_v31 = vld [vmem:[#allocation2 + $0xc74] ss:$44 sps:$4 sm:$0xff]   ;;  %v24370_v34 = vld [vmem:[#allocation2 + $0xc7c] ss:$44 sps:$4 sm:$0xff]  }
 0x3a6   :  { %13503 = vmatpush1.bf16.msra.mxu0 %v24305_v38  ;;  %14019 = vmatpush1.bf16.msra.mxu1 %v24308_v39  ;;  %v24365_v38 = vld [vmem:[#allocation2 + $0xc70] ss:$44 sps:$4 sm:$0xff]   ;;  %v24368_v39 = vld [vmem:[#allocation2 + $0xc78] ss:$44 sps:$4 sm:$0xff]  }
 0x3a7   :  { %13504 = vmatprep.subr.bf16.mxu0 %v24313_v40  ;;  %14020 = vmatprep.subr.bf16.mxu1 %v24316_v43  ;;  %v24373_v40 = vld [vmem:[#allocation2 + $0xccc] ss:$44 sps:$4 sm:$0xff]   ;;  %v24376_v43 = vld [vmem:[#allocation2 + $0xcd4] ss:$44 sps:$4 sm:$0xff]  }
 0x3aa   :  { %13505 = vmatpush1.bf16.msra.mxu0 %v24311_v44  ;;  %14021 = vmatpush1.bf16.msra.mxu1 %v24314_v45  ;;  %v24371_v44 = vld [vmem:[#allocation2 + $0xcc8] ss:$44 sps:$4 sm:$0xff]   ;;  %v24374_v45 = vld [vmem:[#allocation2 + $0xcd0] ss:$44 sps:$4 sm:$0xff]  }
 0x3ab   :  { %13506 = vmatprep.subr.bf16.mxu0 %v24319_v46  ;;  %14022 = vmatprep.subr.bf16.mxu1 %v24322_v48  ;;  %v24379_v46 = vld [vmem:[#allocation2 + $0xd24] ss:$44 sps:$4 sm:$0xff]   ;;  %v24382_v48 = vld [vmem:[#allocation2 + $0xd2c] ss:$44 sps:$4 sm:$0xff]  }
 0x3ae   :  { %13507 = vmatpush1.bf16.msra.mxu0 %v24317_v49  ;;  %14023 = vmatpush1.bf16.msra.mxu1 %v24320_v51  ;;  %v24377_v49 = vld [vmem:[#allocation2 + $0xd20] ss:$44 sps:$4 sm:$0xff]   ;;  %v24380_v51 = vld [vmem:[#allocation2 + $0xd28] ss:$44 sps:$4 sm:$0xff]  }
 0x3af   :  { %13508 = vmatprep.subr.bf16.mxu0 %v24325_v53  ;;  %14024 = vmatprep.subr.bf16.mxu1 %v24328_v54  ;;  %v24385_v53 = vld [vmem:[#allocation2 + $0xd7c] ss:$44 sps:$4 sm:$0xff]   ;;  %v24388_v54 = vld [vmem:[#allocation2 + $0xd84] ss:$44 sps:$4 sm:$0xff]  }
 0x3b2   :  { %13509 = vmatpush1.bf16.msra.mxu0 %v24323_v55  ;;  %14025 = vmatpush1.bf16.msra.mxu1 %v24326_v56  ;;  %v24383_v55 = vld [vmem:[#allocation2 + $0xd78] ss:$44 sps:$4 sm:$0xff]   ;;  %v24386_v56 = vld [vmem:[#allocation2 + $0xd80] ss:$44 sps:$4 sm:$0xff]  }
 0x3b3   :  { %13510 = vmatprep.subr.bf16.mxu0 %v24331_v57  ;;  %14026 = vmatprep.subr.bf16.mxu1 %v24334_v59  ;;  %v24391_v57 = vld [vmem:[#allocation2 + $0xdd4] ss:$44 sps:$4 sm:$0xff]   ;;  %v24394_v59 = vld [vmem:[#allocation2 + $0xddc] ss:$44 sps:$4 sm:$0xff]  }
 0x3b6   :  { %13511 = vmatpush1.bf16.msra.mxu0 %v24329_v0  ;;  %14027 = vmatpush1.bf16.msra.mxu1 %v24332_v1  ;;  %v24389_v0 = vld [vmem:[#allocation2 + $0xdd0] ss:$44 sps:$4 sm:$0xff]   ;;  %v24392_v1 = vld [vmem:[#allocation2 + $0xdd8] ss:$44 sps:$4 sm:$0xff]  }
 0x3b7   :  { %13512 = vmatprep.subr.bf16.mxu0 %v24337_v2  ;;  %14028 = vmatprep.subr.bf16.mxu1 %v24340_v5  ;;  %v24397_v2 = vld [vmem:[#allocation2 + $0xe2c] ss:$44 sps:$4 sm:$0xff]   ;;  %v24400_v5 = vld [vmem:[#allocation2 + $0xe34] ss:$44 sps:$4 sm:$0xff]  }
 0x3ba   :  { %13513 = vmatpush1.bf16.msra.mxu0 %v24335_v6  ;;  %14029 = vmatpush1.bf16.msra.mxu1 %v24338_v7  ;;  %v24395_v6 = vld [vmem:[#allocation2 + $0xe28] ss:$44 sps:$4 sm:$0xff]   ;;  %v24398_v7 = vld [vmem:[#allocation2 + $0xe30] ss:$44 sps:$4 sm:$0xff]  }
 0x3bb   :  { %13525 = vmatprep.subr.bf16.mxu0 %v24343_v8  ;;  %14041 = vmatprep.subr.bf16.mxu1 %v24346_v10  ;;  %v24403_v8 = vld [vmem:[#allocation2 + $0xe84] ss:$44 sps:$4 sm:$0xff]   ;;  %v24406_v10 = vld [vmem:[#allocation2 + $0xe8c] ss:$44 sps:$4 sm:$0xff]  }
 0x3bd   :  { %13515 = vmatmul.mubr.bf16.vlgmr.msra.gmra.mrb[4].mxu0 %v26975_v17  ;;  %14031 = vmatmul.mubr.bf16.vlgmr.msra.gmra.mrb[4].mxu1 %v26975_v17 }
 0x3be   :  { %13526 = vmatpush1.bf16.msra.mxu0 %v24341_v11  ;;  %14042 = vmatpush1.bf16.msra.mxu1 %v24344_v13  ;;  %v24401_v11 = vld [vmem:[#allocation2 + $0xe80] ss:$44 sps:$4 sm:$0xff]   ;;  %v24404_v13 = vld [vmem:[#allocation2 + $0xe88] ss:$44 sps:$4 sm:$0xff]  }
 0x3bf   :  { %13527 = vmatprep.subr.bf16.mxu0 %v24349_v14  ;;  %14043 = vmatprep.subr.bf16.mxu1 %v24352_v15  ;;  %v24409_v14 = vld [vmem:[#allocation2 + $0xedc] ss:$44 sps:$4 sm:$0xff]   ;;  %v24412_v15 = vld [vmem:[#allocation2 + $0xee4] ss:$44 sps:$4 sm:$0xff]  }
 0x3c0   :  { %13557 = vmatprep.mubr.bf16.mxu0 %v26985_v24  ;;  %14073 = vmatprep.mubr.bf16.mxu1 %v26985_v24 }
 0x3c2   :  { %13528 = vmatpush1.bf16.msra.mxu0 %v24347_v16  ;;  %14044 = vmatpush1.bf16.msra.mxu1 %v24350_v19  ;;  %v24407_v16 = vld [vmem:[#allocation2 + $0xed8] ss:$44 sps:$4 sm:$0xff]   ;;  %v24410_v19 = vld [vmem:[#allocation2 + $0xee0] ss:$44 sps:$4 sm:$0xff]  }
 0x3c3   :  { %13529 = vmatprep.subr.bf16.mxu0 %v24355_v20  ;;  %14045 = vmatprep.subr.bf16.mxu1 %v24358_v21  ;;  %v24415_v20 = vld [vmem:[#allocation2 + $0xf34] ss:$44 sps:$4 sm:$0xff]   ;;  %v24418_v21 = vld [vmem:[#allocation2 + $0xf3c] ss:$44 sps:$4 sm:$0xff]  }
 0x3c6   :  { %13530 = vmatpush1.bf16.msra.mxu0 %v24353_v22  ;;  %14046 = vmatpush1.bf16.msra.mxu1 %v24356_v25  ;;  %v24413_v22 = vld [vmem:[#allocation2 + $0xf30] ss:$44 sps:$4 sm:$0xff]   ;;  %v24416_v25 = vld [vmem:[#allocation2 + $0xf38] ss:$44 sps:$4 sm:$0xff]  }
 0x3c7   :  { %13531 = vmatprep.subr.bf16.mxu0 %v24361_v26  ;;  %14047 = vmatprep.subr.bf16.mxu1 %v24364_v27  ;;  %v24421_v26 = vld [vmem:[#allocation2 + $0xf8c] ss:$44 sps:$4 sm:$0xff]   ;;  %v24424_v27 = vld [vmem:[#allocation2 + $0xf94] ss:$44 sps:$4 sm:$0xff]  }
 0x3ca   :  { %13532 = vmatpush1.bf16.msra.mxu0 %v24359_v29  ;;  %14048 = vmatpush1.bf16.msra.mxu1 %v24362_v30  ;;  %v24419_v29 = vld [vmem:[#allocation2 + $0xf88] ss:$44 sps:$4 sm:$0xff]   ;;  %v24422_v30 = vld [vmem:[#allocation2 + $0xf90] ss:$44 sps:$4 sm:$0xff]  }
 0x3cb   :  { %13533 = vmatprep.subr.bf16.mxu0 %v24367_v31  ;;  %14049 = vmatprep.subr.bf16.mxu1 %v24370_v34  ;;  %v24427_v31 = vld [vmem:[#allocation2 + $0xfe4] ss:$44 sps:$4 sm:$0xff]   ;;  %v24430_v34 = vld [vmem:[#allocation2 + $0xfec] ss:$44 sps:$4 sm:$0xff]  }
 0x3ce   :  { %13534 = vmatpush1.bf16.msra.mxu0 %v24365_v38  ;;  %14050 = vmatpush1.bf16.msra.mxu1 %v24368_v39  ;;  %v24425_v38 = vld [vmem:[#allocation2 + $0xfe0] ss:$44 sps:$4 sm:$0xff]   ;;  %v24428_v39 = vld [vmem:[#allocation2 + $0xfe8] ss:$44 sps:$4 sm:$0xff]  }
 0x3cf   :  { %13535 = vmatprep.subr.bf16.mxu0 %v24373_v40  ;;  %14051 = vmatprep.subr.bf16.mxu1 %v24376_v43  ;;  %v24433_v40 = vld [vmem:[#allocation2 + $0x103c] ss:$44 sps:$4 sm:$0xff]   ;;  %v24436_v43 = vld [vmem:[#allocation2 + $0x1044] ss:$44 sps:$4 sm:$0xff]  }
 0x3d2   :  { %13536 = vmatpush1.bf16.msra.mxu0 %v24371_v44  ;;  %14052 = vmatpush1.bf16.msra.mxu1 %v24374_v45  ;;  %v24431_v44 = vld [vmem:[#allocation2 + $0x1038] ss:$44 sps:$4 sm:$0xff]   ;;  %v24434_v45 = vld [vmem:[#allocation2 + $0x1040] ss:$44 sps:$4 sm:$0xff]  }
 0x3d3   :  { %13537 = vmatprep.subr.bf16.mxu0 %v24379_v46  ;;  %14053 = vmatprep.subr.bf16.mxu1 %v24382_v48  ;;  %v24439_v46 = vld [vmem:[#allocation2 + $0x1094] ss:$44 sps:$4 sm:$0xff]   ;;  %v24442_v48 = vld [vmem:[#allocation2 + $0x109c] ss:$44 sps:$4 sm:$0xff]  }
 0x3d6   :  { %13538 = vmatpush1.bf16.msra.mxu0 %v24377_v49  ;;  %14054 = vmatpush1.bf16.msra.mxu1 %v24380_v51  ;;  %v24437_v49 = vld [vmem:[#allocation2 + $0x1090] ss:$44 sps:$4 sm:$0xff]   ;;  %v24440_v51 = vld [vmem:[#allocation2 + $0x1098] ss:$44 sps:$4 sm:$0xff]  }
 0x3d7   :  { %13539 = vmatprep.subr.bf16.mxu0 %v24385_v53  ;;  %14055 = vmatprep.subr.bf16.mxu1 %v24388_v54  ;;  %v24445_v53 = vld [vmem:[#allocation2 + $0x10ec] ss:$44 sps:$4 sm:$0xff]   ;;  %v24448_v54 = vld [vmem:[#allocation2 + $0x10f4] ss:$44 sps:$4 sm:$0xff]  }
 0x3da   :  { %13540 = vmatpush1.bf16.msra.mxu0 %v24383_v55  ;;  %14056 = vmatpush1.bf16.msra.mxu1 %v24386_v56  ;;  %v24443_v55 = vld [vmem:[#allocation2 + $0x10e8] ss:$44 sps:$4 sm:$0xff]   ;;  %v24446_v56 = vld [vmem:[#allocation2 + $0x10f0] ss:$44 sps:$4 sm:$0xff]  }
 0x3db   :  { %13541 = vmatprep.subr.bf16.mxu0 %v24391_v57  ;;  %14057 = vmatprep.subr.bf16.mxu1 %v24394_v59  ;;  %v24451_v57 = vld [vmem:[#allocation2 + $0x1144] ss:$44 sps:$4 sm:$0xff]   ;;  %v24454_v59 = vld [vmem:[#allocation2 + $0x114c] ss:$44 sps:$4 sm:$0xff]  }
 0x3de   :  { %13542 = vmatpush1.bf16.msra.mxu0 %v24389_v0  ;;  %14058 = vmatpush1.bf16.msra.mxu1 %v24392_v1  ;;  %v24449_v0 = vld [vmem:[#allocation2 + $0x1140] ss:$44 sps:$4 sm:$0xff]   ;;  %v24452_v1 = vld [vmem:[#allocation2 + $0x1148] ss:$44 sps:$4 sm:$0xff]  }
 0x3df   :  { %13543 = vmatprep.subr.bf16.mxu0 %v24397_v2  ;;  %14059 = vmatprep.subr.bf16.mxu1 %v24400_v5  ;;  %v24457_v2 = vld [vmem:[#allocation2 + $0x119c] ss:$44 sps:$4 sm:$0xff]   ;;  %v24460_v5 = vld [vmem:[#allocation2 + $0x11a4] ss:$44 sps:$4 sm:$0xff]  }
 0x3e2   :  { %13544 = vmatpush1.bf16.msra.mxu0 %v24395_v6  ;;  %14060 = vmatpush1.bf16.msra.mxu1 %v24398_v7  ;;  %v24455_v6 = vld [vmem:[#allocation2 + $0x1198] ss:$44 sps:$4 sm:$0xff]   ;;  %v24458_v7 = vld [vmem:[#allocation2 + $0x11a0] ss:$44 sps:$4 sm:$0xff]  }
 0x3e3   :  { %13545 = vmatprep.subr.bf16.mxu0 %v24403_v8  ;;  %14061 = vmatprep.subr.bf16.mxu1 %v24406_v10  ;;  %v24463_v8 = vld [vmem:[#allocation2 + $0x11f4] ss:$44 sps:$4 sm:$0xff]   ;;  %v24466_v10 = vld [vmem:[#allocation2 + $0x11fc] ss:$44 sps:$4 sm:$0xff]  }
 0x3e6   :  { %13546 = vmatpush1.bf16.msra.mxu0 %v24401_v11  ;;  %14062 = vmatpush1.bf16.msra.mxu1 %v24404_v13  ;;  %v24461_v11 = vld [vmem:[#allocation2 + $0x11f0] ss:$44 sps:$4 sm:$0xff]   ;;  %v24464_v13 = vld [vmem:[#allocation2 + $0x11f8] ss:$44 sps:$4 sm:$0xff]  }
 0x3e7   :  { %13547 = vmatprep.subr.bf16.mxu0 %v24409_v14  ;;  %14063 = vmatprep.subr.bf16.mxu1 %v24412_v15  ;;  %v24469_v14 = vld [vmem:[#allocation2 + $0x124c] ss:$44 sps:$4 sm:$0xff]   ;;  %v24472_v15 = vld [vmem:[#allocation2 + $0x1254] ss:$44 sps:$4 sm:$0xff]  }
 0x3ea   :  { %13548 = vmatpush1.bf16.msra.mxu0 %v24407_v16  ;;  %14064 = vmatpush1.bf16.msra.mxu1 %v24410_v19  ;;  %v24467_v16 = vld [vmem:[#allocation2 + $0x1248] ss:$44 sps:$4 sm:$0xff]   ;;  %v24470_v19 = vld [vmem:[#allocation2 + $0x1250] ss:$44 sps:$4 sm:$0xff]  }
 0x3eb   :  { %13549 = vmatprep.subr.bf16.mxu0 %v24415_v20  ;;  %14065 = vmatprep.subr.bf16.mxu1 %v24418_v21  ;;  %v24475_v20 = vld [vmem:[#allocation2 + $0x12a4] ss:$44 sps:$4 sm:$0xff]   ;;  %v24478_v21 = vld [vmem:[#allocation2 + $0x12ac] ss:$44 sps:$4 sm:$0xff]  }
 0x3ee   :  { %13550 = vmatpush1.bf16.msra.mxu0 %v24413_v22  ;;  %14066 = vmatpush1.bf16.msra.mxu1 %v24416_v25 }
 0x3ef   :  { %13551 = vmatprep.subr.bf16.mxu0 %v24421_v26  ;;  %14067 = vmatprep.subr.bf16.mxu1 %v24424_v27 }
 0x3f2   :  { %13552 = vmatpush1.bf16.msra.mxu0 %v24419_v29  ;;  %14068 = vmatpush1.bf16.msra.mxu1 %v24422_v30 }
 0x3f3   :  { %13553 = vmatprep.subr.bf16.mxu0 %v24427_v31  ;;  %14069 = vmatprep.subr.bf16.mxu1 %v24430_v34  ;;  %v24473_v31 = vld [vmem:[#allocation2 + $0x12a0] ss:$44 sps:$4 sm:$0xff]   ;;  %v24476_v34 = vld [vmem:[#allocation2 + $0x12a8] ss:$44 sps:$4 sm:$0xff]  }
 0x3f6   :  { %13554 = vmatpush1.bf16.msra.mxu0 %v24425_v38  ;;  %14070 = vmatpush1.bf16.msra.mxu1 %v24428_v39 }
 0x3f7   :  { %13555 = vmatprep.subr.bf16.mxu0 %v24433_v40  ;;  %14071 = vmatprep.subr.bf16.mxu1 %v24436_v43  ;;  %v24481_v40 = vld [vmem:[#allocation2 + $0x12fc] ss:$44 sps:$4 sm:$0xff]   ;;  %v24484_v43 = vld [vmem:[#allocation2 + $0x1304] ss:$44 sps:$4 sm:$0xff]  }
 0x3fa   :  { %13556 = vmatpush1.bf16.msra.mxu0 %v24431_v44  ;;  %14072 = vmatpush1.bf16.msra.mxu1 %v24434_v45  ;;  %v24479_v44 = vld [vmem:[#allocation2 + $0x12f8] ss:$44 sps:$4 sm:$0xff]   ;;  %v24482_v45 = vld [vmem:[#allocation2 + $0x1300] ss:$44 sps:$4 sm:$0xff]  }
 0x3fb   :  { %13568 = vmatprep.subr.bf16.mxu0 %v24439_v46  ;;  %14084 = vmatprep.subr.bf16.mxu1 %v24442_v48  ;;  %v24487_v46 = vld [vmem:[#allocation2 + $0x1354] ss:$44 sps:$4 sm:$0xff]   ;;  %v24490_v48 = vld [vmem:[#allocation2 + $0x135c] ss:$44 sps:$4 sm:$0xff]  }
 0x3fd   :  { %13558 = vmatmul.mubr.bf16.vlgmr.msra.gmra.mrb[4].mxu0 %v26995_v28  ;;  %14074 = vmatmul.mubr.bf16.vlgmr.msra.gmra.mrb[4].mxu1 %v26995_v28 }
 0x3fe   :  { %13569 = vmatpush1.bf16.msra.mxu0 %v24437_v49  ;;  %14085 = vmatpush1.bf16.msra.mxu1 %v24440_v51  ;;  %v24485_v49 = vld [vmem:[#allocation2 + $0x1350] ss:$44 sps:$4 sm:$0xff]   ;;  %v24488_v51 = vld [vmem:[#allocation2 + $0x1358] ss:$44 sps:$4 sm:$0xff]  }
 0x3ff   :  { %13570 = vmatprep.subr.bf16.mxu0 %v24445_v53  ;;  %14086 = vmatprep.subr.bf16.mxu1 %v24448_v54  ;;  %v24493_v53 = vld [vmem:[#allocation2 + $0x13ac] ss:$44 sps:$4 sm:$0xff]   ;;  %v24496_v54 = vld [vmem:[#allocation2 + $0x13b4] ss:$44 sps:$4 sm:$0xff]  }
 0x400   :  { %13600 = vmatprep.mubr.bf16.mxu0 %v27003_v33  ;;  %14116 = vmatprep.mubr.bf16.mxu1 %v27003_v33 }
 0x402   :  { %13571 = vmatpush1.bf16.msra.mxu0 %v24443_v55  ;;  %14087 = vmatpush1.bf16.msra.mxu1 %v24446_v56  ;;  %v24491_v55 = vld [vmem:[#allocation2 + $0x13a8] ss:$44 sps:$4 sm:$0xff]   ;;  %v24494_v56 = vld [vmem:[#allocation2 + $0x13b0] ss:$44 sps:$4 sm:$0xff]  }
 0x403   :  { %13572 = vmatprep.subr.bf16.mxu0 %v24451_v57  ;;  %14088 = vmatprep.subr.bf16.mxu1 %v24454_v59  ;;  %v24499_v57 = vld [vmem:[#allocation2 + $0x1404] ss:$44 sps:$4 sm:$0xff]   ;;  %v24502_v59 = vld [vmem:[#allocation2 + $0x140c] ss:$44 sps:$4 sm:$0xff]  }
 0x406   :  { %13573 = vmatpush1.bf16.msra.mxu0 %v24449_v0  ;;  %14089 = vmatpush1.bf16.msra.mxu1 %v24452_v1  ;;  %v24497_v0 = vld [vmem:[#allocation2 + $0x1400] ss:$44 sps:$4 sm:$0xff]   ;;  %v24500_v1 = vld [vmem:[#allocation2 + $0x1408] ss:$44 sps:$4 sm:$0xff]  }
 0x407   :  { %13574 = vmatprep.subr.bf16.mxu0 %v24457_v2  ;;  %14090 = vmatprep.subr.bf16.mxu1 %v24460_v5  ;;  %v24505_v2 = vld [vmem:[#allocation2 + $0x145c] ss:$44 sps:$4 sm:$0xff]   ;;  %v24508_v5 = vld [vmem:[#allocation2 + $0x1464] ss:$44 sps:$4 sm:$0xff]  }
 0x40a   :  { %13575 = vmatpush1.bf16.msra.mxu0 %v24455_v6  ;;  %14091 = vmatpush1.bf16.msra.mxu1 %v24458_v7  ;;  %v24503_v6 = vld [vmem:[#allocation2 + $0x1458] ss:$44 sps:$4 sm:$0xff]   ;;  %v24506_v7 = vld [vmem:[#allocation2 + $0x1460] ss:$44 sps:$4 sm:$0xff]  }
 0x40b   :  { %13576 = vmatprep.subr.bf16.mxu0 %v24463_v8  ;;  %14092 = vmatprep.subr.bf16.mxu1 %v24466_v10  ;;  %v24511_v8 = vld [vmem:[#allocation2 + $0x14b4] ss:$44 sps:$4 sm:$0xff]   ;;  %v24514_v10 = vld [vmem:[#allocation2 + $0x14bc] ss:$44 sps:$4 sm:$0xff]  }
 0x40e   :  { %13577 = vmatpush1.bf16.msra.mxu0 %v24461_v11  ;;  %14093 = vmatpush1.bf16.msra.mxu1 %v24464_v13  ;;  %v24509_v11 = vld [vmem:[#allocation2 + $0x14b0] ss:$44 sps:$4 sm:$0xff]   ;;  %v24512_v13 = vld [vmem:[#allocation2 + $0x14b8] ss:$44 sps:$4 sm:$0xff]  }
 0x40f   :  { %13578 = vmatprep.subr.bf16.mxu0 %v24469_v14  ;;  %14094 = vmatprep.subr.bf16.mxu1 %v24472_v15  ;;  %v24517_v14 = vld [vmem:[#allocation2 + $0x150c] ss:$44 sps:$4 sm:$0xff]   ;;  %v24520_v15 = vld [vmem:[#allocation2 + $0x1514] ss:$44 sps:$4 sm:$0xff]  }
 0x410   :  { %v27191_v22 = vpop.f32.mrb[0].mxu0  ;;  %v27193_v25 = vpop.f32.mrb[0].mxu1 }
 0x411   :  { %v27195_v26 = vpop.f32.mrb[1].mxu0  ;;  %v27197_v27 = vpop.f32.mrb[1].mxu1 }
 0x412   :  { %v27199_v29 = vpop.f32.mrb[2].mxu0  ;;  %v27201_v30 = vpop.f32.mrb[2].mxu1  ;;  %13579 = vmatpush1.bf16.msra.mxu0 %v24467_v16  ;;  %14095 = vmatpush1.bf16.msra.mxu1 %v24470_v19  ;;  %v24515_v16 = vld [vmem:[#allocation2 + $0x1508] ss:$44 sps:$4 sm:$0xff]   ;;  %v24518_v19 = vld [vmem:[#allocation2 + $0x1510] ss:$44 sps:$4 sm:$0xff]  }
 0x413   :  { %v27203_v38 = vpop.f32.mrb[3].mxu0  ;;  %v27205_v39 = vpop.f32.mrb[3].mxu1  ;;  %13580 = vmatprep.subr.bf16.mxu0 %v24475_v20  ;;  %14096 = vmatprep.subr.bf16.mxu1 %v24478_v21  ;;  %v24523_v20 = vld [vmem:[#allocation2 + $0x1564] ss:$44 sps:$4 sm:$0xff]   ;;  %v24526_v21 = vld [vmem:[#allocation2 + $0x156c] ss:$44 sps:$4 sm:$0xff]  }
 0x416   :  { %13581 = vmatpush1.bf16.msra.mxu0 %v24473_v31  ;;  %14097 = vmatpush1.bf16.msra.mxu1 %v24476_v34  ;;  %v24521_v31 = vld [vmem:[#allocation2 + $0x1560] ss:$44 sps:$4 sm:$0xff]   ;;  %v24524_v34 = vld [vmem:[#allocation2 + $0x1568] ss:$44 sps:$4 sm:$0xff]  }
 0x417   :  { %13582 = vmatprep.subr.bf16.mxu0 %v24481_v40  ;;  %14098 = vmatprep.subr.bf16.mxu1 %v24484_v43  ;;  %v24529_v40 = vld [vmem:[#allocation2 + $0x15bc] ss:$44 sps:$4 sm:$0xff]   ;;  %v24532_v43 = vld [vmem:[#allocation2 + $0x15c4] ss:$44 sps:$4 sm:$0xff]  }
 0x41a   :  { %13583 = vmatpush1.bf16.msra.mxu0 %v24479_v44  ;;  %14099 = vmatpush1.bf16.msra.mxu1 %v24482_v45  ;;  %v24527_v44 = vld [vmem:[#allocation2 + $0x15b8] ss:$44 sps:$4 sm:$0xff]   ;;  %v24530_v45 = vld [vmem:[#allocation2 + $0x15c0] ss:$44 sps:$4 sm:$0xff]  }
 0x41b   :  { %13584 = vmatprep.subr.bf16.mxu0 %v24487_v46  ;;  %14100 = vmatprep.subr.bf16.mxu1 %v24490_v48  ;;  %v24535_v46 = vld [vmem:[#allocation2 + $0x1614] ss:$44 sps:$4 sm:$0xff]   ;;  %v24538_v48 = vld [vmem:[#allocation2 + $0x161c] ss:$44 sps:$4 sm:$0xff]  }
 0x41e   :  { %13585 = vmatpush1.bf16.msra.mxu0 %v24485_v49  ;;  %14101 = vmatpush1.bf16.msra.mxu1 %v24488_v51  ;;  %v24533_v49 = vld [vmem:[#allocation2 + $0x1610] ss:$44 sps:$4 sm:$0xff]   ;;  %v24536_v51 = vld [vmem:[#allocation2 + $0x1618] ss:$44 sps:$4 sm:$0xff]  }
 0x41f   :  { %13586 = vmatprep.subr.bf16.mxu0 %v24493_v53  ;;  %14102 = vmatprep.subr.bf16.mxu1 %v24496_v54  ;;  %v24541_v53 = vld [vmem:[#allocation2 + $0x166c] ss:$44 sps:$4 sm:$0xff]   ;;  %v24544_v54 = vld [vmem:[#allocation2 + $0x1674] ss:$44 sps:$4 sm:$0xff]  }
 0x422   :  { %13587 = vmatpush1.bf16.msra.mxu0 %v24491_v55  ;;  %14103 = vmatpush1.bf16.msra.mxu1 %v24494_v56  ;;  %v24539_v55 = vld [vmem:[#allocation2 + $0x1668] ss:$44 sps:$4 sm:$0xff]   ;;  %v24542_v56 = vld [vmem:[#allocation2 + $0x1670] ss:$44 sps:$4 sm:$0xff]  }
 0x423   :  { %13588 = vmatprep.subr.bf16.mxu0 %v24499_v57  ;;  %14104 = vmatprep.subr.bf16.mxu1 %v24502_v59  ;;  %v24547_v57 = vld [vmem:[#allocation2 + $0x16c4] ss:$44 sps:$4 sm:$0xff]   ;;  %v24550_v59 = vld [vmem:[#allocation2 + $0x16cc] ss:$44 sps:$4 sm:$0xff]  }
 0x426   :  { %13589 = vmatpush1.bf16.msra.mxu0 %v24497_v0  ;;  %14105 = vmatpush1.bf16.msra.mxu1 %v24500_v1  ;;  %v24545_v0 = vld [vmem:[#allocation2 + $0x16c0] ss:$44 sps:$4 sm:$0xff]   ;;  %v24548_v1 = vld [vmem:[#allocation2 + $0x16c8] ss:$44 sps:$4 sm:$0xff]  }
 0x427   :  { %13590 = vmatprep.subr.bf16.mxu0 %v24505_v2  ;;  %14106 = vmatprep.subr.bf16.mxu1 %v24508_v5  ;;  %v24553_v2 = vld [vmem:[#allocation2 + $0x171c] ss:$44 sps:$4 sm:$0xff]   ;;  %v24556_v5 = vld [vmem:[#allocation2 + $0x1724] ss:$44 sps:$4 sm:$0xff]  }
 0x42a   :  { %13591 = vmatpush1.bf16.msra.mxu0 %v24503_v6  ;;  %14107 = vmatpush1.bf16.msra.mxu1 %v24506_v7  ;;  %v24551_v6 = vld [vmem:[#allocation2 + $0x1718] ss:$44 sps:$4 sm:$0xff]   ;;  %v24554_v7 = vld [vmem:[#allocation2 + $0x1720] ss:$44 sps:$4 sm:$0xff]  }
 0x42b   :  { %13592 = vmatprep.subr.bf16.mxu0 %v24511_v8  ;;  %14108 = vmatprep.subr.bf16.mxu1 %v24514_v10  ;;  %v24559_v8 = vld [vmem:[#allocation2 + $0x1774] ss:$44 sps:$4 sm:$0xff]   ;;  %v24562_v10 = vld [vmem:[#allocation2 + $0x177c] ss:$44 sps:$4 sm:$0xff]  }
 0x42e   :  { %13593 = vmatpush1.bf16.msra.mxu0 %v24509_v11  ;;  %14109 = vmatpush1.bf16.msra.mxu1 %v24512_v13  ;;  %v24557_v11 = vld [vmem:[#allocation2 + $0x1770] ss:$44 sps:$4 sm:$0xff]   ;;  %v24560_v13 = vld [vmem:[#allocation2 + $0x1778] ss:$44 sps:$4 sm:$0xff]  }
 0x42f   :  { %13594 = vmatprep.subr.bf16.mxu0 %v24517_v14  ;;  %14110 = vmatprep.subr.bf16.mxu1 %v24520_v15  ;;  %v24565_v14 = vld [vmem:[#allocation2 + $0x17cc] ss:$44 sps:$4 sm:$0xff]   ;;  %v24568_v15 = vld [vmem:[#allocation2 + $0x17d4] ss:$44 sps:$4 sm:$0xff]  }
 0x432   :  { %13595 = vmatpush1.bf16.msra.mxu0 %v24515_v16  ;;  %14111 = vmatpush1.bf16.msra.mxu1 %v24518_v19  ;;  %v24563_v16 = vld [vmem:[#allocation2 + $0x17c8] ss:$44 sps:$4 sm:$0xff]   ;;  %v24566_v19 = vld [vmem:[#allocation2 + $0x17d0] ss:$44 sps:$4 sm:$0xff]  }
 0x433   :  { %13596 = vmatprep.subr.bf16.mxu0 %v24523_v20  ;;  %14112 = vmatprep.subr.bf16.mxu1 %v24526_v21  ;;  %v24571_v20 = vld [vmem:[#allocation2 + $0x1824] ss:$44 sps:$4 sm:$0xff]   ;;  %v24574_v21 = vld [vmem:[#allocation2 + $0x182c] ss:$44 sps:$4 sm:$0xff]  }
 0x436   :  { %13597 = vmatpush1.bf16.msra.mxu0 %v24521_v31  ;;  %14113 = vmatpush1.bf16.msra.mxu1 %v24524_v34  ;;  %v24569_v31 = vld [vmem:[#allocation2 + $0x1820] ss:$44 sps:$4 sm:$0xff]   ;;  %v24572_v34 = vld [vmem:[#allocation2 + $0x1828] ss:$44 sps:$4 sm:$0xff]  }
 0x437   :  { %13598 = vmatprep.subr.bf16.mxu0 %v24529_v40  ;;  %14114 = vmatprep.subr.bf16.mxu1 %v24532_v43  ;;  %v24577_v40 = vld [vmem:[#allocation2 + $0x187c] ss:$44 sps:$4 sm:$0xff]   ;;  %v24580_v43 = vld [vmem:[#allocation2 + $0x1884] ss:$44 sps:$4 sm:$0xff]  }
 0x43a   :  { %13599 = vmatpush1.bf16.msra.mxu0 %v24527_v44  ;;  %14115 = vmatpush1.bf16.msra.mxu1 %v24530_v45  ;;  %v24575_v44 = vld [vmem:[#allocation2 + $0x1878] ss:$44 sps:$4 sm:$0xff]   ;;  %v24578_v45 = vld [vmem:[#allocation2 + $0x1880] ss:$44 sps:$4 sm:$0xff]  }
 0x43b   :  { %13611 = vmatprep.subr.bf16.mxu0 %v24535_v46  ;;  %14127 = vmatprep.subr.bf16.mxu1 %v24538_v48  ;;  %v24583_v46 = vld [vmem:[#allocation2 + $0x18d4] ss:$44 sps:$4 sm:$0xff]   ;;  %v24586_v48 = vld [vmem:[#allocation2 + $0x18dc] ss:$44 sps:$4 sm:$0xff]  }
 0x43d   :  { %13601 = vmatmul.mubr.bf16.vlgmr.msra.gmra.mrb[4].mxu0 %v27015_v42  ;;  %14117 = vmatmul.mubr.bf16.vlgmr.msra.gmra.mrb[4].mxu1 %v27015_v42 }
 0x43e   :  { %13612 = vmatpush1.bf16.msra.mxu0 %v24533_v49  ;;  %14128 = vmatpush1.bf16.msra.mxu1 %v24536_v51  ;;  %v24581_v49 = vld [vmem:[#allocation2 + $0x18d0] ss:$44 sps:$4 sm:$0xff]   ;;  %v24584_v51 = vld [vmem:[#allocation2 + $0x18d8] ss:$44 sps:$4 sm:$0xff]  }
 0x43f   :  { %13613 = vmatprep.subr.bf16.mxu0 %v24541_v53  ;;  %14129 = vmatprep.subr.bf16.mxu1 %v24544_v54  ;;  %v24589_v53 = vld [vmem:[#allocation2 + $0x192c] ss:$44 sps:$4 sm:$0xff]   ;;  %v24592_v54 = vld [vmem:[#allocation2 + $0x1934] ss:$44 sps:$4 sm:$0xff]  }
 0x440   :  { %13643 = vmatprep.mubr.bf16.mxu0 %v27023_v47  ;;  %14159 = vmatprep.mubr.bf16.mxu1 %v27023_v47 }
 0x442   :  { %13614 = vmatpush1.bf16.msra.mxu0 %v24539_v55  ;;  %14130 = vmatpush1.bf16.msra.mxu1 %v24542_v56  ;;  %v24587_v55 = vld [vmem:[#allocation2 + $0x1928] ss:$44 sps:$4 sm:$0xff]   ;;  %v24590_v56 = vld [vmem:[#allocation2 + $0x1930] ss:$44 sps:$4 sm:$0xff]  }
 0x443   :  { %13615 = vmatprep.subr.bf16.mxu0 %v24547_v57  ;;  %14131 = vmatprep.subr.bf16.mxu1 %v24550_v59  ;;  %v24595_v57 = vld [vmem:[#allocation2 + $0x1984] ss:$44 sps:$4 sm:$0xff]   ;;  %v24598_v59 = vld [vmem:[#allocation2 + $0x198c] ss:$44 sps:$4 sm:$0xff]  }
 0x446   :  { %13616 = vmatpush1.bf16.msra.mxu0 %v24545_v0  ;;  %14132 = vmatpush1.bf16.msra.mxu1 %v24548_v1  ;;  %v24593_v0 = vld [vmem:[#allocation2 + $0x1980] ss:$44 sps:$4 sm:$0xff]   ;;  %v24596_v1 = vld [vmem:[#allocation2 + $0x1988] ss:$44 sps:$4 sm:$0xff]  }
 0x447   :  { %13617 = vmatprep.subr.bf16.mxu0 %v24553_v2  ;;  %14133 = vmatprep.subr.bf16.mxu1 %v24556_v5  ;;  %v24601_v2 = vld [vmem:[#allocation2 + $0x19dc] ss:$44 sps:$4 sm:$0xff]   ;;  %v24604_v5 = vld [vmem:[#allocation2 + $0x19e4] ss:$44 sps:$4 sm:$0xff]  }
 0x44a   :  { %13618 = vmatpush1.bf16.msra.mxu0 %v24551_v6  ;;  %14134 = vmatpush1.bf16.msra.mxu1 %v24554_v7  ;;  %v24599_v6 = vld [vmem:[#allocation2 + $0x19d8] ss:$44 sps:$4 sm:$0xff]   ;;  %v24602_v7 = vld [vmem:[#allocation2 + $0x19e0] ss:$44 sps:$4 sm:$0xff]  }
 0x44b   :  { %13619 = vmatprep.subr.bf16.mxu0 %v24559_v8  ;;  %14135 = vmatprep.subr.bf16.mxu1 %v24562_v10  ;;  %v24607_v8 = vld [vmem:[#allocation2 + $0x1a34] ss:$44 sps:$4 sm:$0xff]   ;;  %v24610_v10 = vld [vmem:[#allocation2 + $0x1a3c] ss:$44 sps:$4 sm:$0xff]  }
 0x44e   :  { %13620 = vmatpush1.bf16.msra.mxu0 %v24557_v11  ;;  %14136 = vmatpush1.bf16.msra.mxu1 %v24560_v13  ;;  %v24605_v11 = vld [vmem:[#allocation2 + $0x1a30] ss:$44 sps:$4 sm:$0xff]   ;;  %v24608_v13 = vld [vmem:[#allocation2 + $0x1a38] ss:$44 sps:$4 sm:$0xff]  }
 0x44f   :  { %13621 = vmatprep.subr.bf16.mxu0 %v24565_v14  ;;  %14137 = vmatprep.subr.bf16.mxu1 %v24568_v15  ;;  %v24613_v14 = vld [vmem:[#allocation2 + $0x1a8c] ss:$44 sps:$4 sm:$0xff]   ;;  %v24616_v15 = vld [vmem:[#allocation2 + $0x1a94] ss:$44 sps:$4 sm:$0xff]  }
 0x452   :  { %13622 = vmatpush1.bf16.msra.mxu0 %v24563_v16  ;;  %14138 = vmatpush1.bf16.msra.mxu1 %v24566_v19  ;;  %v24611_v16 = vld [vmem:[#allocation2 + $0x1a88] ss:$44 sps:$4 sm:$0xff]   ;;  %v24614_v19 = vld [vmem:[#allocation2 + $0x1a90] ss:$44 sps:$4 sm:$0xff]  }
 0x453   :  { %13623 = vmatprep.subr.bf16.mxu0 %v24571_v20  ;;  %14139 = vmatprep.subr.bf16.mxu1 %v24574_v21  ;;  %v24619_v20 = vld [vmem:[#allocation2 + $0x1ae4] ss:$44 sps:$4 sm:$0xff]   ;;  %v24622_v21 = vld [vmem:[#allocation2 + $0x1aec] ss:$44 sps:$4 sm:$0xff]  }
 0x456   :  { %13624 = vmatpush1.bf16.msra.mxu0 %v24569_v31  ;;  %14140 = vmatpush1.bf16.msra.mxu1 %v24572_v34  ;;  %v24617_v31 = vld [vmem:[#allocation2 + $0x1ae0] ss:$44 sps:$4 sm:$0xff]   ;;  %v24620_v34 = vld [vmem:[#allocation2 + $0x1ae8] ss:$44 sps:$4 sm:$0xff]  }
 0x457   :  { %13625 = vmatprep.subr.bf16.mxu0 %v24577_v40  ;;  %14141 = vmatprep.subr.bf16.mxu1 %v24580_v43  ;;  %v24625_v40 = vld [vmem:[#allocation2 + $0x1b3c] ss:$44 sps:$4 sm:$0xff]   ;;  %v24628_v43 = vld [vmem:[#allocation2 + $0x1b44] ss:$44 sps:$4 sm:$0xff]  }
 0x45a   :  { %13626 = vmatpush1.bf16.msra.mxu0 %v24575_v44  ;;  %14142 = vmatpush1.bf16.msra.mxu1 %v24578_v45  ;;  %v24623_v44 = vld [vmem:[#allocation2 + $0x1b38] ss:$44 sps:$4 sm:$0xff]   ;;  %v24626_v45 = vld [vmem:[#allocation2 + $0x1b40] ss:$44 sps:$4 sm:$0xff]  }
 0x45b   :  { %13627 = vmatprep.subr.bf16.mxu0 %v24583_v46  ;;  %14143 = vmatprep.subr.bf16.mxu1 %v24586_v48  ;;  %v24631_v46 = vld [vmem:[#allocation2 + $0x1b94] ss:$44 sps:$4 sm:$0xff]   ;;  %v24634_v48 = vld [vmem:[#allocation2 + $0x1b9c] ss:$44 sps:$4 sm:$0xff]  }
 0x45e   :  { %13628 = vmatpush1.bf16.msra.mxu0 %v24581_v49  ;;  %14144 = vmatpush1.bf16.msra.mxu1 %v24584_v51  ;;  %v24629_v49 = vld [vmem:[#allocation2 + $0x1b90] ss:$44 sps:$4 sm:$0xff]   ;;  %v24632_v51 = vld [vmem:[#allocation2 + $0x1b98] ss:$44 sps:$4 sm:$0xff]  }
 0x45f   :  { %13629 = vmatprep.subr.bf16.mxu0 %v24589_v53  ;;  %14145 = vmatprep.subr.bf16.mxu1 %v24592_v54  ;;  %v24637_v53 = vld [vmem:[#allocation2 + $0x1bec] ss:$44 sps:$4 sm:$0xff]   ;;  %v24640_v54 = vld [vmem:[#allocation2 + $0x1bf4] ss:$44 sps:$4 sm:$0xff]  }
 0x462   :  { %13630 = vmatpush1.bf16.msra.mxu0 %v24587_v55  ;;  %14146 = vmatpush1.bf16.msra.mxu1 %v24590_v56  ;;  %v24635_v55 = vld [vmem:[#allocation2 + $0x1be8] ss:$44 sps:$4 sm:$0xff]   ;;  %v24638_v56 = vld [vmem:[#allocation2 + $0x1bf0] ss:$44 sps:$4 sm:$0xff]  }
 0x463   :  { %13631 = vmatprep.subr.bf16.mxu0 %v24595_v57  ;;  %14147 = vmatprep.subr.bf16.mxu1 %v24598_v59  ;;  %v24643_v57 = vld [vmem:[#allocation2 + $0x1c44] ss:$44 sps:$4 sm:$0xff]   ;;  %v24646_v59 = vld [vmem:[#allocation2 + $0x1c4c] ss:$44 sps:$4 sm:$0xff]  }
 0x466   :  { %13632 = vmatpush1.bf16.msra.mxu0 %v24593_v0  ;;  %14148 = vmatpush1.bf16.msra.mxu1 %v24596_v1  ;;  %v24641_v0 = vld [vmem:[#allocation2 + $0x1c40] ss:$44 sps:$4 sm:$0xff]   ;;  %v24644_v1 = vld [vmem:[#allocation2 + $0x1c48] ss:$44 sps:$4 sm:$0xff]  }
 0x467   :  { %13633 = vmatprep.subr.bf16.mxu0 %v24601_v2  ;;  %14149 = vmatprep.subr.bf16.mxu1 %v24604_v5  ;;  %v24649_v2 = vld [vmem:[#allocation2 + $0x1c9c] ss:$44 sps:$4 sm:$0xff]   ;;  %v24652_v5 = vld [vmem:[#allocation2 + $0x1ca4] ss:$44 sps:$4 sm:$0xff]  }
 0x46a   :  { %13634 = vmatpush1.bf16.msra.mxu0 %v24599_v6  ;;  %14150 = vmatpush1.bf16.msra.mxu1 %v24602_v7  ;;  %v24647_v6 = vld [vmem:[#allocation2 + $0x1c98] ss:$44 sps:$4 sm:$0xff]   ;;  %v24650_v7 = vld [vmem:[#allocation2 + $0x1ca0] ss:$44 sps:$4 sm:$0xff]  }
 0x46b   :  { %13635 = vmatprep.subr.bf16.mxu0 %v24607_v8  ;;  %14151 = vmatprep.subr.bf16.mxu1 %v24610_v10  ;;  %v24655_v8 = vld [vmem:[#allocation2 + $0x1cf4] ss:$44 sps:$4 sm:$0xff]   ;;  %v24658_v10 = vld [vmem:[#allocation2 + $0x1cfc] ss:$44 sps:$4 sm:$0xff]  }
 0x46e   :  { %13636 = vmatpush1.bf16.msra.mxu0 %v24605_v11  ;;  %14152 = vmatpush1.bf16.msra.mxu1 %v24608_v13  ;;  %v24653_v11 = vld [vmem:[#allocation2 + $0x1cf0] ss:$44 sps:$4 sm:$0xff]   ;;  %v24656_v13 = vld [vmem:[#allocation2 + $0x1cf8] ss:$44 sps:$4 sm:$0xff]  }
 0x46f   :  { %13637 = vmatprep.subr.bf16.mxu0 %v24613_v14  ;;  %14153 = vmatprep.subr.bf16.mxu1 %v24616_v15  ;;  %v24661_v14 = vld [vmem:[#allocation2 + $0x1d4c] ss:$44 sps:$4 sm:$0xff]   ;;  %v24664_v15 = vld [vmem:[#allocation2 + $0x1d54] ss:$44 sps:$4 sm:$0xff]  }
 0x472   :  { %13638 = vmatpush1.bf16.msra.mxu0 %v24611_v16  ;;  %14154 = vmatpush1.bf16.msra.mxu1 %v24614_v19  ;;  %v24659_v16 = vld [vmem:[#allocation2 + $0x1d48] ss:$44 sps:$4 sm:$0xff]   ;;  %v24662_v19 = vld [vmem:[#allocation2 + $0x1d50] ss:$44 sps:$4 sm:$0xff]  }
 0x473   :  { %13639 = vmatprep.subr.bf16.mxu0 %v24619_v20  ;;  %14155 = vmatprep.subr.bf16.mxu1 %v24622_v21  ;;  %v24667_v20 = vld [vmem:[#allocation2 + $0x1da4] ss:$44 sps:$4 sm:$0xff]   ;;  %v24670_v21 = vld [vmem:[#allocation2 + $0x1dac] ss:$44 sps:$4 sm:$0xff]  }
 0x476   :  { %13640 = vmatpush1.bf16.msra.mxu0 %v24617_v31  ;;  %14156 = vmatpush1.bf16.msra.mxu1 %v24620_v34  ;;  %v24665_v31 = vld [vmem:[#allocation2 + $0x1da0] ss:$44 sps:$4 sm:$0xff]   ;;  %v24668_v34 = vld [vmem:[#allocation2 + $0x1da8] ss:$44 sps:$4 sm:$0xff]  }
 0x477   :  { %13641 = vmatprep.subr.bf16.mxu0 %v24625_v40  ;;  %14157 = vmatprep.subr.bf16.mxu1 %v24628_v43  ;;  %v24673_v40 = vld [vmem:[#allocation2 + $0x1dfc] ss:$44 sps:$4 sm:$0xff]   ;;  %v24676_v43 = vld [vmem:[#allocation2 + $0x1e04] ss:$44 sps:$4 sm:$0xff]  }
 0x47a   :  { %13642 = vmatpush1.bf16.msra.mxu0 %v24623_v44  ;;  %14158 = vmatpush1.bf16.msra.mxu1 %v24626_v45  ;;  %v24671_v44 = vld [vmem:[#allocation2 + $0x1df8] ss:$44 sps:$4 sm:$0xff]   ;;  %v24674_v45 = vld [vmem:[#allocation2 + $0x1e00] ss:$44 sps:$4 sm:$0xff]  }
 0x47b   :  { %13654 = vmatprep.subr.bf16.mxu0 %v24631_v46  ;;  %14170 = vmatprep.subr.bf16.mxu1 %v24634_v48  ;;  %v24679_v46 = vld [vmem:[#allocation2 + $0x1e54] ss:$44 sps:$4 sm:$0xff]   ;;  %v24682_v48 = vld [vmem:[#allocation2 + $0x1e5c] ss:$44 sps:$4 sm:$0xff]  }
 0x47d   :  { %13644 = vmatmul.mubr.bf16.vlgmr.msra.gmra.mrb[4].mxu0 %v27041_v58  ;;  %14160 = vmatmul.mubr.bf16.vlgmr.msra.gmra.mrb[4].mxu1 %v27041_v58 }
 0x47e   :  { %13655 = vmatpush1.bf16.msra.mxu0 %v24629_v49  ;;  %14171 = vmatpush1.bf16.msra.mxu1 %v24632_v51  ;;  %v24677_v49 = vld [vmem:[#allocation2 + $0x1e50] ss:$44 sps:$4 sm:$0xff]   ;;  %v24680_v51 = vld [vmem:[#allocation2 + $0x1e58] ss:$44 sps:$4 sm:$0xff]  }
 0x47f   :  { %13656 = vmatprep.subr.bf16.mxu0 %v24637_v53  ;;  %14172 = vmatprep.subr.bf16.mxu1 %v24640_v54  ;;  %v24685_v53 = vld [vmem:[#allocation2 + $0x1eac] ss:$44 sps:$4 sm:$0xff]   ;;  %v24688_v54 = vld [vmem:[#allocation2 + $0x1eb4] ss:$44 sps:$4 sm:$0xff]  }
 0x480   :  { %13686 = vmatprep.mubr.bf16.mxu0 %v27043_v63  ;;  %14202 = vmatprep.mubr.bf16.mxu1 %v27043_v63 }
 0x482   :  { %13657 = vmatpush1.bf16.msra.mxu0 %v24635_v55  ;;  %14173 = vmatpush1.bf16.msra.mxu1 %v24638_v56  ;;  %v24683_v55 = vld [vmem:[#allocation2 + $0x1ea8] ss:$44 sps:$4 sm:$0xff]   ;;  %v24686_v56 = vld [vmem:[#allocation2 + $0x1eb0] ss:$44 sps:$4 sm:$0xff]  }
 0x483   :  { %13658 = vmatprep.subr.bf16.mxu0 %v24643_v57  ;;  %14174 = vmatprep.subr.bf16.mxu1 %v24646_v59  ;;  %v24691_v57 = vld [vmem:[#allocation2 + $0x1f04] ss:$44 sps:$4 sm:$0xff]   ;;  %v24694_v59 = vld [vmem:[#allocation2 + $0x1f0c] ss:$44 sps:$4 sm:$0xff]  }
 0x486   :  { %13659 = vmatpush1.bf16.msra.mxu0 %v24641_v0  ;;  %14175 = vmatpush1.bf16.msra.mxu1 %v24644_v1  ;;  %v24689_v0 = vld [vmem:[#allocation2 + $0x1f00] ss:$44 sps:$4 sm:$0xff]   ;;  %v24692_v1 = vld [vmem:[#allocation2 + $0x1f08] ss:$44 sps:$4 sm:$0xff]  }
 0x487   :  { %13660 = vmatprep.subr.bf16.mxu0 %v24649_v2  ;;  %14176 = vmatprep.subr.bf16.mxu1 %v24652_v5  ;;  %v24697_v2 = vld [vmem:[#allocation2 + $0x1f5c] ss:$44 sps:$4 sm:$0xff]   ;;  %v24700_v5 = vld [vmem:[#allocation2 + $0x1f64] ss:$44 sps:$4 sm:$0xff]  }
 0x48a   :  { %13661 = vmatpush1.bf16.msra.mxu0 %v24647_v6  ;;  %14177 = vmatpush1.bf16.msra.mxu1 %v24650_v7  ;;  %v24695_v6 = vld [vmem:[#allocation2 + $0x1f58] ss:$44 sps:$4 sm:$0xff]   ;;  %v24698_v7 = vld [vmem:[#allocation2 + $0x1f60] ss:$44 sps:$4 sm:$0xff]  }
 0x48b   :  { %13662 = vmatprep.subr.bf16.mxu0 %v24655_v8  ;;  %14178 = vmatprep.subr.bf16.mxu1 %v24658_v10  ;;  %v24703_v8 = vld [vmem:[#allocation2 + $0x1fb4] ss:$44 sps:$4 sm:$0xff]   ;;  %v24706_v10 = vld [vmem:[#allocation2 + $0x1fbc] ss:$44 sps:$4 sm:$0xff]  }
 0x48e   :  { %13663 = vmatpush1.bf16.msra.mxu0 %v24653_v11  ;;  %14179 = vmatpush1.bf16.msra.mxu1 %v24656_v13  ;;  %v24701_v11 = vld [vmem:[#allocation2 + $0x1fb0] ss:$44 sps:$4 sm:$0xff]   ;;  %v24704_v13 = vld [vmem:[#allocation2 + $0x1fb8] ss:$44 sps:$4 sm:$0xff]  }
 0x48f   :  { %13664 = vmatprep.subr.bf16.mxu0 %v24661_v14  ;;  %14180 = vmatprep.subr.bf16.mxu1 %v24664_v15  ;;  %v24709_v14 = vld [vmem:[#allocation2 + $0x200c] ss:$44 sps:$4 sm:$0xff]   ;;  %v24712_v15 = vld [vmem:[#allocation2 + $0x2014] ss:$44 sps:$4 sm:$0xff]  }
 0x492   :  { %13665 = vmatpush1.bf16.msra.mxu0 %v24659_v16  ;;  %14181 = vmatpush1.bf16.msra.mxu1 %v24662_v19  ;;  %v24707_v16 = vld [vmem:[#allocation2 + $0x2008] ss:$44 sps:$4 sm:$0xff]   ;;  %v24710_v19 = vld [vmem:[#allocation2 + $0x2010] ss:$44 sps:$4 sm:$0xff]  }
 0x493   :  { %13666 = vmatprep.subr.bf16.mxu0 %v24667_v20  ;;  %14182 = vmatprep.subr.bf16.mxu1 %v24670_v21  ;;  %v24715_v20 = vld [vmem:[#allocation2 + $0x2064] ss:$44 sps:$4 sm:$0xff]   ;;  %v24718_v21 = vld [vmem:[#allocation2 + $0x206c] ss:$44 sps:$4 sm:$0xff]  }
 0x496   :  { %13667 = vmatpush1.bf16.msra.mxu0 %v24665_v31  ;;  %14183 = vmatpush1.bf16.msra.mxu1 %v24668_v34  ;;  %v24713_v31 = vld [vmem:[#allocation2 + $0x2060] ss:$44 sps:$4 sm:$0xff]   ;;  %v24716_v34 = vld [vmem:[#allocation2 + $0x2068] ss:$44 sps:$4 sm:$0xff]  }
 0x497   :  { %13668 = vmatprep.subr.bf16.mxu0 %v24673_v40  ;;  %14184 = vmatprep.subr.bf16.mxu1 %v24676_v43  ;;  %v24721_v40 = vld [vmem:[#allocation2 + $0x20bc] ss:$44 sps:$4 sm:$0xff]   ;;  %v24724_v43 = vld [vmem:[#allocation2 + $0x20c4] ss:$44 sps:$4 sm:$0xff]  }
 0x49a   :  { %13669 = vmatpush1.bf16.msra.mxu0 %v24671_v44  ;;  %14185 = vmatpush1.bf16.msra.mxu1 %v24674_v45  ;;  %v24719_v44 = vld [vmem:[#allocation2 + $0x20b8] ss:$44 sps:$4 sm:$0xff]   ;;  %v24722_v45 = vld [vmem:[#allocation2 + $0x20c0] ss:$44 sps:$4 sm:$0xff]  }
 0x49b   :  { %13670 = vmatprep.subr.bf16.mxu0 %v24679_v46  ;;  %14186 = vmatprep.subr.bf16.mxu1 %v24682_v48  ;;  %v24727_v46 = vld [vmem:[#allocation2 + $0x2114] ss:$44 sps:$4 sm:$0xff]   ;;  %v24730_v48 = vld [vmem:[#allocation2 + $0x211c] ss:$44 sps:$4 sm:$0xff]  }
 0x49e   :  { %13671 = vmatpush1.bf16.msra.mxu0 %v24677_v49  ;;  %14187 = vmatpush1.bf16.msra.mxu1 %v24680_v51  ;;  %v24725_v49 = vld [vmem:[#allocation2 + $0x2110] ss:$44 sps:$4 sm:$0xff]   ;;  %v24728_v51 = vld [vmem:[#allocation2 + $0x2118] ss:$44 sps:$4 sm:$0xff]  }
 0x49f   :  { %13672 = vmatprep.subr.bf16.mxu0 %v24685_v53  ;;  %14188 = vmatprep.subr.bf16.mxu1 %v24688_v54  ;;  %v24733_v53 = vld [vmem:[#allocation2 + $0x216c] ss:$44 sps:$4 sm:$0xff]   ;;  %v24736_v54 = vld [vmem:[#allocation2 + $0x2174] ss:$44 sps:$4 sm:$0xff]  }
 0x4a2   :  { %13673 = vmatpush1.bf16.msra.mxu0 %v24683_v55  ;;  %14189 = vmatpush1.bf16.msra.mxu1 %v24686_v56  ;;  %v24731_v55 = vld [vmem:[#allocation2 + $0x2168] ss:$44 sps:$4 sm:$0xff]   ;;  %v24734_v56 = vld [vmem:[#allocation2 + $0x2170] ss:$44 sps:$4 sm:$0xff]  }
 0x4a3   :  { %13674 = vmatprep.subr.bf16.mxu0 %v24691_v57  ;;  %14190 = vmatprep.subr.bf16.mxu1 %v24694_v59  ;;  %v24739_v57 = vld [vmem:[#allocation2 + $0x21c4] ss:$44 sps:$4 sm:$0xff]   ;;  %v24742_v59 = vld [vmem:[#allocation2 + $0x21cc] ss:$44 sps:$4 sm:$0xff]  }
 0x4a6   :  { %13675 = vmatpush1.bf16.msra.mxu0 %v24689_v0  ;;  %14191 = vmatpush1.bf16.msra.mxu1 %v24692_v1  ;;  %v24737_v0 = vld [vmem:[#allocation2 + $0x21c0] ss:$44 sps:$4 sm:$0xff]   ;;  %v24740_v1 = vld [vmem:[#allocation2 + $0x21c8] ss:$44 sps:$4 sm:$0xff]  }
 0x4a7   :  { %13676 = vmatprep.subr.bf16.mxu0 %v24697_v2  ;;  %14192 = vmatprep.subr.bf16.mxu1 %v24700_v5  ;;  %v24745_v2 = vld [vmem:[#allocation2 + $0x221c] ss:$44 sps:$4 sm:$0xff]   ;;  %v24748_v5 = vld [vmem:[#allocation2 + $0x2224] ss:$44 sps:$4 sm:$0xff]  }
 0x4aa   :  { %13677 = vmatpush1.bf16.msra.mxu0 %v24695_v6  ;;  %14193 = vmatpush1.bf16.msra.mxu1 %v24698_v7  ;;  %v24743_v6 = vld [vmem:[#allocation2 + $0x2218] ss:$44 sps:$4 sm:$0xff]   ;;  %v24746_v7 = vld [vmem:[#allocation2 + $0x2220] ss:$44 sps:$4 sm:$0xff]  }
 0x4ab   :  { %13678 = vmatprep.subr.bf16.mxu0 %v24703_v8  ;;  %14194 = vmatprep.subr.bf16.mxu1 %v24706_v10  ;;  %v24751_v8 = vld [vmem:[#allocation2 + $0x2274] ss:$44 sps:$4 sm:$0xff]   ;;  %v24754_v10 = vld [vmem:[#allocation2 + $0x227c] ss:$44 sps:$4 sm:$0xff]  }
 0x4ae   :  { %13679 = vmatpush1.bf16.msra.mxu0 %v24701_v11  ;;  %14195 = vmatpush1.bf16.msra.mxu1 %v24704_v13  ;;  %v24749_v11 = vld [vmem:[#allocation2 + $0x2270] ss:$44 sps:$4 sm:$0xff]   ;;  %v24752_v13 = vld [vmem:[#allocation2 + $0x2278] ss:$44 sps:$4 sm:$0xff]  }
 0x4af   :  { %13680 = vmatprep.subr.bf16.mxu0 %v24709_v14  ;;  %14196 = vmatprep.subr.bf16.mxu1 %v24712_v15  ;;  %v24757_v14 = vld [vmem:[#allocation2 + $0x22cc] ss:$44 sps:$4 sm:$0xff]   ;;  %v24760_v15 = vld [vmem:[#allocation2 + $0x22d4] ss:$44 sps:$4 sm:$0xff]  }
 0x4b2   :  { %13681 = vmatpush1.bf16.msra.mxu0 %v24707_v16  ;;  %14197 = vmatpush1.bf16.msra.mxu1 %v24710_v19  ;;  %v24755_v16 = vld [vmem:[#allocation2 + $0x22c8] ss:$44 sps:$4 sm:$0xff]   ;;  %v24758_v19 = vld [vmem:[#allocation2 + $0x22d0] ss:$44 sps:$4 sm:$0xff]  }
 0x4b3   :  { %13682 = vmatprep.subr.bf16.mxu0 %v24715_v20  ;;  %14198 = vmatprep.subr.bf16.mxu1 %v24718_v21  ;;  %v24763_v20 = vld [vmem:[#allocation2 + $0x2324] ss:$44 sps:$4 sm:$0xff]   ;;  %v24766_v21 = vld [vmem:[#allocation2 + $0x232c] ss:$44 sps:$4 sm:$0xff]  }
 0x4b6   :  { %13683 = vmatpush1.bf16.msra.mxu0 %v24713_v31  ;;  %14199 = vmatpush1.bf16.msra.mxu1 %v24716_v34  ;;  %v24761_v31 = vld [vmem:[#allocation2 + $0x2320] ss:$44 sps:$4 sm:$0xff]   ;;  %v24764_v34 = vld [vmem:[#allocation2 + $0x2328] ss:$44 sps:$4 sm:$0xff]  }
 0x4b7   :  { %13684 = vmatprep.subr.bf16.mxu0 %v24721_v40  ;;  %14200 = vmatprep.subr.bf16.mxu1 %v24724_v43  ;;  %v24769_v40 = vld [vmem:[#allocation2 + $0x237c] ss:$44 sps:$4 sm:$0xff]   ;;  %v24772_v43 = vld [vmem:[#allocation2 + $0x2384] ss:$44 sps:$4 sm:$0xff]  }
 0x4ba   :  { %13685 = vmatpush1.bf16.msra.mxu0 %v24719_v44  ;;  %14201 = vmatpush1.bf16.msra.mxu1 %v24722_v45  ;;  %v24767_v44 = vld [vmem:[#allocation2 + $0x2378] ss:$44 sps:$4 sm:$0xff]   ;;  %v24770_v45 = vld [vmem:[#allocation2 + $0x2380] ss:$44 sps:$4 sm:$0xff]  }
 0x4bb   :  { %13697 = vmatprep.subr.bf16.mxu0 %v24727_v46  ;;  %14213 = vmatprep.subr.bf16.mxu1 %v24730_v48  ;;  %v24775_v46 = vld [vmem:[#allocation2 + $0x23d4] ss:$44 sps:$4 sm:$0xff]   ;;  %v24778_v48 = vld [vmem:[#allocation2 + $0x23dc] ss:$44 sps:$4 sm:$0xff]  }
 0x4bd   :  { %13687 = vmatmul.mubr.bf16.vlgmr.msra.gmra.mrb[4].mxu0 %v27061_v12  ;;  %14203 = vmatmul.mubr.bf16.vlgmr.msra.gmra.mrb[4].mxu1 %v27061_v12 }
 0x4be   :  { %13698 = vmatpush1.bf16.msra.mxu0 %v24725_v49  ;;  %14214 = vmatpush1.bf16.msra.mxu1 %v24728_v51  ;;  %v24773_v49 = vld [vmem:[#allocation2 + $0x23d0] ss:$44 sps:$4 sm:$0xff]   ;;  %v24776_v51 = vld [vmem:[#allocation2 + $0x23d8] ss:$44 sps:$4 sm:$0xff]  }
 0x4bf   :  { %13699 = vmatprep.subr.bf16.mxu0 %v24733_v53  ;;  %14215 = vmatprep.subr.bf16.mxu1 %v24736_v54  ;;  %v24781_v53 = vld [vmem:[#allocation2 + $0x242c] ss:$44 sps:$4 sm:$0xff]   ;;  %v24784_v54 = vld [vmem:[#allocation2 + $0x2434] ss:$44 sps:$4 sm:$0xff]  }
 0x4c0   :  { %13729 = vmatprep.mubr.bf16.mxu0 %v27063_v18  ;;  %14245 = vmatprep.mubr.bf16.mxu1 %v27063_v18 }
 0x4c2   :  { %13700 = vmatpush1.bf16.msra.mxu0 %v24731_v55  ;;  %14216 = vmatpush1.bf16.msra.mxu1 %v24734_v56  ;;  %v24779_v55 = vld [vmem:[#allocation2 + $0x2428] ss:$44 sps:$4 sm:$0xff]   ;;  %v24782_v56 = vld [vmem:[#allocation2 + $0x2430] ss:$44 sps:$4 sm:$0xff]  }
 0x4c3   :  { %13701 = vmatprep.subr.bf16.mxu0 %v24739_v57  ;;  %14217 = vmatprep.subr.bf16.mxu1 %v24742_v59  ;;  %v24787_v57 = vld [vmem:[#allocation2 + $0x2484] ss:$44 sps:$4 sm:$0xff]   ;;  %v24790_v59 = vld [vmem:[#allocation2 + $0x248c] ss:$44 sps:$4 sm:$0xff]  }
 0x4c6   :  { %13702 = vmatpush1.bf16.msra.mxu0 %v24737_v0  ;;  %14218 = vmatpush1.bf16.msra.mxu1 %v24740_v1  ;;  %v24785_v0 = vld [vmem:[#allocation2 + $0x2480] ss:$44 sps:$4 sm:$0xff]   ;;  %v24788_v1 = vld [vmem:[#allocation2 + $0x2488] ss:$44 sps:$4 sm:$0xff]  }
 0x4c7   :  { %13703 = vmatprep.subr.bf16.mxu0 %v24745_v2  ;;  %14219 = vmatprep.subr.bf16.mxu1 %v24748_v5  ;;  %v24793_v2 = vld [vmem:[#allocation2 + $0x24dc] ss:$44 sps:$4 sm:$0xff]   ;;  %v24796_v5 = vld [vmem:[#allocation2 + $0x24e4] ss:$44 sps:$4 sm:$0xff]  }
 0x4ca   :  { %13704 = vmatpush1.bf16.msra.mxu0 %v24743_v6  ;;  %14220 = vmatpush1.bf16.msra.mxu1 %v24746_v7  ;;  %v24791_v6 = vld [vmem:[#allocation2 + $0x24d8] ss:$44 sps:$4 sm:$0xff]   ;;  %v24794_v7 = vld [vmem:[#allocation2 + $0x24e0] ss:$44 sps:$4 sm:$0xff]  }
 0x4cb   :  { %13705 = vmatprep.subr.bf16.mxu0 %v24751_v8  ;;  %14221 = vmatprep.subr.bf16.mxu1 %v24754_v10  ;;  %v24799_v8 = vld [vmem:[#allocation2 + $0x2534] ss:$44 sps:$4 sm:$0xff]   ;;  %v24802_v10 = vld [vmem:[#allocation2 + $0x253c] ss:$44 sps:$4 sm:$0xff]  }
 0x4ce   :  { %13706 = vmatpush1.bf16.msra.mxu0 %v24749_v11  ;;  %14222 = vmatpush1.bf16.msra.mxu1 %v24752_v13  ;;  %v24797_v11 = vld [vmem:[#allocation2 + $0x2530] ss:$44 sps:$4 sm:$0xff]   ;;  %v24800_v13 = vld [vmem:[#allocation2 + $0x2538] ss:$44 sps:$4 sm:$0xff]  }
 0x4cf   :  { %13707 = vmatprep.subr.bf16.mxu0 %v24757_v14  ;;  %14223 = vmatprep.subr.bf16.mxu1 %v24760_v15  ;;  %v24805_v14 = vld [vmem:[#allocation2 + $0x258c] ss:$44 sps:$4 sm:$0xff]   ;;  %v24808_v15 = vld [vmem:[#allocation2 + $0x2594] ss:$44 sps:$4 sm:$0xff]  }
 0x4d2   :  { %13708 = vmatpush1.bf16.msra.mxu0 %v24755_v16  ;;  %14224 = vmatpush1.bf16.msra.mxu1 %v24758_v19  ;;  %v24803_v16 = vld [vmem:[#allocation2 + $0x2588] ss:$44 sps:$4 sm:$0xff]   ;;  %v24806_v19 = vld [vmem:[#allocation2 + $0x2590] ss:$44 sps:$4 sm:$0xff]  }
 0x4d3   :  { %13709 = vmatprep.subr.bf16.mxu0 %v24763_v20  ;;  %14225 = vmatprep.subr.bf16.mxu1 %v24766_v21  ;;  %v24811_v20 = vld [vmem:[#allocation2 + $0x25e4] ss:$44 sps:$4 sm:$0xff]   ;;  %v24814_v21 = vld [vmem:[#allocation2 + $0x25ec] ss:$44 sps:$4 sm:$0xff]  }
 0x4d6   :  { %13710 = vmatpush1.bf16.msra.mxu0 %v24761_v31  ;;  %14226 = vmatpush1.bf16.msra.mxu1 %v24764_v34  ;;  %v24809_v31 = vld [vmem:[#allocation2 + $0x25e0] ss:$44 sps:$4 sm:$0xff]   ;;  %v24812_v34 = vld [vmem:[#allocation2 + $0x25e8] ss:$44 sps:$4 sm:$0xff]  }
 0x4d7   :  { %13711 = vmatprep.subr.bf16.mxu0 %v24769_v40  ;;  %14227 = vmatprep.subr.bf16.mxu1 %v24772_v43  ;;  %v24817_v40 = vld [vmem:[#allocation2 + $0x263c] ss:$44 sps:$4 sm:$0xff]   ;;  %v24820_v43 = vld [vmem:[#allocation2 + $0x2644] ss:$44 sps:$4 sm:$0xff]  }
 0x4da   :  { %13712 = vmatpush1.bf16.msra.mxu0 %v24767_v44  ;;  %14228 = vmatpush1.bf16.msra.mxu1 %v24770_v45  ;;  %v24815_v44 = vld [vmem:[#allocation2 + $0x2638] ss:$44 sps:$4 sm:$0xff]   ;;  %v24818_v45 = vld [vmem:[#allocation2 + $0x2640] ss:$44 sps:$4 sm:$0xff]  }
 0x4db   :  { %13713 = vmatprep.subr.bf16.mxu0 %v24775_v46  ;;  %14229 = vmatprep.subr.bf16.mxu1 %v24778_v48  ;;  %v24823_v46 = vld [vmem:[#allocation2 + $0x2694] ss:$44 sps:$4 sm:$0xff]   ;;  %v24826_v48 = vld [vmem:[#allocation2 + $0x269c] ss:$44 sps:$4 sm:$0xff]  }
 0x4de   :  { %13714 = vmatpush1.bf16.msra.mxu0 %v24773_v49  ;;  %14230 = vmatpush1.bf16.msra.mxu1 %v24776_v51  ;;  %v24821_v49 = vld [vmem:[#allocation2 + $0x2690] ss:$44 sps:$4 sm:$0xff]   ;;  %v24824_v51 = vld [vmem:[#allocation2 + $0x2698] ss:$44 sps:$4 sm:$0xff]  }
 0x4df   :  { %13715 = vmatprep.subr.bf16.mxu0 %v24781_v53  ;;  %14231 = vmatprep.subr.bf16.mxu1 %v24784_v54  ;;  %v24829_v53 = vld [vmem:[#allocation2 + $0x26ec] ss:$44 sps:$4 sm:$0xff]   ;;  %v24832_v54 = vld [vmem:[#allocation2 + $0x26f4] ss:$44 sps:$4 sm:$0xff]  }
 0x4e2   :  { %13716 = vmatpush1.bf16.msra.mxu0 %v24779_v55  ;;  %14232 = vmatpush1.bf16.msra.mxu1 %v24782_v56  ;;  %v24827_v55 = vld [vmem:[#allocation2 + $0x26e8] ss:$44 sps:$4 sm:$0xff]   ;;  %v24830_v56 = vld [vmem:[#allocation2 + $0x26f0] ss:$44 sps:$4 sm:$0xff]  }
 0x4e3   :  { %13717 = vmatprep.subr.bf16.mxu0 %v24787_v57  ;;  %14233 = vmatprep.subr.bf16.mxu1 %v24790_v59  ;;  %v24835_v57 = vld [vmem:[#allocation2 + $0x2744] ss:$44 sps:$4 sm:$0xff]   ;;  %v24838_v59 = vld [vmem:[#allocation2 + $0x274c] ss:$44 sps:$4 sm:$0xff]  }
 0x4e6   :  { %13718 = vmatpush1.bf16.msra.mxu0 %v24785_v0  ;;  %14234 = vmatpush1.bf16.msra.mxu1 %v24788_v1  ;;  %v24833_v0 = vld [vmem:[#allocation2 + $0x2740] ss:$44 sps:$4 sm:$0xff]   ;;  %v24836_v1 = vld [vmem:[#allocation2 + $0x2748] ss:$44 sps:$4 sm:$0xff]  }
 0x4e7   :  { %13719 = vmatprep.subr.bf16.mxu0 %v24793_v2  ;;  %14235 = vmatprep.subr.bf16.mxu1 %v24796_v5  ;;  %v24841_v2 = vld [vmem:[#allocation2 + $0x279c] ss:$44 sps:$4 sm:$0xff]   ;;  %v24844_v5 = vld [vmem:[#allocation2 + $0x27a4] ss:$44 sps:$4 sm:$0xff]  }
 0x4ea   :  { %13720 = vmatpush1.bf16.msra.mxu0 %v24791_v6  ;;  %14236 = vmatpush1.bf16.msra.mxu1 %v24794_v7  ;;  %v24839_v6 = vld [vmem:[#allocation2 + $0x2798] ss:$44 sps:$4 sm:$0xff]   ;;  %v24842_v7 = vld [vmem:[#allocation2 + $0x27a0] ss:$44 sps:$4 sm:$0xff]  }
 0x4eb   :  { %13721 = vmatprep.subr.bf16.mxu0 %v24799_v8  ;;  %14237 = vmatprep.subr.bf16.mxu1 %v24802_v10  ;;  %v24847_v8 = vld [vmem:[#allocation2 + $0x27f4] ss:$44 sps:$4 sm:$0xff]   ;;  %v24850_v10 = vld [vmem:[#allocation2 + $0x27fc] ss:$44 sps:$4 sm:$0xff]  }
 0x4ee   :  { %13722 = vmatpush1.bf16.msra.mxu0 %v24797_v11  ;;  %14238 = vmatpush1.bf16.msra.mxu1 %v24800_v13  ;;  %v24845_v11 = vld [vmem:[#allocation2 + $0x27f0] ss:$44 sps:$4 sm:$0xff]   ;;  %v24848_v13 = vld [vmem:[#allocation2 + $0x27f8] ss:$44 sps:$4 sm:$0xff]  }
 0x4ef   :  { %13723 = vmatprep.subr.bf16.mxu0 %v24805_v14  ;;  %14239 = vmatprep.subr.bf16.mxu1 %v24808_v15  ;;  %v24853_v14 = vld [vmem:[#allocation2 + $0x284c] ss:$44 sps:$4 sm:$0xff]   ;;  %v24856_v15 = vld [vmem:[#allocation2 + $0x2854] ss:$44 sps:$4 sm:$0xff]  }
 0x4f2   :  { %13724 = vmatpush1.bf16.msra.mxu0 %v24803_v16  ;;  %14240 = vmatpush1.bf16.msra.mxu1 %v24806_v19  ;;  %v24851_v16 = vld [vmem:[#allocation2 + $0x2848] ss:$44 sps:$4 sm:$0xff]   ;;  %v24854_v19 = vld [vmem:[#allocation2 + $0x2850] ss:$44 sps:$4 sm:$0xff]  }
 0x4f3   :  { %13725 = vmatprep.subr.bf16.mxu0 %v24811_v20  ;;  %14241 = vmatprep.subr.bf16.mxu1 %v24814_v21  ;;  %v24859_v20 = vld [vmem:[#allocation2 + $0x28a4] ss:$44 sps:$4 sm:$0xff]   ;;  %v24862_v21 = vld [vmem:[#allocation2 + $0x28ac] ss:$44 sps:$4 sm:$0xff]  }
 0x4f6   :  { %13726 = vmatpush1.bf16.msra.mxu0 %v24809_v31  ;;  %14242 = vmatpush1.bf16.msra.mxu1 %v24812_v34  ;;  %v24857_v31 = vld [vmem:[#allocation2 + $0x28a0] ss:$44 sps:$4 sm:$0xff]   ;;  %v24860_v34 = vld [vmem:[#allocation2 + $0x28a8] ss:$44 sps:$4 sm:$0xff]  }
 0x4f7   :  { %13727 = vmatprep.subr.bf16.mxu0 %v24817_v40  ;;  %14243 = vmatprep.subr.bf16.mxu1 %v24820_v43  ;;  %v24865_v40 = vld [vmem:[#allocation2 + $0x28fc] ss:$44 sps:$4 sm:$0xff]   ;;  %v24868_v43 = vld [vmem:[#allocation2 + $0x2904] ss:$44 sps:$4 sm:$0xff]  }
 0x4fa   :  { %13728 = vmatpush1.bf16.msra.mxu0 %v24815_v44  ;;  %14244 = vmatpush1.bf16.msra.mxu1 %v24818_v45  ;;  %v24863_v44 = vld [vmem:[#allocation2 + $0x28f8] ss:$44 sps:$4 sm:$0xff]   ;;  %v24866_v45 = vld [vmem:[#allocation2 + $0x2900] ss:$44 sps:$4 sm:$0xff]  }
 0x4fb   :  { %13740 = vmatprep.subr.bf16.mxu0 %v24823_v46  ;;  %14256 = vmatprep.subr.bf16.mxu1 %v24826_v48  ;;  %v24871_v46 = vld [vmem:[#allocation2 + $0x2954] ss:$44 sps:$4 sm:$0xff]   ;;  %v24874_v48 = vld [vmem:[#allocation2 + $0x295c] ss:$44 sps:$4 sm:$0xff]  }
 0x4fd   :  { %13730 = vmatmul.mubr.bf16.vlgmr.msra.gmra.mrb[4].mxu0 %v27081_v35  ;;  %14246 = vmatmul.mubr.bf16.vlgmr.msra.gmra.mrb[4].mxu1 %v27081_v35 }
 0x4fe   :  { %13741 = vmatpush1.bf16.msra.mxu0 %v24821_v49  ;;  %14257 = vmatpush1.bf16.msra.mxu1 %v24824_v51  ;;  %v24869_v49 = vld [vmem:[#allocation2 + $0x2950] ss:$44 sps:$4 sm:$0xff]   ;;  %v24872_v51 = vld [vmem:[#allocation2 + $0x2958] ss:$44 sps:$4 sm:$0xff]  }
 0x4ff   :  { %13742 = vmatprep.subr.bf16.mxu0 %v24829_v53  ;;  %14258 = vmatprep.subr.bf16.mxu1 %v24832_v54  ;;  %v24877_v53 = vld [vmem:[#allocation2 + $0x29ac] ss:$44 sps:$4 sm:$0xff]   ;;  %v24880_v54 = vld [vmem:[#allocation2 + $0x29b4] ss:$44 sps:$4 sm:$0xff]  }
 0x500   :  { %13772 = vmatprep.mubr.bf16.mxu0 %v27083_v41  ;;  %14288 = vmatprep.mubr.bf16.mxu1 %v27083_v41 }
 0x502   :  { %13743 = vmatpush1.bf16.msra.mxu0 %v24827_v55  ;;  %14259 = vmatpush1.bf16.msra.mxu1 %v24830_v56  ;;  %v24875_v55 = vld [vmem:[#allocation2 + $0x29a8] ss:$44 sps:$4 sm:$0xff]   ;;  %v24878_v56 = vld [vmem:[#allocation2 + $0x29b0] ss:$44 sps:$4 sm:$0xff]  }
 0x503   :  { %13744 = vmatprep.subr.bf16.mxu0 %v24835_v57  ;;  %14260 = vmatprep.subr.bf16.mxu1 %v24838_v59  ;;  %v24883_v57 = vld [vmem:[#allocation2 + $0x2a04] ss:$44 sps:$4 sm:$0xff]   ;;  %v24886_v59 = vld [vmem:[#allocation2 + $0x2a0c] ss:$44 sps:$4 sm:$0xff]  }
 0x506   :  { %13745 = vmatpush1.bf16.msra.mxu0 %v24833_v0  ;;  %14261 = vmatpush1.bf16.msra.mxu1 %v24836_v1  ;;  %v24881_v0 = vld [vmem:[#allocation2 + $0x2a00] ss:$44 sps:$4 sm:$0xff]   ;;  %v24884_v1 = vld [vmem:[#allocation2 + $0x2a08] ss:$44 sps:$4 sm:$0xff]  }
 0x507   :  { %13746 = vmatprep.subr.bf16.mxu0 %v24841_v2  ;;  %14262 = vmatprep.subr.bf16.mxu1 %v24844_v5  ;;  %v24889_v2 = vld [vmem:[#allocation2 + $0x2a5c] ss:$44 sps:$4 sm:$0xff]   ;;  %v24892_v5 = vld [vmem:[#allocation2 + $0x2a64] ss:$44 sps:$4 sm:$0xff]  }
 0x50a   :  { %13747 = vmatpush1.bf16.msra.mxu0 %v24839_v6  ;;  %14263 = vmatpush1.bf16.msra.mxu1 %v24842_v7  ;;  %v24887_v6 = vld [vmem:[#allocation2 + $0x2a58] ss:$44 sps:$4 sm:$0xff]   ;;  %v24890_v7 = vld [vmem:[#allocation2 + $0x2a60] ss:$44 sps:$4 sm:$0xff]  }
 0x50b   :  { %13748 = vmatprep.subr.bf16.mxu0 %v24847_v8  ;;  %14264 = vmatprep.subr.bf16.mxu1 %v24850_v10  ;;  %v24895_v8 = vld [vmem:[#allocation2 + $0x2ab4] ss:$44 sps:$4 sm:$0xff]   ;;  %v24898_v10 = vld [vmem:[#allocation2 + $0x2abc] ss:$44 sps:$4 sm:$0xff]  }
 0x50e   :  { %13749 = vmatpush1.bf16.msra.mxu0 %v24845_v11  ;;  %14265 = vmatpush1.bf16.msra.mxu1 %v24848_v13  ;;  %v24893_v11 = vld [vmem:[#allocation2 + $0x2ab0] ss:$44 sps:$4 sm:$0xff]   ;;  %v24896_v13 = vld [vmem:[#allocation2 + $0x2ab8] ss:$44 sps:$4 sm:$0xff]  }
 0x50f   :  { %13750 = vmatprep.subr.bf16.mxu0 %v24853_v14  ;;  %14266 = vmatprep.subr.bf16.mxu1 %v24856_v15  ;;  %v24901_v14 = vld [vmem:[#allocation2 + $0x2b0c] ss:$44 sps:$4 sm:$0xff]   ;;  %v24904_v15 = vld [vmem:[#allocation2 + $0x2b14] ss:$44 sps:$4 sm:$0xff]  }
 0x512   :  { %13751 = vmatpush1.bf16.msra.mxu0 %v24851_v16  ;;  %14267 = vmatpush1.bf16.msra.mxu1 %v24854_v19  ;;  %v24899_v16 = vld [vmem:[#allocation2 + $0x2b08] ss:$44 sps:$4 sm:$0xff]   ;;  %v24902_v19 = vld [vmem:[#allocation2 + $0x2b10] ss:$44 sps:$4 sm:$0xff]  }
 0x513   :  { %13752 = vmatprep.subr.bf16.mxu0 %v24859_v20  ;;  %14268 = vmatprep.subr.bf16.mxu1 %v24862_v21  ;;  %v24907_v20 = vld [vmem:[#allocation2 + $0x2b64] ss:$44 sps:$4 sm:$0xff]   ;;  %v24910_v21 = vld [vmem:[#allocation2 + $0x2b6c] ss:$44 sps:$4 sm:$0xff]  }
 0x516   :  { %13753 = vmatpush1.bf16.msra.mxu0 %v24857_v31  ;;  %14269 = vmatpush1.bf16.msra.mxu1 %v24860_v34  ;;  %v24905_v31 = vld [vmem:[#allocation2 + $0x2b60] ss:$44 sps:$4 sm:$0xff]   ;;  %v24908_v34 = vld [vmem:[#allocation2 + $0x2b68] ss:$44 sps:$4 sm:$0xff]  }
 0x517   :  { %13754 = vmatprep.subr.bf16.mxu0 %v24865_v40  ;;  %14270 = vmatprep.subr.bf16.mxu1 %v24868_v43  ;;  %v24913_v40 = vld [vmem:[#allocation2 + $0x2bbc] ss:$44 sps:$4 sm:$0xff]   ;;  %v24916_v43 = vld [vmem:[#allocation2 + $0x2bc4] ss:$44 sps:$4 sm:$0xff]  }
 0x51a   :  { %13755 = vmatpush1.bf16.msra.mxu0 %v24863_v44  ;;  %14271 = vmatpush1.bf16.msra.mxu1 %v24866_v45  ;;  %v24911_v44 = vld [vmem:[#allocation2 + $0x2bb8] ss:$44 sps:$4 sm:$0xff]   ;;  %v24914_v45 = vld [vmem:[#allocation2 + $0x2bc0] ss:$44 sps:$4 sm:$0xff]  }
 0x51b   :  { %13756 = vmatprep.subr.bf16.mxu0 %v24871_v46  ;;  %14272 = vmatprep.subr.bf16.mxu1 %v24874_v48  ;;  %v24919_v46 = vld [vmem:[#allocation2 + $0x2c14] ss:$44 sps:$4 sm:$0xff]   ;;  %v24922_v48 = vld [vmem:[#allocation2 + $0x2c1c] ss:$44 sps:$4 sm:$0xff]  }
 0x51e   :  { %13757 = vmatpush1.bf16.msra.mxu0 %v24869_v49  ;;  %14273 = vmatpush1.bf16.msra.mxu1 %v24872_v51  ;;  %v24917_v49 = vld [vmem:[#allocation2 + $0x2c10] ss:$44 sps:$4 sm:$0xff]   ;;  %v24920_v51 = vld [vmem:[#allocation2 + $0x2c18] ss:$44 sps:$4 sm:$0xff]  }
 0x51f   :  { %13758 = vmatprep.subr.bf16.mxu0 %v24877_v53  ;;  %14274 = vmatprep.subr.bf16.mxu1 %v24880_v54  ;;  %v24925_v53 = vld [vmem:[#allocation2 + $0x2c6c] ss:$44 sps:$4 sm:$0xff]   ;;  %v24928_v54 = vld [vmem:[#allocation2 + $0x2c74] ss:$44 sps:$4 sm:$0xff]  }
 0x522   :  { %13759 = vmatpush1.bf16.msra.mxu0 %v24875_v55  ;;  %14275 = vmatpush1.bf16.msra.mxu1 %v24878_v56  ;;  %v24923_v55 = vld [vmem:[#allocation2 + $0x2c68] ss:$44 sps:$4 sm:$0xff]   ;;  %v24926_v56 = vld [vmem:[#allocation2 + $0x2c70] ss:$44 sps:$4 sm:$0xff]  }
 0x523   :  { %13760 = vmatprep.subr.bf16.mxu0 %v24883_v57  ;;  %14276 = vmatprep.subr.bf16.mxu1 %v24886_v59  ;;  %v24931_v57 = vld [vmem:[#allocation2 + $0x2cc4] ss:$44 sps:$4 sm:$0xff]   ;;  %v24934_v59 = vld [vmem:[#allocation2 + $0x2ccc] ss:$44 sps:$4 sm:$0xff]  }
 0x526   :  { %13761 = vmatpush1.bf16.msra.mxu0 %v24881_v0  ;;  %14277 = vmatpush1.bf16.msra.mxu1 %v24884_v1  ;;  %v24929_v0 = vld [vmem:[#allocation2 + $0x2cc0] ss:$44 sps:$4 sm:$0xff]   ;;  %v24932_v1 = vld [vmem:[#allocation2 + $0x2cc8] ss:$44 sps:$4 sm:$0xff]  }
 0x527   :  { %13762 = vmatprep.subr.bf16.mxu0 %v24889_v2  ;;  %14278 = vmatprep.subr.bf16.mxu1 %v24892_v5  ;;  %v24937_v2 = vld [vmem:[#allocation2 + $0x2d1c] ss:$44 sps:$4 sm:$0xff]   ;;  %v24940_v5 = vld [vmem:[#allocation2 + $0x2d24] ss:$44 sps:$4 sm:$0xff]  }
 0x52a   :  { %13763 = vmatpush1.bf16.msra.mxu0 %v24887_v6  ;;  %14279 = vmatpush1.bf16.msra.mxu1 %v24890_v7  ;;  %v24935_v6 = vld [vmem:[#allocation2 + $0x2d18] ss:$44 sps:$4 sm:$0xff]   ;;  %v24938_v7 = vld [vmem:[#allocation2 + $0x2d20] ss:$44 sps:$4 sm:$0xff]  }
 0x52b   :  { %13764 = vmatprep.subr.bf16.mxu0 %v24895_v8  ;;  %14280 = vmatprep.subr.bf16.mxu1 %v24898_v10  ;;  %v24943_v8 = vld [vmem:[#allocation2 + $0x2d74] ss:$44 sps:$4 sm:$0xff]   ;;  %v24946_v10 = vld [vmem:[#allocation2 + $0x2d7c] ss:$44 sps:$4 sm:$0xff]  }
 0x52e   :  { %13765 = vmatpush1.bf16.msra.mxu0 %v24893_v11  ;;  %14281 = vmatpush1.bf16.msra.mxu1 %v24896_v13  ;;  %v24941_v11 = vld [vmem:[#allocation2 + $0x2d70] ss:$44 sps:$4 sm:$0xff]   ;;  %v24944_v13 = vld [vmem:[#allocation2 + $0x2d78] ss:$44 sps:$4 sm:$0xff]  }
 0x52f   :  { %13766 = vmatprep.subr.bf16.mxu0 %v24901_v14  ;;  %14282 = vmatprep.subr.bf16.mxu1 %v24904_v15  ;;  %v24949_v14 = vld [vmem:[#allocation2 + $0x2dcc] ss:$44 sps:$4 sm:$0xff]   ;;  %v24952_v15 = vld [vmem:[#allocation2 + $0x2dd4] ss:$44 sps:$4 sm:$0xff]  }
 0x532   :  { %13767 = vmatpush1.bf16.msra.mxu0 %v24899_v16  ;;  %14283 = vmatpush1.bf16.msra.mxu1 %v24902_v19  ;;  %v24947_v16 = vld [vmem:[#allocation2 + $0x2dc8] ss:$44 sps:$4 sm:$0xff]   ;;  %v24950_v19 = vld [vmem:[#allocation2 + $0x2dd0] ss:$44 sps:$4 sm:$0xff]  }
 0x533   :  { %13768 = vmatprep.subr.bf16.mxu0 %v24907_v20  ;;  %14284 = vmatprep.subr.bf16.mxu1 %v24910_v21  ;;  %v24955_v20 = vld [vmem:[#allocation2 + $0x2e24] ss:$44 sps:$4 sm:$0xff]   ;;  %v24958_v21 = vld [vmem:[#allocation2 + $0x2e2c] ss:$44 sps:$4 sm:$0xff]  }
 0x536   :  { %13769 = vmatpush1.bf16.msra.mxu0 %v24905_v31  ;;  %14285 = vmatpush1.bf16.msra.mxu1 %v24908_v34  ;;  %v24953_v31 = vld [vmem:[#allocation2 + $0x2e20] ss:$44 sps:$4 sm:$0xff]   ;;  %v24956_v34 = vld [vmem:[#allocation2 + $0x2e28] ss:$44 sps:$4 sm:$0xff]  }
 0x537   :  { %13770 = vmatprep.subr.bf16.mxu0 %v24913_v40  ;;  %14286 = vmatprep.subr.bf16.mxu1 %v24916_v43  ;;  %v24961_v40 = vld [vmem:[#allocation2 + $0x2e7c] ss:$44 sps:$4 sm:$0xff]   ;;  %v24964_v43 = vld [vmem:[#allocation2 + $0x2e84] ss:$44 sps:$4 sm:$0xff]  }
 0x53a   :  { %13771 = vmatpush1.bf16.msra.mxu0 %v24911_v44  ;;  %14287 = vmatpush1.bf16.msra.mxu1 %v24914_v45  ;;  %v24959_v44 = vld [vmem:[#allocation2 + $0x2e78] ss:$44 sps:$4 sm:$0xff]   ;;  %v24962_v45 = vld [vmem:[#allocation2 + $0x2e80] ss:$44 sps:$4 sm:$0xff]  }
 0x53b   :  { %13783 = vmatprep.subr.bf16.mxu0 %v24919_v46  ;;  %14299 = vmatprep.subr.bf16.mxu1 %v24922_v48  ;;  %v24967_v46 = vld [vmem:[#allocation2 + $0x2ed4] ss:$44 sps:$4 sm:$0xff]   ;;  %v24970_v48 = vld [vmem:[#allocation2 + $0x2edc] ss:$44 sps:$4 sm:$0xff]  }
 0x53d   :  { %13773 = vmatmul.mubr.bf16.vlgmr.msra.gmra.mrb[4].mxu0 %v27101_v61  ;;  %14289 = vmatmul.mubr.bf16.vlgmr.msra.gmra.mrb[4].mxu1 %v27101_v61 }
 0x53e   :  { %13784 = vmatpush1.bf16.msra.mxu0 %v24917_v49  ;;  %14300 = vmatpush1.bf16.msra.mxu1 %v24920_v51  ;;  %v24965_v49 = vld [vmem:[#allocation2 + $0x2ed0] ss:$44 sps:$4 sm:$0xff]   ;;  %v24968_v51 = vld [vmem:[#allocation2 + $0x2ed8] ss:$44 sps:$4 sm:$0xff]  }
 0x53f   :  { %13785 = vmatprep.subr.bf16.mxu0 %v24925_v53  ;;  %14301 = vmatprep.subr.bf16.mxu1 %v24928_v54  ;;  %v24973_v53 = vld [vmem:[#allocation2 + $0x2f2c] ss:$44 sps:$4 sm:$0xff]   ;;  %v24976_v54 = vld [vmem:[#allocation2 + $0x2f34] ss:$44 sps:$4 sm:$0xff]  }
 0x540   :  { %13815 = vmatprep.mubr.bf16.mxu0 %v27103_v3  ;;  %14331 = vmatprep.mubr.bf16.mxu1 %v27103_v3 }
 0x542   :  { %13786 = vmatpush1.bf16.msra.mxu0 %v24923_v55  ;;  %14302 = vmatpush1.bf16.msra.mxu1 %v24926_v56  ;;  %v24971_v55 = vld [vmem:[#allocation2 + $0x2f28] ss:$44 sps:$4 sm:$0xff]   ;;  %v24974_v56 = vld [vmem:[#allocation2 + $0x2f30] ss:$44 sps:$4 sm:$0xff]  }
 0x543   :  { %13787 = vmatprep.subr.bf16.mxu0 %v24931_v57  ;;  %14303 = vmatprep.subr.bf16.mxu1 %v24934_v59  ;;  %v24979_v57 = vld [vmem:[#allocation2 + $0x2f84] ss:$44 sps:$4 sm:$0xff]   ;;  %v24982_v59 = vld [vmem:[#allocation2 + $0x2f8c] ss:$44 sps:$4 sm:$0xff]  }
 0x546   :  { %13788 = vmatpush1.bf16.msra.mxu0 %v24929_v0  ;;  %14304 = vmatpush1.bf16.msra.mxu1 %v24932_v1  ;;  %v24977_v0 = vld [vmem:[#allocation2 + $0x2f80] ss:$44 sps:$4 sm:$0xff]   ;;  %v24980_v1 = vld [vmem:[#allocation2 + $0x2f88] ss:$44 sps:$4 sm:$0xff]  }
 0x547   :  { %13789 = vmatprep.subr.bf16.mxu0 %v24937_v2  ;;  %14305 = vmatprep.subr.bf16.mxu1 %v24940_v5  ;;  %v24985_v2 = vld [vmem:[#allocation2 + $0x2fdc] ss:$44 sps:$4 sm:$0xff]   ;;  %v24988_v5 = vld [vmem:[#allocation2 + $0x2fe4] ss:$44 sps:$4 sm:$0xff]  }
 0x54a   :  { %13790 = vmatpush1.bf16.msra.mxu0 %v24935_v6  ;;  %14306 = vmatpush1.bf16.msra.mxu1 %v24938_v7  ;;  %v24983_v6 = vld [vmem:[#allocation2 + $0x2fd8] ss:$44 sps:$4 sm:$0xff]   ;;  %v24986_v7 = vld [vmem:[#allocation2 + $0x2fe0] ss:$44 sps:$4 sm:$0xff]  }
 0x54b   :  { %13791 = vmatprep.subr.bf16.mxu0 %v24943_v8  ;;  %14307 = vmatprep.subr.bf16.mxu1 %v24946_v10  ;;  %v24991_v8 = vld [vmem:[#allocation2 + $0x3034] ss:$44 sps:$4 sm:$0xff]   ;;  %v24994_v10 = vld [vmem:[#allocation2 + $0x303c] ss:$44 sps:$4 sm:$0xff]  }
 0x54e   :  { %13792 = vmatpush1.bf16.msra.mxu0 %v24941_v11  ;;  %14308 = vmatpush1.bf16.msra.mxu1 %v24944_v13  ;;  %v24989_v11 = vld [vmem:[#allocation2 + $0x3030] ss:$44 sps:$4 sm:$0xff]   ;;  %v24992_v13 = vld [vmem:[#allocation2 + $0x3038] ss:$44 sps:$4 sm:$0xff]  }
 0x54f   :  { %13793 = vmatprep.subr.bf16.mxu0 %v24949_v14  ;;  %14309 = vmatprep.subr.bf16.mxu1 %v24952_v15  ;;  %v24997_v14 = vld [vmem:[#allocation2 + $0x308c] ss:$44 sps:$4 sm:$0xff]   ;;  %v25000_v15 = vld [vmem:[#allocation2 + $0x3094] ss:$44 sps:$4 sm:$0xff]  }
 0x552   :  { %13794 = vmatpush1.bf16.msra.mxu0 %v24947_v16  ;;  %14310 = vmatpush1.bf16.msra.mxu1 %v24950_v19  ;;  %v24995_v16 = vld [vmem:[#allocation2 + $0x3088] ss:$44 sps:$4 sm:$0xff]   ;;  %v24998_v19 = vld [vmem:[#allocation2 + $0x3090] ss:$44 sps:$4 sm:$0xff]  }
 0x553   :  { %13795 = vmatprep.subr.bf16.mxu0 %v24955_v20  ;;  %14311 = vmatprep.subr.bf16.mxu1 %v24958_v21  ;;  %v25003_v20 = vld [vmem:[#allocation2 + $0x30e4] ss:$44 sps:$4 sm:$0xff]   ;;  %v25006_v21 = vld [vmem:[#allocation2 + $0x30ec] ss:$44 sps:$4 sm:$0xff]  }
 0x556   :  { %13796 = vmatpush1.bf16.msra.mxu0 %v24953_v31  ;;  %14312 = vmatpush1.bf16.msra.mxu1 %v24956_v34  ;;  %v25001_v31 = vld [vmem:[#allocation2 + $0x30e0] ss:$44 sps:$4 sm:$0xff]   ;;  %v25004_v34 = vld [vmem:[#allocation2 + $0x30e8] ss:$44 sps:$4 sm:$0xff]  }
 0x557   :  { %13797 = vmatprep.subr.bf16.mxu0 %v24961_v40  ;;  %14313 = vmatprep.subr.bf16.mxu1 %v24964_v43  ;;  %v25009_v40 = vld [vmem:[#allocation2 + $0x313c] ss:$44 sps:$4 sm:$0xff]   ;;  %v25012_v43 = vld [vmem:[#allocation2 + $0x3144] ss:$44 sps:$4 sm:$0xff]  }
 0x55a   :  { %13798 = vmatpush1.bf16.msra.mxu0 %v24959_v44  ;;  %14314 = vmatpush1.bf16.msra.mxu1 %v24962_v45  ;;  %v25007_v44 = vld [vmem:[#allocation2 + $0x3138] ss:$44 sps:$4 sm:$0xff]   ;;  %v25010_v45 = vld [vmem:[#allocation2 + $0x3140] ss:$44 sps:$4 sm:$0xff]  }
 0x55b   :  { %13799 = vmatprep.subr.bf16.mxu0 %v24967_v46  ;;  %14315 = vmatprep.subr.bf16.mxu1 %v24970_v48  ;;  %v25015_v46 = vld [vmem:[#allocation2 + $0x3194] ss:$44 sps:$4 sm:$0xff]   ;;  %v25018_v48 = vld [vmem:[#allocation2 + $0x319c] ss:$44 sps:$4 sm:$0xff]  }
 0x55e   :  { %13800 = vmatpush1.bf16.msra.mxu0 %v24965_v49  ;;  %14316 = vmatpush1.bf16.msra.mxu1 %v24968_v51  ;;  %v25013_v49 = vld [vmem:[#allocation2 + $0x3190] ss:$44 sps:$4 sm:$0xff]   ;;  %v25016_v51 = vld [vmem:[#allocation2 + $0x3198] ss:$44 sps:$4 sm:$0xff]  }
 0x55f   :  { %13801 = vmatprep.subr.bf16.mxu0 %v24973_v53  ;;  %14317 = vmatprep.subr.bf16.mxu1 %v24976_v54  ;;  %v25021_v53 = vld [vmem:[#allocation2 + $0x31ec] ss:$44 sps:$4 sm:$0xff]   ;;  %v25024_v54 = vld [vmem:[#allocation2 + $0x31f4] ss:$44 sps:$4 sm:$0xff]  }
 0x562   :  { %13802 = vmatpush1.bf16.msra.mxu0 %v24971_v55  ;;  %14318 = vmatpush1.bf16.msra.mxu1 %v24974_v56  ;;  %v25019_v55 = vld [vmem:[#allocation2 + $0x31e8] ss:$44 sps:$4 sm:$0xff]   ;;  %v25022_v56 = vld [vmem:[#allocation2 + $0x31f0] ss:$44 sps:$4 sm:$0xff]  }
 0x563   :  { %13803 = vmatprep.subr.bf16.mxu0 %v24979_v57  ;;  %14319 = vmatprep.subr.bf16.mxu1 %v24982_v59  ;;  %v25027_v57 = vld [vmem:[#allocation2 + $0x3244] ss:$44 sps:$4 sm:$0xff]   ;;  %v25030_v59 = vld [vmem:[#allocation2 + $0x324c] ss:$44 sps:$4 sm:$0xff]  }
 0x566   :  { %13804 = vmatpush1.bf16.msra.mxu0 %v24977_v0  ;;  %14320 = vmatpush1.bf16.msra.mxu1 %v24980_v1  ;;  %v25025_v0 = vld [vmem:[#allocation2 + $0x3240] ss:$44 sps:$4 sm:$0xff]   ;;  %v25028_v1 = vld [vmem:[#allocation2 + $0x3248] ss:$44 sps:$4 sm:$0xff]  }
 0x567   :  { %13805 = vmatprep.subr.bf16.mxu0 %v24985_v2  ;;  %14321 = vmatprep.subr.bf16.mxu1 %v24988_v5  ;;  %v25033_v2 = vld [vmem:[#allocation2 + $0x329c] ss:$44 sps:$4 sm:$0xff]   ;;  %v25036_v5 = vld [vmem:[#allocation2 + $0x32a4] ss:$44 sps:$4 sm:$0xff]  }
 0x56a   :  { %13806 = vmatpush1.bf16.msra.mxu0 %v24983_v6  ;;  %14322 = vmatpush1.bf16.msra.mxu1 %v24986_v7  ;;  %v25031_v6 = vld [vmem:[#allocation2 + $0x3298] ss:$44 sps:$4 sm:$0xff]   ;;  %v25034_v7 = vld [vmem:[#allocation2 + $0x32a0] ss:$44 sps:$4 sm:$0xff]  }
 0x56b   :  { %13807 = vmatprep.subr.bf16.mxu0 %v24991_v8  ;;  %14323 = vmatprep.subr.bf16.mxu1 %v24994_v10  ;;  %v25039_v8 = vld [vmem:[#allocation2 + $0x32f4] ss:$44 sps:$4 sm:$0xff]   ;;  %v25042_v10 = vld [vmem:[#allocation2 + $0x32fc] ss:$44 sps:$4 sm:$0xff]  }
 0x56e   :  { %13808 = vmatpush1.bf16.msra.mxu0 %v24989_v11  ;;  %14324 = vmatpush1.bf16.msra.mxu1 %v24992_v13  ;;  %v25037_v11 = vld [vmem:[#allocation2 + $0x32f0] ss:$44 sps:$4 sm:$0xff]   ;;  %v25040_v13 = vld [vmem:[#allocation2 + $0x32f8] ss:$44 sps:$4 sm:$0xff]  }
 0x56f   :  { %13809 = vmatprep.subr.bf16.mxu0 %v24997_v14  ;;  %14325 = vmatprep.subr.bf16.mxu1 %v25000_v15  ;;  %v25045_v14 = vld [vmem:[#allocation2 + $0x334c] ss:$44 sps:$4 sm:$0xff]   ;;  %v25048_v15 = vld [vmem:[#allocation2 + $0x3354] ss:$44 sps:$4 sm:$0xff]  }
 0x572   :  { %13810 = vmatpush1.bf16.msra.mxu0 %v24995_v16  ;;  %14326 = vmatpush1.bf16.msra.mxu1 %v24998_v19  ;;  %v25043_v16 = vld [vmem:[#allocation2 + $0x3348] ss:$44 sps:$4 sm:$0xff]   ;;  %v25046_v19 = vld [vmem:[#allocation2 + $0x3350] ss:$44 sps:$4 sm:$0xff]  }
 0x573   :  { %13811 = vmatprep.subr.bf16.mxu0 %v25003_v20  ;;  %14327 = vmatprep.subr.bf16.mxu1 %v25006_v21  ;;  %v25051_v20 = vld [vmem:[#allocation2 + $0x33a4] ss:$44 sps:$4 sm:$0xff]   ;;  %v25054_v21 = vld [vmem:[#allocation2 + $0x33ac] ss:$44 sps:$4 sm:$0xff]  }
 0x576   :  { %13812 = vmatpush1.bf16.msra.mxu0 %v25001_v31  ;;  %14328 = vmatpush1.bf16.msra.mxu1 %v25004_v34  ;;  %v25049_v31 = vld [vmem:[#allocation2 + $0x33a0] ss:$44 sps:$4 sm:$0xff]   ;;  %v25052_v34 = vld [vmem:[#allocation2 + $0x33a8] ss:$44 sps:$4 sm:$0xff]  }
 0x577   :  { %13813 = vmatprep.subr.bf16.mxu0 %v25009_v40  ;;  %14329 = vmatprep.subr.bf16.mxu1 %v25012_v43  ;;  %v25057_v40 = vld [vmem:[#allocation2 + $0x33fc] ss:$44 sps:$4 sm:$0xff]   ;;  %v25060_v43 = vld [vmem:[#allocation2 + $0x3404] ss:$44 sps:$4 sm:$0xff]  }
 0x57a   :  { %13814 = vmatpush1.bf16.msra.mxu0 %v25007_v44  ;;  %14330 = vmatpush1.bf16.msra.mxu1 %v25010_v45  ;;  %v25055_v44 = vld [vmem:[#allocation2 + $0x33f8] ss:$44 sps:$4 sm:$0xff]   ;;  %v25058_v45 = vld [vmem:[#allocation2 + $0x3400] ss:$44 sps:$4 sm:$0xff]  }
 0x57b   :  { %13826 = vmatprep.subr.bf16.mxu0 %v25015_v46  ;;  %14342 = vmatprep.subr.bf16.mxu1 %v25018_v48  ;;  %v25063_v46 = vld [vmem:[#allocation2 + $0x3454] ss:$44 sps:$4 sm:$0xff]   ;;  %v25066_v48 = vld [vmem:[#allocation2 + $0x345c] ss:$44 sps:$4 sm:$0xff]  }
 0x57d   :  { %13816 = vmatmul.mubr.bf16.vlgmr.msra.gmra.mrb[4].mxu0 %v27115_v23  ;;  %14332 = vmatmul.mubr.bf16.vlgmr.msra.gmra.mrb[4].mxu1 %v27115_v23 }
 0x57e   :  { %13827 = vmatpush1.bf16.msra.mxu0 %v25013_v49  ;;  %14343 = vmatpush1.bf16.msra.mxu1 %v25016_v51  ;;  %v25061_v49 = vld [vmem:[#allocation2 + $0x3450] ss:$44 sps:$4 sm:$0xff]   ;;  %v25064_v51 = vld [vmem:[#allocation2 + $0x3458] ss:$44 sps:$4 sm:$0xff]  }
 0x57f   :  { %13828 = vmatprep.subr.bf16.mxu0 %v25021_v53  ;;  %14344 = vmatprep.subr.bf16.mxu1 %v25024_v54  ;;  %v25069_v53 = vld [vmem:[#allocation2 + $0x34ac] ss:$44 sps:$4 sm:$0xff]   ;;  %v25072_v54 = vld [vmem:[#allocation2 + $0x34b4] ss:$44 sps:$4 sm:$0xff]  }
 0x580   :  { %13858 = vmatprep.mubr.bf16.mxu0 %v27123_v32  ;;  %14374 = vmatprep.mubr.bf16.mxu1 %v27123_v32 }
 0x582   :  { %13829 = vmatpush1.bf16.msra.mxu0 %v25019_v55  ;;  %14345 = vmatpush1.bf16.msra.mxu1 %v25022_v56  ;;  %v25067_v55 = vld [vmem:[#allocation2 + $0x34a8] ss:$44 sps:$4 sm:$0xff]   ;;  %v25070_v56 = vld [vmem:[#allocation2 + $0x34b0] ss:$44 sps:$4 sm:$0xff]  }
 0x583   :  { %13830 = vmatprep.subr.bf16.mxu0 %v25027_v57  ;;  %14346 = vmatprep.subr.bf16.mxu1 %v25030_v59  ;;  %v25075_v57 = vld [vmem:[#allocation2 + $0x3504] ss:$44 sps:$4 sm:$0xff]   ;;  %v25078_v59 = vld [vmem:[#allocation2 + $0x350c] ss:$44 sps:$4 sm:$0xff]  }
 0x586   :  { %13831 = vmatpush1.bf16.msra.mxu0 %v25025_v0  ;;  %14347 = vmatpush1.bf16.msra.mxu1 %v25028_v1  ;;  %v25073_v0 = vld [vmem:[#allocation2 + $0x3500] ss:$44 sps:$4 sm:$0xff]   ;;  %v25076_v1 = vld [vmem:[#allocation2 + $0x3508] ss:$44 sps:$4 sm:$0xff]  }
 0x587   :  { %13832 = vmatprep.subr.bf16.mxu0 %v25033_v2  ;;  %14348 = vmatprep.subr.bf16.mxu1 %v25036_v5  ;;  %v25081_v2 = vld [vmem:[#allocation2 + $0x355c] ss:$44 sps:$4 sm:$0xff]   ;;  %v25084_v5 = vld [vmem:[#allocation2 + $0x3564] ss:$44 sps:$4 sm:$0xff]  }
 0x58a   :  { %13833 = vmatpush1.bf16.msra.mxu0 %v25031_v6  ;;  %14349 = vmatpush1.bf16.msra.mxu1 %v25034_v7  ;;  %v25079_v6 = vld [vmem:[#allocation2 + $0x3558] ss:$44 sps:$4 sm:$0xff]   ;;  %v25082_v7 = vld [vmem:[#allocation2 + $0x3560] ss:$44 sps:$4 sm:$0xff]  }
 0x58b   :  { %13834 = vmatprep.subr.bf16.mxu0 %v25039_v8  ;;  %14350 = vmatprep.subr.bf16.mxu1 %v25042_v10  ;;  %v25087_v8 = vld [vmem:[#allocation2 + $0x35b4] ss:$44 sps:$4 sm:$0xff]   ;;  %v25090_v10 = vld [vmem:[#allocation2 + $0x35bc] ss:$44 sps:$4 sm:$0xff]  }
 0x58e   :  { %13835 = vmatpush1.bf16.msra.mxu0 %v25037_v11  ;;  %14351 = vmatpush1.bf16.msra.mxu1 %v25040_v13  ;;  %v25085_v11 = vld [vmem:[#allocation2 + $0x35b0] ss:$44 sps:$4 sm:$0xff]   ;;  %v25088_v13 = vld [vmem:[#allocation2 + $0x35b8] ss:$44 sps:$4 sm:$0xff]  }
 0x58f   :  { %13836 = vmatprep.subr.bf16.mxu0 %v25045_v14  ;;  %14352 = vmatprep.subr.bf16.mxu1 %v25048_v15  ;;  %v25093_v14 = vld [vmem:[#allocation2 + $0x360c] ss:$44 sps:$4 sm:$0xff]   ;;  %v25096_v15 = vld [vmem:[#allocation2 + $0x3614] ss:$44 sps:$4 sm:$0xff]  }
 0x592   :  { %13837 = vmatpush1.bf16.msra.mxu0 %v25043_v16  ;;  %14353 = vmatpush1.bf16.msra.mxu1 %v25046_v19  ;;  %v25091_v16 = vld [vmem:[#allocation2 + $0x3608] ss:$44 sps:$4 sm:$0xff]   ;;  %v25094_v19 = vld [vmem:[#allocation2 + $0x3610] ss:$44 sps:$4 sm:$0xff]  }
 0x593   :  { %13838 = vmatprep.subr.bf16.mxu0 %v25051_v20  ;;  %14354 = vmatprep.subr.bf16.mxu1 %v25054_v21  ;;  %v25099_v20 = vld [vmem:[#allocation2 + $0x3664] ss:$44 sps:$4 sm:$0xff]   ;;  %v25102_v21 = vld [vmem:[#allocation2 + $0x366c] ss:$44 sps:$4 sm:$0xff]  }
 0x596   :  { %13839 = vmatpush1.bf16.msra.mxu0 %v25049_v31  ;;  %14355 = vmatpush1.bf16.msra.mxu1 %v25052_v34  ;;  %v25097_v31 = vld [vmem:[#allocation2 + $0x3660] ss:$44 sps:$4 sm:$0xff]   ;;  %v25100_v34 = vld [vmem:[#allocation2 + $0x3668] ss:$44 sps:$4 sm:$0xff]  }
 0x597   :  { %13840 = vmatprep.subr.bf16.mxu0 %v25057_v40  ;;  %14356 = vmatprep.subr.bf16.mxu1 %v25060_v43  ;;  %v25105_v40 = vld [vmem:[#allocation2 + $0x36bc] ss:$44 sps:$4 sm:$0xff]   ;;  %v25108_v43 = vld [vmem:[#allocation2 + $0x36c4] ss:$44 sps:$4 sm:$0xff]  }
 0x59a   :  { %13841 = vmatpush1.bf16.msra.mxu0 %v25055_v44  ;;  %14357 = vmatpush1.bf16.msra.mxu1 %v25058_v45  ;;  %v25103_v44 = vld [vmem:[#allocation2 + $0x36b8] ss:$44 sps:$4 sm:$0xff]   ;;  %v25106_v45 = vld [vmem:[#allocation2 + $0x36c0] ss:$44 sps:$4 sm:$0xff]  }
 0x59b   :  { %13842 = vmatprep.subr.bf16.mxu0 %v25063_v46  ;;  %14358 = vmatprep.subr.bf16.mxu1 %v25066_v48  ;;  %v25111_v46 = vld [vmem:[#allocation2 + $0x3714] ss:$44 sps:$4 sm:$0xff]   ;;  %v25114_v48 = vld [vmem:[#allocation2 + $0x371c] ss:$44 sps:$4 sm:$0xff]  }
 0x59e   :  { %13843 = vmatpush1.bf16.msra.mxu0 %v25061_v49  ;;  %14359 = vmatpush1.bf16.msra.mxu1 %v25064_v51  ;;  %v25109_v49 = vld [vmem:[#allocation2 + $0x3710] ss:$44 sps:$4 sm:$0xff]   ;;  %v25112_v51 = vld [vmem:[#allocation2 + $0x3718] ss:$44 sps:$4 sm:$0xff]  }
 0x59f   :  { %13844 = vmatprep.subr.bf16.mxu0 %v25069_v53  ;;  %14360 = vmatprep.subr.bf16.mxu1 %v25072_v54  ;;  %v25117_v53 = vld [vmem:[#allocation2 + $0x376c] ss:$44 sps:$4 sm:$0xff]   ;;  %v25120_v54 = vld [vmem:[#allocation2 + $0x3774] ss:$44 sps:$4 sm:$0xff]  }
 0x5a2   :  { %13845 = vmatpush1.bf16.msra.mxu0 %v25067_v55  ;;  %14361 = vmatpush1.bf16.msra.mxu1 %v25070_v56  ;;  %v25115_v55 = vld [vmem:[#allocation2 + $0x3768] ss:$44 sps:$4 sm:$0xff]   ;;  %v25118_v56 = vld [vmem:[#allocation2 + $0x3770] ss:$44 sps:$4 sm:$0xff]  }
 0x5a3   :  { %13846 = vmatprep.subr.bf16.mxu0 %v25075_v57  ;;  %14362 = vmatprep.subr.bf16.mxu1 %v25078_v59  ;;  %v25123_v57 = vld [vmem:[#allocation2 + $0x37c4] ss:$44 sps:$4 sm:$0xff]   ;;  %v25126_v59 = vld [vmem:[#allocation2 + $0x37cc] ss:$44 sps:$4 sm:$0xff]  }
 0x5a6   :  { %13847 = vmatpush1.bf16.msra.mxu0 %v25073_v0  ;;  %14363 = vmatpush1.bf16.msra.mxu1 %v25076_v1  ;;  %v25121_v0 = vld [vmem:[#allocation2 + $0x37c0] ss:$44 sps:$4 sm:$0xff]   ;;  %v25124_v1 = vld [vmem:[#allocation2 + $0x37c8] ss:$44 sps:$4 sm:$0xff]  }
 0x5a7   :  { %13848 = vmatprep.subr.bf16.mxu0 %v25081_v2  ;;  %14364 = vmatprep.subr.bf16.mxu1 %v25084_v5  ;;  %v25129_v2 = vld [vmem:[#allocation2 + $0x381c] ss:$44 sps:$4 sm:$0xff]   ;;  %v25132_v5 = vld [vmem:[#allocation2 + $0x3824] ss:$44 sps:$4 sm:$0xff]  }
 0x5aa   :  { %13849 = vmatpush1.bf16.msra.mxu0 %v25079_v6  ;;  %14365 = vmatpush1.bf16.msra.mxu1 %v25082_v7  ;;  %v25127_v6 = vld [vmem:[#allocation2 + $0x3818] ss:$44 sps:$4 sm:$0xff]   ;;  %v25130_v7 = vld [vmem:[#allocation2 + $0x3820] ss:$44 sps:$4 sm:$0xff]  }
 0x5ab   :  { %13850 = vmatprep.subr.bf16.mxu0 %v25087_v8  ;;  %14366 = vmatprep.subr.bf16.mxu1 %v25090_v10  ;;  %v25135_v8 = vld [vmem:[#allocation2 + $0x3874] ss:$44 sps:$4 sm:$0xff]   ;;  %v25138_v10 = vld [vmem:[#allocation2 + $0x387c] ss:$44 sps:$4 sm:$0xff]  }
 0x5ae   :  { %13851 = vmatpush1.bf16.msra.mxu0 %v25085_v11  ;;  %14367 = vmatpush1.bf16.msra.mxu1 %v25088_v13  ;;  %v25133_v11 = vld [vmem:[#allocation2 + $0x3870] ss:$44 sps:$4 sm:$0xff]   ;;  %v25136_v13 = vld [vmem:[#allocation2 + $0x3878] ss:$44 sps:$4 sm:$0xff]  }
 0x5af   :  { %13852 = vmatprep.subr.bf16.mxu0 %v25093_v14  ;;  %14368 = vmatprep.subr.bf16.mxu1 %v25096_v15  ;;  %v25141_v14 = vld [vmem:[#allocation2 + $0x38cc] ss:$44 sps:$4 sm:$0xff]   ;;  %v25144_v15 = vld [vmem:[#allocation2 + $0x38d4] ss:$44 sps:$4 sm:$0xff]  }
 0x5b2   :  { %13853 = vmatpush1.bf16.msra.mxu0 %v25091_v16  ;;  %14369 = vmatpush1.bf16.msra.mxu1 %v25094_v19  ;;  %v25139_v16 = vld [vmem:[#allocation2 + $0x38c8] ss:$44 sps:$4 sm:$0xff]   ;;  %v25142_v19 = vld [vmem:[#allocation2 + $0x38d0] ss:$44 sps:$4 sm:$0xff]  }
 0x5b3   :  { %13854 = vmatprep.subr.bf16.mxu0 %v25099_v20  ;;  %14370 = vmatprep.subr.bf16.mxu1 %v25102_v21  ;;  %v25147_v20 = vld [vmem:[#allocation2 + $0x3924] ss:$44 sps:$4 sm:$0xff]   ;;  %v25150_v21 = vld [vmem:[#allocation2 + $0x392c] ss:$44 sps:$4 sm:$0xff]  }
 0x5b6   :  { %13855 = vmatpush1.bf16.msra.mxu0 %v25097_v31  ;;  %14371 = vmatpush1.bf16.msra.mxu1 %v25100_v34  ;;  %v25145_v31 = vld [vmem:[#allocation2 + $0x3920] ss:$44 sps:$4 sm:$0xff]   ;;  %v25148_v34 = vld [vmem:[#allocation2 + $0x3928] ss:$44 sps:$4 sm:$0xff]  }
 0x5b7   :  { %13856 = vmatprep.subr.bf16.mxu0 %v25105_v40  ;;  %14372 = vmatprep.subr.bf16.mxu1 %v25108_v43  ;;  %v25153_v40 = vld [vmem:[#allocation2 + $0x397c] ss:$44 sps:$4 sm:$0xff]   ;;  %v25156_v43 = vld [vmem:[#allocation2 + $0x3984] ss:$44 sps:$4 sm:$0xff]  }
 0x5ba   :  { %13857 = vmatpush1.bf16.msra.mxu0 %v25103_v44  ;;  %14373 = vmatpush1.bf16.msra.mxu1 %v25106_v45  ;;  %v25151_v44 = vld [vmem:[#allocation2 + $0x3978] ss:$44 sps:$4 sm:$0xff]   ;;  %v25154_v45 = vld [vmem:[#allocation2 + $0x3980] ss:$44 sps:$4 sm:$0xff]  }
 0x5bb   :  { %13869 = vmatprep.subr.bf16.mxu0 %v25111_v46  ;;  %14385 = vmatprep.subr.bf16.mxu1 %v25114_v48  ;;  %v25159_v46 = vld [vmem:[#allocation2 + $0x39d4] ss:$44 sps:$4 sm:$0xff]   ;;  %v25162_v48 = vld [vmem:[#allocation2 + $0x39dc] ss:$44 sps:$4 sm:$0xff]  }
 0x5bd   :  { %13859 = vmatmul.mubr.bf16.vlgmr.msra.gmra.mrb[4].mxu0 %v27141_v60  ;;  %14375 = vmatmul.mubr.bf16.vlgmr.msra.gmra.mrb[4].mxu1 %v27141_v60 }
 0x5be   :  { %13870 = vmatpush1.bf16.msra.mxu0 %v25109_v49  ;;  %14386 = vmatpush1.bf16.msra.mxu1 %v25112_v51  ;;  %v25157_v49 = vld [vmem:[#allocation2 + $0x39d0] ss:$44 sps:$4 sm:$0xff]   ;;  %v25160_v51 = vld [vmem:[#allocation2 + $0x39d8] ss:$44 sps:$4 sm:$0xff]  }
 0x5bf   :  { %13871 = vmatprep.subr.bf16.mxu0 %v25117_v53  ;;  %14387 = vmatprep.subr.bf16.mxu1 %v25120_v54  ;;  %v25165_v53 = vld [vmem:[#allocation2 + $0x3a2c] ss:$44 sps:$4 sm:$0xff]   ;;  %v25168_v54 = vld [vmem:[#allocation2 + $0x3a34] ss:$44 sps:$4 sm:$0xff]  }
 0x5c0   :  { %13901 = vmatprep.mubr.bf16.mxu0 %v27143_v4  ;;  %14417 = vmatprep.mubr.bf16.mxu1 %v27143_v4 }
 0x5c2   :  { %13872 = vmatpush1.bf16.msra.mxu0 %v25115_v55  ;;  %14388 = vmatpush1.bf16.msra.mxu1 %v25118_v56  ;;  %v25163_v55 = vld [vmem:[#allocation2 + $0x3a28] ss:$44 sps:$4 sm:$0xff]   ;;  %v25166_v56 = vld [vmem:[#allocation2 + $0x3a30] ss:$44 sps:$4 sm:$0xff]  }
 0x5c3   :  { %13873 = vmatprep.subr.bf16.mxu0 %v25123_v57  ;;  %14389 = vmatprep.subr.bf16.mxu1 %v25126_v59  ;;  %v25171_v57 = vld [vmem:[#allocation2 + $0x3a84] ss:$44 sps:$4 sm:$0xff]   ;;  %v25174_v59 = vld [vmem:[#allocation2 + $0x3a8c] ss:$44 sps:$4 sm:$0xff]  }
 0x5c6   :  { %13874 = vmatpush1.bf16.msra.mxu0 %v25121_v0  ;;  %14390 = vmatpush1.bf16.msra.mxu1 %v25124_v1  ;;  %v25169_v0 = vld [vmem:[#allocation2 + $0x3a80] ss:$44 sps:$4 sm:$0xff]   ;;  %v25172_v1 = vld [vmem:[#allocation2 + $0x3a88] ss:$44 sps:$4 sm:$0xff]  }
 0x5c7   :  { %13875 = vmatprep.subr.bf16.mxu0 %v25129_v2  ;;  %14391 = vmatprep.subr.bf16.mxu1 %v25132_v5  ;;  %v25177_v2 = vld [vmem:[#allocation2 + $0x3adc] ss:$44 sps:$4 sm:$0xff]   ;;  %v25180_v5 = vld [vmem:[#allocation2 + $0x3ae4] ss:$44 sps:$4 sm:$0xff]  }
 0x5ca   :  { %13876 = vmatpush1.bf16.msra.mxu0 %v25127_v6  ;;  %14392 = vmatpush1.bf16.msra.mxu1 %v25130_v7  ;;  %v25175_v6 = vld [vmem:[#allocation2 + $0x3ad8] ss:$44 sps:$4 sm:$0xff]   ;;  %v25178_v7 = vld [vmem:[#allocation2 + $0x3ae0] ss:$44 sps:$4 sm:$0xff]  }
 0x5cb   :  { %13877 = vmatprep.subr.bf16.mxu0 %v25135_v8  ;;  %14393 = vmatprep.subr.bf16.mxu1 %v25138_v10  ;;  %v25183_v8 = vld [vmem:[#allocation2 + $0x3b34] ss:$44 sps:$4 sm:$0xff]   ;;  %v25186_v10 = vld [vmem:[#allocation2 + $0x3b3c] ss:$44 sps:$4 sm:$0xff]  }
 0x5ce   :  { %13878 = vmatpush1.bf16.msra.mxu0 %v25133_v11  ;;  %14394 = vmatpush1.bf16.msra.mxu1 %v25136_v13  ;;  %v25181_v11 = vld [vmem:[#allocation2 + $0x3b30] ss:$44 sps:$4 sm:$0xff]   ;;  %v25184_v13 = vld [vmem:[#allocation2 + $0x3b38] ss:$44 sps:$4 sm:$0xff]  }
 0x5cf   :  { %13879 = vmatprep.subr.bf16.mxu0 %v25141_v14  ;;  %14395 = vmatprep.subr.bf16.mxu1 %v25144_v15  ;;  %v25189_v14 = vld [vmem:[#allocation2 + $0x3b8c] ss:$44 sps:$4 sm:$0xff]   ;;  %v25192_v15 = vld [vmem:[#allocation2 + $0x3b94] ss:$44 sps:$4 sm:$0xff]  }
 0x5d2   :  { %13880 = vmatpush1.bf16.msra.mxu0 %v25139_v16  ;;  %14396 = vmatpush1.bf16.msra.mxu1 %v25142_v19  ;;  %v25187_v16 = vld [vmem:[#allocation2 + $0x3b88] ss:$44 sps:$4 sm:$0xff]   ;;  %v25190_v19 = vld [vmem:[#allocation2 + $0x3b90] ss:$44 sps:$4 sm:$0xff]  }
 0x5d3   :  { %13881 = vmatprep.subr.bf16.mxu0 %v25147_v20  ;;  %14397 = vmatprep.subr.bf16.mxu1 %v25150_v21  ;;  %v25195_v20 = vld [vmem:[#allocation2 + $0x3be4] ss:$44 sps:$4 sm:$0xff]   ;;  %v25198_v21 = vld [vmem:[#allocation2 + $0x3bec] ss:$44 sps:$4 sm:$0xff]  }
 0x5d6   :  { %13882 = vmatpush1.bf16.msra.mxu0 %v25145_v31  ;;  %14398 = vmatpush1.bf16.msra.mxu1 %v25148_v34  ;;  %v25193_v31 = vld [vmem:[#allocation2 + $0x3be0] ss:$44 sps:$4 sm:$0xff]   ;;  %v25196_v34 = vld [vmem:[#allocation2 + $0x3be8] ss:$44 sps:$4 sm:$0xff]  }
 0x5d7   :  { %13883 = vmatprep.subr.bf16.mxu0 %v25153_v40  ;;  %14399 = vmatprep.subr.bf16.mxu1 %v25156_v43  ;;  %v25201_v40 = vld [vmem:[#allocation2 + $0x3c3c] ss:$44 sps:$4 sm:$0xff]   ;;  %v25204_v43 = vld [vmem:[#allocation2 + $0x3c44] ss:$44 sps:$4 sm:$0xff]  }
 0x5da   :  { %13884 = vmatpush1.bf16.msra.mxu0 %v25151_v44  ;;  %14400 = vmatpush1.bf16.msra.mxu1 %v25154_v45  ;;  %v25199_v44 = vld [vmem:[#allocation2 + $0x3c38] ss:$44 sps:$4 sm:$0xff]   ;;  %v25202_v45 = vld [vmem:[#allocation2 + $0x3c40] ss:$44 sps:$4 sm:$0xff]  }
 0x5db   :  { %13885 = vmatprep.subr.bf16.mxu0 %v25159_v46  ;;  %14401 = vmatprep.subr.bf16.mxu1 %v25162_v48  ;;  %v25207_v46 = vld [vmem:[#allocation2 + $0x3c94] ss:$44 sps:$4 sm:$0xff]   ;;  %v25210_v48 = vld [vmem:[#allocation2 + $0x3c9c] ss:$44 sps:$4 sm:$0xff]  }
 0x5de   :  { %13886 = vmatpush1.bf16.msra.mxu0 %v25157_v49  ;;  %14402 = vmatpush1.bf16.msra.mxu1 %v25160_v51  ;;  %v25205_v49 = vld [vmem:[#allocation2 + $0x3c90] ss:$44 sps:$4 sm:$0xff]   ;;  %v25208_v51 = vld [vmem:[#allocation2 + $0x3c98] ss:$44 sps:$4 sm:$0xff]  }
 0x5df   :  { %13887 = vmatprep.subr.bf16.mxu0 %v25165_v53  ;;  %14403 = vmatprep.subr.bf16.mxu1 %v25168_v54  ;;  %v25213_v53 = vld [vmem:[#allocation2 + $0x3cec] ss:$44 sps:$4 sm:$0xff]   ;;  %v25216_v54 = vld [vmem:[#allocation2 + $0x3cf4] ss:$44 sps:$4 sm:$0xff]  }
 0x5e2   :  { %13888 = vmatpush1.bf16.msra.mxu0 %v25163_v55  ;;  %14404 = vmatpush1.bf16.msra.mxu1 %v25166_v56  ;;  %v2310_v55 = vld [vmem:[#allocation2 + $0x3d40] sm:$0x33]  ;;  %v2311_v56 = vld [vmem:[#allocation2 + $0x3d48] sm:$0x33] }
 0x5e3   :  { %13889 = vmatprep.subr.bf16.mxu0 %v25171_v57  ;;  %14405 = vmatprep.subr.bf16.mxu1 %v25174_v59  ;;  %v25211_v57 = vld [vmem:[#allocation2 + $0x3ce8] ss:$44 sps:$4 sm:$0xff]   ;;  %v25214_v59 = vld [vmem:[#allocation2 + $0x3cf0] ss:$44 sps:$4 sm:$0xff]  }
 0x5e6   :  { %13890 = vmatpush1.bf16.msra.mxu0 %v25169_v0  ;;  %14406 = vmatpush1.bf16.msra.mxu1 %v25172_v1  ;;  %v21807_v0 = vcombine.low %v2310_v55, %v2310_v55  ;;  %v21809_v1 = vcombine.low %v2311_v56, %v2311_v56 }
 0x5e7   :  { %13891 = vmatprep.subr.bf16.mxu0 %v25177_v2  ;;  %14407 = vmatprep.subr.bf16.mxu1 %v25180_v5  ;;  %v21808_v2 = vcombine.high %v2310_v55, %v2310_v55  ;;  %v21810_v5 = vcombine.high %v2311_v56, %v2311_v56  ;;  %v25283_v55 = vld [vmem:[#allocation2 + $0x1e0] ss:$44 sps:$4 sm:$0xff]  }
 0x5e8   :  { %v25241_v56 = vld [vmem:[#allocation2 + $0x234] ss:$44 sps:$4 sm:$0xff]  }
 0x5ea   :  { %13892 = vmatpush1.bf16.msra.mxu0 %v25175_v6  ;;  %14408 = vmatpush1.bf16.msra.mxu1 %v25178_v7  ;;  %v12387_v6 = vsel %vm12373_vm0, %v21807_v0, 0  ;;  %v12393_v7 = vsel %vm12373_vm0, %v21809_v1, 0  ;;  %v25288_v0 = vld [vmem:[#allocation2 + $0x238] ss:$44 sps:$4 sm:$0xff]  }
 0x5eb   :  { %13893 = vmatprep.subr.bf16.mxu0 %v25183_v8  ;;  %14409 = vmatprep.subr.bf16.mxu1 %v25186_v10  ;;  %v25223_v8 = vld [vmem:[#allocation2 + $0x24] ss:$44 sps:$4 sm:$0xff]   ;;  %v25257_v10 = vld [vmem:[#allocation2 + $0x2e8] ss:$44 sps:$4 sm:$0xff]   ;;  %v25244_v1 = vld [vmem:[#allocation2 + $0x28c] ss:$44 sps:$4 sm:$0xff]  }
 0x5ee   :  { %13894 = vmatpush1.bf16.msra.mxu0 %v25181_v11  ;;  %14410 = vmatpush1.bf16.msra.mxu1 %v25184_v13  ;;  %v25221_v11 = vld [vmem:[#allocation2 + $0x20] ss:$44 sps:$4 sm:$0xff]   ;;  %v25226_v13 = vld [vmem:[#allocation2 + $0x7c] ss:$44 sps:$4 sm:$0xff]  }
 0x5ef   :  { %13895 = vmatprep.subr.bf16.mxu0 %v25189_v14  ;;  %14411 = vmatprep.subr.bf16.mxu1 %v25192_v15  ;;  %v25258_v14 = vld [vmem:[#allocation2 + $0x28] ss:$44 sps:$4 sm:$0xff]   ;;  %v25262_v15 = vld [vmem:[#allocation2 + $0x340] ss:$44 sps:$4 sm:$0xff]  }
 0x5f2   :  { %13896 = vmatpush1.bf16.msra.mxu0 %v25187_v16  ;;  %14412 = vmatpush1.bf16.msra.mxu1 %v25190_v19  ;;  %v25224_v16 = vld [vmem:[#allocation2 + $0x78] ss:$44 sps:$4 sm:$0xff]   ;;  %v25229_v19 = vld [vmem:[#allocation2 + $0xd4] ss:$44 sps:$4 sm:$0xff]  }
 0x5f3   :  { %13897 = vmatprep.subr.bf16.mxu0 %v25195_v20  ;;  %14413 = vmatprep.subr.bf16.mxu1 %v25198_v21  ;;  %v25263_v20 = vld [vmem:[#allocation2 + $0x80] ss:$44 sps:$4 sm:$0xff]   ;;  %v25267_v21 = vld [vmem:[#allocation2 + $0x398] ss:$44 sps:$4 sm:$0xff]  }
 0x5f6   :  { %13898 = vmatpush1.bf16.msra.mxu0 %v25193_v31  ;;  %14414 = vmatpush1.bf16.msra.mxu1 %v25196_v34  ;;  %v25227_v31 = vld [vmem:[#allocation2 + $0xd0] ss:$44 sps:$4 sm:$0xff]   ;;  %v25232_v34 = vld [vmem:[#allocation2 + $0x12c] ss:$44 sps:$4 sm:$0xff]  }
 0x5f7   :  { %13899 = vmatprep.subr.bf16.mxu0 %v25201_v40  ;;  %14415 = vmatprep.subr.bf16.mxu1 %v25204_v43  ;;  %v25268_v40 = vld [vmem:[#allocation2 + $0xd8] ss:$44 sps:$4 sm:$0xff]   ;;  %v25272_v43 = vld [vmem:[#allocation2 + $0x3f0] ss:$44 sps:$4 sm:$0xff]  }
 0x5fa   :  { %13900 = vmatpush1.bf16.msra.mxu0 %v25199_v44  ;;  %14416 = vmatpush1.bf16.msra.mxu1 %v25202_v45  ;;  %v25230_v44 = vld [vmem:[#allocation2 + $0x128] ss:$44 sps:$4 sm:$0xff]   ;;  %v25235_v45 = vld [vmem:[#allocation2 + $0x184] ss:$44 sps:$4 sm:$0xff]  }
 0x5fb   :  { %13912 = vmatprep.subr.bf16.mxu0 %v25207_v46  ;;  %14428 = vmatprep.subr.bf16.mxu1 %v25210_v48  ;;  %v25273_v46 = vld [vmem:[#allocation2 + $0x130] ss:$44 sps:$4 sm:$0xff]   ;;  %v25277_v48 = vld [vmem:[#allocation2 + $0x448] ss:$44 sps:$4 sm:$0xff]  }
 0x5fd   :  { %13902 = vmatmul.mubr.bf16.vlgmr.msra.gmra.mrb[4].mxu0 %v27155_v37  ;;  %14418 = vmatmul.mubr.bf16.vlgmr.msra.gmra.mrb[4].mxu1 %v27155_v37 }
 0x5fe   :  { %13913 = vmatpush1.bf16.msra.mxu0 %v25205_v49  ;;  %14429 = vmatpush1.bf16.msra.mxu1 %v25208_v51  ;;  %v25233_v49 = vld [vmem:[#allocation2 + $0x180] ss:$44 sps:$4 sm:$0xff]   ;;  %v25278_v51 = vld [vmem:[#allocation2 + $0x188] ss:$44 sps:$4 sm:$0xff]  }
 0x5ff   :  { %13914 = vmatprep.subr.bf16.mxu0 %v25213_v53  ;;  %14430 = vmatprep.subr.bf16.mxu1 %v25216_v54  ;;  %v25282_v53 = vld [vmem:[#allocation2 + $0x4a0] ss:$44 sps:$4 sm:$0xff]   ;;  %v25236_v54 = vld [vmem:[#allocation2 + $0x1d8] ss:$44 sps:$4 sm:$0xff]  }
 0x600   :  { %13944 = vmatprep.mubr.bf16.mxu0 %v26824_v52  ;;  %14460 = vmatprep.mubr.bf16.mxu1 %v26824_v52 }
 0x602   :  { %13915 = vmatpush1.bf16.msra.mxu0 %v25211_v57  ;;  %14431 = vmatpush1.bf16.msra.mxu1 %v25214_v59  ;;  %v25287_v57 = vld [vmem:[#allocation2 + $0x4f8] ss:$44 sps:$4 sm:$0xff]   ;;  %v25239_v59 = vld [vmem:[#allocation2 + $0x230] ss:$44 sps:$4 sm:$0xff]  }
 0x603   :  { %21818 = vmatprep.subr.msk.bf16.mxu0 %vm12373_vm0, %v21808_v2  ;;  %21820 = vmatprep.subr.msk.bf16.mxu1 %vm12373_vm0, %v21810_v5  ;;  %v25292_v2 = vld [vmem:[#allocation2 + $0x550] ss:$44 sps:$4 sm:$0xff]   ;;  %v25242_v5 = vld [vmem:[#allocation2 + $0x288] ss:$44 sps:$4 sm:$0xff]  }
 0x606   :  { %13917 = vmatpush1.bf16.msra.mxu0 %v12387_v6  ;;  %14433 = vmatpush1.bf16.msra.mxu1 %v12393_v7  ;;  %v25293_v6 = vld [vmem:[#allocation2 + $0x290] ss:$44 sps:$4 sm:$0xff]  }
 0x607   :  { %14471 = vmatprep.subr.bf16.mxu0 %v25223_v8  ;;  %22306 = vmatprep.subr.bf16.mxu1 %v25257_v10  ;;  %v25247_v7 = vld [vmem:[#allocation2 + $0x2e4] ss:$44 sps:$4 sm:$0xff]   ;;  %v25297_v8 = vld [vmem:[#allocation2 + $0x868] ss:$44 sps:$4 sm:$0xff]   ;;  %v25245_v10 = vld [vmem:[#allocation2 + $0x2e0] ss:$44 sps:$4 sm:$0xff]  }
 0x609   :  { %21819 = vmatmul.mubr.msk.bf16.vlgmr.msra.gmra.mrb[4].mxu0 %vm12369_vm1, %v27171_v62  ;;  %21821 = vmatmul.mubr.msk.bf16.vlgmr.msra.gmra.mrb[4].mxu1 %vm12369_vm1, %v27171_v62 }
 0x60a   :  { %14472 = vmatpush1.bf16.msra.mxu0 %v25221_v11  ;;  %22307 = vmatpush3.bf16.msra.mxu1 %v25258_v14  ;;  %v25298_v11 = vld [vmem:[#allocation2 + $0x5a8] ss:$44 sps:$4 sm:$0xff]   ;;  %v25302_v14 = vld [vmem:[#allocation2 + $0x8c0] ss:$44 sps:$4 sm:$0xff]  }
 0x60b   :  { %14473 = vmatprep.subr.bf16.mxu0 %v25226_v13  ;;  %22308 = vmatprep.subr.bf16.mxu1 %v25262_v15  ;;  %v25250_v13 = vld [vmem:[#allocation2 + $0x33c] ss:$44 sps:$4 sm:$0xff]   ;;  %v25248_v15 = vld [vmem:[#allocation2 + $0x338] ss:$44 sps:$4 sm:$0xff]  }
 0x60c   :  { %14503 = vmatprep.mubr.bf16.mxu0 %v26945_v50  ;;  %15019 = vmatprep.mubr.bf16.mxu1 %v26945_v50  ;;  %v25238_v50 = vld [vmem:[#allocation2 + $0x1dc] ss:$44 sps:$4 sm:$0xff]  }
 0x60e   :  { %14474 = vmatpush1.bf16.msra.mxu0 %v25224_v16  ;;  %22309 = vmatpush3.bf16.msra.mxu1 %v25263_v20  ;;  %v25303_v16 = vld [vmem:[#allocation2 + $0x600] ss:$44 sps:$4 sm:$0xff]   ;;  %v25307_v20 = vld [vmem:[#allocation2 + $0x918] ss:$44 sps:$4 sm:$0xff]  }
 0x60f   :  { %14475 = vmatprep.subr.bf16.mxu0 %v25229_v19  ;;  %22310 = vmatprep.subr.bf16.mxu1 %v25267_v21  ;;  %v25253_v19 = vld [vmem:[#allocation2 + $0x394] ss:$44 sps:$4 sm:$0xff]   ;;  %v25251_v21 = vld [vmem:[#allocation2 + $0x390] ss:$44 sps:$4 sm:$0xff]  }
 0x612   :  { %14476 = vmatpush1.bf16.msra.mxu0 %v25227_v31  ;;  %22311 = vmatpush3.bf16.msra.mxu1 %v25268_v40  ;;  %v25308_v31 = vld [vmem:[#allocation2 + $0x658] ss:$44 sps:$4 sm:$0xff]   ;;  %v25312_v40 = vld [vmem:[#allocation2 + $0x970] ss:$44 sps:$4 sm:$0xff]  }
 0x613   :  { %14477 = vmatprep.subr.bf16.mxu0 %v25232_v34  ;;  %22312 = vmatprep.subr.bf16.mxu1 %v25272_v43  ;;  %v25256_v34 = vld [vmem:[#allocation2 + $0x3ec] ss:$44 sps:$4 sm:$0xff]   ;;  %v25254_v43 = vld [vmem:[#allocation2 + $0x3e8] ss:$44 sps:$4 sm:$0xff]  }
 0x616   :  { %14478 = vmatpush1.bf16.msra.mxu0 %v25230_v44  ;;  %22313 = vmatpush3.bf16.msra.mxu1 %v25273_v46  ;;  %v25313_v44 = vld [vmem:[#allocation2 + $0x6b0] ss:$44 sps:$4 sm:$0xff]   ;;  %v25317_v46 = vld [vmem:[#allocation2 + $0x9c8] ss:$44 sps:$4 sm:$0xff]  }
 0x617   :  { %14479 = vmatprep.subr.bf16.mxu0 %v25235_v45  ;;  %22314 = vmatprep.subr.bf16.mxu1 %v25277_v48  ;;  %v25261_v45 = vld [vmem:[#allocation2 + $0x444] ss:$44 sps:$4 sm:$0xff]   ;;  %v25259_v48 = vld [vmem:[#allocation2 + $0x440] ss:$44 sps:$4 sm:$0xff]  }
 0x61a   :  { %14480 = vmatpush1.bf16.msra.mxu0 %v25233_v49  ;;  %22315 = vmatpush3.bf16.msra.mxu1 %v25278_v51  ;;  %v25318_v49 = vld [vmem:[#allocation2 + $0x708] ss:$44 sps:$4 sm:$0xff]  }
 0x61b   :  { %14481 = vmatprep.subr.bf16.mxu0 %v25238_v50  ;;  %22316 = vmatprep.subr.bf16.mxu1 %v25282_v53  ;;  %v25266_v51 = vld [vmem:[#allocation2 + $0x49c] ss:$44 sps:$4 sm:$0xff]   ;;  %v25322_v50 = vld [vmem:[#allocation2 + $0xa20] ss:$44 sps:$4 sm:$0xff]   ;;  %v25264_v53 = vld [vmem:[#allocation2 + $0x498] ss:$44 sps:$4 sm:$0xff]  }
 0x61e   :  { %14482 = vmatpush1.bf16.msra.mxu0 %v25236_v54  ;;  %22317 = vmatpush3.bf16.msra.mxu1 %v25283_v55  ;;  %v25323_v54 = vld [vmem:[#allocation2 + $0x760] ss:$44 sps:$4 sm:$0xff]  }
 0x61f   :  { %14483 = vmatprep.subr.bf16.mxu0 %v25241_v56  ;;  %22318 = vmatprep.subr.bf16.mxu1 %v25287_v57  ;;  %v25271_v55 = vld [vmem:[#allocation2 + $0x4f4] ss:$44 sps:$4 sm:$0xff]   ;;  %v25327_v56 = vld [vmem:[#allocation2 + $0xa78] ss:$44 sps:$4 sm:$0xff]   ;;  %v25269_v57 = vld [vmem:[#allocation2 + $0x4f0] ss:$44 sps:$4 sm:$0xff]  }
 0x622   :  { %14484 = vmatpush1.bf16.msra.mxu0 %v25239_v59  ;;  %22319 = vmatpush3.bf16.msra.mxu1 %v25288_v0  ;;  %v25328_v59 = vld [vmem:[#allocation2 + $0x7b8] ss:$44 sps:$4 sm:$0xff]  }
 0x623   :  { %14485 = vmatprep.subr.bf16.mxu0 %v25244_v1  ;;  %22320 = vmatprep.subr.bf16.mxu1 %v25292_v2  ;;  %v25276_v0 = vld [vmem:[#allocation2 + $0x54c] ss:$44 sps:$4 sm:$0xff]   ;;  %v25332_v1 = vld [vmem:[#allocation2 + $0xad0] ss:$44 sps:$4 sm:$0xff]   ;;  %v25274_v2 = vld [vmem:[#allocation2 + $0x548] ss:$44 sps:$4 sm:$0xff]  }
 0x626   :  { %14486 = vmatpush1.bf16.msra.mxu0 %v25242_v5  ;;  %22321 = vmatpush3.bf16.msra.mxu1 %v25293_v6  ;;  %v25333_v5 = vld [vmem:[#allocation2 + $0x810] ss:$44 sps:$4 sm:$0xff]  }
 0x627   :  { %14487 = vmatprep.subr.bf16.mxu0 %v25247_v7  ;;  %22328 = vmatprep.subr.bf16.mxu1 %v25297_v8  ;;  %v25281_v6 = vld [vmem:[#allocation2 + $0x5a4] ss:$44 sps:$4 sm:$0xff]   ;;  %v25337_v7 = vld [vmem:[#allocation2 + $0xde8] ss:$44 sps:$4 sm:$0xff]   ;;  %v25279_v8 = vld [vmem:[#allocation2 + $0x5a0] ss:$44 sps:$4 sm:$0xff]  }
 0x629   :  { %15020 = vmatmul.mubr.bf16.vlgmr.msra.gmra.mrb[8].mxu1 %v26955_v9 }
 0x62a   :  { %14488 = vmatpush1.bf16.msra.mxu0 %v25245_v10  ;;  %22329 = vmatpush3.bf16.msra.mxu1 %v25298_v11  ;;  %v25338_v10 = vld [vmem:[#allocation2 + $0xb28] ss:$44 sps:$4 sm:$0xff]  }
 0x62b   :  { %14489 = vmatprep.subr.bf16.mxu0 %v25250_v13  ;;  %22330 = vmatprep.subr.bf16.mxu1 %v25302_v14  ;;  %v25286_v11 = vld [vmem:[#allocation2 + $0x5fc] ss:$44 sps:$4 sm:$0xff]   ;;  %v25342_v13 = vld [vmem:[#allocation2 + $0xe40] ss:$44 sps:$4 sm:$0xff]   ;;  %v25284_v14 = vld [vmem:[#allocation2 + $0x5f8] ss:$44 sps:$4 sm:$0xff]  }
 0x62c   :  { %15060 = vmatprep.mubr.bf16.mxu1 %v26965_v36 }
 0x62e   :  { %14490 = vmatpush1.bf16.msra.mxu0 %v25248_v15  ;;  %22331 = vmatpush3.bf16.msra.mxu1 %v25303_v16  ;;  %v25343_v15 = vld [vmem:[#allocation2 + $0xb80] ss:$44 sps:$4 sm:$0xff]  }
 0x62f   :  { %14491 = vmatprep.subr.bf16.mxu0 %v25253_v19  ;;  %22332 = vmatprep.subr.bf16.mxu1 %v25307_v20  ;;  %v25291_v16 = vld [vmem:[#allocation2 + $0x654] ss:$44 sps:$4 sm:$0xff]   ;;  %v25347_v19 = vld [vmem:[#allocation2 + $0xe98] ss:$44 sps:$4 sm:$0xff]   ;;  %v25289_v20 = vld [vmem:[#allocation2 + $0x650] ss:$44 sps:$4 sm:$0xff]  }
 0x632   :  { %14492 = vmatpush1.bf16.msra.mxu0 %v25251_v21  ;;  %22333 = vmatpush3.bf16.msra.mxu1 %v25308_v31  ;;  %v25348_v21 = vld [vmem:[#allocation2 + $0xbd8] ss:$44 sps:$4 sm:$0xff]   ;;  %v25352_v31 = vld [vmem:[#allocation2 + $0xef0] ss:$44 sps:$4 sm:$0xff]  }
 0x633   :  { %14493 = vmatprep.subr.bf16.mxu0 %v25256_v34  ;;  %22334 = vmatprep.subr.bf16.mxu1 %v25312_v40  ;;  %v25294_v34 = vld [vmem:[#allocation2 + $0x6a8] ss:$44 sps:$4 sm:$0xff]   ;;  %v25353_v40 = vld [vmem:[#allocation2 + $0xc30] ss:$44 sps:$4 sm:$0xff]  }
 0x636   :  { %14494 = vmatpush1.bf16.msra.mxu0 %v25254_v43  ;;  %22335 = vmatpush3.bf16.msra.mxu1 %v25313_v44  ;;  %v25301_v43 = vld [vmem:[#allocation2 + $0x704] ss:$44 sps:$4 sm:$0xff]   ;;  %v25357_v44 = vld [vmem:[#allocation2 + $0xf48] ss:$44 sps:$4 sm:$0xff]  }
 0x637   :  { %14495 = vmatprep.subr.bf16.mxu0 %v25261_v45  ;;  %22336 = vmatprep.subr.bf16.mxu1 %v25317_v46  ;;  %v25358_v45 = vld [vmem:[#allocation2 + $0xc88] ss:$44 sps:$4 sm:$0xff]  }
 0x638   :  { %v25306_v46 = vld [vmem:[#allocation2 + $0x75c] ss:$44 sps:$4 sm:$0xff]  }
 0x63a   :  { %14496 = vmatpush1.bf16.msra.mxu0 %v25259_v48  ;;  %22337 = vmatpush3.bf16.msra.mxu1 %v25318_v49  ;;  %v25362_v48 = vld [vmem:[#allocation2 + $0xfa0] ss:$44 sps:$4 sm:$0xff]   ;;  %v25304_v49 = vld [vmem:[#allocation2 + $0x758] ss:$44 sps:$4 sm:$0xff]  }
 0x63b   :  { %14497 = vmatprep.subr.bf16.mxu0 %v25266_v51  ;;  %22338 = vmatprep.subr.bf16.mxu1 %v25322_v50  ;;  %v25363_v51 = vld [vmem:[#allocation2 + $0xce0] ss:$44 sps:$4 sm:$0xff]  }
 0x63c   :  { %v25311_v50 = vld [vmem:[#allocation2 + $0x7b4] ss:$44 sps:$4 sm:$0xff]  }
 0x63e   :  { %14498 = vmatpush1.bf16.msra.mxu0 %v25264_v53  ;;  %22339 = vmatpush3.bf16.msra.mxu1 %v25323_v54  ;;  %v25367_v53 = vld [vmem:[#allocation2 + $0xff8] ss:$44 sps:$4 sm:$0xff]   ;;  %v25309_v54 = vld [vmem:[#allocation2 + $0x7b0] ss:$44 sps:$4 sm:$0xff]  }
 0x63f   :  { %14499 = vmatprep.subr.bf16.mxu0 %v25271_v55  ;;  %22340 = vmatprep.subr.bf16.mxu1 %v25327_v56  ;;  %v25368_v55 = vld [vmem:[#allocation2 + $0xd38] ss:$44 sps:$4 sm:$0xff]  }
 0x640   :  { %v25316_v56 = vld [vmem:[#allocation2 + $0x80c] ss:$44 sps:$4 sm:$0xff]  }
 0x642   :  { %14500 = vmatpush1.bf16.msra.mxu0 %v25269_v57  ;;  %22341 = vmatpush3.bf16.msra.mxu1 %v25328_v59  ;;  %v25372_v57 = vld [vmem:[#allocation2 + $0x1050] ss:$44 sps:$4 sm:$0xff]   ;;  %v25314_v59 = vld [vmem:[#allocation2 + $0x808] ss:$44 sps:$4 sm:$0xff]  }
 0x643   :  { %14501 = vmatprep.subr.bf16.mxu0 %v25276_v0  ;;  %22342 = vmatprep.subr.bf16.mxu1 %v25332_v1  ;;  %v25373_v0 = vld [vmem:[#allocation2 + $0xd90] ss:$44 sps:$4 sm:$0xff]  }
 0x644   :  { %v25321_v1 = vld [vmem:[#allocation2 + $0x864] ss:$44 sps:$4 sm:$0xff]  }
 0x646   :  { %14502 = vmatpush1.bf16.msra.mxu0 %v25274_v2  ;;  %22343 = vmatpush3.bf16.msra.mxu1 %v25333_v5  ;;  %v25377_v2 = vld [vmem:[#allocation2 + $0x1368] ss:$44 sps:$4 sm:$0xff]   ;;  %v25319_v5 = vld [vmem:[#allocation2 + $0x860] ss:$44 sps:$4 sm:$0xff]  }
 0x647   :  { %14514 = vmatprep.subr.bf16.mxu0 %v25281_v6  ;;  %22350 = vmatprep.subr.bf16.mxu1 %v25337_v7  ;;  %v25378_v6 = vld [vmem:[#allocation2 + $0x10a8] ss:$44 sps:$4 sm:$0xff]  }
 0x648   :  { %v25326_v7 = vld [vmem:[#allocation2 + $0x8bc] ss:$44 sps:$4 sm:$0xff]  }
 0x649   :  { %14504 = vmatmul.mubr.bf16.vlgmr.msra.gmra.mrb[8].mxu0 %v26955_v9  ;;  %15061 = vmatmul.mubr.bf16.vlgmr.msra.gmra.mrb[12].mxu1 %v26975_v17  ;;  %v25296_v9 = vld [vmem:[#allocation2 + $0x6ac] ss:$44 sps:$4 sm:$0xff]  }
 0x64a   :  { %14515 = vmatpush1.bf16.msra.mxu0 %v25279_v8  ;;  %22351 = vmatpush3.bf16.msra.mxu1 %v25338_v10  ;;  %v25382_v8 = vld [vmem:[#allocation2 + $0x13c0] ss:$44 sps:$4 sm:$0xff]   ;;  %v25324_v10 = vld [vmem:[#allocation2 + $0x8b8] ss:$44 sps:$4 sm:$0xff]  }
 0x64b   :  { %14516 = vmatprep.subr.bf16.mxu0 %v25286_v11  ;;  %22352 = vmatprep.subr.bf16.mxu1 %v25342_v13  ;;  %v25383_v11 = vld [vmem:[#allocation2 + $0x1100] ss:$44 sps:$4 sm:$0xff]  }
 0x64c   :  { %14546 = vmatprep.mubr.bf16.mxu0 %v26965_v36  ;;  %15101 = vmatprep.mubr.bf16.mxu1 %v26985_v24  ;;  %v25299_v36 = vld [vmem:[#allocation2 + $0x700] ss:$44 sps:$4 sm:$0xff]  }
 0x64d   :  { %v25331_v13 = vld [vmem:[#allocation2 + $0x914] ss:$44 sps:$4 sm:$0xff]  }
 0x64e   :  { %14517 = vmatpush1.bf16.msra.mxu0 %v25284_v14  ;;  %22353 = vmatpush3.bf16.msra.mxu1 %v25343_v15  ;;  %v25387_v14 = vld [vmem:[#allocation2 + $0x1418] ss:$44 sps:$4 sm:$0xff]   ;;  %v25329_v15 = vld [vmem:[#allocation2 + $0x910] ss:$44 sps:$4 sm:$0xff]  }
 0x64f   :  { %14518 = vmatprep.subr.bf16.mxu0 %v25291_v16  ;;  %22354 = vmatprep.subr.bf16.mxu1 %v25347_v19  ;;  %v25388_v16 = vld [vmem:[#allocation2 + $0x1158] ss:$44 sps:$4 sm:$0xff]  }
 0x650   :  { %v25336_v19 = vld [vmem:[#allocation2 + $0x96c] ss:$44 sps:$4 sm:$0xff]  }
 0x652   :  { %14519 = vmatpush1.bf16.msra.mxu0 %v25289_v20  ;;  %22355 = vmatpush3.bf16.msra.mxu1 %v25348_v21  ;;  %v25392_v20 = vld [vmem:[#allocation2 + $0x1470] ss:$44 sps:$4 sm:$0xff]   ;;  %v25334_v21 = vld [vmem:[#allocation2 + $0x968] ss:$44 sps:$4 sm:$0xff]  }
 0x653   :  { %14520 = vmatprep.subr.bf16.mxu0 %v25296_v9  ;;  %22356 = vmatprep.subr.bf16.mxu1 %v25352_v31  ;;  %v25393_v9 = vld [vmem:[#allocation2 + $0x11b0] ss:$44 sps:$4 sm:$0xff]  }
 0x654   :  { %v25341_v31 = vld [vmem:[#allocation2 + $0x9c4] ss:$44 sps:$4 sm:$0xff]  }
 0x656   :  { %14521 = vmatpush1.bf16.msra.mxu0 %v25294_v34  ;;  %22357 = vmatpush3.bf16.msra.mxu1 %v25353_v40  ;;  %v25397_v34 = vld [vmem:[#allocation2 + $0x14c8] ss:$44 sps:$4 sm:$0xff]   ;;  %v25339_v40 = vld [vmem:[#allocation2 + $0x9c0] ss:$44 sps:$4 sm:$0xff]  }
 0x657   :  { %14522 = vmatprep.subr.bf16.mxu0 %v25301_v43  ;;  %22358 = vmatprep.subr.bf16.mxu1 %v25357_v44  ;;  %v25398_v43 = vld [vmem:[#allocation2 + $0x1208] ss:$44 sps:$4 sm:$0xff]  }
 0x658   :  { %v25346_v44 = vld [vmem:[#allocation2 + $0xa1c] ss:$44 sps:$4 sm:$0xff]  }
 0x65a   :  { %14523 = vmatpush1.bf16.msra.mxu0 %v25299_v36  ;;  %22359 = vmatpush3.bf16.msra.mxu1 %v25358_v45  ;;  %v25402_v36 = vld [vmem:[#allocation2 + $0x1520] ss:$44 sps:$4 sm:$0xff]   ;;  %v25344_v45 = vld [vmem:[#allocation2 + $0xa18] ss:$44 sps:$4 sm:$0xff]  }
 0x65b   :  { %14524 = vmatprep.subr.bf16.mxu0 %v25306_v46  ;;  %22360 = vmatprep.subr.bf16.mxu1 %v25362_v48  ;;  %v25403_v46 = vld [vmem:[#allocation2 + $0x1260] ss:$44 sps:$4 sm:$0xff]  }
 0x65c   :  { %v25351_v48 = vld [vmem:[#allocation2 + $0xa74] ss:$44 sps:$4 sm:$0xff]  }
 0x65e   :  { %14525 = vmatpush1.bf16.msra.mxu0 %v25304_v49  ;;  %22361 = vmatpush3.bf16.msra.mxu1 %v25363_v51  ;;  %v25407_v49 = vld [vmem:[#allocation2 + $0x1578] ss:$44 sps:$4 sm:$0xff]   ;;  %v25349_v51 = vld [vmem:[#allocation2 + $0xa70] ss:$44 sps:$4 sm:$0xff]  }
 0x65f   :  { %14526 = vmatprep.subr.bf16.mxu0 %v25311_v50  ;;  %22362 = vmatprep.subr.bf16.mxu1 %v25367_v53  ;;  %v25408_v50 = vld [vmem:[#allocation2 + $0x12b8] ss:$44 sps:$4 sm:$0xff]  }
 0x660   :  { %v25356_v53 = vld [vmem:[#allocation2 + $0xacc] ss:$44 sps:$4 sm:$0xff]  }
 0x662   :  { %14527 = vmatpush1.bf16.msra.mxu0 %v25309_v54  ;;  %22363 = vmatpush3.bf16.msra.mxu1 %v25368_v55  ;;  %v25412_v54 = vld [vmem:[#allocation2 + $0x15d0] ss:$44 sps:$4 sm:$0xff]   ;;  %v25354_v55 = vld [vmem:[#allocation2 + $0xac8] ss:$44 sps:$4 sm:$0xff]  }
 0x663   :  { %14528 = vmatprep.subr.bf16.mxu0 %v25316_v56  ;;  %22364 = vmatprep.subr.bf16.mxu1 %v25372_v57  ;;  %v25413_v56 = vld [vmem:[#allocation2 + $0x1310] ss:$44 sps:$4 sm:$0xff]  }
 0x664   :  { %v25361_v57 = vld [vmem:[#allocation2 + $0xb24] ss:$44 sps:$4 sm:$0xff]  }
 0x666   :  { %14529 = vmatpush1.bf16.msra.mxu0 %v25314_v59  ;;  %22365 = vmatpush3.bf16.msra.mxu1 %v25373_v0  ;;  %v25417_v59 = vld [vmem:[#allocation2 + $0x18e8] ss:$44 sps:$4 sm:$0xff]   ;;  %v25359_v0 = vld [vmem:[#allocation2 + $0xb20] ss:$44 sps:$4 sm:$0xff]  }
 0x667   :  { %14530 = vmatprep.subr.bf16.mxu0 %v25321_v1  ;;  %22372 = vmatprep.subr.bf16.mxu1 %v25377_v2  ;;  %v25418_v1 = vld [vmem:[#allocation2 + $0x1628] ss:$44 sps:$4 sm:$0xff]  }
 0x668   :  { %v25366_v2 = vld [vmem:[#allocation2 + $0xb7c] ss:$44 sps:$4 sm:$0xff]  }
 0x669   :  { %15102 = vmatmul.mubr.bf16.vlgmr.msra.gmra.mrb[16].mxu1 %v26995_v28 }
 0x66a   :  { %14531 = vmatpush1.bf16.msra.mxu0 %v25319_v5  ;;  %22373 = vmatpush3.bf16.msra.mxu1 %v25378_v6  ;;  %v25422_v5 = vld [vmem:[#allocation2 + $0x1940] ss:$44 sps:$4 sm:$0xff]   ;;  %v25364_v6 = vld [vmem:[#allocation2 + $0xb78] ss:$44 sps:$4 sm:$0xff]  }
 0x66b   :  { %14532 = vmatprep.subr.bf16.mxu0 %v25326_v7  ;;  %22374 = vmatprep.subr.bf16.mxu1 %v25382_v8  ;;  %v25423_v7 = vld [vmem:[#allocation2 + $0x1680] ss:$44 sps:$4 sm:$0xff]  }
 0x66c   :  { %15142 = vmatprep.mubr.bf16.mxu1 %v27003_v33  ;;  %v25371_v8 = vld [vmem:[#allocation2 + $0xbd4] ss:$44 sps:$4 sm:$0xff]  }
 0x66e   :  { %14533 = vmatpush1.bf16.msra.mxu0 %v25324_v10  ;;  %22375 = vmatpush3.bf16.msra.mxu1 %v25383_v11  ;;  %v25427_v10 = vld [vmem:[#allocation2 + $0x1998] ss:$44 sps:$4 sm:$0xff]   ;;  %v25369_v11 = vld [vmem:[#allocation2 + $0xbd0] ss:$44 sps:$4 sm:$0xff]  }
 0x66f   :  { %14534 = vmatprep.subr.bf16.mxu0 %v25331_v13  ;;  %22376 = vmatprep.subr.bf16.mxu1 %v25387_v14  ;;  %v25428_v13 = vld [vmem:[#allocation2 + $0x16d8] ss:$44 sps:$4 sm:$0xff]   ;;  %v25432_v14 = vld [vmem:[#allocation2 + $0x19f0] ss:$44 sps:$4 sm:$0xff]  }
 0x672   :  { %14535 = vmatpush1.bf16.msra.mxu0 %v25329_v15  ;;  %22377 = vmatpush3.bf16.msra.mxu1 %v25388_v16  ;;  %v25374_v15 = vld [vmem:[#allocation2 + $0xc28] ss:$44 sps:$4 sm:$0xff]   ;;  %v25433_v16 = vld [vmem:[#allocation2 + $0x1730] ss:$44 sps:$4 sm:$0xff]  }
 0x673   :  { %14536 = vmatprep.subr.bf16.mxu0 %v25336_v19  ;;  %22378 = vmatprep.subr.bf16.mxu1 %v25392_v20  ;;  %v25381_v19 = vld [vmem:[#allocation2 + $0xc84] ss:$44 sps:$4 sm:$0xff]   ;;  %v25437_v20 = vld [vmem:[#allocation2 + $0x1a48] ss:$44 sps:$4 sm:$0xff]  }
 0x676   :  { %14537 = vmatpush1.bf16.msra.mxu0 %v25334_v21  ;;  %22379 = vmatpush3.bf16.msra.mxu1 %v25393_v9  ;;  %v25438_v21 = vld [vmem:[#allocation2 + $0x1788] ss:$44 sps:$4 sm:$0xff]  }
 0x677   :  { %14538 = vmatprep.subr.bf16.mxu0 %v25341_v31  ;;  %22380 = vmatprep.subr.bf16.mxu1 %v25397_v34  ;;  %v25386_v9 = vld [vmem:[#allocation2 + $0xcdc] ss:$44 sps:$4 sm:$0xff]   ;;  %v25442_v31 = vld [vmem:[#allocation2 + $0x1aa0] ss:$44 sps:$4 sm:$0xff]   ;;  %v25384_v34 = vld [vmem:[#allocation2 + $0xcd8] ss:$44 sps:$4 sm:$0xff]  }
 0x67a   :  { %14539 = vmatpush1.bf16.msra.mxu0 %v25339_v40  ;;  %22381 = vmatpush3.bf16.msra.mxu1 %v25398_v43  ;;  %v25443_v40 = vld [vmem:[#allocation2 + $0x17e0] ss:$44 sps:$4 sm:$0xff]  }
 0x67b   :  { %14540 = vmatprep.subr.bf16.mxu0 %v25346_v44  ;;  %22382 = vmatprep.subr.bf16.mxu1 %v25402_v36  ;;  %v25391_v43 = vld [vmem:[#allocation2 + $0xd34] ss:$44 sps:$4 sm:$0xff]   ;;  %v25447_v44 = vld [vmem:[#allocation2 + $0x1af8] ss:$44 sps:$4 sm:$0xff]   ;;  %v25389_v36 = vld [vmem:[#allocation2 + $0xd30] ss:$44 sps:$4 sm:$0xff]  }
 0x67e   :  { %14541 = vmatpush1.bf16.msra.mxu0 %v25344_v45  ;;  %22383 = vmatpush3.bf16.msra.mxu1 %v25403_v46  ;;  %v25448_v45 = vld [vmem:[#allocation2 + $0x1838] ss:$44 sps:$4 sm:$0xff]  }
 0x67f   :  { %14542 = vmatprep.subr.bf16.mxu0 %v25351_v48  ;;  %22384 = vmatprep.subr.bf16.mxu1 %v25407_v49  ;;  %v25396_v46 = vld [vmem:[#allocation2 + $0xd8c] ss:$44 sps:$4 sm:$0xff]   ;;  %v25452_v48 = vld [vmem:[#allocation2 + $0x1b50] ss:$44 sps:$4 sm:$0xff]   ;;  %v25394_v49 = vld [vmem:[#allocation2 + $0xd88] ss:$44 sps:$4 sm:$0xff]  }
 0x682   :  { %14543 = vmatpush1.bf16.msra.mxu0 %v25349_v51  ;;  %22385 = vmatpush3.bf16.msra.mxu1 %v25408_v50  ;;  %v25453_v51 = vld [vmem:[#allocation2 + $0x1890] ss:$44 sps:$4 sm:$0xff]  }
 0x683   :  { %14544 = vmatprep.subr.bf16.mxu0 %v25356_v53  ;;  %22386 = vmatprep.subr.bf16.mxu1 %v25412_v54  ;;  %v25401_v50 = vld [vmem:[#allocation2 + $0xde4] ss:$44 sps:$4 sm:$0xff]   ;;  %v25457_v53 = vld [vmem:[#allocation2 + $0x1e68] ss:$44 sps:$4 sm:$0xff]   ;;  %v25399_v54 = vld [vmem:[#allocation2 + $0xde0] ss:$44 sps:$4 sm:$0xff]  }
 0x686   :  { %14545 = vmatpush1.bf16.msra.mxu0 %v25354_v55  ;;  %22387 = vmatpush3.bf16.msra.mxu1 %v25413_v56  ;;  %v25458_v55 = vld [vmem:[#allocation2 + $0x1ba8] ss:$44 sps:$4 sm:$0xff]  }
 0x687   :  { %14557 = vmatprep.subr.bf16.mxu0 %v25361_v57  ;;  %22394 = vmatprep.subr.bf16.mxu1 %v25417_v59  ;;  %v25406_v56 = vld [vmem:[#allocation2 + $0xe3c] ss:$44 sps:$4 sm:$0xff]   ;;  %v25462_v57 = vld [vmem:[#allocation2 + $0x1ec0] ss:$44 sps:$4 sm:$0xff]   ;;  %v25404_v59 = vld [vmem:[#allocation2 + $0xe38] ss:$44 sps:$4 sm:$0xff]  }
 0x689   :  { %14547 = vmatmul.mubr.bf16.vlgmr.msra.gmra.mrb[8].mxu0 %v26975_v17  ;;  %15143 = vmatmul.mubr.bf16.vlgmr.msra.gmra.mrb[20].mxu1 %v27015_v42  ;;  %v25376_v17 = vld [vmem:[#allocation2 + $0xc2c] ss:$44 sps:$4 sm:$0xff]  }
 0x68a   :  { %14558 = vmatpush1.bf16.msra.mxu0 %v25359_v0  ;;  %22395 = vmatpush3.bf16.msra.mxu1 %v25418_v1  ;;  %v25463_v0 = vld [vmem:[#allocation2 + $0x1c00] ss:$44 sps:$4 sm:$0xff]  }
 0x68b   :  { %14559 = vmatprep.subr.bf16.mxu0 %v25366_v2  ;;  %22396 = vmatprep.subr.bf16.mxu1 %v25422_v5  ;;  %v25411_v1 = vld [vmem:[#allocation2 + $0xe94] ss:$44 sps:$4 sm:$0xff]   ;;  %v25467_v2 = vld [vmem:[#allocation2 + $0x1f18] ss:$44 sps:$4 sm:$0xff]   ;;  %v25409_v5 = vld [vmem:[#allocation2 + $0xe90] ss:$44 sps:$4 sm:$0xff]  }
 0x68c   :  { %14589 = vmatprep.mubr.bf16.mxu0 %v26985_v24  ;;  %15183 = vmatprep.mubr.bf16.mxu1 %v27023_v47  ;;  %v25379_v24 = vld [vmem:[#allocation2 + $0xc80] ss:$44 sps:$4 sm:$0xff]  }
 0x68e   :  { %14560 = vmatpush1.bf16.msra.mxu0 %v25364_v6  ;;  %22397 = vmatpush3.bf16.msra.mxu1 %v25423_v7  ;;  %v25468_v6 = vld [vmem:[#allocation2 + $0x1c58] ss:$44 sps:$4 sm:$0xff]  }
 0x68f   :  { %14561 = vmatprep.subr.bf16.mxu0 %v25371_v8  ;;  %22398 = vmatprep.subr.bf16.mxu1 %v25427_v10  ;;  %v25416_v7 = vld [vmem:[#allocation2 + $0xeec] ss:$44 sps:$4 sm:$0xff]   ;;  %v25472_v8 = vld [vmem:[#allocation2 + $0x1f70] ss:$44 sps:$4 sm:$0xff]   ;;  %v25414_v10 = vld [vmem:[#allocation2 + $0xee8] ss:$44 sps:$4 sm:$0xff]  }
 0x692   :  { %14562 = vmatpush1.bf16.msra.mxu0 %v25369_v11  ;;  %22399 = vmatpush3.bf16.msra.mxu1 %v25428_v13  ;;  %v25473_v11 = vld [vmem:[#allocation2 + $0x1cb0] ss:$44 sps:$4 sm:$0xff]  }
 0x693   :  { %14563 = vmatprep.subr.bf16.mxu0 %v25376_v17  ;;  %22400 = vmatprep.subr.bf16.mxu1 %v25432_v14  ;;  %v25421_v13 = vld [vmem:[#allocation2 + $0xf44] ss:$44 sps:$4 sm:$0xff]   ;;  %v25477_v17 = vld [vmem:[#allocation2 + $0x1fc8] ss:$44 sps:$4 sm:$0xff]   ;;  %v25419_v14 = vld [vmem:[#allocation2 + $0xf40] ss:$44 sps:$4 sm:$0xff]  }
 0x696   :  { %14564 = vmatpush1.bf16.msra.mxu0 %v25374_v15  ;;  %22401 = vmatpush3.bf16.msra.mxu1 %v25433_v16  ;;  %v25478_v15 = vld [vmem:[#allocation2 + $0x1d08] ss:$44 sps:$4 sm:$0xff]  }
 0x697   :  { %14565 = vmatprep.subr.bf16.mxu0 %v25381_v19  ;;  %22402 = vmatprep.subr.bf16.mxu1 %v25437_v20  ;;  %v25426_v16 = vld [vmem:[#allocation2 + $0xf9c] ss:$44 sps:$4 sm:$0xff]   ;;  %v25482_v19 = vld [vmem:[#allocation2 + $0x2020] ss:$44 sps:$4 sm:$0xff]   ;;  %v25424_v20 = vld [vmem:[#allocation2 + $0xf98] ss:$44 sps:$4 sm:$0xff]  }
 0x69a   :  { %14566 = vmatpush1.bf16.msra.mxu0 %v25379_v24  ;;  %22403 = vmatpush3.bf16.msra.mxu1 %v25438_v21  ;;  %v25483_v24 = vld [vmem:[#allocation2 + $0x1d60] ss:$44 sps:$4 sm:$0xff]  }
 0x69b   :  { %14567 = vmatprep.subr.bf16.mxu0 %v25386_v9  ;;  %22404 = vmatprep.subr.bf16.mxu1 %v25442_v31  ;;  %v25431_v21 = vld [vmem:[#allocation2 + $0xff4] ss:$44 sps:$4 sm:$0xff]   ;;  %v25487_v9 = vld [vmem:[#allocation2 + $0x2078] ss:$44 sps:$4 sm:$0xff]   ;;  %v25429_v31 = vld [vmem:[#allocation2 + $0xff0] ss:$44 sps:$4 sm:$0xff]  }
 0x69e   :  { %14568 = vmatpush1.bf16.msra.mxu0 %v25384_v34  ;;  %22405 = vmatpush3.bf16.msra.mxu1 %v25443_v40  ;;  %v25488_v34 = vld [vmem:[#allocation2 + $0x1db8] ss:$44 sps:$4 sm:$0xff]  }
 0x69f   :  { %14569 = vmatprep.subr.bf16.mxu0 %v25391_v43  ;;  %22406 = vmatprep.subr.bf16.mxu1 %v25447_v44  ;;  %v25436_v40 = vld [vmem:[#allocation2 + $0x104c] ss:$44 sps:$4 sm:$0xff]   ;;  %v25492_v43 = vld [vmem:[#allocation2 + $0x20d0] ss:$44 sps:$4 sm:$0xff]   ;;  %v25434_v44 = vld [vmem:[#allocation2 + $0x1048] ss:$44 sps:$4 sm:$0xff]  }
 0x6a2   :  { %14570 = vmatpush1.bf16.msra.mxu0 %v25389_v36  ;;  %22407 = vmatpush3.bf16.msra.mxu1 %v25448_v45  ;;  %v25493_v36 = vld [vmem:[#allocation2 + $0x1e10] ss:$44 sps:$4 sm:$0xff]  }
 0x6a3   :  { %14571 = vmatprep.subr.bf16.mxu0 %v25396_v46  ;;  %22408 = vmatprep.subr.bf16.mxu1 %v25452_v48  ;;  %v25441_v45 = vld [vmem:[#allocation2 + $0x10a4] ss:$44 sps:$4 sm:$0xff]   ;;  %v25497_v46 = vld [vmem:[#allocation2 + $0x23e8] ss:$44 sps:$4 sm:$0xff]   ;;  %v25439_v48 = vld [vmem:[#allocation2 + $0x10a0] ss:$44 sps:$4 sm:$0xff]  }
 0x6a6   :  { %14572 = vmatpush1.bf16.msra.mxu0 %v25394_v49  ;;  %22409 = vmatpush3.bf16.msra.mxu1 %v25453_v51  ;;  %v25498_v49 = vld [vmem:[#allocation2 + $0x2128] ss:$44 sps:$4 sm:$0xff]  }
 0x6a7   :  { %14573 = vmatprep.subr.bf16.mxu0 %v25401_v50  ;;  %22416 = vmatprep.subr.bf16.mxu1 %v25457_v53  ;;  %v25446_v51 = vld [vmem:[#allocation2 + $0x10fc] ss:$44 sps:$4 sm:$0xff]   ;;  %v25502_v50 = vld [vmem:[#allocation2 + $0x2440] ss:$44 sps:$4 sm:$0xff]   ;;  %v25444_v53 = vld [vmem:[#allocation2 + $0x10f8] ss:$44 sps:$4 sm:$0xff]  }
 0x6a9   :  { %15184 = vmatmul.mubr.bf16.vlgmr.msra.gmra.mrb[24].mxu1 %v27041_v58 }
 0x6aa   :  { %14574 = vmatpush1.bf16.msra.mxu0 %v25399_v54  ;;  %22417 = vmatpush3.bf16.msra.mxu1 %v25458_v55  ;;  %v25503_v54 = vld [vmem:[#allocation2 + $0x2180] ss:$44 sps:$4 sm:$0xff]  }
 0x6ab   :  { %14575 = vmatprep.subr.bf16.mxu0 %v25406_v56  ;;  %22418 = vmatprep.subr.bf16.mxu1 %v25462_v57  ;;  %v25451_v55 = vld [vmem:[#allocation2 + $0x1154] ss:$44 sps:$4 sm:$0xff]   ;;  %v25507_v56 = vld [vmem:[#allocation2 + $0x2498] ss:$44 sps:$4 sm:$0xff]   ;;  %v25449_v57 = vld [vmem:[#allocation2 + $0x1150] ss:$44 sps:$4 sm:$0xff]  }
 0x6ac   :  { %15224 = vmatprep.mubr.bf16.mxu1 %v27043_v63 }
 0x6ae   :  { %14576 = vmatpush1.bf16.msra.mxu0 %v25404_v59  ;;  %22419 = vmatpush3.bf16.msra.mxu1 %v25463_v0  ;;  %v25508_v59 = vld [vmem:[#allocation2 + $0x21d8] ss:$44 sps:$4 sm:$0xff]   ;;  %v25512_v0 = vld [vmem:[#allocation2 + $0x24f0] ss:$44 sps:$4 sm:$0xff]  }
 0x6af   :  { %14577 = vmatprep.subr.bf16.mxu0 %v25411_v1  ;;  %22420 = vmatprep.subr.bf16.mxu1 %v25467_v2  ;;  %v25454_v1 = vld [vmem:[#allocation2 + $0x11a8] ss:$44 sps:$4 sm:$0xff]   ;;  %v25513_v2 = vld [vmem:[#allocation2 + $0x2230] ss:$44 sps:$4 sm:$0xff]  }
 0x6b2   :  { %14578 = vmatpush1.bf16.msra.mxu0 %v25409_v5  ;;  %22421 = vmatpush3.bf16.msra.mxu1 %v25468_v6  ;;  %v25461_v5 = vld [vmem:[#allocation2 + $0x1204] ss:$44 sps:$4 sm:$0xff]   ;;  %v25517_v6 = vld [vmem:[#allocation2 + $0x2548] ss:$44 sps:$4 sm:$0xff]  }
 0x6b3   :  { %14579 = vmatprep.subr.bf16.mxu0 %v25416_v7  ;;  %22422 = vmatprep.subr.bf16.mxu1 %v25472_v8  ;;  %v25518_v7 = vld [vmem:[#allocation2 + $0x2288] ss:$44 sps:$4 sm:$0xff]  }
 0x6b4   :  { %v25466_v8 = vld [vmem:[#allocation2 + $0x125c] ss:$44 sps:$4 sm:$0xff]  }
 0x6b6   :  { %14580 = vmatpush1.bf16.msra.mxu0 %v25414_v10  ;;  %22423 = vmatpush3.bf16.msra.mxu1 %v25473_v11  ;;  %v25522_v10 = vld [vmem:[#allocation2 + $0x25a0] ss:$44 sps:$4 sm:$0xff]   ;;  %v25464_v11 = vld [vmem:[#allocation2 + $0x1258] ss:$44 sps:$4 sm:$0xff]  }
 0x6b7   :  { %14581 = vmatprep.subr.bf16.mxu0 %v25421_v13  ;;  %22424 = vmatprep.subr.bf16.mxu1 %v25477_v17  ;;  %v25523_v13 = vld [vmem:[#allocation2 + $0x22e0] ss:$44 sps:$4 sm:$0xff]  }
 0x6b8   :  { %v25471_v17 = vld [vmem:[#allocation2 + $0x12b4] ss:$44 sps:$4 sm:$0xff]  }
 0x6ba   :  { %14582 = vmatpush1.bf16.msra.mxu0 %v25419_v14  ;;  %22425 = vmatpush3.bf16.msra.mxu1 %v25478_v15  ;;  %v25527_v14 = vld [vmem:[#allocation2 + $0x25f8] ss:$44 sps:$4 sm:$0xff]  }
 0x6bb   :  { %14583 = vmatprep.subr.bf16.mxu0 %v25426_v16  ;;  %22426 = vmatprep.subr.bf16.mxu1 %v25482_v19 }
 0x6be   :  { %14584 = vmatpush1.bf16.msra.mxu0 %v25424_v20  ;;  %22427 = vmatpush3.bf16.msra.mxu1 %v25483_v24 }
 0x6bf   :  { %14585 = vmatprep.subr.bf16.mxu0 %v25431_v21  ;;  %22428 = vmatprep.subr.bf16.mxu1 %v25487_v9  ;;  %v25469_v9 = vld [vmem:[#allocation2 + $0x12b0] ss:$44 sps:$4 sm:$0xff]  }
 0x6c2   :  { %14586 = vmatpush1.bf16.msra.mxu0 %v25429_v31  ;;  %22429 = vmatpush3.bf16.msra.mxu1 %v25488_v34  ;;  %v25528_v31 = vld [vmem:[#allocation2 + $0x2338] ss:$44 sps:$4 sm:$0xff]  }
 0x6c3   :  { %14587 = vmatprep.subr.bf16.mxu0 %v25436_v40  ;;  %22430 = vmatprep.subr.bf16.mxu1 %v25492_v43  ;;  %v25476_v43 = vld [vmem:[#allocation2 + $0x130c] ss:$44 sps:$4 sm:$0xff]  }
 0x6c6   :  { %14588 = vmatpush1.bf16.msra.mxu0 %v25434_v44  ;;  %22431 = vmatpush3.bf16.msra.mxu1 %v25493_v36  ;;  %v25532_v44 = vld [vmem:[#allocation2 + $0x2650] ss:$44 sps:$4 sm:$0xff]   ;;  %v25474_v36 = vld [vmem:[#allocation2 + $0x1308] ss:$44 sps:$4 sm:$0xff]  }
 0x6c7   :  { %14600 = vmatprep.subr.bf16.mxu0 %v25441_v45  ;;  %22438 = vmatprep.subr.bf16.mxu1 %v25497_v46  ;;  %v25533_v45 = vld [vmem:[#allocation2 + $0x2390] ss:$44 sps:$4 sm:$0xff]  }
 0x6c8   :  { %v25481_v46 = vld [vmem:[#allocation2 + $0x1364] ss:$44 sps:$4 sm:$0xff]  }
 0x6c9   :  { %14590 = vmatmul.mubr.bf16.vlgmr.msra.gmra.mrb[8].mxu0 %v26995_v28  ;;  %15225 = vmatmul.mubr.bf16.vlgmr.msra.gmra.mrb[28].mxu1 %v27061_v12  ;;  %v25456_v28 = vld [vmem:[#allocation2 + $0x11ac] ss:$44 sps:$4 sm:$0xff]  }
 0x6ca   :  { %14601 = vmatpush1.bf16.msra.mxu0 %v25439_v48  ;;  %22439 = vmatpush3.bf16.msra.mxu1 %v25498_v49  ;;  %v25537_v48 = vld [vmem:[#allocation2 + $0x2968] ss:$44 sps:$4 sm:$0xff]   ;;  %v25479_v49 = vld [vmem:[#allocation2 + $0x1360] ss:$44 sps:$4 sm:$0xff]  }
 0x6cb   :  { %14602 = vmatprep.subr.bf16.mxu0 %v25446_v51  ;;  %22440 = vmatprep.subr.bf16.mxu1 %v25502_v50  ;;  %v25538_v51 = vld [vmem:[#allocation2 + $0x26a8] ss:$44 sps:$4 sm:$0xff]  }
 0x6cc   :  { %14632 = vmatprep.mubr.bf16.mxu0 %v27003_v33  ;;  %15265 = vmatprep.mubr.bf16.mxu1 %v27063_v18  ;;  %v25459_v33 = vld [vmem:[#allocation2 + $0x1200] ss:$44 sps:$4 sm:$0xff]   ;;  %v25486_v50 = vld [vmem:[#allocation2 + $0x13bc] ss:$44 sps:$4 sm:$0xff]  }
 0x6ce   :  { %14603 = vmatpush1.bf16.msra.mxu0 %v25444_v53  ;;  %22441 = vmatpush3.bf16.msra.mxu1 %v25503_v54  ;;  %v25542_v53 = vld [vmem:[#allocation2 + $0x29c0] ss:$44 sps:$4 sm:$0xff]   ;;  %v25484_v54 = vld [vmem:[#allocation2 + $0x13b8] ss:$44 sps:$4 sm:$0xff]  }
 0x6cf   :  { %14604 = vmatprep.subr.bf16.mxu0 %v25451_v55  ;;  %22442 = vmatprep.subr.bf16.mxu1 %v25507_v56  ;;  %v25543_v55 = vld [vmem:[#allocation2 + $0x2700] ss:$44 sps:$4 sm:$0xff]  }
 0x6d0   :  { %v25491_v56 = vld [vmem:[#allocation2 + $0x1414] ss:$44 sps:$4 sm:$0xff]  }
 0x6d2   :  { %14605 = vmatpush1.bf16.msra.mxu0 %v25449_v57  ;;  %22443 = vmatpush3.bf16.msra.mxu1 %v25508_v59  ;;  %v25547_v57 = vld [vmem:[#allocation2 + $0x2a18] ss:$44 sps:$4 sm:$0xff]   ;;  %v25489_v59 = vld [vmem:[#allocation2 + $0x1410] ss:$44 sps:$4 sm:$0xff]  }
 0x6d3   :  { %14606 = vmatprep.subr.bf16.mxu0 %v25456_v28  ;;  %22444 = vmatprep.subr.bf16.mxu1 %v25512_v0  ;;  %v25548_v28 = vld [vmem:[#allocation2 + $0x2758] ss:$44 sps:$4 sm:$0xff]  }
 0x6d4   :  { %v25496_v0 = vld [vmem:[#allocation2 + $0x146c] ss:$44 sps:$4 sm:$0xff]  }
 0x6d6   :  { %14607 = vmatpush1.bf16.msra.mxu0 %v25454_v1  ;;  %22445 = vmatpush3.bf16.msra.mxu1 %v25513_v2  ;;  %v25552_v1 = vld [vmem:[#allocation2 + $0x2a70] ss:$44 sps:$4 sm:$0xff]   ;;  %v25494_v2 = vld [vmem:[#allocation2 + $0x1468] ss:$44 sps:$4 sm:$0xff]  }
 0x6d7   :  { %14608 = vmatprep.subr.bf16.mxu0 %v25461_v5  ;;  %22446 = vmatprep.subr.bf16.mxu1 %v25517_v6  ;;  %v25553_v5 = vld [vmem:[#allocation2 + $0x27b0] ss:$44 sps:$4 sm:$0xff]  }
 0x6d8   :  { %v25501_v6 = vld [vmem:[#allocation2 + $0x14c4] ss:$44 sps:$4 sm:$0xff]  }
 0x6da   :  { %14609 = vmatpush1.bf16.msra.mxu0 %v25459_v33  ;;  %22447 = vmatpush3.bf16.msra.mxu1 %v25518_v7  ;;  %v25557_v33 = vld [vmem:[#allocation2 + $0x2ac8] ss:$44 sps:$4 sm:$0xff]   ;;  %v25499_v7 = vld [vmem:[#allocation2 + $0x14c0] ss:$44 sps:$4 sm:$0xff]  }
 0x6db   :  { %14610 = vmatprep.subr.bf16.mxu0 %v25466_v8  ;;  %22448 = vmatprep.subr.bf16.mxu1 %v25522_v10  ;;  %v25558_v8 = vld [vmem:[#allocation2 + $0x2808] ss:$44 sps:$4 sm:$0xff]  }
 0x6dc   :  { %v27267_v15 = vpop.f32.mrb[4].mxu0  ;;  %v27269_v16 = vpop.f32.mrb[4].mxu1  ;;  %v25506_v10 = vld [vmem:[#allocation2 + $0x151c] ss:$44 sps:$4 sm:$0xff]  }
 0x6dd   :  { %v27271_v19 = vpop.f32.mrb[5].mxu0  ;;  %v27273_v20 = vpop.f32.mrb[5].mxu1 }
 0x6de   :  { %v27275_v24 = vpop.f32.mrb[6].mxu0  ;;  %v27277_v21 = vpop.f32.mrb[6].mxu1  ;;  %14611 = vmatpush1.bf16.msra.mxu0 %v25464_v11  ;;  %22449 = vmatpush3.bf16.msra.mxu1 %v25523_v13  ;;  %v25562_v11 = vld [vmem:[#allocation2 + $0x2b20] ss:$44 sps:$4 sm:$0xff]   ;;  %v25504_v13 = vld [vmem:[#allocation2 + $0x1518] ss:$44 sps:$4 sm:$0xff]  }
 0x6df   :  { %v27279_v34 = vpop.f32.mrb[7].mxu0  ;;  %v27281_v40 = vpop.f32.mrb[7].mxu1  ;;  %14612 = vmatprep.subr.bf16.mxu0 %v25471_v17  ;;  %22450 = vmatprep.subr.bf16.mxu1 %v25527_v14  ;;  %v25563_v17 = vld [vmem:[#allocation2 + $0x2860] ss:$44 sps:$4 sm:$0xff]  }
 0x6e0   :  { %v25511_v14 = vld [vmem:[#allocation2 + $0x1574] ss:$44 sps:$4 sm:$0xff]  }
 0x6e2   :  { %14613 = vmatpush1.bf16.msra.mxu0 %v25469_v9  ;;  %22451 = vmatpush3.bf16.msra.mxu1 %v25528_v31  ;;  %v25567_v9 = vld [vmem:[#allocation2 + $0x2b78] ss:$44 sps:$4 sm:$0xff]   ;;  %v25509_v31 = vld [vmem:[#allocation2 + $0x1570] ss:$44 sps:$4 sm:$0xff]  }
 0x6e3   :  { %14614 = vmatprep.subr.bf16.mxu0 %v25476_v43  ;;  %22452 = vmatprep.subr.bf16.mxu1 %v25532_v44  ;;  %v25568_v43 = vld [vmem:[#allocation2 + $0x28b8] ss:$44 sps:$4 sm:$0xff]  }
 0x6e4   :  { %v25516_v44 = vld [vmem:[#allocation2 + $0x15cc] ss:$44 sps:$4 sm:$0xff]  }
 0x6e6   :  { %14615 = vmatpush1.bf16.msra.mxu0 %v25474_v36  ;;  %22453 = vmatpush3.bf16.msra.mxu1 %v25533_v45  ;;  %v25572_v36 = vld [vmem:[#allocation2 + $0x2bd0] ss:$44 sps:$4 sm:$0xff]   ;;  %v25514_v45 = vld [vmem:[#allocation2 + $0x15c8] ss:$44 sps:$4 sm:$0xff]  }
 0x6e7   :  { %14616 = vmatprep.subr.bf16.mxu0 %v25481_v46  ;;  %22460 = vmatprep.subr.bf16.mxu1 %v25537_v48  ;;  %v25573_v46 = vld [vmem:[#allocation2 + $0x2910] ss:$44 sps:$4 sm:$0xff]  }
 0x6e8   :  { %v25521_v48 = vld [vmem:[#allocation2 + $0x1624] ss:$44 sps:$4 sm:$0xff]  }
 0x6e9   :  { %15266 = vmatmul.mubr.bf16.vlgmr.msra.gmra.mrb[32].mxu1 %v27081_v35 }
 0x6ea   :  { %14617 = vmatpush1.bf16.msra.mxu0 %v25479_v49  ;;  %22461 = vmatpush3.bf16.msra.mxu1 %v25538_v51  ;;  %v25577_v49 = vld [vmem:[#allocation2 + $0x2ee8] ss:$44 sps:$4 sm:$0xff]   ;;  %v25519_v51 = vld [vmem:[#allocation2 + $0x1620] ss:$44 sps:$4 sm:$0xff]  }
 0x6eb   :  { %14618 = vmatprep.subr.bf16.mxu0 %v25486_v50  ;;  %22462 = vmatprep.subr.bf16.mxu1 %v25542_v53  ;;  %v25578_v50 = vld [vmem:[#allocation2 + $0x2c28] ss:$44 sps:$4 sm:$0xff]  }
 0x6ec   :  { %15306 = vmatprep.mubr.bf16.mxu1 %v27083_v41  ;;  %v25526_v53 = vld [vmem:[#allocation2 + $0x167c] ss:$44 sps:$4 sm:$0xff]  }
 0x6ee   :  { %14619 = vmatpush1.bf16.msra.mxu0 %v25484_v54  ;;  %22463 = vmatpush3.bf16.msra.mxu1 %v25543_v55  ;;  %v25582_v54 = vld [vmem:[#allocation2 + $0x2f40] ss:$44 sps:$4 sm:$0xff]   ;;  %v25524_v55 = vld [vmem:[#allocation2 + $0x1678] ss:$44 sps:$4 sm:$0xff]  }
 0x6ef   :  { %14620 = vmatprep.subr.bf16.mxu0 %v25491_v56  ;;  %22464 = vmatprep.subr.bf16.mxu1 %v25547_v57  ;;  %v25583_v56 = vld [vmem:[#allocation2 + $0x2c80] ss:$44 sps:$4 sm:$0xff]  }
 0x6f0   :  { %v25531_v57 = vld [vmem:[#allocation2 + $0x16d4] ss:$44 sps:$4 sm:$0xff]  }
 0x6f2   :  { %14621 = vmatpush1.bf16.msra.mxu0 %v25489_v59  ;;  %22465 = vmatpush3.bf16.msra.mxu1 %v25548_v28  ;;  %v25587_v59 = vld [vmem:[#allocation2 + $0x2f98] ss:$44 sps:$4 sm:$0xff]   ;;  %v25529_v28 = vld [vmem:[#allocation2 + $0x16d0] ss:$44 sps:$4 sm:$0xff]  }
 0x6f3   :  { %14622 = vmatprep.subr.bf16.mxu0 %v25496_v0  ;;  %22466 = vmatprep.subr.bf16.mxu1 %v25552_v1  ;;  %v25588_v0 = vld [vmem:[#allocation2 + $0x2cd8] ss:$44 sps:$4 sm:$0xff]   ;;  %v25592_v1 = vld [vmem:[#allocation2 + $0x2ff0] ss:$44 sps:$4 sm:$0xff]  }
 0x6f6   :  { %14623 = vmatpush1.bf16.msra.mxu0 %v25494_v2  ;;  %22467 = vmatpush3.bf16.msra.mxu1 %v25553_v5  ;;  %v25534_v2 = vld [vmem:[#allocation2 + $0x1728] ss:$44 sps:$4 sm:$0xff]   ;;  %v25593_v5 = vld [vmem:[#allocation2 + $0x2d30] ss:$44 sps:$4 sm:$0xff]  }
 0x6f7   :  { %14624 = vmatprep.subr.bf16.mxu0 %v25501_v6  ;;  %22468 = vmatprep.subr.bf16.mxu1 %v25557_v33  ;;  %v25541_v6 = vld [vmem:[#allocation2 + $0x1784] ss:$44 sps:$4 sm:$0xff]   ;;  %v25597_v33 = vld [vmem:[#allocation2 + $0x3048] ss:$44 sps:$4 sm:$0xff]  }
 0x6fa   :  { %14625 = vmatpush1.bf16.msra.mxu0 %v25499_v7  ;;  %22469 = vmatpush3.bf16.msra.mxu1 %v25558_v8  ;;  %v25598_v7 = vld [vmem:[#allocation2 + $0x2d88] ss:$44 sps:$4 sm:$0xff]  }
 0x6fb   :  { %14626 = vmatprep.subr.bf16.mxu0 %v25506_v10  ;;  %22470 = vmatprep.subr.bf16.mxu1 %v25562_v11  ;;  %v25546_v8 = vld [vmem:[#allocation2 + $0x17dc] ss:$44 sps:$4 sm:$0xff]   ;;  %v25602_v10 = vld [vmem:[#allocation2 + $0x30a0] ss:$44 sps:$4 sm:$0xff]   ;;  %v25544_v11 = vld [vmem:[#allocation2 + $0x17d8] ss:$44 sps:$4 sm:$0xff]  }
 0x6fe   :  { %14627 = vmatpush1.bf16.msra.mxu0 %v25504_v13  ;;  %22471 = vmatpush3.bf16.msra.mxu1 %v25563_v17  ;;  %v25603_v13 = vld [vmem:[#allocation2 + $0x2de0] ss:$44 sps:$4 sm:$0xff]  }
 0x6ff   :  { %14628 = vmatprep.subr.bf16.mxu0 %v25511_v14  ;;  %22472 = vmatprep.subr.bf16.mxu1 %v25567_v9  ;;  %v25551_v17 = vld [vmem:[#allocation2 + $0x1834] ss:$44 sps:$4 sm:$0xff]   ;;  %v25607_v14 = vld [vmem:[#allocation2 + $0x30f8] ss:$44 sps:$4 sm:$0xff]   ;;  %v25549_v9 = vld [vmem:[#allocation2 + $0x1830] ss:$44 sps:$4 sm:$0xff]  }
 0x702   :  { %14629 = vmatpush1.bf16.msra.mxu0 %v25509_v31  ;;  %22473 = vmatpush3.bf16.msra.mxu1 %v25568_v43  ;;  %v25608_v31 = vld [vmem:[#allocation2 + $0x2e38] ss:$44 sps:$4 sm:$0xff]  }
 0x703   :  { %14630 = vmatprep.subr.bf16.mxu0 %v25516_v44  ;;  %22474 = vmatprep.subr.bf16.mxu1 %v25572_v36  ;;  %v25556_v43 = vld [vmem:[#allocation2 + $0x188c] ss:$44 sps:$4 sm:$0xff]   ;;  %v25612_v44 = vld [vmem:[#allocation2 + $0x3150] ss:$44 sps:$4 sm:$0xff]   ;;  %v25554_v36 = vld [vmem:[#allocation2 + $0x1888] ss:$44 sps:$4 sm:$0xff]  }
 0x706   :  { %14631 = vmatpush1.bf16.msra.mxu0 %v25514_v45  ;;  %22475 = vmatpush3.bf16.msra.mxu1 %v25573_v46  ;;  %v25613_v45 = vld [vmem:[#allocation2 + $0x2e90] ss:$44 sps:$4 sm:$0xff]  }
 0x707   :  { %14643 = vmatprep.subr.bf16.mxu0 %v25521_v48  ;;  %22482 = vmatprep.subr.bf16.mxu1 %v25577_v49  ;;  %v25561_v46 = vld [vmem:[#allocation2 + $0x18e4] ss:$44 sps:$4 sm:$0xff]   ;;  %v25617_v48 = vld [vmem:[#allocation2 + $0x3468] ss:$44 sps:$4 sm:$0xff]   ;;  %v25559_v49 = vld [vmem:[#allocation2 + $0x18e0] ss:$44 sps:$4 sm:$0xff]  }
 0x709   :  { %14633 = vmatmul.mubr.bf16.vlgmr.msra.gmra.mrb[8].mxu0 %v27015_v42  ;;  %15307 = vmatmul.mubr.bf16.vlgmr.msra.gmra.mrb[36].mxu1 %v27101_v61  ;;  %v25536_v42 = vld [vmem:[#allocation2 + $0x172c] ss:$44 sps:$4 sm:$0xff]  }
 0x70a   :  { %14644 = vmatpush1.bf16.msra.mxu0 %v25519_v51  ;;  %22483 = vmatpush3.bf16.msra.mxu1 %v25578_v50  ;;  %v25618_v51 = vld [vmem:[#allocation2 + $0x31a8] ss:$44 sps:$4 sm:$0xff]  }
 0x70b   :  { %14645 = vmatprep.subr.bf16.mxu0 %v25526_v53  ;;  %22484 = vmatprep.subr.bf16.mxu1 %v25582_v54  ;;  %v25566_v50 = vld [vmem:[#allocation2 + $0x193c] ss:$44 sps:$4 sm:$0xff]   ;;  %v25622_v53 = vld [vmem:[#allocation2 + $0x34c0] ss:$44 sps:$4 sm:$0xff]   ;;  %v25564_v54 = vld [vmem:[#allocation2 + $0x1938] ss:$44 sps:$4 sm:$0xff]  }
 0x70c   :  { %14675 = vmatprep.mubr.bf16.mxu0 %v27023_v47  ;;  %15347 = vmatprep.mubr.bf16.mxu1 %v27103_v3  ;;  %v25539_v47 = vld [vmem:[#allocation2 + $0x1780] ss:$44 sps:$4 sm:$0xff]  }
 0x70e   :  { %14646 = vmatpush1.bf16.msra.mxu0 %v25524_v55  ;;  %22485 = vmatpush3.bf16.msra.mxu1 %v25583_v56  ;;  %v25623_v55 = vld [vmem:[#allocation2 + $0x3200] ss:$44 sps:$4 sm:$0xff]  }
 0x70f   :  { %14647 = vmatprep.subr.bf16.mxu0 %v25531_v57  ;;  %22486 = vmatprep.subr.bf16.mxu1 %v25587_v59  ;;  %v25571_v56 = vld [vmem:[#allocation2 + $0x1994] ss:$44 sps:$4 sm:$0xff]   ;;  %v25627_v57 = vld [vmem:[#allocation2 + $0x3518] ss:$44 sps:$4 sm:$0xff]   ;;  %v25569_v59 = vld [vmem:[#allocation2 + $0x1990] ss:$44 sps:$4 sm:$0xff]  }
 0x712   :  { %14648 = vmatpush1.bf16.msra.mxu0 %v25529_v28  ;;  %22487 = vmatpush3.bf16.msra.mxu1 %v25588_v0  ;;  %v25628_v28 = vld [vmem:[#allocation2 + $0x3258] ss:$44 sps:$4 sm:$0xff]  }
 0x713   :  { %14649 = vmatprep.subr.bf16.mxu0 %v25536_v42  ;;  %22488 = vmatprep.subr.bf16.mxu1 %v25592_v1  ;;  %v25576_v0 = vld [vmem:[#allocation2 + $0x19ec] ss:$44 sps:$4 sm:$0xff]   ;;  %v25632_v42 = vld [vmem:[#allocation2 + $0x3570] ss:$44 sps:$4 sm:$0xff]   ;;  %v25574_v1 = vld [vmem:[#allocation2 + $0x19e8] ss:$44 sps:$4 sm:$0xff]  }
 0x716   :  { %14650 = vmatpush1.bf16.msra.mxu0 %v25534_v2  ;;  %22489 = vmatpush3.bf16.msra.mxu1 %v25593_v5  ;;  %v25633_v2 = vld [vmem:[#allocation2 + $0x32b0] ss:$44 sps:$4 sm:$0xff]  }
 0x717   :  { %14651 = vmatprep.subr.bf16.mxu0 %v25541_v6  ;;  %22490 = vmatprep.subr.bf16.mxu1 %v25597_v33  ;;  %v25581_v5 = vld [vmem:[#allocation2 + $0x1a44] ss:$44 sps:$4 sm:$0xff]   ;;  %v25637_v6 = vld [vmem:[#allocation2 + $0x35c8] ss:$44 sps:$4 sm:$0xff]   ;;  %v25579_v33 = vld [vmem:[#allocation2 + $0x1a40] ss:$44 sps:$4 sm:$0xff]  }
 0x71a   :  { %14652 = vmatpush1.bf16.msra.mxu0 %v25539_v47  ;;  %22491 = vmatpush3.bf16.msra.mxu1 %v25598_v7  ;;  %v25638_v47 = vld [vmem:[#allocation2 + $0x3308] ss:$44 sps:$4 sm:$0xff]  }
 0x71b   :  { %14653 = vmatprep.subr.bf16.mxu0 %v25546_v8  ;;  %22492 = vmatprep.subr.bf16.mxu1 %v25602_v10  ;;  %v25586_v7 = vld [vmem:[#allocation2 + $0x1a9c] ss:$44 sps:$4 sm:$0xff]   ;;  %v25642_v8 = vld [vmem:[#allocation2 + $0x3620] ss:$44 sps:$4 sm:$0xff]   ;;  %v25584_v10 = vld [vmem:[#allocation2 + $0x1a98] ss:$44 sps:$4 sm:$0xff]  }
 0x71e   :  { %14654 = vmatpush1.bf16.msra.mxu0 %v25544_v11  ;;  %22493 = vmatpush3.bf16.msra.mxu1 %v25603_v13  ;;  %v25643_v11 = vld [vmem:[#allocation2 + $0x3360] ss:$44 sps:$4 sm:$0xff]  }
 0x71f   :  { %14655 = vmatprep.subr.bf16.mxu0 %v25551_v17  ;;  %22494 = vmatprep.subr.bf16.mxu1 %v25607_v14  ;;  %v25591_v13 = vld [vmem:[#allocation2 + $0x1af4] ss:$44 sps:$4 sm:$0xff]   ;;  %v25647_v17 = vld [vmem:[#allocation2 + $0x3678] ss:$44 sps:$4 sm:$0xff]   ;;  %v25589_v14 = vld [vmem:[#allocation2 + $0x1af0] ss:$44 sps:$4 sm:$0xff]  }
 0x722   :  { %14656 = vmatpush1.bf16.msra.mxu0 %v25549_v9  ;;  %22495 = vmatpush3.bf16.msra.mxu1 %v25608_v31  ;;  %v25648_v9 = vld [vmem:[#allocation2 + $0x33b8] ss:$44 sps:$4 sm:$0xff]  }
 0x723   :  { %14657 = vmatprep.subr.bf16.mxu0 %v25556_v43  ;;  %22496 = vmatprep.subr.bf16.mxu1 %v25612_v44  ;;  %v25596_v31 = vld [vmem:[#allocation2 + $0x1b4c] ss:$44 sps:$4 sm:$0xff]   ;;  %v25652_v43 = vld [vmem:[#allocation2 + $0x36d0] ss:$44 sps:$4 sm:$0xff]   ;;  %v25594_v44 = vld [vmem:[#allocation2 + $0x1b48] ss:$44 sps:$4 sm:$0xff]  }
 0x726   :  { %14658 = vmatpush1.bf16.msra.mxu0 %v25554_v36  ;;  %22497 = vmatpush3.bf16.msra.mxu1 %v25613_v45  ;;  %v25653_v36 = vld [vmem:[#allocation2 + $0x3410] ss:$44 sps:$4 sm:$0xff]  }
 0x727   :  { %14659 = vmatprep.subr.bf16.mxu0 %v25561_v46  ;;  %22504 = vmatprep.subr.bf16.mxu1 %v25617_v48  ;;  %v25601_v45 = vld [vmem:[#allocation2 + $0x1ba4] ss:$44 sps:$4 sm:$0xff]   ;;  %v25657_v46 = vld [vmem:[#allocation2 + $0x39e8] ss:$44 sps:$4 sm:$0xff]   ;;  %v25599_v48 = vld [vmem:[#allocation2 + $0x1ba0] ss:$44 sps:$4 sm:$0xff]  }
 0x729   :  { %15348 = vmatmul.mubr.bf16.vlgmr.msra.gmra.mrb[40].mxu1 %v27115_v23 }
 0x72a   :  { %14660 = vmatpush1.bf16.msra.mxu0 %v25559_v49  ;;  %22505 = vmatpush3.bf16.msra.mxu1 %v25618_v51  ;;  %v25658_v49 = vld [vmem:[#allocation2 + $0x3728] ss:$44 sps:$4 sm:$0xff]  }
 0x72b   :  { %14661 = vmatprep.subr.bf16.mxu0 %v25566_v50  ;;  %22506 = vmatprep.subr.bf16.mxu1 %v25622_v53  ;;  %v25606_v51 = vld [vmem:[#allocation2 + $0x1bfc] ss:$44 sps:$4 sm:$0xff]   ;;  %v25662_v50 = vld [vmem:[#allocation2 + $0x3a40] ss:$44 sps:$4 sm:$0xff]   ;;  %v25604_v53 = vld [vmem:[#allocation2 + $0x1bf8] ss:$44 sps:$4 sm:$0xff]  }
 0x72c   :  { %15388 = vmatprep.mubr.bf16.mxu1 %v27123_v32 }
 0x72e   :  { %14662 = vmatpush1.bf16.msra.mxu0 %v25564_v54  ;;  %22507 = vmatpush3.bf16.msra.mxu1 %v25623_v55  ;;  %v25663_v54 = vld [vmem:[#allocation2 + $0x3780] ss:$44 sps:$4 sm:$0xff]  }
 0x72f   :  { %14663 = vmatprep.subr.bf16.mxu0 %v25571_v56  ;;  %22508 = vmatprep.subr.bf16.mxu1 %v25627_v57  ;;  %v25611_v55 = vld [vmem:[#allocation2 + $0x1c54] ss:$44 sps:$4 sm:$0xff]   ;;  %v25667_v56 = vld [vmem:[#allocation2 + $0x3a98] ss:$44 sps:$4 sm:$0xff]   ;;  %v25609_v57 = vld [vmem:[#allocation2 + $0x1c50] ss:$44 sps:$4 sm:$0xff]  }
 0x732   :  { %14664 = vmatpush1.bf16.msra.mxu0 %v25569_v59  ;;  %22509 = vmatpush3.bf16.msra.mxu1 %v25628_v28  ;;  %v25668_v59 = vld [vmem:[#allocation2 + $0x37d8] ss:$44 sps:$4 sm:$0xff]   ;;  %v25672_v28 = vld [vmem:[#allocation2 + $0x3af0] ss:$44 sps:$4 sm:$0xff]  }
 0x733   :  { %14665 = vmatprep.subr.bf16.mxu0 %v25576_v0  ;;  %22510 = vmatprep.subr.bf16.mxu1 %v25632_v42  ;;  %v25614_v0 = vld [vmem:[#allocation2 + $0x1ca8] ss:$44 sps:$4 sm:$0xff]   ;;  %v25673_v42 = vld [vmem:[#allocation2 + $0x3830] ss:$44 sps:$4 sm:$0xff]  }
 0x736   :  { %14666 = vmatpush1.bf16.msra.mxu0 %v25574_v1  ;;  %22511 = vmatpush3.bf16.msra.mxu1 %v25633_v2  ;;  %v25621_v1 = vld [vmem:[#allocation2 + $0x1d04] ss:$44 sps:$4 sm:$0xff]   ;;  %v25677_v2 = vld [vmem:[#allocation2 + $0x3b48] ss:$44 sps:$4 sm:$0xff]  }
 0x737   :  { %14667 = vmatprep.subr.bf16.mxu0 %v25581_v5  ;;  %22512 = vmatprep.subr.bf16.mxu1 %v25637_v6  ;;  %v25678_v5 = vld [vmem:[#allocation2 + $0x3888] ss:$44 sps:$4 sm:$0xff]  }
 0x738   :  { %v25626_v6 = vld [vmem:[#allocation2 + $0x1d5c] ss:$44 sps:$4 sm:$0xff]  }
 0x73a   :  { %14668 = vmatpush1.bf16.msra.mxu0 %v25579_v33  ;;  %22513 = vmatpush3.bf16.msra.mxu1 %v25638_v47  ;;  %v25682_v33 = vld [vmem:[#allocation2 + $0x3ba0] ss:$44 sps:$4 sm:$0xff]   ;;  %v25624_v47 = vld [vmem:[#allocation2 + $0x1d58] ss:$44 sps:$4 sm:$0xff]  }
 0x73b   :  { %14669 = vmatprep.subr.bf16.mxu0 %v25586_v7  ;;  %22514 = vmatprep.subr.bf16.mxu1 %v25642_v8  ;;  %v25683_v7 = vld [vmem:[#allocation2 + $0x38e0] ss:$44 sps:$4 sm:$0xff]  }
 0x73c   :  { %v25631_v8 = vld [vmem:[#allocation2 + $0x1db4] ss:$44 sps:$4 sm:$0xff]  }
 0x73e   :  { %14670 = vmatpush1.bf16.msra.mxu0 %v25584_v10  ;;  %22515 = vmatpush3.bf16.msra.mxu1 %v25643_v11  ;;  %v25687_v10 = vld [vmem:[#allocation2 + $0x3bf8] ss:$44 sps:$4 sm:$0xff]   ;;  %v25629_v11 = vld [vmem:[#allocation2 + $0x1db0] ss:$44 sps:$4 sm:$0xff]  }
 0x73f   :  { %14671 = vmatprep.subr.bf16.mxu0 %v25591_v13  ;;  %22516 = vmatprep.subr.bf16.mxu1 %v25647_v17  ;;  %v25688_v13 = vld [vmem:[#allocation2 + $0x3938] ss:$44 sps:$4 sm:$0xff]  }
 0x740   :  { %v25636_v17 = vld [vmem:[#allocation2 + $0x1e0c] ss:$44 sps:$4 sm:$0xff]  }
 0x742   :  { %14672 = vmatpush1.bf16.msra.mxu0 %v25589_v14  ;;  %22517 = vmatpush3.bf16.msra.mxu1 %v25648_v9  ;;  %v25692_v14 = vld [vmem:[#allocation2 + $0x3c50] ss:$44 sps:$4 sm:$0xff]   ;;  %v25634_v9 = vld [vmem:[#allocation2 + $0x1e08] ss:$44 sps:$4 sm:$0xff]  }
 0x743   :  { %14673 = vmatprep.subr.bf16.mxu0 %v25596_v31  ;;  %22518 = vmatprep.subr.bf16.mxu1 %v25652_v43  ;;  %v25693_v31 = vld [vmem:[#allocation2 + $0x3990] ss:$44 sps:$4 sm:$0xff]  }
 0x744   :  { %v25641_v43 = vld [vmem:[#allocation2 + $0x1e64] ss:$44 sps:$4 sm:$0xff]  }
 0x746   :  { %14674 = vmatpush1.bf16.msra.mxu0 %v25594_v44  ;;  %22519 = vmatpush3.bf16.msra.mxu1 %v25653_v36  ;;  %v25639_v44 = vld [vmem:[#allocation2 + $0x1e60] ss:$44 sps:$4 sm:$0xff]   ;;  %v25697_v36 = vld [vmem:[#allocation2 + $0x3ca8] ss:$44 sps:$4 sm:$0xff]  }
 0x747   :  { %14686 = vmatprep.subr.bf16.mxu0 %v25601_v45  ;;  %22526 = vmatprep.subr.bf16.mxu1 %v25657_v46  ;;  %v25646_v45 = vld [vmem:[#allocation2 + $0x1ebc] ss:$44 sps:$4 sm:$0xff]   ;;  %v26825_v46 = vmov 0.0  }
 0x749   :  { %14676 = vmatmul.mubr.bf16.vlgmr.msra.gmra.mrb[8].mxu0 %v27041_v58  ;;  %15389 = vmatmul.mubr.bf16.vlgmr.msra.gmra.mrb[44].mxu1 %v27141_v60  ;;  %v25616_v58 = vld [vmem:[#allocation2 + $0x1cac] ss:$44 sps:$4 sm:$0xff]  }
 0x74a   :  { %14687 = vmatpush1.bf16.msra.mxu0 %v25599_v48  ;;  %22527 = vmatpush3.bf16.msra.mxu1 %v25658_v49  ;;  %v25644_v48 = vld [vmem:[#allocation2 + $0x1eb8] ss:$44 sps:$4 sm:$0xff]   ;;  %v25701_v49 = vld [vmem:[#allocation2 + $0x3d00] ss:$44 sps:$4 sm:$0xff]  }
 0x74b   :  { %14688 = vmatprep.subr.bf16.mxu0 %v25606_v51  ;;  %22528 = vmatprep.subr.bf16.mxu1 %v25662_v50  ;;  %v25651_v51 = vld [vmem:[#allocation2 + $0x1f14] ss:$44 sps:$4 sm:$0xff]   ;;  %v25705_v50 = vld [vmem:[#allocation2 + $0x3d58] ss:$0 sps:$4 sm:$0x33]  }
 0x74c   :  { %14718 = vmatprep.mubr.bf16.mxu0 %v27043_v63  ;;  %15429 = vmatprep.mubr.bf16.mxu1 %v27143_v4  ;;  %v25619_v63 = vld [vmem:[#allocation2 + $0x1d00] ss:$44 sps:$4 sm:$0xff]  }
 0x74e   :  { %14689 = vmatpush1.bf16.msra.mxu0 %v25604_v53  ;;  %22529 = vmatpush3.bf16.msra.mxu1 %v25663_v54  ;;  %v25649_v53 = vld [vmem:[#allocation2 + $0x1f10] ss:$44 sps:$4 sm:$0xff]   ;;  %v25656_v54 = vld [vmem:[#allocation2 + $0x1f6c] ss:$44 sps:$4 sm:$0xff]  }
 0x74f   :  { %14690 = vmatprep.subr.bf16.mxu0 %v25611_v55  ;;  %22530 = vmatprep.subr.bf16.mxu1 %v25667_v56  ;;  %v12405_v55 = vsel %vm12373_vm0, %v25705_v50, 0  ;;  %v25654_v56 = vld [vmem:[#allocation2 + $0x1f68] ss:$44 sps:$4 sm:$0xff]  }
 0x750   :  { %v25721_v50 = vld [vmem:[#allocation2 + $0x24e8] ss:$44 sps:$4 sm:$0xff]  }
 0x752   :  { %14691 = vmatpush1.bf16.msra.mxu0 %v25609_v57  ;;  %22531 = vmatpush3.bf16.msra.mxu1 %v25668_v59  ;;  %v25661_v57 = vld [vmem:[#allocation2 + $0x1fc4] ss:$44 sps:$4 sm:$0xff]   ;;  %v25659_v59 = vld [vmem:[#allocation2 + $0x1fc0] ss:$44 sps:$4 sm:$0xff]  }
 0x753   :  { %14692 = vmatprep.subr.bf16.mxu0 %v25616_v58  ;;  %22532 = vmatprep.subr.bf16.mxu1 %v25672_v28  ;;  %v25666_v58 = vld [vmem:[#allocation2 + $0x201c] ss:$44 sps:$4 sm:$0xff]   ;;  %v25664_v28 = vld [vmem:[#allocation2 + $0x2018] ss:$44 sps:$4 sm:$0xff]  }
 0x756   :  { %14693 = vmatpush1.bf16.msra.mxu0 %v25614_v0  ;;  %22533 = vmatpush3.bf16.msra.mxu1 %v25673_v42  ;;  %v25671_v0 = vld [vmem:[#allocation2 + $0x2074] ss:$44 sps:$4 sm:$0xff]   ;;  %v25669_v42 = vld [vmem:[#allocation2 + $0x2070] ss:$44 sps:$4 sm:$0xff]  }
 0x757   :  { %14694 = vmatprep.subr.bf16.mxu0 %v25621_v1  ;;  %22534 = vmatprep.subr.bf16.mxu1 %v25677_v2  ;;  %v25676_v1 = vld [vmem:[#allocation2 + $0x20cc] ss:$44 sps:$4 sm:$0xff]   ;;  %v25674_v2 = vld [vmem:[#allocation2 + $0x20c8] ss:$44 sps:$4 sm:$0xff]  }
 0x75a   :  { %14695 = vmatpush1.bf16.msra.mxu0 %v25619_v63  ;;  %22535 = vmatpush3.bf16.msra.mxu1 %v25678_v5  ;;  %v25681_v63 = vld [vmem:[#allocation2 + $0x2124] ss:$44 sps:$4 sm:$0xff]   ;;  %v25679_v5 = vld [vmem:[#allocation2 + $0x2120] ss:$44 sps:$4 sm:$0xff]  }
 0x75b   :  { %14696 = vmatprep.subr.bf16.mxu0 %v25626_v6  ;;  %22536 = vmatprep.subr.bf16.mxu1 %v25682_v33  ;;  %v25686_v6 = vld [vmem:[#allocation2 + $0x217c] ss:$44 sps:$4 sm:$0xff]   ;;  %v25684_v33 = vld [vmem:[#allocation2 + $0x2178] ss:$44 sps:$4 sm:$0xff]  }
 0x75e   :  { %14697 = vmatpush1.bf16.msra.mxu0 %v25624_v47  ;;  %22537 = vmatpush3.bf16.msra.mxu1 %v25683_v7  ;;  %v25691_v47 = vld [vmem:[#allocation2 + $0x21d4] ss:$44 sps:$4 sm:$0xff]   ;;  %v25689_v7 = vld [vmem:[#allocation2 + $0x21d0] ss:$44 sps:$4 sm:$0xff]  }
 0x75f   :  { %14698 = vmatprep.subr.bf16.mxu0 %v25631_v8  ;;  %22538 = vmatprep.subr.bf16.mxu1 %v25687_v10  ;;  %v25696_v8 = vld [vmem:[#allocation2 + $0x222c] ss:$44 sps:$4 sm:$0xff]   ;;  %v25694_v10 = vld [vmem:[#allocation2 + $0x2228] ss:$44 sps:$4 sm:$0xff]  }
 0x762   :  { %14699 = vmatpush1.bf16.msra.mxu0 %v25629_v11  ;;  %22539 = vmatpush3.bf16.msra.mxu1 %v25688_v13  ;;  %v25700_v11 = vld [vmem:[#allocation2 + $0x2284] ss:$44 sps:$4 sm:$0xff]   ;;  %v25698_v13 = vld [vmem:[#allocation2 + $0x2280] ss:$44 sps:$4 sm:$0xff]  }
 0x763   :  { %14700 = vmatprep.subr.bf16.mxu0 %v25636_v17  ;;  %22540 = vmatprep.subr.bf16.mxu1 %v25692_v14  ;;  %v25704_v17 = vld [vmem:[#allocation2 + $0x22dc] ss:$44 sps:$4 sm:$0xff]   ;;  %v25708_v14 = vld [vmem:[#allocation2 + $0x2334] ss:$44 sps:$4 sm:$0xff]  }
 0x766   :  { %14701 = vmatpush1.bf16.msra.mxu0 %v25634_v9  ;;  %22541 = vmatpush3.bf16.msra.mxu1 %v25693_v31  ;;  %v25711_v9 = vld [vmem:[#allocation2 + $0x238c] ss:$44 sps:$4 sm:$0xff]   ;;  %v25709_v31 = vld [vmem:[#allocation2 + $0x2388] ss:$44 sps:$4 sm:$0xff]  }
 0x767   :  { %14702 = vmatprep.subr.bf16.mxu0 %v25641_v43  ;;  %22724 = vmatprep.subr.bf16.mxu1 %v26825_v46  ;;  %v25714_v43 = vld [vmem:[#allocation2 + $0x23e4] ss:$44 sps:$4 sm:$0xff]  }
 0x769   :  { %15430 = vmatmul.mubr.bf16.vlgmr.msra.gmra.mrb[48].mxu1 %v27155_v37 }
 0x76a   :  { %14703 = vmatpush1.bf16.msra.mxu0 %v25639_v44  ;;  %22725 = vmatpush3.bf16.msra.mxu1 %v25697_v36  ;;  %v25712_v44 = vld [vmem:[#allocation2 + $0x23e0] ss:$44 sps:$4 sm:$0xff]   ;;  %v25717_v36 = vld [vmem:[#allocation2 + $0x243c] ss:$44 sps:$4 sm:$0xff]  }
 0x76b   :  { %14704 = vmatprep.subr.bf16.mxu0 %v25646_v45  ;;  %22726 = vmatprep.subr.bf16.mxu1 %v26825_v46  ;;  %v25715_v45 = vld [vmem:[#allocation2 + $0x2438] ss:$44 sps:$4 sm:$0xff]  }
 0x76c   :  { %22730 = vmatprep.mubr.msk.bf16.mxu1 %vm26826_vm2, %v26825_v46 }
 0x76e   :  { %14705 = vmatpush1.bf16.msra.mxu0 %v25644_v48  ;;  %22727 = vmatpush3.bf16.msra.mxu1 %v25701_v49  ;;  %v25720_v48 = vld [vmem:[#allocation2 + $0x2494] ss:$44 sps:$4 sm:$0xff]   ;;  %v25718_v49 = vld [vmem:[#allocation2 + $0x2490] ss:$44 sps:$4 sm:$0xff]  }
 0x76f   :  { %14706 = vmatprep.subr.bf16.mxu0 %v25651_v51  ;;  %22728 = vmatprep.subr.bf16.mxu1 %v26825_v46  ;;  %v25723_v51 = vld [vmem:[#allocation2 + $0x24ec] ss:$44 sps:$4 sm:$0xff]  }
 0x772   :  { %14707 = vmatpush1.bf16.msra.mxu0 %v25649_v53  ;;  %22729 = vmatpush3.bf16.msra.mxu1 %v12405_v55  ;;  %v25726_v53 = vld [vmem:[#allocation2 + $0x2544] ss:$44 sps:$4 sm:$0xff]   ;;  %v25729_v55 = vld [vmem:[#allocation2 + $0x259c] ss:$44 sps:$4 sm:$0xff]  }
 0x773   :  { %14708 = vmatprep.subr.bf16.mxu0 %v25656_v54  ;;  %v25724_v54 = vld [vmem:[#allocation2 + $0x2540] ss:$44 sps:$4 sm:$0xff]  }
 0x775   :  { %22731 = vmatmul.mubr.msk.bf16.vlgmr.msra.gmra.mrb[52].mxu1 %vm12369_vm1, %v27171_v62 }
 0x776   :  { %14709 = vmatpush1.bf16.msra.mxu0 %v25654_v56  ;;  %v25727_v56 = vld [vmem:[#allocation2 + $0x2598] ss:$44 sps:$4 sm:$0xff]  }
 0x777   :  { %14710 = vmatprep.subr.bf16.mxu0 %v25661_v57  ;;  %v25732_v57 = vld [vmem:[#allocation2 + $0x25f4] ss:$44 sps:$4 sm:$0xff]  }
 0x77a   :  { %14711 = vmatpush1.bf16.msra.mxu0 %v25659_v59  ;;  %v2318_v59 = vlaneseq }
 0x77b   :  { %14712 = vmatprep.subr.bf16.mxu0 %v25666_v58  ;;  %v25730_v58 = vld [vmem:[#allocation2 + $0x25f0] ss:$44 sps:$4 sm:$0xff]  }
 0x77e   :  { %14713 = vmatpush1.bf16.msra.mxu0 %v25664_v28  ;;  %v25735_v28 = vld [vmem:[#allocation2 + $0x264c] ss:$44 sps:$4 sm:$0xff]  }
 0x77f   :  { %14714 = vmatprep.subr.bf16.mxu0 %v25671_v0  ;;  %v27307_v0 = vshrl.u32 %v2318_v59, 7 }
 0x782   :  { %14715 = vmatpush1.bf16.msra.mxu0 %v25669_v42  ;;  %v25733_v42 = vld [vmem:[#allocation2 + $0x2648] ss:$44 sps:$4 sm:$0xff]  }
 0x783   :  { %14716 = vmatprep.subr.bf16.mxu0 %v25676_v1  ;;  %v25738_v1 = vld [vmem:[#allocation2 + $0x26a4] ss:$44 sps:$4 sm:$0xff]  }
 0x786   :  { %14717 = vmatpush1.bf16.msra.mxu0 %v25674_v2  ;;  %v27310_v2 = vsub.s32 2, %v27307_v0 }
 0x787   :  { %14729 = vmatprep.subr.bf16.mxu0 %v25681_v63  ;;  %v25736_v63 = vld [vmem:[#allocation2 + $0x26a0] ss:$44 sps:$4 sm:$0xff]  }
 0x789   :  { %14719 = vmatmul.mubr.bf16.vlgmr.msra.gmra.mrb[8].mxu0 %v27061_v12  ;;  %v25702_v12 = vld [vmem:[#allocation2 + $0x22d8] ss:$44 sps:$4 sm:$0xff]  }
 0x78a   :  { %14730 = vmatpush1.bf16.msra.mxu0 %v25679_v5  ;;  %14761 = vmatprep.mubr.bf16.mxu0 %v27063_v18  ;;  %v25706_v18 = vld [vmem:[#allocation2 + $0x2330] ss:$44 sps:$4 sm:$0xff]   ;;  %v22322_v5 = vpop.f32.mrb[8].mxu1 }
 0x78b   :  { %14731 = vmatprep.subr.bf16.mxu0 %v25686_v6  ;;  %v25741_v6 = vld [vmem:[#allocation2 + $0x26fc] ss:$44 sps:$4 sm:$0xff]  }
 0x78e   :  { %14732 = vmatpush1.bf16.msra.mxu0 %v25684_v33  ;;  %v27312_v33 = vld [vmem:[#allocation4 + $0x8] sm:$0x7] }
 0x78f   :  { %14733 = vmatprep.subr.bf16.mxu0 %v25691_v47  ;;  %v22323_v47 = vpop.f32.mrb[9].mxu1 }
 0x792   :  { %14734 = vmatpush1.bf16.msra.mxu0 %v25689_v7  ;;  %v2361_v7 = vrot.slane %v27312_v33, %v27310_v2 }
 0x793   :  { %14735 = vmatprep.subr.bf16.mxu0 %v25696_v8  ;;  %v22324_v8 = vadd.f32 %v22323_v47, %v22322_v5  ;;  %v25748_v47 = vld [vmem:[#allocation2 + $0x2800] ss:$44 sps:$4 sm:$0xff]  }
 0x796   :  { %14736 = vmatpush1.bf16.msra.mxu0 %v25694_v10  ;;  %v22325_v10 = vpop.f32.mrb[10].mxu1 }
 0x797   :  { %14737 = vmatprep.subr.bf16.mxu0 %v25700_v11  ;;  %v25739_v11 = vld [vmem:[#allocation2 + $0x26f8] ss:$44 sps:$4 sm:$0xff]  }
 0x79a   :  { %14738 = vmatpush1.bf16.msra.mxu0 %v25698_v13  ;;  %v22326_v13 = vpop.f32.mrb[11].mxu1 }
 0x79b   :  { %14739 = vmatprep.subr.bf16.mxu0 %v25704_v17  ;;  %v25744_v17 = vld [vmem:[#allocation2 + $0x2754] ss:$44 sps:$4 sm:$0xff]  }
 0x79e   :  { %14740 = vmatpush1.bf16.msra.mxu0 %v25702_v12  ;;  %v15022_v12 = vadd.f32 %v22324_v8, %v2361_v7  ;;  %v25753_v8 = vld [vmem:[#allocation2 + $0x285c] ss:$44 sps:$4 sm:$0xff]  }
 0x79f   :  { %14741 = vmatprep.subr.bf16.mxu0 %v25708_v14  ;;  %v22327_v14 = vadd.f32 %v22326_v13, %v22325_v10 }
 0x7a2   :  { %14742 = vmatpush1.bf16.msra.mxu0 %v25706_v18  ;;  %v22344_v18 = vpop.f32.mrb[12].mxu1 }
 0x7a3   :  { %14743 = vmatprep.subr.bf16.mxu0 %v25711_v9  ;;  %v22345_v9 = vpop.f32.mrb[13].mxu1 }
 0x7a6   :  { %14744 = vmatpush1.bf16.msra.mxu0 %v25709_v31  ;;  %v15025_v31 = vadd.f32 %v22327_v14, %v2361_v7 }
 0x7a7   :  { %14745 = vmatprep.subr.bf16.mxu0 %v25714_v43  ;;  %v22346_v43 = vadd.f32 %v22345_v9, %v22344_v18  ;;  %v25751_v9 = vld [vmem:[#allocation2 + $0x2858] ss:$44 sps:$4 sm:$0xff]  }
 0x7aa   :  { %14746 = vmatpush1.bf16.msra.mxu0 %v25712_v44  ;;  %v22347_v44 = vpop.f32.mrb[14].mxu1 }
 0x7ab   :  { %14747 = vmatprep.subr.bf16.mxu0 %v25717_v36  ;;  %v25742_v36 = vld [vmem:[#allocation2 + $0x2750] ss:$44 sps:$4 sm:$0xff]  }
 0x7ae   :  { %14748 = vmatpush1.bf16.msra.mxu0 %v25715_v45  ;;  %v22348_v45 = vpop.f32.mrb[15].mxu1 }
 0x7af   :  { %14749 = vmatprep.subr.bf16.mxu0 %v25720_v48  ;;  %v15063_v48 = vadd.f32 %v22346_v43, %v15022_v12  ;;  %v25756_v43 = vld [vmem:[#allocation2 + $0x28b4] ss:$44 sps:$4 sm:$0xff]  }
 0x7b2   :  { %14750 = vmatpush1.bf16.msra.mxu0 %v25718_v49  ;;  %v22349_v49 = vadd.f32 %v22348_v45, %v22347_v44 }
 0x7b3   :  { %14751 = vmatprep.subr.bf16.mxu0 %v25723_v51  ;;  %v22366_v51 = vpop.f32.mrb[16].mxu1 }
 0x7b6   :  { %14752 = vmatpush1.bf16.msra.mxu0 %v25721_v50  ;;  %v22367_v50 = vpop.f32.mrb[17].mxu1 }
 0x7b7   :  { %14753 = vmatprep.subr.bf16.mxu0 %v25726_v53  ;;  %v22368_v53 = vadd.f32 %v22367_v50, %v22366_v51  ;;  %v25754_v50 = vld [vmem:[#allocation2 + $0x28b0] ss:$44 sps:$4 sm:$0xff]  }
 0x7ba   :  { %14754 = vmatpush1.bf16.msra.mxu0 %v25724_v54  ;;  %v22369_v54 = vpop.f32.mrb[18].mxu1 }
 0x7bb   :  { %14755 = vmatprep.subr.bf16.mxu0 %v25729_v55  ;;  %v25745_v55 = vld [vmem:[#allocation2 + $0x27a8] ss:$44 sps:$4 sm:$0xff]  }
 0x7be   :  { %14756 = vmatpush1.bf16.msra.mxu0 %v25727_v56  ;;  %v22370_v56 = vpop.f32.mrb[19].mxu1 }
 0x7bf   :  { %14757 = vmatprep.subr.bf16.mxu0 %v25732_v57  ;;  %v25750_v57 = vld [vmem:[#allocation2 + $0x2804] ss:$44 sps:$4 sm:$0xff]  }
 0x7c2   :  { %14758 = vmatpush1.bf16.msra.mxu0 %v25730_v58  ;;  %v15104_v58 = vadd.f32 %v22368_v53, %v15063_v48  ;;  %v25759_v53 = vld [vmem:[#allocation2 + $0x290c] ss:$44 sps:$4 sm:$0xff]  }
 0x7c3   :  { %14759 = vmatprep.subr.bf16.mxu0 %v25735_v28  ;;  %v22371_v28 = vadd.f32 %v22370_v56, %v22369_v54 }
 0x7c6   :  { %14760 = vmatpush1.bf16.msra.mxu0 %v25733_v42  ;;  %v22388_v42 = vpop.f32.mrb[20].mxu1 }
 0x7c7   :  { %14772 = vmatprep.subr.bf16.mxu0 %v25738_v1  ;;  %v22389_v1 = vpop.f32.mrb[21].mxu1 }
 0x7c8   :  { %v22390_v5 = vadd.f32 %v22389_v1, %v22388_v42  ;;  %v25757_v1 = vld [vmem:[#allocation2 + $0x2908] ss:$44 sps:$4 sm:$0xff]  }
 0x7c9   :  { %14762 = vmatmul.mubr.bf16.vlgmr.msra.gmra.mrb[8].mxu0 %v27081_v35  ;;  %v25747_v35 = vld [vmem:[#allocation2 + $0x27ac] ss:$44 sps:$4 sm:$0xff]  }
 0x7ca   :  { %14773 = vmatpush1.bf16.msra.mxu0 %v25736_v63  ;;  %14804 = vmatprep.mubr.bf16.mxu0 %v27083_v41  ;;  %v15066_v41 = vadd.f32 %v22349_v49, %v15025_v31  ;;  %v15145_v10 = vadd.f32 %v22390_v5, %v15104_v58  ;;  %v25762_v5 = vld [vmem:[#allocation2 + $0x2964] ss:$44 sps:$4 sm:$0xff]  }
 0x7cb   :  { %14774 = vmatprep.subr.bf16.mxu0 %v25741_v6  ;;  %v22391_v6 = vpop.f32.mrb[22].mxu1 }
 0x7cc   :  { %v15107_v63 = vadd.f32 %v22371_v28, %v15066_v41  ;;  %v22392_v7 = vpop.f32.mrb[23].mxu1 }
 0x7cd   :  { %v22410_v13 = vpop.f32.mrb[24].mxu1 }
 0x7ce   :  { %14775 = vmatpush1.bf16.msra.mxu0 %v25739_v11  ;;  %v22393_v11 = vadd.f32 %v22392_v7, %v22391_v6 }
 0x7cf   :  { %14776 = vmatprep.subr.bf16.mxu0 %v25744_v17  ;;  %v22411_v17 = vpop.f32.mrb[25].mxu1 }
 0x7d0   :  { %v15148_v12 = vadd.f32 %v22393_v11, %v15107_v63  ;;  %v22412_v14 = vadd.f32 %v22411_v17, %v22410_v13  ;;  %v22413_v18 = vpop.f32.mrb[26].mxu1  ;;  %v25760_v17 = vld [vmem:[#allocation2 + $0x2960] ss:$44 sps:$4 sm:$0xff]  }
 0x7d1   :  { %v22414_v31 = vpop.f32.mrb[27].mxu1 }
 0x7d2   :  { %14777 = vmatpush1.bf16.msra.mxu0 %v25742_v36  ;;  %v15186_v44 = vadd.f32 %v22412_v14, %v15145_v10  ;;  %v22415_v36 = vadd.f32 %v22414_v31, %v22413_v18  ;;  %v22432_v45 = vpop.f32.mrb[28].mxu1  ;;  %v25765_v14 = vld [vmem:[#allocation2 + $0x29bc] ss:$44 sps:$4 sm:$0xff]  }
 0x7d3   :  { %14778 = vmatprep.subr.bf16.mxu0 %v25747_v35  ;;  %v22433_v35 = vpop.f32.mrb[29].mxu1 }
 0x7d4   :  { %v15189_v48 = vadd.f32 %v22415_v36, %v15148_v12  ;;  %v22434_v49 = vadd.f32 %v22433_v35, %v22432_v45  ;;  %v22435_v51 = vpop.f32.mrb[30].mxu1  ;;  %v25766_v36 = vld [vmem:[#allocation2 + $0x2a10] ss:$44 sps:$4 sm:$0xff]   ;;  %v25771_v45 = vld [vmem:[#allocation2 + $0x2a6c] ss:$44 sps:$4 sm:$0xff]  }
 0x7d5   :  { %v22436_v41 = vpop.f32.mrb[31].mxu1  ;;  %v25769_v35 = vld [vmem:[#allocation2 + $0x2a68] ss:$44 sps:$4 sm:$0xff]  }
 0x7d6   :  { %14779 = vmatpush1.bf16.msra.mxu0 %v25745_v55  ;;  %v15227_v54 = vadd.f32 %v22434_v49, %v15186_v44  ;;  %v22437_v55 = vadd.f32 %v22436_v41, %v22435_v51  ;;  %v22454_v56 = vpop.f32.mrb[32].mxu1  ;;  %v25768_v44 = vld [vmem:[#allocation2 + $0x2a14] ss:$44 sps:$4 sm:$0xff]   ;;  %v25777_v51 = vld [vmem:[#allocation2 + $0x2b1c] ss:$44 sps:$4 sm:$0xff]  }
 0x7d7   :  { %14780 = vmatprep.subr.bf16.mxu0 %v25750_v57  ;;  %v22455_v57 = vpop.f32.mrb[33].mxu1  ;;  %v25772_v49 = vld [vmem:[#allocation2 + $0x2ac0] ss:$44 sps:$4 sm:$0xff]  }
 0x7d8   :  { %v15230_v58 = vadd.f32 %v22437_v55, %v15189_v48  ;;  %v22456_v28 = vadd.f32 %v22455_v57, %v22454_v56  ;;  %v22457_v42 = vpop.f32.mrb[34].mxu1  ;;  %v25774_v48 = vld [vmem:[#allocation2 + $0x2ac4] ss:$44 sps:$4 sm:$0xff]   ;;  %v25780_v41 = vld [vmem:[#allocation2 + $0x2b74] ss:$44 sps:$4 sm:$0xff]  }
 0x7d9   :  { %v22458_v63 = vpop.f32.mrb[35].mxu1  ;;  %v25778_v55 = vld [vmem:[#allocation2 + $0x2b70] ss:$44 sps:$4 sm:$0xff]  }
 0x7da   :  { %14781 = vmatpush1.bf16.msra.mxu0 %v25748_v47  ;;  %v15268_v6 = vadd.f32 %v22456_v28, %v15227_v54  ;;  %v22459_v47 = vadd.f32 %v22458_v63, %v22457_v42  ;;  %v25781_v63 = vld [vmem:[#allocation2 + $0x2bc8] ss:$44 sps:$4 sm:$0xff]  }
 0x7db   :  { %14782 = vmatprep.subr.bf16.mxu0 %v25753_v8 }
 0x7dc   :  { %v22476_v7 = vpop.f32.mrb[36].mxu1  ;;  %v15271_v10 = vadd.f32 %v22459_v47, %v15230_v58  ;;  %v25783_v58 = vld [vmem:[#allocation2 + $0x2bcc] ss:$44 sps:$4 sm:$0xff]  }
 0x7dd   :  { %v22477_v8 = vpop.f32.mrb[37].mxu1  ;;  %v25784_v47 = vld [vmem:[#allocation2 + $0x2c20] ss:$44 sps:$4 sm:$0xff]  }
 0x7de   :  { %14783 = vmatpush1.bf16.msra.mxu0 %v25751_v9  ;;  %v22478_v11 = vadd.f32 %v22477_v8, %v22476_v7  ;;  %v22479_v13 = vpop.f32.mrb[38].mxu1  ;;  %v25789_v7 = vld [vmem:[#allocation2 + $0x2c7c] ss:$44 sps:$4 sm:$0xff]   ;;  %v25787_v8 = vld [vmem:[#allocation2 + $0x2c78] ss:$44 sps:$4 sm:$0xff]  }
 0x7df   :  { %14784 = vmatprep.subr.bf16.mxu0 %v25756_v43  ;;  %v22480_v12 = vpop.f32.mrb[39].mxu1  ;;  %v25763_v43 = vld [vmem:[#allocation2 + $0x29b8] ss:$44 sps:$4 sm:$0xff]  }
 0x7e0   :  { %v15309_v18 = vadd.f32 %v22478_v11, %v15268_v6  ;;  %v22481_v9 = vadd.f32 %v22480_v12, %v22479_v13  ;;  %v25786_v6 = vld [vmem:[#allocation2 + $0x2c24] ss:$44 sps:$4 sm:$0xff]   ;;  %v25795_v13 = vld [vmem:[#allocation2 + $0x2d2c] ss:$44 sps:$4 sm:$0xff]  }
 0x7e1   :  { %v25790_v11 = vld [vmem:[#allocation2 + $0x2cd0] ss:$44 sps:$4 sm:$0xff]  }
 0x7e2   :  { %14785 = vmatpush1.bf16.msra.mxu0 %v25754_v50  ;;  %v15312_v31 = vadd.f32 %v22481_v9, %v15271_v10  ;;  %v25775_v50 = vld [vmem:[#allocation2 + $0x2b18] ss:$44 sps:$4 sm:$0xff]   ;;  %v25792_v10 = vld [vmem:[#allocation2 + $0x2cd4] ss:$44 sps:$4 sm:$0xff]  }
 0x7e3   :  { %14786 = vmatprep.subr.bf16.mxu0 %v25759_v53  ;;  %v25798_v12 = vld [vmem:[#allocation2 + $0x2d84] ss:$44 sps:$4 sm:$0xff]   ;;  %v25804_v9 = vld [vmem:[#allocation2 + $0x2e34] ss:$44 sps:$4 sm:$0xff]  }
 0x7e6   :  { %14787 = vmatpush1.bf16.msra.mxu0 %v25757_v1 }
 0x7e7   :  { %14788 = vmatprep.subr.bf16.mxu0 %v25762_v5 }
 0x7ea   :  { %14789 = vmatpush1.bf16.msra.mxu0 %v25760_v17  ;;  %v25793_v17 = vld [vmem:[#allocation2 + $0x2d28] ss:$44 sps:$4 sm:$0xff]  }
 0x7eb   :  { %14790 = vmatprep.subr.bf16.mxu0 %v25765_v14  ;;  %v25796_v14 = vld [vmem:[#allocation2 + $0x2d80] ss:$44 sps:$4 sm:$0xff]  }
 0x7ee   :  { %14791 = vmatpush1.bf16.msra.mxu0 %v25763_v43  ;;  %v25802_v43 = vld [vmem:[#allocation2 + $0x2e30] ss:$44 sps:$4 sm:$0xff]  }
 0x7ef   :  { %14792 = vmatprep.subr.bf16.mxu0 %v25768_v44 }
 0x7f2   :  { %14793 = vmatpush1.bf16.msra.mxu0 %v25766_v36 }
 0x7f3   :  { %14794 = vmatprep.subr.bf16.mxu0 %v25771_v45  ;;  %v25807_v45 = vld [vmem:[#allocation2 + $0x2e8c] ss:$44 sps:$4 sm:$0xff]  }
 0x7f6   :  { %14795 = vmatpush1.bf16.msra.mxu0 %v25769_v35 }
 0x7f7   :  { %14796 = vmatprep.subr.bf16.mxu0 %v25774_v48 }
 0x7fa   :  { %14797 = vmatpush1.bf16.msra.mxu0 %v25772_v49 }
 0x7fb   :  { %14798 = vmatprep.subr.bf16.mxu0 %v25777_v51  ;;  %v25805_v51 = vld [vmem:[#allocation2 + $0x2e88] ss:$44 sps:$4 sm:$0xff]  }
 0x7fc   :  { %v22498_v53 = vpop.f32.mrb[40].mxu1 }
 0x7fd   :  { %v22499_v54 = vpop.f32.mrb[41].mxu1 }
 0x7fe   :  { %14799 = vmatpush1.bf16.msra.mxu0 %v25775_v50  ;;  %v22500_v56 = vadd.f32 %v22499_v54, %v22498_v53  ;;  %v22501_v57 = vpop.f32.mrb[42].mxu1  ;;  %v25808_v53 = vld [vmem:[#allocation2 + $0x2ee0] ss:$44 sps:$4 sm:$0xff]   ;;  %v25813_v54 = vld [vmem:[#allocation2 + $0x2f3c] ss:$44 sps:$4 sm:$0xff]  }
 0x7ff   :  { %14800 = vmatprep.subr.bf16.mxu0 %v25780_v41  ;;  %v22502_v28 = vpop.f32.mrb[43].mxu1  ;;  %v25810_v41 = vld [vmem:[#allocation2 + $0x2ee4] ss:$44 sps:$4 sm:$0xff]  }
 0x800   :  { %v15350_v42 = vadd.f32 %v22500_v56, %v15309_v18  ;;  %v22503_v1 = vadd.f32 %v22502_v28, %v22501_v57  ;;  %v25801_v18 = vld [vmem:[#allocation2 + $0x2ddc] ss:$44 sps:$4 sm:$0xff]   ;;  %v25816_v56 = vld [vmem:[#allocation2 + $0x2f94] ss:$44 sps:$4 sm:$0xff]  }
 0x801   :  { %v25814_v57 = vld [vmem:[#allocation2 + $0x2f90] ss:$44 sps:$4 sm:$0xff]   ;;  %v25817_v28 = vld [vmem:[#allocation2 + $0x2fe8] ss:$44 sps:$4 sm:$0xff]  }
 0x802   :  { %14801 = vmatpush1.bf16.msra.mxu0 %v25778_v55  ;;  %v15353_v5 = vadd.f32 %v22503_v1, %v15312_v31  ;;  %v25811_v55 = vld [vmem:[#allocation2 + $0x2f38] ss:$44 sps:$4 sm:$0xff]   ;;  %v25820_v1 = vld [vmem:[#allocation2 + $0x3040] ss:$44 sps:$4 sm:$0xff]  }
 0x803   :  { %14802 = vmatprep.subr.bf16.mxu0 %v25783_v58  ;;  %v25819_v58 = vld [vmem:[#allocation2 + $0x2fec] ss:$44 sps:$4 sm:$0xff]  }
 0x806   :  { %14803 = vmatpush1.bf16.msra.mxu0 %v25781_v63  ;;  %v25825_v63 = vld [vmem:[#allocation2 + $0x309c] ss:$44 sps:$4 sm:$0xff]  }
 0x807   :  { %14815 = vmatprep.subr.bf16.mxu0 %v25786_v6  ;;  %v25828_v6 = vld [vmem:[#allocation2 + $0x30f4] ss:$44 sps:$4 sm:$0xff]  }
 0x809   :  { %14805 = vmatmul.mubr.bf16.vlgmr.msra.gmra.mrb[8].mxu0 %v27101_v61  ;;  %v25799_v61 = vld [vmem:[#allocation2 + $0x2dd8] ss:$44 sps:$4 sm:$0xff]  }
 0x80a   :  { %14816 = vmatpush1.bf16.msra.mxu0 %v25784_v47  ;;  %14847 = vmatprep.mubr.bf16.mxu0 %v27103_v3 }
 0x80b   :  { %14817 = vmatprep.subr.bf16.mxu0 %v25789_v7 }
 0x80e   :  { %14818 = vmatpush1.bf16.msra.mxu0 %v25787_v8  ;;  %v25826_v8 = vld [vmem:[#allocation2 + $0x30f0] ss:$44 sps:$4 sm:$0xff]  }
 0x80f   :  { %14819 = vmatprep.subr.bf16.mxu0 %v25792_v10 }
 0x812   :  { %14820 = vmatpush1.bf16.msra.mxu0 %v25790_v11 }
 0x813   :  { %14821 = vmatprep.subr.bf16.mxu0 %v25795_v13  ;;  %v25831_v13 = vld [vmem:[#allocation2 + $0x314c] ss:$44 sps:$4 sm:$0xff]  }
 0x816   :  { %14822 = vmatpush1.bf16.msra.mxu0 %v25793_v17 }
 0x817   :  { %14823 = vmatprep.subr.bf16.mxu0 %v25798_v12 }
 0x81a   :  { %14824 = vmatpush1.bf16.msra.mxu0 %v25796_v14 }
 0x81b   :  { %14825 = vmatprep.subr.bf16.mxu0 %v25801_v18  ;;  %v25829_v18 = vld [vmem:[#allocation2 + $0x3148] ss:$44 sps:$4 sm:$0xff]  }
 0x81c   :  { %v22520_v31 = vpop.f32.mrb[44].mxu1 }
 0x81d   :  { %v22521_v3 = vpop.f32.mrb[45].mxu1 }
 0x81e   :  { %14826 = vmatpush1.bf16.msra.mxu0 %v25799_v61  ;;  %v22522_v44 = vadd.f32 %v22521_v3, %v22520_v31  ;;  %v22523_v36 = vpop.f32.mrb[46].mxu1  ;;  %v25832_v31 = vld [vmem:[#allocation2 + $0x31a0] ss:$44 sps:$4 sm:$0xff]   ;;  %v25837_v3 = vld [vmem:[#allocation2 + $0x31fc] ss:$44 sps:$4 sm:$0xff]  }
 0x81f   :  { %14827 = vmatprep.subr.bf16.mxu0 %v25804_v9  ;;  %v22524_v35 = vpop.f32.mrb[47].mxu1  ;;  %v25834_v9 = vld [vmem:[#allocation2 + $0x31a4] ss:$44 sps:$4 sm:$0xff]  }
 0x820   :  { %v15391_v48 = vadd.f32 %v22522_v44, %v15350_v42  ;;  %v22525_v49 = vadd.f32 %v22524_v35, %v22523_v36  ;;  %v25822_v42 = vld [vmem:[#allocation2 + $0x3044] ss:$44 sps:$4 sm:$0xff]  }
 0x822   :  { %14828 = vmatpush1.bf16.msra.mxu0 %v25802_v43  ;;  %v15394_v50 = vadd.f32 %v22525_v49, %v15353_v5  ;;  %v25823_v5 = vld [vmem:[#allocation2 + $0x3098] ss:$44 sps:$4 sm:$0xff]  }
 0x823   :  { %14829 = vmatprep.subr.bf16.mxu0 %v25807_v45  ;;  %v25835_v45 = vld [vmem:[#allocation2 + $0x31f8] ss:$44 sps:$4 sm:$0xff]  }
 0x826   :  { %14830 = vmatpush1.bf16.msra.mxu0 %v25805_v51 }
 0x827   :  { %14831 = vmatprep.subr.bf16.mxu0 %v25810_v41  ;;  %v25843_v41 = vld [vmem:[#allocation2 + $0x32ac] ss:$44 sps:$4 sm:$0xff]  }
 0x82a   :  { %14832 = vmatpush1.bf16.msra.mxu0 %v25808_v53  ;;  %v25841_v53 = vld [vmem:[#allocation2 + $0x32a8] ss:$44 sps:$4 sm:$0xff]  }
 0x82b   :  { %14833 = vmatprep.subr.bf16.mxu0 %v25813_v54  ;;  %v25844_v54 = vld [vmem:[#allocation2 + $0x3300] ss:$44 sps:$4 sm:$0xff]  }
 0x82e   :  { %14834 = vmatpush1.bf16.msra.mxu0 %v25811_v55  ;;  %v25849_v55 = vld [vmem:[#allocation2 + $0x335c] ss:$44 sps:$4 sm:$0xff]  }
 0x82f   :  { %14835 = vmatprep.subr.bf16.mxu0 %v25816_v56  ;;  %v25847_v56 = vld [vmem:[#allocation2 + $0x3358] ss:$44 sps:$4 sm:$0xff]  }
 0x832   :  { %14836 = vmatpush1.bf16.msra.mxu0 %v25814_v57  ;;  %v25850_v57 = vld [vmem:[#allocation2 + $0x33b0] ss:$44 sps:$4 sm:$0xff]  }
 0x833   :  { %14837 = vmatprep.subr.bf16.mxu0 %v25819_v58  ;;  %v25855_v58 = vld [vmem:[#allocation2 + $0x340c] ss:$44 sps:$4 sm:$0xff]  }
 0x836   :  { %14838 = vmatpush1.bf16.msra.mxu0 %v25817_v28  ;;  %v25853_v28 = vld [vmem:[#allocation2 + $0x3408] ss:$44 sps:$4 sm:$0xff]  }
 0x837   :  { %14839 = vmatprep.subr.bf16.mxu0 %v25822_v42  ;;  %v25858_v42 = vld [vmem:[#allocation2 + $0x3464] ss:$44 sps:$4 sm:$0xff]  }
 0x83a   :  { %14840 = vmatpush1.bf16.msra.mxu0 %v25820_v1  ;;  %v25856_v1 = vld [vmem:[#allocation2 + $0x3460] ss:$44 sps:$4 sm:$0xff]  }
 0x83b   :  { %14841 = vmatprep.subr.bf16.mxu0 %v25825_v63  ;;  %v25861_v63 = vld [vmem:[#allocation2 + $0x34bc] ss:$44 sps:$4 sm:$0xff]  }
 0x83c   :  { %v22542_v47 = vpop.f32.mrb[48].mxu1 }
 0x83d   :  { %v22543_v7 = vpop.f32.mrb[49].mxu1 }
 0x83e   :  { %14842 = vmatpush1.bf16.msra.mxu0 %v25823_v5  ;;  %v22544_v10 = vadd.f32 %v22543_v7, %v22542_v47  ;;  %v22545_v11 = vpop.f32.mrb[50].mxu1  ;;  %v25859_v5 = vld [vmem:[#allocation2 + $0x34b8] ss:$44 sps:$4 sm:$0xff]   ;;  %v25862_v47 = vld [vmem:[#allocation2 + $0x3510] ss:$44 sps:$4 sm:$0xff]  }
 0x83f   :  { %14843 = vmatprep.subr.bf16.mxu0 %v25828_v6  ;;  %v22546_v17 = vpop.f32.mrb[51].mxu1  ;;  %v25864_v6 = vld [vmem:[#allocation2 + $0x3514] ss:$44 sps:$4 sm:$0xff]   ;;  %v25867_v7 = vld [vmem:[#allocation2 + $0x356c] ss:$44 sps:$4 sm:$0xff]  }
 0x840   :  { %v22547_v12 = vadd.f32 %v22546_v17, %v22545_v11  ;;  %v15432_v14 = vadd.f32 %v22544_v10, %v15391_v48  ;;  %v25840_v48 = vld [vmem:[#allocation2 + $0x3254] ss:$44 sps:$4 sm:$0xff]   ;;  %v25870_v10 = vld [vmem:[#allocation2 + $0x35c4] ss:$44 sps:$4 sm:$0xff]  }
 0x841   :  { %v25868_v11 = vld [vmem:[#allocation2 + $0x35c0] ss:$44 sps:$4 sm:$0xff]   ;;  %v25871_v17 = vld [vmem:[#allocation2 + $0x3618] ss:$44 sps:$4 sm:$0xff]  }
 0x842   :  { %14844 = vmatpush1.bf16.msra.mxu0 %v25826_v8  ;;  %v15435_v61 = vadd.f32 %v22547_v12, %v15394_v50  ;;  %v25838_v50 = vld [vmem:[#allocation2 + $0x3250] ss:$44 sps:$4 sm:$0xff]   ;;  %v25865_v8 = vld [vmem:[#allocation2 + $0x3568] ss:$44 sps:$4 sm:$0xff]  }
 0x843   :  { %14845 = vmatprep.subr.bf16.mxu0 %v25831_v13  ;;  %v25873_v13 = vld [vmem:[#allocation2 + $0x361c] ss:$44 sps:$4 sm:$0xff]   ;;  %v25876_v12 = vld [vmem:[#allocation2 + $0x3674] ss:$44 sps:$4 sm:$0xff]  }
 0x846   :  { %14846 = vmatpush1.bf16.msra.mxu0 %v25829_v18  ;;  %v25879_v18 = vld [vmem:[#allocation2 + $0x36cc] ss:$44 sps:$4 sm:$0xff]  }
 0x847   :  { %14858 = vmatprep.subr.bf16.mxu0 %v25834_v9  ;;  %v25882_v9 = vld [vmem:[#allocation2 + $0x3724] ss:$44 sps:$4 sm:$0xff]  }
 0x848   :  { %v15472_v43 = vpop.f32.mrb[52].mxu1 }
 0x849   :  { %14848 = vmatmul.mubr.bf16.vlgmr.msra.gmra.mrb[8].mxu0 %v27115_v23  ;;  %v27321_v44 = vadd.f32 %v15472_v43, %v15432_v14  ;;  %v22732_v36 = vpop.f32.mrb[53].mxu1  ;;  %v25846_v23 = vld [vmem:[#allocation2 + $0x3304] ss:$44 sps:$4 sm:$0xff]  }
 0x84a   :  { %14859 = vmatpush1.bf16.msra.mxu0 %v25832_v31  ;;  %v15475_v35 = vpop.f32.mrb[54].mxu1  ;;  %14890 = vmatprep.mubr.bf16.mxu0 %v27123_v32  ;;  %v25852_v32 = vld [vmem:[#allocation2 + $0x33b4] ss:$44 sps:$4 sm:$0xff]   ;;  %v25874_v14 = vld [vmem:[#allocation2 + $0x3670] ss:$44 sps:$4 sm:$0xff]  }
 0x84b   :  { %14860 = vmatprep.subr.bf16.mxu0 %v25837_v3  ;;  %v27324_v49 = vadd.f32 %v15475_v35, %v15435_v61  ;;  %v22733_v51 = vpop.f32.mrb[55].mxu1  ;;  %v25877_v61 = vld [vmem:[#allocation2 + $0x36c8] ss:$44 sps:$4 sm:$0xff]   ;;  %v25880_v31 = vld [vmem:[#allocation2 + $0x3720] ss:$44 sps:$4 sm:$0xff]  }
 0x84c   :  { %v25885_v3 = vld [vmem:[#allocation2 + $0x377c] ss:$44 sps:$4 sm:$0xff]   ;;  %v25883_v43 = vld [vmem:[#allocation2 + $0x3778] ss:$44 sps:$4 sm:$0xff]   ;;  %v25888_v36 = vld [vmem:[#allocation2 + $0x37d4] ss:$44 sps:$4 sm:$0xff]  }
 0x84d   :  { %v25891_v35 = vld [vmem:[#allocation2 + $0x382c] ss:$44 sps:$4 sm:$0xff]   ;;  %v25894_v51 = vld [vmem:[#allocation2 + $0x3884] ss:$44 sps:$4 sm:$0xff]  }
 0x84e   :  { %14861 = vmatpush1.bf16.msra.mxu0 %v25835_v45  ;;  %v25886_v45 = vld [vmem:[#allocation2 + $0x37d0] ss:$44 sps:$4 sm:$0xff]  }
 0x84f   :  { %14862 = vmatprep.subr.bf16.mxu0 %v25840_v48  ;;  %v25889_v48 = vld [vmem:[#allocation2 + $0x3828] ss:$44 sps:$4 sm:$0xff]  }
 0x852   :  { %14863 = vmatpush1.bf16.msra.mxu0 %v25838_v50  ;;  %v25892_v50 = vld [vmem:[#allocation2 + $0x3880] ss:$44 sps:$4 sm:$0xff]  }
 0x853   :  { %14864 = vmatprep.subr.bf16.mxu0 %v25843_v41  ;;  %v25897_v41 = vld [vmem:[#allocation2 + $0x38dc] ss:$44 sps:$4 sm:$0xff]  }
 0x856   :  { %14865 = vmatpush1.bf16.msra.mxu0 %v25841_v53  ;;  %v25900_v53 = vld [vmem:[#allocation2 + $0x3934] ss:$44 sps:$4 sm:$0xff]  }
 0x857   :  { %14866 = vmatprep.subr.bf16.mxu0 %v25846_v23  ;;  %v25903_v23 = vld [vmem:[#allocation2 + $0x398c] ss:$44 sps:$4 sm:$0xff]  }
 0x85a   :  { %14867 = vmatpush1.bf16.msra.mxu0 %v25844_v54  ;;  %v25901_v54 = vld [vmem:[#allocation2 + $0x3988] ss:$44 sps:$4 sm:$0xff]  }
 0x85b   :  { %14868 = vmatprep.subr.bf16.mxu0 %v25849_v55  ;;  %v25906_v55 = vld [vmem:[#allocation2 + $0x39e4] ss:$44 sps:$4 sm:$0xff]  }
 0x85e   :  { %14869 = vmatpush1.bf16.msra.mxu0 %v25847_v56  ;;  %v25904_v56 = vld [vmem:[#allocation2 + $0x39e0] ss:$44 sps:$4 sm:$0xff]  }
 0x85f   :  { %14870 = vmatprep.subr.bf16.mxu0 %v25852_v32  ;;  %v25909_v32 = vld [vmem:[#allocation2 + $0x3a3c] ss:$44 sps:$4 sm:$0xff]  }
 0x862   :  { %14871 = vmatpush1.bf16.msra.mxu0 %v25850_v57  ;;  %v25907_v57 = vld [vmem:[#allocation2 + $0x3a38] ss:$44 sps:$4 sm:$0xff]  }
 0x863   :  { %14872 = vmatprep.subr.bf16.mxu0 %v25855_v58  ;;  %v25912_v58 = vld [vmem:[#allocation2 + $0x3a94] ss:$44 sps:$4 sm:$0xff]  }
 0x866   :  { %14873 = vmatpush1.bf16.msra.mxu0 %v25853_v28  ;;  %v25910_v28 = vld [vmem:[#allocation2 + $0x3a90] ss:$44 sps:$4 sm:$0xff]  }
 0x867   :  { %14874 = vmatprep.subr.bf16.mxu0 %v25858_v42  ;;  %v25915_v42 = vld [vmem:[#allocation2 + $0x3aec] ss:$44 sps:$4 sm:$0xff]  }
 0x86a   :  { %14875 = vmatpush1.bf16.msra.mxu0 %v25856_v1  ;;  %v25913_v1 = vld [vmem:[#allocation2 + $0x3ae8] ss:$44 sps:$4 sm:$0xff]  }
 0x86b   :  { %14876 = vmatprep.subr.bf16.mxu0 %v25861_v63  ;;  %v25918_v63 = vld [vmem:[#allocation2 + $0x3b44] ss:$44 sps:$4 sm:$0xff]  }
 0x86e   :  { %14877 = vmatpush1.bf16.msra.mxu0 %v25859_v5  ;;  %v25916_v5 = vld [vmem:[#allocation2 + $0x3b40] ss:$44 sps:$4 sm:$0xff]  }
 0x86f   :  { %14878 = vmatprep.subr.bf16.mxu0 %v25864_v6  ;;  %v25921_v6 = vld [vmem:[#allocation2 + $0x3b9c] ss:$44 sps:$4 sm:$0xff]  }
 0x872   :  { %14879 = vmatpush1.bf16.msra.mxu0 %v25862_v47  ;;  %v25919_v47 = vld [vmem:[#allocation2 + $0x3b98] ss:$44 sps:$4 sm:$0xff]  }
 0x873   :  { %14880 = vmatprep.subr.bf16.mxu0 %v25867_v7  ;;  %v25924_v7 = vld [vmem:[#allocation2 + $0x3bf4] ss:$44 sps:$4 sm:$0xff]  }
 0x876   :  { %14881 = vmatpush1.bf16.msra.mxu0 %v25865_v8  ;;  %v25922_v8 = vld [vmem:[#allocation2 + $0x3bf0] ss:$44 sps:$4 sm:$0xff]  }
 0x877   :  { %14882 = vmatprep.subr.bf16.mxu0 %v25870_v10  ;;  %v25927_v10 = vld [vmem:[#allocation2 + $0x3c4c] ss:$44 sps:$4 sm:$0xff]  }
 0x87a   :  { %14883 = vmatpush1.bf16.msra.mxu0 %v25868_v11  ;;  %v25925_v11 = vld [vmem:[#allocation2 + $0x3c48] ss:$44 sps:$4 sm:$0xff]  }
 0x87b   :  { %14884 = vmatprep.subr.bf16.mxu0 %v25873_v13  ;;  %v25930_v13 = vld [vmem:[#allocation2 + $0x3ca4] ss:$44 sps:$4 sm:$0xff]  }
 0x87e   :  { %14885 = vmatpush1.bf16.msra.mxu0 %v25871_v17  ;;  %v25928_v17 = vld [vmem:[#allocation2 + $0x3ca0] ss:$44 sps:$4 sm:$0xff]  }
 0x87f   :  { %14886 = vmatprep.subr.bf16.mxu0 %v25876_v12  ;;  %v25933_v12 = vld [vmem:[#allocation2 + $0x3cfc] ss:$44 sps:$4 sm:$0xff]  }
 0x882   :  { %14887 = vmatpush1.bf16.msra.mxu0 %v25874_v14  ;;  %v2312_v14 = vld [vmem:[#allocation2 + $0x3d50] sm:$0x33] }
 0x883   :  { %14888 = vmatprep.subr.bf16.mxu0 %v25879_v18  ;;  %v25931_v18 = vld [vmem:[#allocation2 + $0x3cf8] ss:$44 sps:$4 sm:$0xff]  }
 0x886   :  { %14889 = vmatpush1.bf16.msra.mxu0 %v25877_v61  ;;  %v21812_v61 = vcombine.high %v2312_v14, %v2312_v14 }
 0x887   :  { %14901 = vmatprep.subr.bf16.mxu0 %v25882_v9  ;;  %v21811_v9 = vcombine.low %v2312_v14, %v2312_v14 }
 0x889   :  { %14891 = vmatmul.mubr.bf16.vlgmr.msra.gmra.mrb[8].mxu0 %v27141_v60  ;;  %v25895_v60 = vld [vmem:[#allocation2 + $0x38d8] ss:$44 sps:$4 sm:$0xff]  }
 0x88a   :  { %14902 = vmatpush1.bf16.msra.mxu0 %v25880_v31  ;;  %14933 = vmatprep.mubr.bf16.mxu0 %v27143_v4  ;;  %v25898_v4 = vld [vmem:[#allocation2 + $0x3930] ss:$44 sps:$4 sm:$0xff]   ;;  %v12399_v31 = vsel %vm12373_vm0, %v21811_v9, 0 }
 0x88b   :  { %14903 = vmatprep.subr.bf16.mxu0 %v25885_v3  ;;  %v27335_v3 = vsub.s32 0, %v27307_v0 }
 0x88e   :  { %14904 = vmatpush1.bf16.msra.mxu0 %v25883_v43  ;;  %v27338_v43 = vsub.s32 1, %v27307_v0 }
 0x88f   :  { %14905 = vmatprep.subr.bf16.mxu0 %v25888_v36  ;;  %v2332_v36 = vsub.s32 3, %v27307_v0 }
 0x892   :  { %14906 = vmatpush1.bf16.msra.mxu0 %v25886_v45  ;;  %v2336_v45 = vsub.s32 4, %v27307_v0 }
 0x893   :  { %14907 = vmatprep.subr.bf16.mxu0 %v25891_v35 }
 0x896   :  { %14908 = vmatpush1.bf16.msra.mxu0 %v25889_v48 }
 0x897   :  { %14909 = vmatprep.subr.bf16.mxu0 %v25894_v51  ;;  %v2340_v51 = vsub.s32 5, %v27307_v0 }
 0x89a   :  { %14910 = vmatpush1.bf16.msra.mxu0 %v25892_v50 }
 0x89b   :  { %14911 = vmatprep.subr.bf16.mxu0 %v25897_v41 }
 0x89e   :  { %14912 = vmatpush1.bf16.msra.mxu0 %v25895_v60 }
 0x89f   :  { %14913 = vmatprep.subr.bf16.mxu0 %v25900_v53 }
 0x8a2   :  { %14914 = vmatpush1.bf16.msra.mxu0 %v25898_v4 }
 0x8a3   :  { %14915 = vmatprep.subr.bf16.mxu0 %v25903_v23 }
 0x8a6   :  { %14916 = vmatpush1.bf16.msra.mxu0 %v25901_v54  ;;  %v2344_v54 = vsub.s32 6, %v27307_v0 }
 0x8a7   :  { %14917 = vmatprep.subr.bf16.mxu0 %v25906_v55 }
 0x8aa   :  { %14918 = vmatpush1.bf16.msra.mxu0 %v25904_v56 }
 0x8ab   :  { %14919 = vmatprep.subr.bf16.mxu0 %v25909_v32 }
 0x8ae   :  { %14920 = vmatpush1.bf16.msra.mxu0 %v25907_v57  ;;  %v27374_v57 = vand.u32 127, %v2318_v59 }
 0x8af   :  { %14921 = vmatprep.subr.bf16.mxu0 %v25912_v58 }
 0x8b0   :  { %vm19814_vm5 = vcmp.lt.s32.totalorder %v27374_v57, 6 }
 0x8b2   :  { %14922 = vmatpush1.bf16.msra.mxu0 %v25910_v28 }
 0x8b3   :  { %14923 = vmatprep.subr.bf16.mxu0 %v25915_v42 }
 0x8b6   :  { %14924 = vmatpush1.bf16.msra.mxu0 %v25913_v1 }
 0x8b7   :  { %14925 = vmatprep.subr.bf16.mxu0 %v25918_v63  ;;  %v2357_v63 = vrot.slane %v27312_v33, %v27338_v43 }
 0x8ba   :  { %14926 = vmatpush1.bf16.msra.mxu0 %v25916_v5 }
 0x8bb   :  { %14927 = vmatprep.subr.bf16.mxu0 %v25921_v6 }
 0x8be   :  { %14928 = vmatpush1.bf16.msra.mxu0 %v25919_v47 }
 0x8bf   :  { %14929 = vmatprep.subr.bf16.mxu0 %v25924_v7 }
 0x8c2   :  { %14930 = vmatpush1.bf16.msra.mxu0 %v25922_v8 }
 0x8c3   :  { %14931 = vmatprep.subr.bf16.mxu0 %v25927_v10 }
 0x8c6   :  { %14932 = vmatpush1.bf16.msra.mxu0 %v25925_v11 }
 0x8c7   :  { %14944 = vmatprep.subr.bf16.mxu0 %v25930_v13 }
 0x8c9   :  { %14934 = vmatmul.mubr.bf16.vlgmr.msra.gmra.mrb[8].mxu0 %v27155_v37  ;;  %v2314_v37 = vld [vmem:[#allocation4] sm:$0xff] }
 0x8ca   :  { %14945 = vmatpush1.bf16.msra.mxu0 %v25928_v17  ;;  %14976 = vmatprep.mubr.bf16.mxu0 %v26824_v52  ;;  %v2321_v35 = vrot.slane %v2314_v37, %v27335_v3  ;;  %v2329_v48 = vrot.slane %v2314_v37, %v27310_v2  ;;  %v2325_v50 = vrot.slane %v2314_v37, %v27338_v43 }
 0x8cb   :  { %14946 = vmatprep.subr.bf16.mxu0 %v25933_v12  ;;  %v2337_v41 = vrot.slane %v2314_v37, %v2336_v45  ;;  %v2341_v4 = vrot.slane %v2314_v37, %v2340_v51  ;;  %v2345_v58 = vrot.slane %v2314_v37, %v2344_v54  ;;  %v25938_v54 = vld [vmem:[#allocation6 + $0x4] ss:$20 sps:$4 sm:$0xff]  }
 0x8cc   :  { %v27351_v60 = vadd.f32 %v27191_v22, %v2321_v35  ;;  %v27354_v53 = vadd.f32 %v27193_v25, %v2329_v48  ;;  %v27357_v23 = vadd.f32 %v27195_v26, %v2325_v50  ;;  %v27364_v56 = vadd.f32 %v27199_v29, %v2321_v35  ;;  %18516 = vmatprep.subr.bf16.mxu1 %v25938_v54  ;;  %v25984_v54 = vld [vmem:[#allocation6 + $0x140] ss:$20 sps:$4 sm:$0xff]  }
 0x8cd   :  { %v27367_v32 = vadd.f32 %v27201_v30, %v2329_v48  ;;  %v2348_v22 = vsub.s32 7, %v27307_v0  ;;  %v27371_v25 = vadd.f32 %v27267_v15, %v2337_v41  ;;  %v27382_v29 = vadd.f32 %v27203_v38, %v2325_v50 }
 0x8ce   :  { %14947 = vmatpush1.bf16.msra.mxu0 %v25931_v18  ;;  %v15524_v26 = vmax.f32 %v27351_v60, %v27354_v53  ;;  %v27388_v28 = vadd.f32 %v27275_v24, %v2337_v41  ;;  %v27396_v1 = vadd.f32 %v27279_v34, %v2341_v4  ;;  %v15490_v38 = vadd.s32 1280, %v27374_v57 }
 0x8cf   :  { %21822 = vmatprep.subr.msk.bf16.mxu0 %vm12373_vm0, %v21812_v61  ;;  %v15536_v59 = vmax.f32 %v27364_v56, %v27367_v32  ;;  %v2349_v42 = vrot.slane %v2314_v37, %v2348_v22  ;;  %v27407_v6 = vadd.f32 %v27269_v16, %v2345_v58  ;;  %v27414_v7 = vadd.f32 %v27277_v21, %v2345_v58  ;;  %v25939_v22 = vld [vmem:[#allocation6 + $0x8] ss:$20 sps:$4 sm:$0xff]   ;;  %v25944_v58 = vld [vmem:[#allocation6 + $0x2c] ss:$20 sps:$4 sm:$0xff]  }
 0x8d0   :  { %vm15501_vm3 = vcmp.lt.s32.totalorder %v15490_v38, 1300  ;;  %v25948_v38 = vld [vmem:[#allocation6 + $0x50] ss:$20 sps:$4 sm:$0xff]  }
 0x8d1   :  { %v15538_v47 = vmax.f32 %v15536_v59, %v27388_v28  ;;  %v27411_v34 = vadd.f32 %v27273_v20, %v2349_v42  ;;  %v27425_v14 = vadd.f32 %v27281_v40, %v2349_v42  ;;  %v27432_v9 = vsel %vm15501_vm3, %v27321_v44, -inf  ;;  %v25942_v59 = vld [vmem:[#allocation6 + $0x28] ss:$20 sps:$4 sm:$0xff]  }
 0x8d2   :  { %14949 = vmatpush1.bf16.msra.mxu0 %v12399_v31  ;;  %v27442_v51 = vsel %vm15501_vm3, %v27324_v49, -inf  ;;  %v25945_v49 = vld [vmem:[#allocation6 + $0x30] ss:$20 sps:$4 sm:$0xff]   ;;  %v25950_v42 = vld [vmem:[#allocation6 + $0x54] ss:$20 sps:$4 sm:$0xff]  }
 0x8d3   :  { %v15540_v20 = vmax.f32 %v15538_v47, %v27414_v7  ;;  %v25957_v47 = vld [vmem:[#allocation6 + $0x80] ss:$20 sps:$4 sm:$0xff]  }
 0x8d5   :  { %21823 = vmatmul.mubr.msk.bf16.vlgmr.msra.gmra.mrb[8].mxu0 %vm12369_vm1, %v27171_v62  ;;  %v2333_v62 = vrot.slane %v2314_v37, %v2332_v36 }
 0x8d7   :  { %v27361_v55 = vadd.f32 %v27197_v27, %v2333_v62  ;;  %v27379_v27 = vadd.f32 %v27271_v19, %v2341_v4  ;;  %v27385_v30 = vadd.f32 %v27205_v39, %v2333_v62  ;;  %v15526_v19 = vmax.f32 %v15524_v26, %v27371_v25  ;;  %v25936_v4 = vld [vmem:[#allocation6] ss:$20 sps:$4 sm:$0xff]  }
 0x8d8   :  { %v2353_v39 = vrot.slane %v27312_v33, %v27335_v3  ;;  %v25941_v26 = vld [vmem:[#allocation6 + $0xc] ss:$20 sps:$4 sm:$0xff]   ;;  %18517 = vmatpush1.bf16.msra.mxu1 %v25936_v4 }
 0x8d9   :  { %v15525_v15 = vmax.f32 %v27357_v23, %v27361_v55  ;;  %v15537_v5 = vmax.f32 %v27382_v29, %v27385_v30  ;;  %v15528_v10 = vmax.f32 %v15526_v19, %v27407_v6  ;;  %18774 = vmatprep.subr.bf16.mxu0 %v25941_v26  ;;  %18518 = vmatprep.subr.bf16.mxu1 %v25944_v58  ;;  %v25953_v19 = vld [vmem:[#allocation6 + $0x5c] ss:$20 sps:$4 sm:$0xff]   ;;  %v25989_v4 = vld [vmem:[#allocation6 + $0x14c] ss:$20 sps:$4 sm:$0xff]   ;;  %v25995_v58 = vld [vmem:[#allocation6 + $0x174] ss:$20 sps:$4 sm:$0xff]  }
 0x8da   :  { %18775 = vmatpush1.bf16.msra.mxu0 %v25939_v22  ;;  %v25987_v22 = vld [vmem:[#allocation6 + $0x148] ss:$20 sps:$4 sm:$0xff]   ;;  %v25992_v26 = vld [vmem:[#allocation6 + $0x16c] ss:$20 sps:$4 sm:$0xff]  }
 0x8db   :  { %v15527_v24 = vmax.f32 %v15525_v15, %v27379_v27  ;;  %v15539_v11 = vmax.f32 %v15537_v5, %v27396_v1  ;;  %v25947_v15 = vld [vmem:[#allocation6 + $0x34] ss:$20 sps:$4 sm:$0xff]   ;;  %v25954_v5 = vld [vmem:[#allocation6 + $0x78] ss:$20 sps:$4 sm:$0xff]  }
 0x8dc   :  { %18776 = vmatprep.subr.bf16.mxu0 %v25947_v15  ;;  %18519 = vmatpush1.bf16.msra.mxu1 %v25942_v59  ;;  %v25990_v15 = vld [vmem:[#allocation6 + $0x168] ss:$20 sps:$4 sm:$0xff]   ;;  %v25993_v59 = vld [vmem:[#allocation6 + $0x170] ss:$20 sps:$4 sm:$0xff]  }
 0x8dd   :  { %v15529_v16 = vmax.f32 %v15527_v24, %v27411_v34  ;;  %v15541_v35 = vmax.f32 %v15539_v11, %v27425_v14  ;;  %18520 = vmatprep.subr.bf16.mxu1 %v25950_v42  ;;  %v25956_v24 = vld [vmem:[#allocation6 + $0x7c] ss:$20 sps:$4 sm:$0xff]   ;;  %v25960_v11 = vld [vmem:[#allocation6 + $0xa0] ss:$20 sps:$4 sm:$0xff]  }
 0x8de   :  { %18777 = vmatpush1.bf16.msra.mxu0 %v25945_v49  ;;  %v25998_v49 = vld [vmem:[#allocation6 + $0x194] ss:$20 sps:$4 sm:$0xff]   ;;  %v26001_v42 = vld [vmem:[#allocation6 + $0x19c] ss:$20 sps:$4 sm:$0xff]  }
 0x8df   :  { %18778 = vmatprep.subr.bf16.mxu0 %v25953_v19  ;;  %v25996_v19 = vld [vmem:[#allocation6 + $0x190] ss:$20 sps:$4 sm:$0xff]  }
 0x8e0   :  { %18521 = vmatpush1.bf16.msra.mxu1 %v25948_v38  ;;  %v25999_v38 = vld [vmem:[#allocation6 + $0x198] ss:$20 sps:$4 sm:$0xff]  }
 0x8e1   :  { %18522 = vmatprep.subr.bf16.mxu1 %v25956_v24  ;;  %v26007_v24 = vld [vmem:[#allocation6 + $0x1c4] ss:$20 sps:$4 sm:$0xff]  }
 0x8e4   :  { %18523 = vmatpush1.bf16.msra.mxu1 %v25954_v5  ;;  %v26005_v5 = vld [vmem:[#allocation6 + $0x1c0] ss:$20 sps:$4 sm:$0xff]  }
 0x9a8   :  { %v14978_v8 = vpop.f32.mrb[8].mxu0 }
 0x9a9   :  { %v27418_v33 = vadd.f32 %v14978_v8, %v2353_v39  ;;  %v14980_v13 = vpop.f32.mrb[9].mxu0  ;;  %v25962_v8 = vld [vmem:[#allocation6 + $0xa4] ss:$20 sps:$4 sm:$0xff]  }
 0x9aa   :  { %v27421_v17 = vadd.f32 %v14980_v13, %v2357_v63  ;;  %v14982_v12 = vpop.f32.mrb[10].mxu0  ;;  %18524 = vmatprep.subr.bf16.mxu1 %v25962_v8  ;;  %v25963_v13 = vld [vmem:[#allocation6 + $0xa8] ss:$20 sps:$4 sm:$0xff]  }
 0x9ab   :  { %v15530_v21 = vmax.f32 %v15528_v10, %v27418_v33  ;;  %v27428_v18 = vadd.f32 %v14982_v12, %v2353_v39  ;;  %v14984_v61 = vpop.f32.mrb[11].mxu0  ;;  %v25951_v39 = vld [vmem:[#allocation6 + $0x58] ss:$20 sps:$4 sm:$0xff]   ;;  %v25971_v12 = vld [vmem:[#allocation6 + $0xd4] ss:$20 sps:$4 sm:$0xff]   ;;  %18525 = vmatpush1.bf16.msra.mxu1 %v25960_v11 }
 0x9ac   :  { %v27434_v31 = vadd.f32 %v14984_v61, %v2357_v63  ;;  %v15531_v37 = vmax.f32 %v15529_v16, %v27421_v17  ;;  %v25959_v63 = vld [vmem:[#allocation6 + $0x84] ss:$20 sps:$4 sm:$0xff]   ;;  %18779 = vmatpush1.bf16.msra.mxu0 %v25951_v39  ;;  %v25965_v10 = vld [vmem:[#allocation6 + $0xac] ss:$20 sps:$4 sm:$0xff]   ;;  %v25974_v61 = vld [vmem:[#allocation6 + $0xf4] ss:$20 sps:$4 sm:$0xff]  }
 0x9ad   :  { %v15542_v48 = vmax.f32 %v15540_v20, %v27428_v18  ;;  %v15532_v40 = vmax.f32 %v15530_v21, %v27432_v9  ;;  %18780 = vmatprep.subr.bf16.mxu0 %v25959_v63  ;;  %v25968_v16 = vld [vmem:[#allocation6 + $0xcc] ss:$20 sps:$4 sm:$0xff]   ;;  %v25966_v20 = vld [vmem:[#allocation6 + $0xc8] ss:$20 sps:$4 sm:$0xff]   ;;  %v25969_v21 = vld [vmem:[#allocation6 + $0xd0] ss:$20 sps:$4 sm:$0xff]  }
 0x9ae   :  { %v15543_v50 = vmax.f32 %v15541_v35, %v27434_v31  ;;  %18526 = vmatprep.subr.bf16.mxu1 %v25968_v16  ;;  %v25972_v35 = vld [vmem:[#allocation6 + $0xf0] ss:$20 sps:$4 sm:$0xff]   ;;  %v26002_v63 = vld [vmem:[#allocation6 + $0x1b8] ss:$20 sps:$4 sm:$0xff]  }
 0x9af   :  { %v15533_v62 = vmax.f32 %v15532_v40, %v15531_v37  ;;  %v15544_v44 = vmax.f32 %v15542_v48, %v27442_v51  ;;  %v25977_v37 = vld [vmem:[#allocation6 + $0xfc] ss:$20 sps:$4 sm:$0xff]   ;;  %18527 = vmatpush1.bf16.msra.mxu1 %v25966_v20  ;;  %v25975_v48 = vld [vmem:[#allocation6 + $0xf8] ss:$20 sps:$4 sm:$0xff]  }
 0x9b0   :  { %18781 = vmatpush1.bf16.msra.mxu0 %v25957_v47  ;;  %18528 = vmatprep.subr.bf16.mxu1 %v25974_v61  ;;  %v25980_v40 = vld [vmem:[#allocation6 + $0x11c] ss:$20 sps:$4 sm:$0xff]  }
 0x9b1   :  { %15534 = vmax.xlane.f32.xlu0 %v15533_v62  ;;  %v15545_v41 = vmax.f32 %v15544_v44, %v15543_v50  ;;  %18782 = vmatprep.subr.bf16.mxu0 %v25965_v10  ;;  %v25983_v50 = vld [vmem:[#allocation6 + $0x124] ss:$20 sps:$4 sm:$0xff]   ;;  %v25981_v44 = vld [vmem:[#allocation6 + $0x120] ss:$20 sps:$4 sm:$0xff]   ;;  %v26004_v39 = vld [vmem:[#allocation6 + $0x1bc] ss:$20 sps:$4 sm:$0xff]  }
 0x9b2   :  { %v25978_v62 = vld [vmem:[#allocation6 + $0x118] ss:$20 sps:$4 sm:$0xff]  }
 0x9b3   :  { %18529 = vmatpush1.bf16.msra.mxu1 %v25972_v35 }
 0x9b4   :  { %18783 = vmatpush1.bf16.msra.mxu0 %v25963_v13  ;;  %18530 = vmatprep.subr.bf16.mxu1 %v25980_v40 }
 0x9b5   :  { %15546 = vmax.xlane.f32.xlu0 %v15545_v41  ;;  %18784 = vmatprep.subr.bf16.mxu0 %v25971_v12  ;;  %v25986_v41 = vld [vmem:[#allocation6 + $0x144] ss:$20 sps:$4 sm:$0xff]  }
 0x9b7   :  { %18531 = vmatpush1.bf16.msra.mxu1 %v25978_v62 }
 0x9b8   :  { %18785 = vmatpush1.bf16.msra.mxu0 %v25969_v21  ;;  %18532 = vmatprep.subr.bf16.mxu1 %v25986_v41 }
 0x9b9   :  { %18786 = vmatprep.subr.bf16.mxu0 %v25977_v37 }
 0x9bb   :  { %18533 = vmatpush1.bf16.msra.mxu1 %v25984_v54 }
 0x9bc   :  { %18787 = vmatpush1.bf16.msra.mxu0 %v25975_v48  ;;  %18534 = vmatprep.subr.bf16.mxu1 %v25992_v26 }
 0x9bd   :  { %18788 = vmatprep.subr.bf16.mxu0 %v25983_v50 }
 0x9bf   :  { %18535 = vmatpush1.bf16.msra.mxu1 %v25990_v15 }
 0x9c0   :  { %18789 = vmatpush1.bf16.msra.mxu0 %v25981_v44  ;;  %18536 = vmatprep.subr.bf16.mxu1 %v25998_v49 }
 0x9c1   :  { %18790 = vmatprep.subr.bf16.mxu0 %v25989_v4 }
 0x9c3   :  { %18537 = vmatpush1.bf16.msra.mxu1 %v25996_v19 }
 0x9c4   :  { %18791 = vmatpush1.bf16.msra.mxu0 %v25987_v22  ;;  %18538 = vmatprep.subr.bf16.mxu1 %v26004_v39 }
 0x9c5   :  { %18792 = vmatprep.subr.bf16.mxu0 %v25995_v58 }
 0x9c7   :  { %18539 = vmatpush1.bf16.msra.mxu1 %v26002_v63 }
 0x9c8   :  { %18793 = vmatpush1.bf16.msra.mxu0 %v25993_v59 }
 0x9c9   :  { %18794 = vmatprep.subr.bf16.mxu0 %v26001_v42 }
 0x9cc   :  { %18795 = vmatpush1.bf16.msra.mxu0 %v25999_v38 }
 0x9cd   :  { %18796 = vmatprep.subr.bf16.mxu0 %v26007_v24 }
 0x9d0   :  { %18797 = vmatpush1.bf16.msra.mxu0 %v26005_v5 }
 0xa3e   :  { %v15535_v47 = vpop.xlane.xlu0 %15534 }
 0xa3f   :  { %v15548_v8 = vsub.f32 %v27351_v60, %v15535_v47  ;;  %v15549_v10 = vsub.f32 %v27357_v23, %v15535_v47  ;;  %v15550_v11 = vsub.f32 %v27354_v53, %v15535_v47  ;;  %v15551_v13 = vsub.f32 %v27361_v55, %v15535_v47 }
 0xa40   :  { %v15552_v12 = vsub.f32 %v27371_v25, %v15535_v47  ;;  %v15553_v37 = vsub.f32 %v27379_v27, %v15535_v47  ;;  %v15554_v60 = vsub.f32 %v27407_v6, %v15535_v47  ;;  %v15555_v25 = vsub.f32 %v27411_v34, %v15535_v47 }
 0xa41   :  { %v15570_v16 = vmul.f32 1.442695, %v15548_v8  ;;  %v15572_v20 = vmul.f32 1.442695, %v15549_v10  ;;  %v15574_v21 = vmul.f32 1.442695, %v15550_v11  ;;  %v15556_v50 = vsub.f32 %v27418_v33, %v15535_v47 }
 0xa42   :  { %v27451_v61 = vpop.xlane.xlu0 %15546  ;;  %v15576_v35 = vmul.f32 1.442695, %v15551_v13  ;;  %v15578_v23 = vmul.f32 1.442695, %v15552_v12  ;;  %v15580_v48 = vmul.f32 1.442695, %v15553_v37  ;;  %v15558_v33 = vsub.f32 %v27432_v9, %v15535_v47 }
 0xa43   :  { %26592 = vpow2.f32 %v15570_v16  ;;  %v15559_v53 = vsub.f32 %v27364_v56, %v27451_v61  ;;  %v15560_v55 = vsub.f32 %v27382_v29, %v27451_v61  ;;  %v15582_v40 = vmul.f32 1.442695, %v15554_v60 }
 0xa44   :  { %26594 = vpow2.f32 %v15572_v20  ;;  %v15561_v27 = vsub.f32 %v27367_v32, %v27451_v61  ;;  %v15562_v62 = vsub.f32 %v27385_v30, %v27451_v61  ;;  %v15557_v56 = vsub.f32 %v27421_v17, %v15535_v47 }
 0xa45   :  { %26596 = vpow2.f32 %v15574_v21  ;;  %v15592_v6 = vmul.f32 1.442695, %v15559_v53  ;;  %v15594_v44 = vmul.f32 1.442695, %v15560_v55  ;;  %v15584_v29 = vmul.f32 1.442695, %v15555_v25 }
 0xa46   :  { %26598 = vpow2.f32 %v15576_v35  ;;  %v15563_v34 = vsub.f32 %v27388_v28, %v27451_v61  ;;  %v15596_v4 = vmul.f32 1.442695, %v15561_v27  ;;  %v15586_v54 = vmul.f32 1.442695, %v15556_v50 }
 0xa47   :  { %26600 = vpow2.f32 %v15578_v23  ;;  %v15564_v17 = vsub.f32 %v27396_v1, %v27451_v61  ;;  %v15598_v22 = vmul.f32 1.442695, %v15562_v62  ;;  %v15588_v58 = vmul.f32 1.442695, %v15557_v56 }
 0xa48   :  { %26602 = vpow2.f32 %v15580_v48  ;;  %v15565_v15 = vsub.f32 %v27414_v7, %v27451_v61  ;;  %v15600_v9 = vmul.f32 1.442695, %v15563_v34  ;;  %v15590_v49 = vmul.f32 1.442695, %v15558_v33 }
 0xa49   :  { %26604 = vpow2.f32 %v15582_v40  ;;  %v15566_v1 = vsub.f32 %v27425_v14, %v27451_v61  ;;  %v15602_v19 = vmul.f32 1.442695, %v15564_v17  ;;  %v15567_v7 = vsub.f32 %v27428_v18, %v27451_v61 }
 0xa4a   :  { %26606 = vpow2.f32 %v15592_v6  ;;  %v15604_v24 = vmul.f32 1.442695, %v15565_v15  ;;  %v15568_v14 = vsub.f32 %v27434_v31, %v27451_v61  ;;  %v15569_v13 = vsub.f32 %v27442_v51, %v27451_v61  ;;  %v26011_v15 = vld [vmem:[#allocation6 + $0x1e8] ss:$20 sps:$4 sm:$0xff]  }
 0xa4b   :  { %26608 = vpow2.f32 %v15594_v44  ;;  %v15606_v8 = vmul.f32 1.442695, %v15566_v1  ;;  %v15608_v16 = vmul.f32 1.442695, %v15567_v7  ;;  %v26017_v1 = vld [vmem:[#allocation6 + $0x210] ss:$20 sps:$4 sm:$0xff]  }
 0xa4c   :  { %26610 = vpow2.f32 %v15584_v29  ;;  %v15610_v37 = vmul.f32 1.442695, %v15568_v14  ;;  %v15612_v61 = vmul.f32 1.442695, %v15569_v13  ;;  %v26025_v7 = vld [vmem:[#allocation6 + $0x23c] ss:$20 sps:$4 sm:$0xff]  }
 0xa4d   :  { %v27466_v41 = vpop.eup %26592  ;;  %26612 = vpow2.f32 %v15596_v4  ;;  %v26028_v14 = vld [vmem:[#allocation6 + $0x25c] ss:$20 sps:$4 sm:$0xff]   ;;  %v26029_v13 = vld [vmem:[#allocation6 + $0x260] ss:$20 sps:$4 sm:$0xff]  }
 0xa4e   :  { %v27470_v32 = vpop.eup %26594  ;;  %26614 = vpow2.f32 %v15586_v54 }
 0xa4f   :  { %v15614_v30 = vadd.f32 %v27470_v32, %v27466_v41  ;;  %v27477_v26 = vpop.eup %26596  ;;  %26616 = vpow2.f32 %v15598_v22 }
 0xa50   :  { %v27482_v59 = vpop.eup %26598  ;;  %26618 = vpow2.f32 %v15588_v58  ;;  %v26008_v58 = vld [vmem:[#allocation6 + $0x1e0] ss:$20 sps:$4 sm:$0xff]  }
 0xa51   :  { %v15615_v28 = vadd.f32 %v27477_v26, %v15614_v30  ;;  %v27487_v38 = vpop.eup %26600  ;;  %26620 = vpow2.f32 %v15600_v9  ;;  %v26013_v9 = vld [vmem:[#allocation6 + $0x1ec] ss:$20 sps:$4 sm:$0xff]  }
 0xa52   :  { %v27492_v63 = vpop.eup %26602  ;;  %26622 = vpow2.f32 %v15590_v49  ;;  %18798 = vmatprep.subr.bf16.mxu0 %v26013_v9  ;;  %v26014_v49 = vld [vmem:[#allocation6 + $0x208] ss:$20 sps:$4 sm:$0xff]  }
 0xa53   :  { %v15616_v42 = vadd.f32 %v27482_v59, %v15615_v28  ;;  %v27494_v5 = vpop.eup %26604  ;;  %26624 = vpow2.f32 %v15602_v19  ;;  %v26010_v28 = vld [vmem:[#allocation6 + $0x1e4] ss:$20 sps:$4 sm:$0xff]   ;;  %18799 = vmatpush1.bf16.msra.mxu0 %v26011_v15  ;;  %v26019_v19 = vld [vmem:[#allocation6 + $0x214] ss:$20 sps:$4 sm:$0xff]  }
 0xa54   :  { %v27499_v10 = vpop.eup %26606  ;;  %26626 = vpow2.f32 %v15604_v24  ;;  %18540 = vmatprep.subr.bf16.mxu1 %v26010_v28  ;;  %18800 = vmatprep.subr.bf16.mxu0 %v26019_v19  ;;  %v26020_v24 = vld [vmem:[#allocation6 + $0x230] ss:$20 sps:$4 sm:$0xff]  }
 0xa55   :  { %v15617_v39 = vadd.f32 %v27487_v38, %v15616_v42  ;;  %v27501_v11 = vpop.eup %26608  ;;  %26628 = vpow2.f32 %v15606_v8  ;;  %18541 = vmatpush1.bf16.msra.mxu1 %v26008_v58  ;;  %v26016_v42 = vld [vmem:[#allocation6 + $0x20c] ss:$20 sps:$4 sm:$0xff]   ;;  %v26031_v8 = vld [vmem:[#allocation6 + $0x264] ss:$20 sps:$4 sm:$0xff]  }
 0xa56   :  { %v27506_v12 = vpop.eup %26610  ;;  %v15626_v20 = vadd.f32 %v27501_v11, %v27499_v10  ;;  %26630 = vpow2.f32 %v15608_v16  ;;  %18542 = vmatprep.subr.bf16.mxu1 %v26016_v42  ;;  %v26034_v16 = vld [vmem:[#allocation6 + $0x284] ss:$20 sps:$4 sm:$0xff]  }
 0xa57   :  { %v15618_v47 = vadd.f32 %v27492_v63, %v15617_v39  ;;  %v27510_v21 = vpop.eup %26612  ;;  %26632 = vpow2.f32 %v15610_v37  ;;  %v26022_v39 = vld [vmem:[#allocation6 + $0x234] ss:$20 sps:$4 sm:$0xff]   ;;  %18801 = vmatpush1.bf16.msra.mxu0 %v26017_v1  ;;  %v26041_v42 = vld [vmem:[#allocation6 + $0x2b0] ss:$20 sps:$4 sm:$0xff]  }
 0xa58   :  { %v27513_v35 = vpop.eup %26614  ;;  %v15627_v60 = vadd.f32 %v27510_v21, %v15626_v20  ;;  %26634 = vpow2.f32 %v15612_v61  ;;  %18802 = vmatprep.subr.bf16.mxu0 %v26025_v7  ;;  %v26037_v20 = vld [vmem:[#allocation6 + $0x28c] ss:$20 sps:$4 sm:$0xff]  }
 0xa59   :  { %v15619_v18 = vadd.f32 %v27494_v5, %v15618_v47  ;;  %v27516_v23 = vpop.eup %26616  ;;  %18543 = vmatpush1.bf16.msra.mxu1 %v26014_v49  ;;  %v26023_v47 = vld [vmem:[#allocation6 + $0x238] ss:$20 sps:$4 sm:$0xff]   ;;  %v26038_v49 = vld [vmem:[#allocation6 + $0x2a8] ss:$20 sps:$4 sm:$0xff]  }
 0xa5a   :  { %v27519_v53 = vpop.eup %26618  ;;  %v15628_v55 = vadd.f32 %v27516_v23, %v15627_v60  ;;  %18544 = vmatprep.subr.bf16.mxu1 %v26022_v39  ;;  %v26047_v7 = vld [vmem:[#allocation6 + $0x2d8] ss:$20 sps:$4 sm:$0xff]  }
 0xa5b   :  { %v15620_v31 = vadd.f32 %v27506_v12, %v15619_v18  ;;  %v27522_v25 = vpop.eup %26620  ;;  %v26026_v18 = vld [vmem:[#allocation6 + $0x258] ss:$20 sps:$4 sm:$0xff]   ;;  %18803 = vmatpush1.bf16.msra.mxu0 %v26023_v47 }
 0xa5c   :  { %v27525_v40 = vpop.eup %26622  ;;  %v15629_v27 = vadd.f32 %v27522_v25, %v15628_v55  ;;  %18804 = vmatprep.subr.bf16.mxu0 %v26031_v8  ;;  %v26055_v47 = vld [vmem:[#allocation6 + $0x304] ss:$20 sps:$4 sm:$0xff]   ;;  %v26053_v8 = vld [vmem:[#allocation6 + $0x300] ss:$20 sps:$4 sm:$0xff]  }
 0xa5d   :  { %v15621_v51 = vadd.f32 %v27513_v35, %v15620_v31  ;;  %v27528_v50 = vpop.eup %26624  ;;  %18545 = vmatpush1.bf16.msra.mxu1 %v26020_v24  ;;  %v26052_v24 = vld [vmem:[#allocation6 + $0x2fc] ss:$20 sps:$4 sm:$0xff]  }
 0xa5e   :  { %v15630_v62 = vadd.f32 %v27528_v50, %v15629_v27  ;;  %v27532_v44 = vpop.eup %26626  ;;  %18546 = vmatprep.subr.bf16.mxu1 %v26028_v14  ;;  %v26050_v14 = vld [vmem:[#allocation6 + $0x2f8] ss:$20 sps:$4 sm:$0xff]  }
 0xa5f   :  { %v15622_v48 = vadd.f32 %v27519_v53, %v15621_v51  ;;  %v27535_v29 = vpop.eup %26628  ;;  %18805 = vmatpush1.bf16.msra.mxu0 %v26029_v13  ;;  %v26061_v13 = vld [vmem:[#allocation6 + $0x32c] ss:$20 sps:$4 sm:$0xff]  }
 0xa60   :  { %v15631_v56 = vadd.f32 %v27532_v44, %v15630_v62  ;;  %v27538_v4 = vpop.eup %26630  ;;  %18817 = vmatprep.subr.bf16.mxu0 %v26037_v20  ;;  %v26059_v20 = vld [vmem:[#allocation6 + $0x328] ss:$20 sps:$4 sm:$0xff]  }
 0xa61   :  { %v15623_v6 = vadd.f32 %v27525_v40, %v15622_v48  ;;  %v27541_v54 = vpop.eup %26632  ;;  %18547 = vmatpush1.bf16.msra.mxu1 %v26026_v18  ;;  %v26058_v18 = vld [vmem:[#allocation6 + $0x324] ss:$20 sps:$4 sm:$0xff]  }
 0xa62   :  { %v15632_v34 = vadd.f32 %v27535_v29, %v15631_v56  ;;  %v27544_v17 = vpop.eup %26634  ;;  %18559 = vmatprep.subr.bf16.mxu1 %v26034_v16  ;;  %v26056_v16 = vld [vmem:[#allocation6 + $0x320] ss:$20 sps:$4 sm:$0xff]  }
 0xa63   :  { %15624 = vadd.xlane.f32.xlu1 %v15623_v6 }
 0xa64   :  { %v15633_v33 = vadd.f32 %v27538_v4, %v15632_v34 }
 0xa66   :  { %v15634_v30 = vadd.f32 %v27541_v54, %v15633_v33 }
 0xa68   :  { %v15635_v22 = vadd.f32 %v27544_v17, %v15634_v30 }
 0xa6a   :  { %15636 = vadd.xlane.f32.xlu1 %v15635_v22 }
 0xaf0   :  { %v15625_v31 = vpop.xlane.xlu1 %15624 }
 0xaf1   :  { %26636 = vrcp.f32 %v15625_v31  ;;  %v26064_v31 = vld [vmem:[#allocation6 + $0x34c] ss:$20 sps:$4 sm:$0xff]  }
 0xaf7   :  { %v15637_v37 = vpop.xlane.xlu1 %15636 }
 0xaf8   :  { %26638 = vrcp.f32 %v15637_v37  ;;  %v26067_v37 = vld [vmem:[#allocation6 + $0x354] ss:$20 sps:$4 sm:$0xff]  }
 0xafb   :  { %v26637_v60 = vpop.eup %26636 }
 0xafc   :  { %v15640_v51 = vmul.f32 %v26637_v60, %v27470_v32  ;;  %v15639_v61 = vmul.f32 %v26637_v60, %v27466_v41  ;;  %v15642_v55 = vmul.f32 %v26637_v60, %v27482_v59  ;;  %v15641_v48 = vmul.f32 %v26637_v60, %v27477_v26 }
 0xafd   :  { %v15644_v27 = vmul.f32 %v26637_v60, %v27492_v63  ;;  %v15643_v6 = vmul.f32 %v26637_v60, %v27487_v38  ;;  %v15646_v56 = vmul.f32 %v26637_v60, %v27506_v12  ;;  %v15645_v34 = vmul.f32 %v26637_v60, %v27494_v5 }
 0xafe   :  { %v15648_v33 = vmul.f32 %v26637_v60, %v27519_v53  ;;  %v15647_v30 = vmul.f32 %v26637_v60, %v27513_v35  ;;  %v26032_v53 = vld [vmem:[#allocation6 + $0x280] ss:$20 sps:$4 sm:$0xff]   ;;  %v26035_v35 = vld [vmem:[#allocation6 + $0x288] ss:$20 sps:$4 sm:$0xff]  }
 0xb02   :  { %v26639_v62 = vpop.eup %26638 }
 0xb03   :  { %v15652_v32 = vmul.f32 %v26639_v62, %v27501_v11  ;;  %v15651_v41 = vmul.f32 %v26639_v62, %v27499_v10  ;;  %v15654_v59 = vmul.f32 %v26639_v62, %v27516_v23  ;;  %v15653_v26 = vmul.f32 %v26639_v62, %v27510_v21 }
 0xb04   :  { %v15656_v63 = vmul.f32 %v26639_v62, %v27528_v50  ;;  %v15655_v38 = vmul.f32 %v26639_v62, %v27522_v25  ;;  %v15658_v12 = vmul.f32 %v26639_v62, %v27535_v29  ;;  %v15657_v5 = vmul.f32 %v26639_v62, %v27532_v44  ;;  %v26040_v44 = vld [vmem:[#allocation6 + $0x2ac] ss:$20 sps:$4 sm:$0xff]   ;;  %v26043_v29 = vld [vmem:[#allocation6 + $0x2b4] ss:$20 sps:$4 sm:$0xff]  }
 0xb05   :  { %v27565_v22 = vpack.c.bf16 %v15652_v32, %v15640_v51  ;;  %v27567_v58 = vpack.c.bf16 %v15651_v41, %v15639_v61  ;;  %v27569_v11 = vpack.c.bf16 %v15653_v26, %v15641_v48  ;;  %v15649_v10 = vmul.f32 %v26637_v60, %v27525_v40  ;;  %v26062_v60 = vld [vmem:[#allocation6 + $0x348] ss:$20 sps:$4 sm:$0xff]   ;;  %v26065_v51 = vld [vmem:[#allocation6 + $0x350] ss:$20 sps:$4 sm:$0xff]   ;;  %v26080_v32 = vld [vmem:[#allocation6 + $0x3c0] ss:$20 sps:$4 sm:$0xff]  }
 0xb06   :  { %v27572_v23 = vpack.c.bf16 %v15656_v63, %v15644_v27  ;;  %v27574_v21 = vpack.c.bf16 %v15655_v38, %v15643_v6  ;;  %v27576_v50 = vpack.c.bf16 %v15658_v12, %v15646_v56  ;;  %v27578_v25 = vpack.c.bf16 %v15657_v5, %v15645_v34  ;;  %v26070_v61 = vld [vmem:[#allocation6 + $0x374] ss:$20 sps:$4 sm:$0xff]   ;;  %v26068_v48 = vld [vmem:[#allocation6 + $0x370] ss:$20 sps:$4 sm:$0xff]   ;;  %v26071_v27 = vld [vmem:[#allocation6 + $0x378] ss:$20 sps:$4 sm:$0xff]  }
 0xb07   :  { %18548 = vmatprep.mubr.bf16.mxu1 %v27565_v22  ;;  %18806 = vmatprep.mubr.bf16.mxu0 %v27565_v22  ;;  %v15660_v28 = vmul.f32 %v26639_v62, %v27541_v54  ;;  %v15659_v15 = vmul.f32 %v26639_v62, %v27538_v4  ;;  %v15661_v40 = vmul.f32 %v26639_v62, %v27544_v17  ;;  %v26046_v4 = vld [vmem:[#allocation6 + $0x2d4] ss:$20 sps:$4 sm:$0xff]   ;;  %v26049_v54 = vld [vmem:[#allocation6 + $0x2dc] ss:$20 sps:$4 sm:$0xff]   ;;  %v26079_v62 = vld [vmem:[#allocation6 + $0x3a4] ss:$20 sps:$4 sm:$0xff]  }
 0xb08   :  { %18549 = vmatmul.mubr.bf16.vlgmr.msra.gmra.mrb[56].mxu1 %v27567_v58  ;;  %18807 = vmatmul.mubr.bf16.vlgmr.msra.gmra.mrb[12].mxu0 %v27567_v58  ;;  %v27587_v9 = vpack.c.bf16 %v15654_v59, %v15642_v55  ;;  %v26044_v17 = vld [vmem:[#allocation6 + $0x2d0] ss:$20 sps:$4 sm:$0xff]   ;;  %v26074_v56 = vld [vmem:[#allocation6 + $0x398] ss:$20 sps:$4 sm:$0xff]   ;;  %v26077_v34 = vld [vmem:[#allocation6 + $0x3a0] ss:$20 sps:$4 sm:$0xff]  }
 0xb09   :  { %18560 = vmatpush1.bf16.msra.mxu1 %v26032_v53  ;;  %18818 = vmatpush1.bf16.msra.mxu0 %v26035_v35  ;;  %v27589_v1 = vpack.c.bf16 %v15660_v28, %v15648_v33  ;;  %v27591_v19 = vpack.c.bf16 %v15659_v15, %v15647_v30  ;;  %v27593_v39 = vpack.c.bf16 %v15661_v40, %v15649_v10  ;;  %v26073_v55 = vld [vmem:[#allocation6 + $0x37c] ss:$20 sps:$4 sm:$0xff]   ;;  %v26082_v33 = vld [vmem:[#allocation6 + $0x3c4] ss:$20 sps:$4 sm:$0xff]   ;;  %v26085_v30 = vld [vmem:[#allocation6 + $0x3cc] ss:$20 sps:$4 sm:$0xff]  }
 0xb0a   :  { %18591 = vmatprep.mubr.bf16.mxu1 %v27587_v9  ;;  %18849 = vmatprep.mubr.bf16.mxu0 %v27587_v9  ;;  %v26076_v6 = vld [vmem:[#allocation6 + $0x39c] ss:$20 sps:$4 sm:$0xff]   ;;  %v26088_v59 = vld [vmem:[#allocation6 + $0x3ec] ss:$20 sps:$4 sm:$0xff]   ;;  %v26091_v26 = vld [vmem:[#allocation6 + $0x3f4] ss:$20 sps:$4 sm:$0xff]  }
 0xb0b   :  { %18561 = vmatprep.subr.bf16.mxu1 %v26040_v44  ;;  %18819 = vmatprep.subr.bf16.mxu0 %v26043_v29  ;;  %v26083_v41 = vld [vmem:[#allocation6 + $0x3c8] ss:$20 sps:$4 sm:$0xff]   ;;  %v26089_v38 = vld [vmem:[#allocation6 + $0x3f0] ss:$20 sps:$4 sm:$0xff]   ;;  %v26095_v35 = vld [vmem:[#allocation6 + $0x418] ss:$20 sps:$4 sm:$0xff]  }
 0xb0c   :  { %v26086_v63 = vld [vmem:[#allocation6 + $0x3e8] ss:$20 sps:$4 sm:$0xff]   ;;  %v26092_v53 = vld [vmem:[#allocation6 + $0x410] ss:$20 sps:$4 sm:$0xff]   ;;  %v26098_v29 = vld [vmem:[#allocation6 + $0x438] ss:$20 sps:$4 sm:$0xff]  }
 0xb0d   :  { %18562 = vmatpush1.bf16.msra.mxu1 %v26038_v49  ;;  %18820 = vmatpush1.bf16.msra.mxu0 %v26041_v42  ;;  %v26094_v12 = vld [vmem:[#allocation6 + $0x414] ss:$20 sps:$4 sm:$0xff]   ;;  %v26097_v5 = vld [vmem:[#allocation6 + $0x41c] ss:$20 sps:$4 sm:$0xff]   ;;  %v26103_v44 = vld [vmem:[#allocation6 + $0x444] ss:$20 sps:$4 sm:$0xff]  }
 0xb0e   :  { %18563 = vmatprep.subr.bf16.mxu1 %v26046_v4  ;;  %18821 = vmatprep.subr.bf16.mxu0 %v26049_v54  ;;  %v26100_v10 = vld [vmem:[#allocation6 + $0x43c] ss:$20 sps:$4 sm:$0xff]   ;;  %v26101_v28 = vld [vmem:[#allocation6 + $0x440] ss:$20 sps:$4 sm:$0xff]   ;;  %v26106_v15 = vld [vmem:[#allocation6 + $0x464] ss:$20 sps:$4 sm:$0xff]  }
 0xb0f   :  { %v26109_v40 = vld [vmem:[#allocation6 + $0x46c] ss:$20 sps:$4 sm:$0xff]   ;;  %v26107_v42 = vld [vmem:[#allocation6 + $0x468] ss:$20 sps:$4 sm:$0xff]  }
 0xb10   :  { %v26104_v49 = vld [vmem:[#allocation6 + $0x460] ss:$20 sps:$4 sm:$0xff]  }
 0xb11   :  { %18564 = vmatpush1.bf16.msra.mxu1 %v26044_v17  ;;  %18822 = vmatpush1.bf16.msra.mxu0 %v26047_v7  ;;  %v26112_v4 = vld [vmem:[#allocation6 + $0x48c] ss:$20 sps:$4 sm:$0xff]   ;;  %v26115_v54 = vld [vmem:[#allocation6 + $0x494] ss:$20 sps:$4 sm:$0xff]   ;;  %v26113_v7 = vld [vmem:[#allocation6 + $0x490] ss:$20 sps:$4 sm:$0xff]  }
 0xb12   :  { %18565 = vmatprep.subr.bf16.mxu1 %v26052_v24  ;;  %18823 = vmatprep.subr.bf16.mxu0 %v26055_v47  ;;  %v26110_v17 = vld [vmem:[#allocation6 + $0x488] ss:$20 sps:$4 sm:$0xff]  }
 0xb13   :  { %v26118_v24 = vld [vmem:[#allocation6 + $0x4b4] ss:$20 sps:$4 sm:$0xff]   ;;  %v26121_v47 = vld [vmem:[#allocation6 + $0x4bc] ss:$20 sps:$4 sm:$0xff]  }
 0xb15   :  { %18566 = vmatpush1.bf16.msra.mxu1 %v26050_v14  ;;  %18824 = vmatpush1.bf16.msra.mxu0 %v26053_v8  ;;  %v26116_v14 = vld [vmem:[#allocation6 + $0x4b0] ss:$20 sps:$4 sm:$0xff]   ;;  %v26119_v8 = vld [vmem:[#allocation6 + $0x4b8] ss:$20 sps:$4 sm:$0xff]  }
 0xb16   :  { %18567 = vmatprep.subr.bf16.mxu1 %v26058_v18  ;;  %18825 = vmatprep.subr.bf16.mxu0 %v26061_v13  ;;  %v26124_v18 = vld [vmem:[#allocation6 + $0x4dc] ss:$20 sps:$4 sm:$0xff]   ;;  %v26127_v13 = vld [vmem:[#allocation6 + $0x4e4] ss:$20 sps:$4 sm:$0xff]  }
 0xb19   :  { %18568 = vmatpush1.bf16.msra.mxu1 %v26056_v16  ;;  %18826 = vmatpush1.bf16.msra.mxu0 %v26059_v20  ;;  %v26122_v16 = vld [vmem:[#allocation6 + $0x4d8] ss:$20 sps:$4 sm:$0xff]   ;;  %v26125_v20 = vld [vmem:[#allocation6 + $0x4e0] ss:$20 sps:$4 sm:$0xff]  }
 0xb1a   :  { %18569 = vmatprep.subr.bf16.mxu1 %v26064_v31  ;;  %18827 = vmatprep.subr.bf16.mxu0 %v26067_v37  ;;  %v26130_v31 = vld [vmem:[#allocation6 + $0x504] ss:$20 sps:$4 sm:$0xff]   ;;  %v26133_v37 = vld [vmem:[#allocation6 + $0x50c] ss:$20 sps:$4 sm:$0xff]  }
 0xb1d   :  { %18570 = vmatpush1.bf16.msra.mxu1 %v26062_v60  ;;  %18828 = vmatpush1.bf16.msra.mxu0 %v26065_v51  ;;  %v26128_v60 = vld [vmem:[#allocation6 + $0x500] ss:$20 sps:$4 sm:$0xff]   ;;  %v26131_v51 = vld [vmem:[#allocation6 + $0x508] ss:$20 sps:$4 sm:$0xff]  }
 0xb1e   :  { %18571 = vmatprep.subr.bf16.mxu1 %v26070_v61  ;;  %18829 = vmatprep.subr.bf16.mxu0 %v26073_v55  ;;  %v26136_v61 = vld [vmem:[#allocation6 + $0x52c] ss:$20 sps:$4 sm:$0xff]   ;;  %v26139_v55 = vld [vmem:[#allocation6 + $0x534] ss:$20 sps:$4 sm:$0xff]  }
 0xb21   :  { %18572 = vmatpush1.bf16.msra.mxu1 %v26068_v48  ;;  %18830 = vmatpush1.bf16.msra.mxu0 %v26071_v27  ;;  %v26134_v48 = vld [vmem:[#allocation6 + $0x528] ss:$20 sps:$4 sm:$0xff]   ;;  %v26137_v27 = vld [vmem:[#allocation6 + $0x530] ss:$20 sps:$4 sm:$0xff]  }
 0xb22   :  { %18573 = vmatprep.subr.bf16.mxu1 %v26076_v6  ;;  %18831 = vmatprep.subr.bf16.mxu0 %v26079_v62  ;;  %v26142_v6 = vld [vmem:[#allocation6 + $0x554] ss:$20 sps:$4 sm:$0xff]   ;;  %v26145_v62 = vld [vmem:[#allocation6 + $0x55c] ss:$20 sps:$4 sm:$0xff]  }
 0xb25   :  { %18574 = vmatpush1.bf16.msra.mxu1 %v26074_v56  ;;  %18832 = vmatpush1.bf16.msra.mxu0 %v26077_v34  ;;  %v26140_v56 = vld [vmem:[#allocation6 + $0x550] ss:$20 sps:$4 sm:$0xff]   ;;  %v26143_v34 = vld [vmem:[#allocation6 + $0x558] ss:$20 sps:$4 sm:$0xff]  }
 0xb26   :  { %18575 = vmatprep.subr.bf16.mxu1 %v26082_v33  ;;  %18833 = vmatprep.subr.bf16.mxu0 %v26085_v30  ;;  %v26148_v33 = vld [vmem:[#allocation6 + $0x57c] ss:$20 sps:$4 sm:$0xff]   ;;  %v26151_v30 = vld [vmem:[#allocation6 + $0x584] ss:$20 sps:$4 sm:$0xff]  }
 0xb29   :  { %18576 = vmatpush1.bf16.msra.mxu1 %v26080_v32  ;;  %18834 = vmatpush1.bf16.msra.mxu0 %v26083_v41  ;;  %v26146_v32 = vld [vmem:[#allocation6 + $0x578] ss:$20 sps:$4 sm:$0xff]   ;;  %v26149_v41 = vld [vmem:[#allocation6 + $0x580] ss:$20 sps:$4 sm:$0xff]  }
 0xb2a   :  { %18577 = vmatprep.subr.bf16.mxu1 %v26088_v59  ;;  %18835 = vmatprep.subr.bf16.mxu0 %v26091_v26  ;;  %v26154_v59 = vld [vmem:[#allocation6 + $0x5a4] ss:$20 sps:$4 sm:$0xff]   ;;  %v26157_v26 = vld [vmem:[#allocation6 + $0x5ac] ss:$20 sps:$4 sm:$0xff]  }
 0xb2d   :  { %18578 = vmatpush1.bf16.msra.mxu1 %v26086_v63  ;;  %18836 = vmatpush1.bf16.msra.mxu0 %v26089_v38  ;;  %v26152_v63 = vld [vmem:[#allocation6 + $0x5a0] ss:$20 sps:$4 sm:$0xff]   ;;  %v26155_v38 = vld [vmem:[#allocation6 + $0x5a8] ss:$20 sps:$4 sm:$0xff]  }
 0xb2e   :  { %18579 = vmatprep.subr.bf16.mxu1 %v26094_v12  ;;  %18837 = vmatprep.subr.bf16.mxu0 %v26097_v5  ;;  %v26160_v12 = vld [vmem:[#allocation6 + $0x5cc] ss:$20 sps:$4 sm:$0xff]   ;;  %v26163_v5 = vld [vmem:[#allocation6 + $0x5d4] ss:$20 sps:$4 sm:$0xff]  }
 0xb31   :  { %18580 = vmatpush1.bf16.msra.mxu1 %v26092_v53  ;;  %18838 = vmatpush1.bf16.msra.mxu0 %v26095_v35  ;;  %v26158_v53 = vld [vmem:[#allocation6 + $0x5c8] ss:$20 sps:$4 sm:$0xff]   ;;  %v26161_v35 = vld [vmem:[#allocation6 + $0x5d0] ss:$20 sps:$4 sm:$0xff]  }
 0xb32   :  { %18581 = vmatprep.subr.bf16.mxu1 %v26100_v10  ;;  %18839 = vmatprep.subr.bf16.mxu0 %v26103_v44  ;;  %v26166_v10 = vld [vmem:[#allocation6 + $0x5f4] ss:$20 sps:$4 sm:$0xff]   ;;  %v26169_v44 = vld [vmem:[#allocation6 + $0x5fc] ss:$20 sps:$4 sm:$0xff]  }
 0xb35   :  { %18582 = vmatpush1.bf16.msra.mxu1 %v26098_v29  ;;  %18840 = vmatpush1.bf16.msra.mxu0 %v26101_v28  ;;  %v26164_v29 = vld [vmem:[#allocation6 + $0x5f0] ss:$20 sps:$4 sm:$0xff]   ;;  %v26167_v28 = vld [vmem:[#allocation6 + $0x5f8] ss:$20 sps:$4 sm:$0xff]  }
 0xb36   :  { %18583 = vmatprep.subr.bf16.mxu1 %v26106_v15  ;;  %18841 = vmatprep.subr.bf16.mxu0 %v26109_v40  ;;  %v26172_v15 = vld [vmem:[#allocation6 + $0x61c] ss:$20 sps:$4 sm:$0xff]   ;;  %v26175_v40 = vld [vmem:[#allocation6 + $0x624] ss:$20 sps:$4 sm:$0xff]  }
 0xb39   :  { %18584 = vmatpush1.bf16.msra.mxu1 %v26104_v49  ;;  %18842 = vmatpush1.bf16.msra.mxu0 %v26107_v42  ;;  %v26170_v49 = vld [vmem:[#allocation6 + $0x618] ss:$20 sps:$4 sm:$0xff]   ;;  %v26173_v42 = vld [vmem:[#allocation6 + $0x620] ss:$20 sps:$4 sm:$0xff]  }
 0xb3a   :  { %18585 = vmatprep.subr.bf16.mxu1 %v26112_v4  ;;  %18843 = vmatprep.subr.bf16.mxu0 %v26115_v54  ;;  %v26178_v4 = vld [vmem:[#allocation6 + $0x644] ss:$20 sps:$4 sm:$0xff]   ;;  %v26181_v54 = vld [vmem:[#allocation6 + $0x64c] ss:$20 sps:$4 sm:$0xff]  }
 0xb3d   :  { %18586 = vmatpush1.bf16.msra.mxu1 %v26110_v17  ;;  %18844 = vmatpush1.bf16.msra.mxu0 %v26113_v7  ;;  %v26176_v17 = vld [vmem:[#allocation6 + $0x640] ss:$20 sps:$4 sm:$0xff]   ;;  %v26179_v7 = vld [vmem:[#allocation6 + $0x648] ss:$20 sps:$4 sm:$0xff]  }
 0xb3e   :  { %18587 = vmatprep.subr.bf16.mxu1 %v26118_v24  ;;  %18845 = vmatprep.subr.bf16.mxu0 %v26121_v47  ;;  %v26184_v24 = vld [vmem:[#allocation6 + $0x66c] ss:$20 sps:$4 sm:$0xff]   ;;  %v26187_v47 = vld [vmem:[#allocation6 + $0x674] ss:$20 sps:$4 sm:$0xff]  }
 0xb41   :  { %18588 = vmatpush1.bf16.msra.mxu1 %v26116_v14  ;;  %18846 = vmatpush1.bf16.msra.mxu0 %v26119_v8  ;;  %v26182_v14 = vld [vmem:[#allocation6 + $0x668] ss:$20 sps:$4 sm:$0xff]   ;;  %v26185_v8 = vld [vmem:[#allocation6 + $0x670] ss:$20 sps:$4 sm:$0xff]  }
 0xb42   :  { %18589 = vmatprep.subr.bf16.mxu1 %v26124_v18  ;;  %18847 = vmatprep.subr.bf16.mxu0 %v26127_v13  ;;  %v26190_v18 = vld [vmem:[#allocation6 + $0x694] ss:$20 sps:$4 sm:$0xff]   ;;  %v26193_v13 = vld [vmem:[#allocation6 + $0x69c] ss:$20 sps:$4 sm:$0xff]  }
 0xb45   :  { %18590 = vmatpush1.bf16.msra.mxu1 %v26122_v16  ;;  %18848 = vmatpush1.bf16.msra.mxu0 %v26125_v20  ;;  %v26188_v16 = vld [vmem:[#allocation6 + $0x690] ss:$20 sps:$4 sm:$0xff]   ;;  %v26191_v20 = vld [vmem:[#allocation6 + $0x698] ss:$20 sps:$4 sm:$0xff]  }
 0xb46   :  { %18602 = vmatprep.subr.bf16.mxu1 %v26130_v31  ;;  %18860 = vmatprep.subr.bf16.mxu0 %v26133_v37  ;;  %v26196_v31 = vld [vmem:[#allocation6 + $0x6bc] ss:$20 sps:$4 sm:$0xff]   ;;  %v26199_v37 = vld [vmem:[#allocation6 + $0x6c4] ss:$20 sps:$4 sm:$0xff]  }
 0xb48   :  { %18592 = vmatmul.mubr.bf16.vlgmr.msra.gmra.mrb[56].mxu1 %v27569_v11  ;;  %18850 = vmatmul.mubr.bf16.vlgmr.msra.gmra.mrb[12].mxu0 %v27569_v11 }
 0xb49   :  { %18603 = vmatpush1.bf16.msra.mxu1 %v26128_v60  ;;  %18634 = vmatprep.mubr.bf16.mxu1 %v27572_v23  ;;  %v26194_v60 = vld [vmem:[#allocation6 + $0x6b8] ss:$20 sps:$4 sm:$0xff]  }
 0xb4a   :  { %18861 = vmatpush1.bf16.msra.mxu0 %v26131_v51  ;;  %18892 = vmatprep.mubr.bf16.mxu0 %v27572_v23  ;;  %v26197_v51 = vld [vmem:[#allocation6 + $0x6c0] ss:$20 sps:$4 sm:$0xff]  }
 0xb4b   :  { %18604 = vmatprep.subr.bf16.mxu1 %v26136_v61  ;;  %18862 = vmatprep.subr.bf16.mxu0 %v26139_v55  ;;  %v26202_v61 = vld [vmem:[#allocation6 + $0x6e4] ss:$20 sps:$4 sm:$0xff]   ;;  %v26205_v55 = vld [vmem:[#allocation6 + $0x6ec] ss:$20 sps:$4 sm:$0xff]  }
 0xb4d   :  { %18605 = vmatpush1.bf16.msra.mxu1 %v26134_v48  ;;  %v26200_v48 = vld [vmem:[#allocation6 + $0x6e0] ss:$20 sps:$4 sm:$0xff]  }
 0xb4e   :  { %18863 = vmatpush1.bf16.msra.mxu0 %v26137_v27  ;;  %18606 = vmatprep.subr.bf16.mxu1 %v26142_v6  ;;  %v26203_v27 = vld [vmem:[#allocation6 + $0x6e8] ss:$20 sps:$4 sm:$0xff]   ;;  %v26208_v6 = vld [vmem:[#allocation6 + $0x70c] ss:$20 sps:$4 sm:$0xff]  }
 0xb4f   :  { %18864 = vmatprep.subr.bf16.mxu0 %v26145_v62  ;;  %v26211_v62 = vld [vmem:[#allocation6 + $0x714] ss:$20 sps:$4 sm:$0xff]  }
 0xb51   :  { %18607 = vmatpush1.bf16.msra.mxu1 %v26140_v56  ;;  %v26206_v56 = vld [vmem:[#allocation6 + $0x708] ss:$20 sps:$4 sm:$0xff]  }
 0xb52   :  { %18865 = vmatpush1.bf16.msra.mxu0 %v26143_v34  ;;  %18608 = vmatprep.subr.bf16.mxu1 %v26148_v33  ;;  %v26209_v34 = vld [vmem:[#allocation6 + $0x710] ss:$20 sps:$4 sm:$0xff]   ;;  %v26214_v33 = vld [vmem:[#allocation6 + $0x734] ss:$20 sps:$4 sm:$0xff]  }
 0xb53   :  { %18866 = vmatprep.subr.bf16.mxu0 %v26151_v30  ;;  %v26217_v30 = vld [vmem:[#allocation6 + $0x73c] ss:$20 sps:$4 sm:$0xff]  }
 0xb55   :  { %18609 = vmatpush1.bf16.msra.mxu1 %v26146_v32  ;;  %v26212_v32 = vld [vmem:[#allocation6 + $0x730] ss:$20 sps:$4 sm:$0xff]  }
 0xb56   :  { %18867 = vmatpush1.bf16.msra.mxu0 %v26149_v41  ;;  %18610 = vmatprep.subr.bf16.mxu1 %v26154_v59  ;;  %v26215_v41 = vld [vmem:[#allocation6 + $0x738] ss:$20 sps:$4 sm:$0xff]   ;;  %v26220_v59 = vld [vmem:[#allocation6 + $0x75c] ss:$20 sps:$4 sm:$0xff]  }
 0xb57   :  { %18868 = vmatprep.subr.bf16.mxu0 %v26157_v26  ;;  %v26223_v26 = vld [vmem:[#allocation6 + $0x764] ss:$20 sps:$4 sm:$0xff]  }
 0xb59   :  { %18611 = vmatpush1.bf16.msra.mxu1 %v26152_v63  ;;  %v26218_v63 = vld [vmem:[#allocation6 + $0x758] ss:$20 sps:$4 sm:$0xff]  }
 0xb5a   :  { %18869 = vmatpush1.bf16.msra.mxu0 %v26155_v38  ;;  %18612 = vmatprep.subr.bf16.mxu1 %v26160_v12  ;;  %v26221_v38 = vld [vmem:[#allocation6 + $0x760] ss:$20 sps:$4 sm:$0xff]   ;;  %v26226_v12 = vld [vmem:[#allocation6 + $0x784] ss:$20 sps:$4 sm:$0xff]  }
 0xb5b   :  { %18870 = vmatprep.subr.bf16.mxu0 %v26163_v5  ;;  %v26229_v5 = vld [vmem:[#allocation6 + $0x78c] ss:$20 sps:$4 sm:$0xff]  }
 0xb5d   :  { %18613 = vmatpush1.bf16.msra.mxu1 %v26158_v53  ;;  %v26224_v53 = vld [vmem:[#allocation6 + $0x780] ss:$20 sps:$4 sm:$0xff]  }
 0xb5e   :  { %18871 = vmatpush1.bf16.msra.mxu0 %v26161_v35  ;;  %18614 = vmatprep.subr.bf16.mxu1 %v26166_v10  ;;  %v26227_v35 = vld [vmem:[#allocation6 + $0x788] ss:$20 sps:$4 sm:$0xff]   ;;  %v26232_v10 = vld [vmem:[#allocation6 + $0x7ac] ss:$20 sps:$4 sm:$0xff]  }
 0xb5f   :  { %18872 = vmatprep.subr.bf16.mxu0 %v26169_v44  ;;  %v26235_v44 = vld [vmem:[#allocation6 + $0x7b4] ss:$20 sps:$4 sm:$0xff]  }
 0xb61   :  { %18615 = vmatpush1.bf16.msra.mxu1 %v26164_v29  ;;  %v26230_v29 = vld [vmem:[#allocation6 + $0x7a8] ss:$20 sps:$4 sm:$0xff]  }
 0xb62   :  { %18873 = vmatpush1.bf16.msra.mxu0 %v26167_v28  ;;  %18616 = vmatprep.subr.bf16.mxu1 %v26172_v15  ;;  %v26233_v28 = vld [vmem:[#allocation6 + $0x7b0] ss:$20 sps:$4 sm:$0xff]   ;;  %v26238_v15 = vld [vmem:[#allocation6 + $0x7d4] ss:$20 sps:$4 sm:$0xff]  }
 0xb63   :  { %18874 = vmatprep.subr.bf16.mxu0 %v26175_v40  ;;  %v26241_v40 = vld [vmem:[#allocation6 + $0x7dc] ss:$20 sps:$4 sm:$0xff]  }
 0xb65   :  { %18617 = vmatpush1.bf16.msra.mxu1 %v26170_v49  ;;  %v26236_v49 = vld [vmem:[#allocation6 + $0x7d0] ss:$20 sps:$4 sm:$0xff]  }
 0xb66   :  { %18875 = vmatpush1.bf16.msra.mxu0 %v26173_v42  ;;  %18618 = vmatprep.subr.bf16.mxu1 %v26178_v4  ;;  %v26239_v42 = vld [vmem:[#allocation6 + $0x7d8] ss:$20 sps:$4 sm:$0xff]   ;;  %v26244_v4 = vld [vmem:[#allocation6 + $0x7fc] ss:$20 sps:$4 sm:$0xff]  }
 0xb67   :  { %18876 = vmatprep.subr.bf16.mxu0 %v26181_v54  ;;  %v26247_v54 = vld [vmem:[#allocation6 + $0x804] ss:$20 sps:$4 sm:$0xff]  }
 0xb69   :  { %18619 = vmatpush1.bf16.msra.mxu1 %v26176_v17  ;;  %v26242_v17 = vld [vmem:[#allocation6 + $0x7f8] ss:$20 sps:$4 sm:$0xff]  }
 0xb6a   :  { %18877 = vmatpush1.bf16.msra.mxu0 %v26179_v7  ;;  %18620 = vmatprep.subr.bf16.mxu1 %v26184_v24  ;;  %v26245_v7 = vld [vmem:[#allocation6 + $0x800] ss:$20 sps:$4 sm:$0xff]   ;;  %v26250_v24 = vld [vmem:[#allocation6 + $0x824] ss:$20 sps:$4 sm:$0xff]  }
 0xb6b   :  { %18878 = vmatprep.subr.bf16.mxu0 %v26187_v47  ;;  %v26253_v47 = vld [vmem:[#allocation6 + $0x82c] ss:$20 sps:$4 sm:$0xff]  }
 0xb6d   :  { %18621 = vmatpush1.bf16.msra.mxu1 %v26182_v14  ;;  %v26248_v14 = vld [vmem:[#allocation6 + $0x820] ss:$20 sps:$4 sm:$0xff]  }
 0xb6e   :  { %18879 = vmatpush1.bf16.msra.mxu0 %v26185_v8  ;;  %18622 = vmatprep.subr.bf16.mxu1 %v26190_v18  ;;  %v26251_v8 = vld [vmem:[#allocation6 + $0x828] ss:$20 sps:$4 sm:$0xff]   ;;  %v26256_v18 = vld [vmem:[#allocation6 + $0x84c] ss:$20 sps:$4 sm:$0xff]  }
 0xb6f   :  { %18880 = vmatprep.subr.bf16.mxu0 %v26193_v13  ;;  %v26259_v13 = vld [vmem:[#allocation6 + $0x854] ss:$20 sps:$4 sm:$0xff]  }
 0xb71   :  { %18623 = vmatpush1.bf16.msra.mxu1 %v26188_v16  ;;  %v26254_v16 = vld [vmem:[#allocation6 + $0x848] ss:$20 sps:$4 sm:$0xff]  }
 0xb72   :  { %18881 = vmatpush1.bf16.msra.mxu0 %v26191_v20  ;;  %18624 = vmatprep.subr.bf16.mxu1 %v26196_v31  ;;  %v26257_v20 = vld [vmem:[#allocation6 + $0x850] ss:$20 sps:$4 sm:$0xff]   ;;  %v26262_v31 = vld [vmem:[#allocation6 + $0x874] ss:$20 sps:$4 sm:$0xff]  }
 0xb73   :  { %18882 = vmatprep.subr.bf16.mxu0 %v26199_v37  ;;  %v26265_v37 = vld [vmem:[#allocation6 + $0x87c] ss:$20 sps:$4 sm:$0xff]  }
 0xb75   :  { %18625 = vmatpush1.bf16.msra.mxu1 %v26194_v60  ;;  %v26260_v60 = vld [vmem:[#allocation6 + $0x870] ss:$20 sps:$4 sm:$0xff]  }
 0xb76   :  { %18883 = vmatpush1.bf16.msra.mxu0 %v26197_v51  ;;  %18626 = vmatprep.subr.bf16.mxu1 %v26202_v61  ;;  %v26263_v51 = vld [vmem:[#allocation6 + $0x878] ss:$20 sps:$4 sm:$0xff]   ;;  %v26268_v61 = vld [vmem:[#allocation6 + $0x89c] ss:$20 sps:$4 sm:$0xff]  }
 0xb77   :  { %18884 = vmatprep.subr.bf16.mxu0 %v26205_v55  ;;  %v26271_v55 = vld [vmem:[#allocation6 + $0x8a4] ss:$20 sps:$4 sm:$0xff]  }
 0xb79   :  { %18627 = vmatpush1.bf16.msra.mxu1 %v26200_v48  ;;  %v26266_v48 = vld [vmem:[#allocation6 + $0x898] ss:$20 sps:$4 sm:$0xff]  }
 0xb7a   :  { %18885 = vmatpush1.bf16.msra.mxu0 %v26203_v27  ;;  %18628 = vmatprep.subr.bf16.mxu1 %v26208_v6  ;;  %v26269_v27 = vld [vmem:[#allocation6 + $0x8a0] ss:$20 sps:$4 sm:$0xff]   ;;  %v26274_v6 = vld [vmem:[#allocation6 + $0x8c4] ss:$20 sps:$4 sm:$0xff]  }
 0xb7b   :  { %18886 = vmatprep.subr.bf16.mxu0 %v26211_v62  ;;  %v26277_v62 = vld [vmem:[#allocation6 + $0x8cc] ss:$20 sps:$4 sm:$0xff]  }
 0xb7d   :  { %18629 = vmatpush1.bf16.msra.mxu1 %v26206_v56  ;;  %v26272_v56 = vld [vmem:[#allocation6 + $0x8c0] ss:$20 sps:$4 sm:$0xff]  }
 0xb7e   :  { %18887 = vmatpush1.bf16.msra.mxu0 %v26209_v34  ;;  %18630 = vmatprep.subr.bf16.mxu1 %v26214_v33  ;;  %v26275_v34 = vld [vmem:[#allocation6 + $0x8c8] ss:$20 sps:$4 sm:$0xff]   ;;  %v26280_v33 = vld [vmem:[#allocation6 + $0x8ec] ss:$20 sps:$4 sm:$0xff]  }
 0xb7f   :  { %18888 = vmatprep.subr.bf16.mxu0 %v26217_v30  ;;  %v26283_v30 = vld [vmem:[#allocation6 + $0x8f4] ss:$20 sps:$4 sm:$0xff]  }
 0xb81   :  { %18631 = vmatpush1.bf16.msra.mxu1 %v26212_v32  ;;  %v26278_v32 = vld [vmem:[#allocation6 + $0x8e8] ss:$20 sps:$4 sm:$0xff]  }
 0xb82   :  { %18889 = vmatpush1.bf16.msra.mxu0 %v26215_v41  ;;  %18632 = vmatprep.subr.bf16.mxu1 %v26220_v59  ;;  %v26281_v41 = vld [vmem:[#allocation6 + $0x8f0] ss:$20 sps:$4 sm:$0xff]   ;;  %v26286_v59 = vld [vmem:[#allocation6 + $0x914] ss:$20 sps:$4 sm:$0xff]  }
 0xb83   :  { %18890 = vmatprep.subr.bf16.mxu0 %v26223_v26  ;;  %v26289_v26 = vld [vmem:[#allocation6 + $0x91c] ss:$20 sps:$4 sm:$0xff]  }
 0xb85   :  { %18633 = vmatpush1.bf16.msra.mxu1 %v26218_v63  ;;  %v26284_v63 = vld [vmem:[#allocation6 + $0x910] ss:$20 sps:$4 sm:$0xff]  }
 0xb86   :  { %18891 = vmatpush1.bf16.msra.mxu0 %v26221_v38  ;;  %18645 = vmatprep.subr.bf16.mxu1 %v26226_v12  ;;  %v26287_v38 = vld [vmem:[#allocation6 + $0x918] ss:$20 sps:$4 sm:$0xff]   ;;  %v26292_v12 = vld [vmem:[#allocation6 + $0x93c] ss:$20 sps:$4 sm:$0xff]  }
 0xb87   :  { %18903 = vmatprep.subr.bf16.mxu0 %v26229_v5  ;;  %v26295_v5 = vld [vmem:[#allocation6 + $0x944] ss:$20 sps:$4 sm:$0xff]  }
 0xb88   :  { %18635 = vmatmul.mubr.bf16.vlgmr.msra.gmra.mrb[56].mxu1 %v27574_v21 }
 0xb89   :  { %18893 = vmatmul.mubr.bf16.vlgmr.msra.gmra.mrb[12].mxu0 %v27574_v21  ;;  %18646 = vmatpush1.bf16.msra.mxu1 %v26224_v53  ;;  %v26290_v53 = vld [vmem:[#allocation6 + $0x938] ss:$20 sps:$4 sm:$0xff]  }
 0xb8a   :  { %18677 = vmatprep.mubr.bf16.mxu1 %v27576_v50  ;;  %18904 = vmatpush1.bf16.msra.mxu0 %v26227_v35  ;;  %v26293_v35 = vld [vmem:[#allocation6 + $0x940] ss:$20 sps:$4 sm:$0xff]  }
 0xb8b   :  { %18935 = vmatprep.mubr.bf16.mxu0 %v27576_v50  ;;  %18647 = vmatprep.subr.bf16.mxu1 %v26232_v10  ;;  %v26298_v10 = vld [vmem:[#allocation6 + $0x964] ss:$20 sps:$4 sm:$0xff]  }
 0xb8c   :  { %18905 = vmatprep.subr.bf16.mxu0 %v26235_v44  ;;  %v26301_v44 = vld [vmem:[#allocation6 + $0x96c] ss:$20 sps:$4 sm:$0xff]  }
 0xb8d   :  { %18648 = vmatpush1.bf16.msra.mxu1 %v26230_v29  ;;  %v26296_v29 = vld [vmem:[#allocation6 + $0x960] ss:$20 sps:$4 sm:$0xff]  }
 0xb8e   :  { %18906 = vmatpush1.bf16.msra.mxu0 %v26233_v28  ;;  %18649 = vmatprep.subr.bf16.mxu1 %v26238_v15  ;;  %v26299_v28 = vld [vmem:[#allocation6 + $0x968] ss:$20 sps:$4 sm:$0xff]   ;;  %v26304_v15 = vld [vmem:[#allocation6 + $0x98c] ss:$20 sps:$4 sm:$0xff]  }
 0xb8f   :  { %18907 = vmatprep.subr.bf16.mxu0 %v26241_v40  ;;  %v26307_v40 = vld [vmem:[#allocation6 + $0x994] ss:$20 sps:$4 sm:$0xff]  }
 0xb91   :  { %18650 = vmatpush1.bf16.msra.mxu1 %v26236_v49  ;;  %v26302_v49 = vld [vmem:[#allocation6 + $0x988] ss:$20 sps:$4 sm:$0xff]  }
 0xb92   :  { %18908 = vmatpush1.bf16.msra.mxu0 %v26239_v42  ;;  %18651 = vmatprep.subr.bf16.mxu1 %v26244_v4  ;;  %v26305_v42 = vld [vmem:[#allocation6 + $0x990] ss:$20 sps:$4 sm:$0xff]   ;;  %v26310_v4 = vld [vmem:[#allocation6 + $0x9b4] ss:$20 sps:$4 sm:$0xff]  }
 0xb93   :  { %18909 = vmatprep.subr.bf16.mxu0 %v26247_v54  ;;  %v26313_v54 = vld [vmem:[#allocation6 + $0x9bc] ss:$20 sps:$4 sm:$0xff]  }
 0xb95   :  { %18652 = vmatpush1.bf16.msra.mxu1 %v26242_v17  ;;  %v26308_v17 = vld [vmem:[#allocation6 + $0x9b0] ss:$20 sps:$4 sm:$0xff]  }
 0xb96   :  { %18910 = vmatpush1.bf16.msra.mxu0 %v26245_v7  ;;  %18653 = vmatprep.subr.bf16.mxu1 %v26250_v24  ;;  %v26311_v7 = vld [vmem:[#allocation6 + $0x9b8] ss:$20 sps:$4 sm:$0xff]   ;;  %v26316_v24 = vld [vmem:[#allocation6 + $0x9dc] ss:$20 sps:$4 sm:$0xff]  }
 0xb97   :  { %18911 = vmatprep.subr.bf16.mxu0 %v26253_v47  ;;  %v26319_v47 = vld [vmem:[#allocation6 + $0x9e4] ss:$20 sps:$4 sm:$0xff]  }
 0xb99   :  { %18654 = vmatpush1.bf16.msra.mxu1 %v26248_v14  ;;  %v26314_v14 = vld [vmem:[#allocation6 + $0x9d8] ss:$20 sps:$4 sm:$0xff]  }
 0xb9a   :  { %18912 = vmatpush1.bf16.msra.mxu0 %v26251_v8  ;;  %18655 = vmatprep.subr.bf16.mxu1 %v26256_v18  ;;  %v26317_v8 = vld [vmem:[#allocation6 + $0x9e0] ss:$20 sps:$4 sm:$0xff]   ;;  %v26322_v18 = vld [vmem:[#allocation6 + $0xa04] ss:$20 sps:$4 sm:$0xff]  }
 0xb9b   :  { %18913 = vmatprep.subr.bf16.mxu0 %v26259_v13  ;;  %v26325_v13 = vld [vmem:[#allocation6 + $0xa0c] ss:$20 sps:$4 sm:$0xff]  }
 0xb9d   :  { %18656 = vmatpush1.bf16.msra.mxu1 %v26254_v16  ;;  %v26320_v16 = vld [vmem:[#allocation6 + $0xa00] ss:$20 sps:$4 sm:$0xff]  }
 0xb9e   :  { %18914 = vmatpush1.bf16.msra.mxu0 %v26257_v20  ;;  %18657 = vmatprep.subr.bf16.mxu1 %v26262_v31  ;;  %v26323_v20 = vld [vmem:[#allocation6 + $0xa08] ss:$20 sps:$4 sm:$0xff]   ;;  %v26328_v31 = vld [vmem:[#allocation6 + $0xa2c] ss:$20 sps:$4 sm:$0xff]  }
 0xb9f   :  { %18915 = vmatprep.subr.bf16.mxu0 %v26265_v37  ;;  %v26331_v37 = vld [vmem:[#allocation6 + $0xa34] ss:$20 sps:$4 sm:$0xff]  }
 0xba1   :  { %18658 = vmatpush1.bf16.msra.mxu1 %v26260_v60  ;;  %v26326_v60 = vld [vmem:[#allocation6 + $0xa28] ss:$20 sps:$4 sm:$0xff]  }
 0xba2   :  { %18916 = vmatpush1.bf16.msra.mxu0 %v26263_v51  ;;  %18659 = vmatprep.subr.bf16.mxu1 %v26268_v61  ;;  %v26329_v51 = vld [vmem:[#allocation6 + $0xa30] ss:$20 sps:$4 sm:$0xff]   ;;  %v26334_v61 = vld [vmem:[#allocation6 + $0xa54] ss:$20 sps:$4 sm:$0xff]  }
 0xba3   :  { %18917 = vmatprep.subr.bf16.mxu0 %v26271_v55  ;;  %v26337_v55 = vld [vmem:[#allocation6 + $0xa5c] ss:$20 sps:$4 sm:$0xff]  }
 0xba5   :  { %18660 = vmatpush1.bf16.msra.mxu1 %v26266_v48  ;;  %v26332_v48 = vld [vmem:[#allocation6 + $0xa50] ss:$20 sps:$4 sm:$0xff]  }
 0xba6   :  { %18918 = vmatpush1.bf16.msra.mxu0 %v26269_v27  ;;  %18661 = vmatprep.subr.bf16.mxu1 %v26274_v6  ;;  %v26335_v27 = vld [vmem:[#allocation6 + $0xa58] ss:$20 sps:$4 sm:$0xff]   ;;  %v26340_v6 = vld [vmem:[#allocation6 + $0xa7c] ss:$20 sps:$4 sm:$0xff]  }
 0xba7   :  { %18919 = vmatprep.subr.bf16.mxu0 %v26277_v62  ;;  %v26343_v62 = vld [vmem:[#allocation6 + $0xa84] ss:$20 sps:$4 sm:$0xff]  }
 0xba9   :  { %18662 = vmatpush1.bf16.msra.mxu1 %v26272_v56  ;;  %v26338_v56 = vld [vmem:[#allocation6 + $0xa78] ss:$20 sps:$4 sm:$0xff]  }
 0xbaa   :  { %18920 = vmatpush1.bf16.msra.mxu0 %v26275_v34  ;;  %18663 = vmatprep.subr.bf16.mxu1 %v26280_v33  ;;  %v26341_v34 = vld [vmem:[#allocation6 + $0xa80] ss:$20 sps:$4 sm:$0xff]   ;;  %v26346_v33 = vld [vmem:[#allocation6 + $0xaa4] ss:$20 sps:$4 sm:$0xff]  }
 0xbab   :  { %18921 = vmatprep.subr.bf16.mxu0 %v26283_v30  ;;  %v26349_v30 = vld [vmem:[#allocation6 + $0xaac] ss:$20 sps:$4 sm:$0xff]  }
 0xbad   :  { %18664 = vmatpush1.bf16.msra.mxu1 %v26278_v32  ;;  %v26344_v32 = vld [vmem:[#allocation6 + $0xaa0] ss:$20 sps:$4 sm:$0xff]  }
 0xbae   :  { %18922 = vmatpush1.bf16.msra.mxu0 %v26281_v41  ;;  %18665 = vmatprep.subr.bf16.mxu1 %v26286_v59  ;;  %v26347_v41 = vld [vmem:[#allocation6 + $0xaa8] ss:$20 sps:$4 sm:$0xff]   ;;  %v26352_v59 = vld [vmem:[#allocation6 + $0xacc] ss:$20 sps:$4 sm:$0xff]  }
 0xbaf   :  { %18923 = vmatprep.subr.bf16.mxu0 %v26289_v26  ;;  %v26355_v26 = vld [vmem:[#allocation6 + $0xad4] ss:$20 sps:$4 sm:$0xff]  }
 0xbb1   :  { %18666 = vmatpush1.bf16.msra.mxu1 %v26284_v63  ;;  %v26350_v63 = vld [vmem:[#allocation6 + $0xac8] ss:$20 sps:$4 sm:$0xff]  }
 0xbb2   :  { %18924 = vmatpush1.bf16.msra.mxu0 %v26287_v38  ;;  %18667 = vmatprep.subr.bf16.mxu1 %v26292_v12  ;;  %v26353_v38 = vld [vmem:[#allocation6 + $0xad0] ss:$20 sps:$4 sm:$0xff]   ;;  %v26358_v12 = vld [vmem:[#allocation6 + $0xaf4] ss:$20 sps:$4 sm:$0xff]  }
 0xbb3   :  { %18925 = vmatprep.subr.bf16.mxu0 %v26295_v5  ;;  %v26361_v5 = vld [vmem:[#allocation6 + $0xafc] ss:$20 sps:$4 sm:$0xff]  }
 0xbb5   :  { %18668 = vmatpush1.bf16.msra.mxu1 %v26290_v53  ;;  %v26356_v53 = vld [vmem:[#allocation6 + $0xaf0] ss:$20 sps:$4 sm:$0xff]  }
 0xbb6   :  { %18926 = vmatpush1.bf16.msra.mxu0 %v26293_v35  ;;  %18669 = vmatprep.subr.bf16.mxu1 %v26298_v10  ;;  %v26359_v35 = vld [vmem:[#allocation6 + $0xaf8] ss:$20 sps:$4 sm:$0xff]   ;;  %v26364_v10 = vld [vmem:[#allocation6 + $0xb1c] ss:$20 sps:$4 sm:$0xff]  }
 0xbb7   :  { %18927 = vmatprep.subr.bf16.mxu0 %v26301_v44  ;;  %v26367_v44 = vld [vmem:[#allocation6 + $0xb24] ss:$20 sps:$4 sm:$0xff]  }
 0xbb9   :  { %18670 = vmatpush1.bf16.msra.mxu1 %v26296_v29  ;;  %v26362_v29 = vld [vmem:[#allocation6 + $0xb18] ss:$20 sps:$4 sm:$0xff]  }
 0xbba   :  { %18928 = vmatpush1.bf16.msra.mxu0 %v26299_v28  ;;  %18671 = vmatprep.subr.bf16.mxu1 %v26304_v15  ;;  %v26365_v28 = vld [vmem:[#allocation6 + $0xb20] ss:$20 sps:$4 sm:$0xff]   ;;  %v26370_v15 = vld [vmem:[#allocation6 + $0xb44] ss:$20 sps:$4 sm:$0xff]  }
 0xbbb   :  { %18929 = vmatprep.subr.bf16.mxu0 %v26307_v40  ;;  %v26373_v40 = vld [vmem:[#allocation6 + $0xb4c] ss:$20 sps:$4 sm:$0xff]  }
 0xbbd   :  { %18672 = vmatpush1.bf16.msra.mxu1 %v26302_v49  ;;  %v26368_v49 = vld [vmem:[#allocation6 + $0xb40] ss:$20 sps:$4 sm:$0xff]  }
 0xbbe   :  { %18930 = vmatpush1.bf16.msra.mxu0 %v26305_v42  ;;  %18673 = vmatprep.subr.bf16.mxu1 %v26310_v4  ;;  %v26371_v42 = vld [vmem:[#allocation6 + $0xb48] ss:$20 sps:$4 sm:$0xff]   ;;  %v26376_v4 = vld [vmem:[#allocation6 + $0xb6c] ss:$20 sps:$4 sm:$0xff]  }
 0xbbf   :  { %18931 = vmatprep.subr.bf16.mxu0 %v26313_v54  ;;  %v26379_v54 = vld [vmem:[#allocation6 + $0xb74] ss:$20 sps:$4 sm:$0xff]  }
 0xbc1   :  { %18674 = vmatpush1.bf16.msra.mxu1 %v26308_v17  ;;  %v26374_v17 = vld [vmem:[#allocation6 + $0xb68] ss:$20 sps:$4 sm:$0xff]  }
 0xbc2   :  { %18932 = vmatpush1.bf16.msra.mxu0 %v26311_v7  ;;  %18675 = vmatprep.subr.bf16.mxu1 %v26316_v24  ;;  %v26377_v7 = vld [vmem:[#allocation6 + $0xb70] ss:$20 sps:$4 sm:$0xff]   ;;  %v26382_v24 = vld [vmem:[#allocation6 + $0xb94] ss:$20 sps:$4 sm:$0xff]  }
 0xbc3   :  { %18933 = vmatprep.subr.bf16.mxu0 %v26319_v47  ;;  %v26385_v47 = vld [vmem:[#allocation6 + $0xb9c] ss:$20 sps:$4 sm:$0xff]  }
 0xbc5   :  { %18676 = vmatpush1.bf16.msra.mxu1 %v26314_v14  ;;  %v26380_v14 = vld [vmem:[#allocation6 + $0xb90] ss:$20 sps:$4 sm:$0xff]  }
 0xbc6   :  { %18934 = vmatpush1.bf16.msra.mxu0 %v26317_v8  ;;  %18688 = vmatprep.subr.bf16.mxu1 %v26322_v18  ;;  %v26383_v8 = vld [vmem:[#allocation6 + $0xb98] ss:$20 sps:$4 sm:$0xff]   ;;  %v26388_v18 = vld [vmem:[#allocation6 + $0xbbc] ss:$20 sps:$4 sm:$0xff]  }
 0xbc7   :  { %18946 = vmatprep.subr.bf16.mxu0 %v26325_v13  ;;  %v26391_v13 = vld [vmem:[#allocation6 + $0xbc4] ss:$20 sps:$4 sm:$0xff]  }
 0xbc8   :  { %18678 = vmatmul.mubr.bf16.vlgmr.msra.gmra.mrb[56].mxu1 %v27578_v25 }
 0xbc9   :  { %18936 = vmatmul.mubr.bf16.vlgmr.msra.gmra.mrb[12].mxu0 %v27578_v25  ;;  %18689 = vmatpush1.bf16.msra.mxu1 %v26320_v16  ;;  %v26386_v16 = vld [vmem:[#allocation6 + $0xbb8] ss:$20 sps:$4 sm:$0xff]  }
 0xbca   :  { %18720 = vmatprep.mubr.bf16.mxu1 %v27589_v1  ;;  %18947 = vmatpush1.bf16.msra.mxu0 %v26323_v20  ;;  %v26389_v20 = vld [vmem:[#allocation6 + $0xbc0] ss:$20 sps:$4 sm:$0xff]  }
 0xbcb   :  { %18978 = vmatprep.mubr.bf16.mxu0 %v27589_v1  ;;  %18690 = vmatprep.subr.bf16.mxu1 %v26328_v31  ;;  %v26394_v31 = vld [vmem:[#allocation6 + $0xbe4] ss:$20 sps:$4 sm:$0xff]  }
 0xbcc   :  { %18948 = vmatprep.subr.bf16.mxu0 %v26331_v37  ;;  %v26397_v37 = vld [vmem:[#allocation6 + $0xbec] ss:$20 sps:$4 sm:$0xff]  }
 0xbcd   :  { %18691 = vmatpush1.bf16.msra.mxu1 %v26326_v60  ;;  %v26392_v60 = vld [vmem:[#allocation6 + $0xbe0] ss:$20 sps:$4 sm:$0xff]  }
 0xbce   :  { %18949 = vmatpush1.bf16.msra.mxu0 %v26329_v51  ;;  %18692 = vmatprep.subr.bf16.mxu1 %v26334_v61  ;;  %v26395_v51 = vld [vmem:[#allocation6 + $0xbe8] ss:$20 sps:$4 sm:$0xff]   ;;  %v26400_v61 = vld [vmem:[#allocation6 + $0xc0c] ss:$20 sps:$4 sm:$0xff]  }
 0xbcf   :  { %18950 = vmatprep.subr.bf16.mxu0 %v26337_v55  ;;  %v26403_v55 = vld [vmem:[#allocation6 + $0xc14] ss:$20 sps:$4 sm:$0xff]  }
 0xbd1   :  { %18693 = vmatpush1.bf16.msra.mxu1 %v26332_v48  ;;  %v26398_v48 = vld [vmem:[#allocation6 + $0xc08] ss:$20 sps:$4 sm:$0xff]  }
 0xbd2   :  { %18951 = vmatpush1.bf16.msra.mxu0 %v26335_v27  ;;  %18694 = vmatprep.subr.bf16.mxu1 %v26340_v6  ;;  %v26401_v27 = vld [vmem:[#allocation6 + $0xc10] ss:$20 sps:$4 sm:$0xff]   ;;  %v26406_v6 = vld [vmem:[#allocation6 + $0xc34] ss:$20 sps:$4 sm:$0xff]  }
 0xbd3   :  { %18952 = vmatprep.subr.bf16.mxu0 %v26343_v62  ;;  %v26409_v62 = vld [vmem:[#allocation6 + $0xc3c] ss:$20 sps:$4 sm:$0xff]  }
 0xbd5   :  { %18695 = vmatpush1.bf16.msra.mxu1 %v26338_v56  ;;  %v26404_v56 = vld [vmem:[#allocation6 + $0xc30] ss:$20 sps:$4 sm:$0xff]  }
 0xbd6   :  { %18953 = vmatpush1.bf16.msra.mxu0 %v26341_v34  ;;  %18696 = vmatprep.subr.bf16.mxu1 %v26346_v33  ;;  %v26407_v34 = vld [vmem:[#allocation6 + $0xc38] ss:$20 sps:$4 sm:$0xff]   ;;  %v26412_v33 = vld [vmem:[#allocation6 + $0xc5c] ss:$20 sps:$4 sm:$0xff]  }
 0xbd7   :  { %18954 = vmatprep.subr.bf16.mxu0 %v26349_v30  ;;  %v26415_v30 = vld [vmem:[#allocation6 + $0xc64] ss:$20 sps:$4 sm:$0xff]  }
 0xbd9   :  { %18697 = vmatpush1.bf16.msra.mxu1 %v26344_v32  ;;  %v26410_v32 = vld [vmem:[#allocation6 + $0xc58] ss:$20 sps:$4 sm:$0xff]  }
 0xbda   :  { %18955 = vmatpush1.bf16.msra.mxu0 %v26347_v41  ;;  %18698 = vmatprep.subr.bf16.mxu1 %v26352_v59  ;;  %v26413_v41 = vld [vmem:[#allocation6 + $0xc60] ss:$20 sps:$4 sm:$0xff]   ;;  %v26418_v59 = vld [vmem:[#allocation6 + $0xc84] ss:$20 sps:$4 sm:$0xff]  }
 0xbdb   :  { %18956 = vmatprep.subr.bf16.mxu0 %v26355_v26  ;;  %v26416_v26 = vld [vmem:[#allocation6 + $0xc80] ss:$20 sps:$4 sm:$0xff]  }
 0xbdd   :  { %18699 = vmatpush1.bf16.msra.mxu1 %v26350_v63  ;;  %v26421_v63 = vld [vmem:[#allocation6 + $0xcac] ss:$20 sps:$4 sm:$0xff]  }
 0xbde   :  { %18957 = vmatpush1.bf16.msra.mxu0 %v26353_v38  ;;  %18700 = vmatprep.subr.bf16.mxu1 %v26358_v12  ;;  %v26419_v38 = vld [vmem:[#allocation6 + $0xca8] ss:$20 sps:$4 sm:$0xff]  }
 0xbdf   :  { %18958 = vmatprep.subr.bf16.mxu0 %v26361_v5  ;;  %v26424_v12 = vld [vmem:[#allocation6 + $0xcd4] ss:$20 sps:$4 sm:$0xff]   ;;  %v26422_v5 = vld [vmem:[#allocation6 + $0xcd0] ss:$20 sps:$4 sm:$0xff]  }
 0xbe1   :  { %18701 = vmatpush1.bf16.msra.mxu1 %v26356_v53  ;;  %v26427_v53 = vld [vmem:[#allocation6 + $0xcfc] ss:$20 sps:$4 sm:$0xff]  }
 0xbe2   :  { %18959 = vmatpush1.bf16.msra.mxu0 %v26359_v35  ;;  %18702 = vmatprep.subr.bf16.mxu1 %v26364_v10  ;;  %v26425_v35 = vld [vmem:[#allocation6 + $0xcf8] ss:$20 sps:$4 sm:$0xff]  }
 0xbe3   :  { %18960 = vmatprep.subr.bf16.mxu0 %v26367_v44  ;;  %v26430_v10 = vld [vmem:[#allocation6 + $0xd24] ss:$20 sps:$4 sm:$0xff]   ;;  %v26428_v44 = vld [vmem:[#allocation6 + $0xd20] ss:$20 sps:$4 sm:$0xff]  }
 0xbe5   :  { %18703 = vmatpush1.bf16.msra.mxu1 %v26362_v29  ;;  %v26433_v29 = vld [vmem:[#allocation6 + $0xd4c] ss:$20 sps:$4 sm:$0xff]  }
 0xbe6   :  { %18961 = vmatpush1.bf16.msra.mxu0 %v26365_v28  ;;  %18704 = vmatprep.subr.bf16.mxu1 %v26370_v15  ;;  %v26431_v28 = vld [vmem:[#allocation6 + $0xd48] ss:$20 sps:$4 sm:$0xff]  }
 0xbe7   :  { %18962 = vmatprep.subr.bf16.mxu0 %v26373_v40  ;;  %v26436_v15 = vld [vmem:[#allocation6 + $0xd74] ss:$20 sps:$4 sm:$0xff]   ;;  %v26434_v40 = vld [vmem:[#allocation6 + $0xd70] ss:$20 sps:$4 sm:$0xff]  }
 0xbe9   :  { %18705 = vmatpush1.bf16.msra.mxu1 %v26368_v49  ;;  %v26439_v49 = vld [vmem:[#allocation6 + $0xd9c] ss:$20 sps:$4 sm:$0xff]  }
 0xbea   :  { %18963 = vmatpush1.bf16.msra.mxu0 %v26371_v42  ;;  %18706 = vmatprep.subr.bf16.mxu1 %v26376_v4  ;;  %v26437_v42 = vld [vmem:[#allocation6 + $0xd98] ss:$20 sps:$4 sm:$0xff]  }
 0xbeb   :  { %18964 = vmatprep.subr.bf16.mxu0 %v26379_v54  ;;  %v26442_v4 = vld [vmem:[#allocation6 + $0xc8c] ss:$20 sps:$4 sm:$0xff]   ;;  %v26440_v54 = vld [vmem:[#allocation6 + $0xc88] ss:$20 sps:$4 sm:$0xff]  }
 0xbed   :  { %18707 = vmatpush1.bf16.msra.mxu1 %v26374_v17  ;;  %v26445_v17 = vld [vmem:[#allocation6 + $0xcb4] ss:$20 sps:$4 sm:$0xff]  }
 0xbee   :  { %18965 = vmatpush1.bf16.msra.mxu0 %v26377_v7  ;;  %18708 = vmatprep.subr.bf16.mxu1 %v26382_v24  ;;  %v26443_v7 = vld [vmem:[#allocation6 + $0xcb0] ss:$20 sps:$4 sm:$0xff]  }
 0xbef   :  { %18966 = vmatprep.subr.bf16.mxu0 %v26385_v47  ;;  %v26448_v24 = vld [vmem:[#allocation6 + $0xcdc] ss:$20 sps:$4 sm:$0xff]   ;;  %v26446_v47 = vld [vmem:[#allocation6 + $0xcd8] ss:$20 sps:$4 sm:$0xff]  }
 0xbf1   :  { %18709 = vmatpush1.bf16.msra.mxu1 %v26380_v14  ;;  %v26451_v14 = vld [vmem:[#allocation6 + $0xd04] ss:$20 sps:$4 sm:$0xff]  }
 0xbf2   :  { %18967 = vmatpush1.bf16.msra.mxu0 %v26383_v8  ;;  %18710 = vmatprep.subr.bf16.mxu1 %v26388_v18  ;;  %v26449_v8 = vld [vmem:[#allocation6 + $0xd00] ss:$20 sps:$4 sm:$0xff]  }
 0xbf3   :  { %18968 = vmatprep.subr.bf16.mxu0 %v26391_v13  ;;  %v26454_v18 = vld [vmem:[#allocation6 + $0xd2c] ss:$20 sps:$4 sm:$0xff]   ;;  %v26452_v13 = vld [vmem:[#allocation6 + $0xd28] ss:$20 sps:$4 sm:$0xff]  }
 0xbf5   :  { %18711 = vmatpush1.bf16.msra.mxu1 %v26386_v16  ;;  %v26457_v16 = vld [vmem:[#allocation6 + $0xd54] ss:$20 sps:$4 sm:$0xff]  }
 0xbf6   :  { %18969 = vmatpush1.bf16.msra.mxu0 %v26389_v20  ;;  %18712 = vmatprep.subr.bf16.mxu1 %v26394_v31  ;;  %v26455_v20 = vld [vmem:[#allocation6 + $0xd50] ss:$20 sps:$4 sm:$0xff]  }
 0xbf7   :  { %18970 = vmatprep.subr.bf16.mxu0 %v26397_v37  ;;  %v26460_v31 = vld [vmem:[#allocation6 + $0xd7c] ss:$20 sps:$4 sm:$0xff]   ;;  %v26463_v37 = vld [vmem:[#allocation6 + $0xda4] ss:$20 sps:$4 sm:$0xff]  }
 0xbf9   :  { %18713 = vmatpush1.bf16.msra.mxu1 %v26392_v60  ;;  %v26461_v60 = vld [vmem:[#allocation6 + $0xda0] ss:$20 sps:$4 sm:$0xff]  }
 0xbfa   :  { %18971 = vmatpush1.bf16.msra.mxu0 %v26395_v51  ;;  %18714 = vmatprep.subr.bf16.mxu1 %v26400_v61  ;;  %v26464_v51 = vld [vmem:[#allocation6 + $0x150] ss:$20 sps:$4 sm:$0xff]  }
 0xbfb   :  { %18972 = vmatprep.subr.bf16.mxu0 %v26403_v55  ;;  %v26465_v61 = vld [vmem:[#allocation6 + $0x10] ss:$20 sps:$4 sm:$0xff]   ;;  %v26466_v55 = vld [vmem:[#allocation6 + $0x178] ss:$20 sps:$4 sm:$0xff]  }
 0xbfd   :  { %18715 = vmatpush1.bf16.msra.mxu1 %v26398_v48  ;;  %v26467_v48 = vld [vmem:[#allocation6 + $0x38] ss:$20 sps:$4 sm:$0xff]  }
 0xbfe   :  { %18973 = vmatpush1.bf16.msra.mxu0 %v26401_v27  ;;  %18716 = vmatprep.subr.bf16.mxu1 %v26406_v6  ;;  %v26468_v27 = vld [vmem:[#allocation6 + $0x1a0] ss:$20 sps:$4 sm:$0xff]  }
 0xbff   :  { %18974 = vmatprep.subr.bf16.mxu0 %v26409_v62  ;;  %v26469_v6 = vld [vmem:[#allocation6 + $0x60] ss:$20 sps:$4 sm:$0xff]   ;;  %v26470_v62 = vld [vmem:[#allocation6 + $0x1c8] ss:$20 sps:$4 sm:$0xff]  }
 0xc01   :  { %18717 = vmatpush1.bf16.msra.mxu1 %v26404_v56  ;;  %v26471_v56 = vld [vmem:[#allocation6 + $0x88] ss:$20 sps:$4 sm:$0xff]  }
 0xc02   :  { %18975 = vmatpush1.bf16.msra.mxu0 %v26407_v34  ;;  %18718 = vmatprep.subr.bf16.mxu1 %v26412_v33  ;;  %v26472_v34 = vld [vmem:[#allocation6 + $0x1f0] ss:$20 sps:$4 sm:$0xff]  }
 0xc03   :  { %18976 = vmatprep.subr.bf16.mxu0 %v26415_v30  ;;  %v26473_v33 = vld [vmem:[#allocation6 + $0xb0] ss:$20 sps:$4 sm:$0xff]   ;;  %v26474_v30 = vld [vmem:[#allocation6 + $0x218] ss:$20 sps:$4 sm:$0xff]  }
 0xc05   :  { %18719 = vmatpush1.bf16.msra.mxu1 %v26410_v32  ;;  %v26475_v32 = vld [vmem:[#allocation6 + $0xd8] ss:$20 sps:$4 sm:$0xff]  }
 0xc06   :  { %18977 = vmatpush1.bf16.msra.mxu0 %v26413_v41  ;;  %18731 = vmatprep.subr.bf16.mxu1 %v26418_v59  ;;  %v26476_v41 = vld [vmem:[#allocation6 + $0x240] ss:$20 sps:$4 sm:$0xff]   ;;  %v26478_v59 = vld [vmem:[#allocation6 + $0x268] ss:$20 sps:$4 sm:$0xff]  }
 0xc08   :  { %18721 = vmatmul.mubr.bf16.vlgmr.msra.gmra.mrb[56].mxu1 %v27591_v19 }
 0xc09   :  { %18979 = vmatmul.mubr.bf16.vlgmr.msra.gmra.mrb[12].mxu0 %v27591_v19  ;;  %18732 = vmatpush1.bf16.msra.mxu1 %v26416_v26  ;;  %v26479_v26 = vld [vmem:[#allocation6 + $0x128] ss:$20 sps:$4 sm:$0xff]  }
 0xc0a   :  { %18733 = vmatprep.subr.bf16.mxu1 %v26421_v63  ;;  %18763 = vmatprep.mubr.bf16.mxu1 %v26824_v52  ;;  %v26480_v63 = vld [vmem:[#allocation6 + $0x3d0] ss:$20 sps:$4 sm:$0xff]  }
 0xc0d   :  { %18734 = vmatpush1.bf16.msra.mxu1 %v26419_v38  ;;  %v26481_v38 = vld [vmem:[#allocation6 + $0x290] ss:$20 sps:$4 sm:$0xff]  }
 0xc0e   :  { %18735 = vmatprep.subr.bf16.mxu1 %v26424_v12  ;;  %v26482_v12 = vld [vmem:[#allocation6 + $0x3f8] ss:$20 sps:$4 sm:$0xff]  }
 0xc11   :  { %18736 = vmatpush1.bf16.msra.mxu1 %v26422_v5  ;;  %v26483_v5 = vld [vmem:[#allocation6 + $0x2b8] ss:$20 sps:$4 sm:$0xff]  }
 0xc12   :  { %18737 = vmatprep.subr.bf16.mxu1 %v26427_v53  ;;  %v26484_v53 = vld [vmem:[#allocation6 + $0x420] ss:$20 sps:$4 sm:$0xff]  }
 0xc15   :  { %18738 = vmatpush1.bf16.msra.mxu1 %v26425_v35  ;;  %v26485_v35 = vld [vmem:[#allocation6 + $0x2e0] ss:$20 sps:$4 sm:$0xff]  }
 0xc16   :  { %18739 = vmatprep.subr.bf16.mxu1 %v26430_v10  ;;  %v26486_v10 = vld [vmem:[#allocation6 + $0x448] ss:$20 sps:$4 sm:$0xff]  }
 0xc19   :  { %18740 = vmatpush1.bf16.msra.mxu1 %v26428_v44  ;;  %v26487_v44 = vld [vmem:[#allocation6 + $0x308] ss:$20 sps:$4 sm:$0xff]  }
 0xc1a   :  { %18741 = vmatprep.subr.bf16.mxu1 %v26433_v29  ;;  %v26488_v29 = vld [vmem:[#allocation6 + $0x470] ss:$20 sps:$4 sm:$0xff]  }
 0xc1d   :  { %18742 = vmatpush1.bf16.msra.mxu1 %v26431_v28  ;;  %v26489_v28 = vld [vmem:[#allocation6 + $0x330] ss:$20 sps:$4 sm:$0xff]  }
 0xc1e   :  { %18743 = vmatprep.subr.bf16.mxu1 %v26436_v15  ;;  %v26490_v15 = vld [vmem:[#allocation6 + $0x498] ss:$20 sps:$4 sm:$0xff]  }
 0xc21   :  { %18744 = vmatpush1.bf16.msra.mxu1 %v26434_v40  ;;  %v26492_v40 = vld [vmem:[#allocation6 + $0x4c0] ss:$20 sps:$4 sm:$0xff]  }
 0xc22   :  { %18745 = vmatprep.subr.bf16.mxu1 %v26439_v49  ;;  %v26494_v49 = vld [vmem:[#allocation6 + $0x4e8] ss:$20 sps:$4 sm:$0xff]  }
 0xc25   :  { %18746 = vmatpush1.bf16.msra.mxu1 %v26437_v42  ;;  %v26495_v42 = vld [vmem:[#allocation6 + $0x3a8] ss:$20 sps:$4 sm:$0xff]  }
 0xc26   :  { %18989 = vmatprep.subr.bf16.mxu1 %v26442_v4  ;;  %v26496_v4 = vld [vmem:[#allocation6 + $0x650] ss:$20 sps:$4 sm:$0xff]  }
 0xc28   :  { %18764 = vmatmul.mubr.bf16.vlgmr.msra.gmra.mrb[56].mxu1 %v27593_v39 }
 0xc29   :  { %18990 = vmatpush1.bf16.msra.mxu1 %v26440_v54  ;;  %19021 = vmatprep.mubr.bf16.mxu1 %v26824_v52  ;;  %v26458_v52 = vld [vmem:[#allocation6 + $0xd78] ss:$20 sps:$4 sm:$0xff]   ;;  %v26497_v54 = vld [vmem:[#allocation6 + $0x510] ss:$20 sps:$4 sm:$0xff]  }
 0xc2a   :  { %18991 = vmatprep.subr.bf16.mxu1 %v26445_v17  ;;  %v26498_v17 = vld [vmem:[#allocation6 + $0x678] ss:$20 sps:$4 sm:$0xff]  }
 0xc2d   :  { %18992 = vmatpush1.bf16.msra.mxu1 %v26443_v7  ;;  %v26499_v7 = vld [vmem:[#allocation6 + $0x538] ss:$20 sps:$4 sm:$0xff]  }
 0xc2e   :  { %18993 = vmatprep.subr.bf16.mxu1 %v26448_v24  ;;  %v26500_v24 = vld [vmem:[#allocation6 + $0x6a0] ss:$20 sps:$4 sm:$0xff]  }
 0xc31   :  { %18994 = vmatpush1.bf16.msra.mxu1 %v26446_v47  ;;  %v26501_v47 = vld [vmem:[#allocation6 + $0x560] ss:$20 sps:$4 sm:$0xff]  }
 0xc32   :  { %18995 = vmatprep.subr.bf16.mxu1 %v26451_v14  ;;  %v26502_v14 = vld [vmem:[#allocation6 + $0x6c8] ss:$20 sps:$4 sm:$0xff]  }
 0xc35   :  { %18996 = vmatpush1.bf16.msra.mxu1 %v26449_v8  ;;  %v26503_v8 = vld [vmem:[#allocation6 + $0x588] ss:$20 sps:$4 sm:$0xff]  }
 0xc36   :  { %18997 = vmatprep.subr.bf16.mxu1 %v26454_v18  ;;  %v26504_v18 = vld [vmem:[#allocation6 + $0x6f0] ss:$20 sps:$4 sm:$0xff]  }
 0xc39   :  { %18998 = vmatpush1.bf16.msra.mxu1 %v26452_v13  ;;  %v26505_v13 = vld [vmem:[#allocation6 + $0x5b0] ss:$20 sps:$4 sm:$0xff]  }
 0xc3a   :  { %18999 = vmatprep.subr.bf16.mxu1 %v26457_v16  ;;  %v26506_v16 = vld [vmem:[#allocation6 + $0x718] ss:$20 sps:$4 sm:$0xff]  }
 0xc3d   :  { %19000 = vmatpush1.bf16.msra.mxu1 %v26455_v20  ;;  %v26508_v20 = vld [vmem:[#allocation6 + $0x740] ss:$20 sps:$4 sm:$0xff]  }
 0xc3e   :  { %19001 = vmatprep.subr.bf16.mxu1 %v26460_v31  ;;  %v26510_v31 = vld [vmem:[#allocation6 + $0x768] ss:$20 sps:$4 sm:$0xff]  }
 0xc41   :  { %19002 = vmatpush1.bf16.msra.mxu1 %v26458_v52  ;;  %v26511_v52 = vld [vmem:[#allocation6 + $0x628] ss:$20 sps:$4 sm:$0xff]  }
 0xc42   :  { %19003 = vmatprep.subr.bf16.mxu1 %v26463_v37  ;;  %v26512_v37 = vld [vmem:[#allocation6 + $0x8d0] ss:$20 sps:$4 sm:$0xff]  }
 0xc45   :  { %19004 = vmatpush1.bf16.msra.mxu1 %v26461_v60  ;;  %v26513_v60 = vld [vmem:[#allocation6 + $0x790] ss:$20 sps:$4 sm:$0xff]  }
 0xc46   :  { %22552 = vmatprep.subr.bf16.mxu1 %v26464_v51  ;;  %v26514_v51 = vld [vmem:[#allocation6 + $0x8f8] ss:$20 sps:$4 sm:$0xff]  }
 0xc48   :  { %19022 = vmatmul.mubr.bf16.vlgmr.msra.gmra.mrb[60].mxu1 %v27593_v39 }
 0xc49   :  { %22553 = vmatpush3.bf16.msra.mxu1 %v26465_v61  ;;  %19064 = vmatprep.mubr.bf16.mxu1 %v27565_v22  ;;  %v26477_v22 = vld [vmem:[#allocation6 + $0x100] ss:$20 sps:$4 sm:$0xff]   ;;  %v26515_v61 = vld [vmem:[#allocation6 + $0x7b8] ss:$20 sps:$4 sm:$0xff]  }
 0xc4a   :  { %22554 = vmatprep.subr.bf16.mxu1 %v26466_v55  ;;  %v26516_v55 = vld [vmem:[#allocation6 + $0x920] ss:$20 sps:$4 sm:$0xff]  }
 0xc4d   :  { %22555 = vmatpush3.bf16.msra.mxu1 %v26467_v48  ;;  %v26517_v48 = vld [vmem:[#allocation6 + $0x7e0] ss:$20 sps:$4 sm:$0xff]  }
 0xc4e   :  { %22556 = vmatprep.subr.bf16.mxu1 %v26468_v27  ;;  %v26518_v27 = vld [vmem:[#allocation6 + $0x948] ss:$20 sps:$4 sm:$0xff]  }
 0xc51   :  { %22557 = vmatpush3.bf16.msra.mxu1 %v26469_v6  ;;  %v26519_v6 = vld [vmem:[#allocation6 + $0x808] ss:$20 sps:$4 sm:$0xff]  }
 0xc52   :  { %22558 = vmatprep.subr.bf16.mxu1 %v26470_v62  ;;  %v26520_v62 = vld [vmem:[#allocation6 + $0x970] ss:$20 sps:$4 sm:$0xff]  }
 0xc55   :  { %22559 = vmatpush3.bf16.msra.mxu1 %v26471_v56  ;;  %v26521_v56 = vld [vmem:[#allocation6 + $0x830] ss:$20 sps:$4 sm:$0xff]  }
 0xc56   :  { %22560 = vmatprep.subr.bf16.mxu1 %v26472_v34  ;;  %v26522_v34 = vld [vmem:[#allocation6 + $0x998] ss:$20 sps:$4 sm:$0xff]  }
 0xc59   :  { %22561 = vmatpush3.bf16.msra.mxu1 %v26473_v33  ;;  %v26524_v33 = vld [vmem:[#allocation6 + $0x9c0] ss:$20 sps:$4 sm:$0xff]  }
 0xc5a   :  { %22562 = vmatprep.subr.bf16.mxu1 %v26474_v30  ;;  %v26526_v30 = vld [vmem:[#allocation6 + $0x9e8] ss:$20 sps:$4 sm:$0xff]  }
 0xc5d   :  { %22563 = vmatpush3.bf16.msra.mxu1 %v26475_v32  ;;  %v26527_v32 = vld [vmem:[#allocation6 + $0x8a8] ss:$20 sps:$4 sm:$0xff]  }
 0xc5e   :  { %22564 = vmatprep.subr.bf16.mxu1 %v26476_v41  ;;  %v26528_v41 = vld [vmem:[#allocation6 + $0xb50] ss:$20 sps:$4 sm:$0xff]  }
 0xc61   :  { %22565 = vmatpush3.bf16.msra.mxu1 %v26477_v22  ;;  %v26529_v22 = vld [vmem:[#allocation6 + $0xa10] ss:$20 sps:$4 sm:$0xff]  }
 0xc62   :  { %22566 = vmatprep.subr.bf16.mxu1 %v26478_v59  ;;  %v26530_v59 = vld [vmem:[#allocation6 + $0xb78] ss:$20 sps:$4 sm:$0xff]  }
 0xc65   :  { %22567 = vmatpush3.bf16.msra.mxu1 %v26479_v26  ;;  %v26531_v26 = vld [vmem:[#allocation6 + $0xa38] ss:$20 sps:$4 sm:$0xff]  }
 0xc66   :  { %22574 = vmatprep.subr.bf16.mxu1 %v26480_v63  ;;  %v26532_v63 = vld [vmem:[#allocation6 + $0xba0] ss:$20 sps:$4 sm:$0xff]  }
 0xc68   :  { %19065 = vmatmul.mubr.bf16.vlgmr.msra.gmra.mrb[64].mxu1 %v27567_v58  ;;  %v26491_v58 = vld [vmem:[#allocation6 + $0x358] ss:$20 sps:$4 sm:$0xff]  }
 0xc69   :  { %22575 = vmatpush3.bf16.msra.mxu1 %v26481_v38  ;;  %19105 = vmatprep.mubr.bf16.mxu1 %v27587_v9  ;;  %v26493_v9 = vld [vmem:[#allocation6 + $0x380] ss:$20 sps:$4 sm:$0xff]  }
 0xc6a   :  { %22576 = vmatprep.subr.bf16.mxu1 %v26482_v12  ;;  %v26533_v38 = vld [vmem:[#allocation6 + $0xa60] ss:$20 sps:$4 sm:$0xff]   ;;  %v26534_v12 = vld [vmem:[#allocation6 + $0xbc8] ss:$20 sps:$4 sm:$0xff]  }
 0xc6d   :  { %22577 = vmatpush3.bf16.msra.mxu1 %v26483_v5  ;;  %v26535_v5 = vld [vmem:[#allocation6 + $0xa88] ss:$20 sps:$4 sm:$0xff]  }
 0xc6e   :  { %22578 = vmatprep.subr.bf16.mxu1 %v26484_v53  ;;  %v26536_v53 = vld [vmem:[#allocation6 + $0xbf0] ss:$20 sps:$4 sm:$0xff]  }
 0xc71   :  { %22579 = vmatpush3.bf16.msra.mxu1 %v26485_v35  ;;  %v26537_v35 = vld [vmem:[#allocation6 + $0xab0] ss:$20 sps:$4 sm:$0xff]  }
 0xc72   :  { %22580 = vmatprep.subr.bf16.mxu1 %v26486_v10  ;;  %v26538_v10 = vld [vmem:[#allocation6 + $0xc18] ss:$20 sps:$4 sm:$0xff]  }
 0xc75   :  { %22581 = vmatpush3.bf16.msra.mxu1 %v26487_v44  ;;  %v26540_v44 = vld [vmem:[#allocation6 + $0xc40] ss:$20 sps:$4 sm:$0xff]  }
 0xc76   :  { %22582 = vmatprep.subr.bf16.mxu1 %v26488_v29 }
 0xc79   :  { %22583 = vmatpush3.bf16.msra.mxu1 %v26489_v28  ;;  %v26541_v28 = vld [vmem:[#allocation6 + $0xb00] ss:$20 sps:$4 sm:$0xff]  }
 0xc7a   :  { %22584 = vmatprep.subr.bf16.mxu1 %v26490_v15 }
 0xc7d   :  { %22585 = vmatpush3.bf16.msra.mxu1 %v26491_v58  ;;  %v26542_v58 = vld [vmem:[#allocation6 + $0xc68] ss:$20 sps:$4 sm:$0xff]  }
 0xc7e   :  { %22586 = vmatprep.subr.bf16.mxu1 %v26492_v40 }
 0xc81   :  { %22587 = vmatpush3.bf16.msra.mxu1 %v26493_v9  ;;  %v26543_v9 = vld [vmem:[#allocation6 + $0xb28] ss:$20 sps:$4 sm:$0xff]  }
 0xc82   :  { %22588 = vmatprep.subr.bf16.mxu1 %v26494_v49  ;;  %v26544_v49 = vld [vmem:[#allocation6 + $0xc90] ss:$20 sps:$4 sm:$0xff]  }
 0xc85   :  { %22589 = vmatpush3.bf16.msra.mxu1 %v26495_v42  ;;  %v26545_v42 = vld [vmem:[#allocation6 + $0xcb8] ss:$20 sps:$4 sm:$0xff]  }
 0xc86   :  { %22596 = vmatprep.subr.bf16.mxu1 %v26496_v4  ;;  %v26546_v4 = vld [vmem:[#allocation6 + $0xce0] ss:$20 sps:$4 sm:$0xff]  }
 0xc88   :  { %19106 = vmatmul.mubr.bf16.vlgmr.msra.gmra.mrb[68].mxu1 %v27569_v11  ;;  %v26507_v11 = vld [vmem:[#allocation6 + $0x5d8] ss:$20 sps:$4 sm:$0xff]  }
 0xc89   :  { %22597 = vmatpush3.bf16.msra.mxu1 %v26497_v54  ;;  %19146 = vmatprep.mubr.bf16.mxu1 %v27572_v23  ;;  %v26509_v23 = vld [vmem:[#allocation6 + $0x600] ss:$20 sps:$4 sm:$0xff]   ;;  %v26547_v54 = vld [vmem:[#allocation6 + $0xd08] ss:$20 sps:$4 sm:$0xff]  }
 0xc8a   :  { %22598 = vmatprep.subr.bf16.mxu1 %v26498_v17  ;;  %v26548_v17 = vld [vmem:[#allocation6 + $0xd30] ss:$20 sps:$4 sm:$0xff]  }
 0xc8d   :  { %22599 = vmatpush3.bf16.msra.mxu1 %v26499_v7 }
 0xc8e   :  { %22600 = vmatprep.subr.bf16.mxu1 %v26500_v24 }
 0xc91   :  { %22601 = vmatpush3.bf16.msra.mxu1 %v26501_v47 }
 0xc92   :  { %22602 = vmatprep.subr.bf16.mxu1 %v26502_v14  ;;  %v26550_v14 = vld [vmem:[#allocation6 + $0xd80] ss:$20 sps:$4 sm:$0xff]  }
 0xc95   :  { %22603 = vmatpush3.bf16.msra.mxu1 %v26503_v8 }
 0xc96   :  { %22604 = vmatprep.subr.bf16.mxu1 %v26504_v18  ;;  %v26551_v18 = vld [vmem:[#allocation6 + $0xda8] ss:$20 sps:$4 sm:$0xff]  }
 0xc99   :  { %22605 = vmatpush3.bf16.msra.mxu1 %v26505_v13  ;;  %v16201_v13 = vld [vmem:[#allocation7] sm:$0x1f] }
 0xc9a   :  { %22606 = vmatprep.subr.bf16.mxu1 %v26506_v16  ;;  %v16214_v16 = vrot.slane %v16201_v13, %v27310_v2 }
 0xc9d   :  { %22607 = vmatpush3.bf16.msra.mxu1 %v26507_v11  ;;  %v16218_v11 = vrot.slane %v16201_v13, %v2332_v36 }
 0xc9e   :  { %22608 = vmatprep.subr.bf16.mxu1 %v26508_v20 }
 0xca1   :  { %22609 = vmatpush3.bf16.msra.mxu1 %v26509_v23 }
 0xca2   :  { %22610 = vmatprep.subr.bf16.mxu1 %v26510_v31 }
 0xca5   :  { %22611 = vmatpush3.bf16.msra.mxu1 %v26511_v52 }
 0xca6   :  { %22618 = vmatprep.subr.bf16.mxu1 %v26512_v37 }
 0xca8   :  { %19147 = vmatmul.mubr.bf16.vlgmr.msra.gmra.mrb[72].mxu1 %v27574_v21  ;;  %v26523_v21 = vld [vmem:[#allocation6 + $0x858] ss:$20 sps:$4 sm:$0xff]  }
 0xca9   :  { %22619 = vmatpush3.bf16.msra.mxu1 %v26513_v60  ;;  %19187 = vmatprep.mubr.bf16.mxu1 %v27576_v50  ;;  %v26525_v50 = vld [vmem:[#allocation6 + $0x880] ss:$20 sps:$4 sm:$0xff]  }
 0xcaa   :  { %22620 = vmatprep.subr.bf16.mxu1 %v26514_v51 }
 0xcad   :  { %22621 = vmatpush3.bf16.msra.mxu1 %v26515_v61 }
 0xcae   :  { %22622 = vmatprep.subr.bf16.mxu1 %v26516_v55 }
 0xcb1   :  { %22623 = vmatpush3.bf16.msra.mxu1 %v26517_v48 }
 0xcb2   :  { %22624 = vmatprep.subr.bf16.mxu1 %v26518_v27 }
 0xcb5   :  { %22625 = vmatpush3.bf16.msra.mxu1 %v26519_v6 }
 0xcb6   :  { %22626 = vmatprep.subr.bf16.mxu1 %v26520_v62 }
 0xcb9   :  { %22627 = vmatpush3.bf16.msra.mxu1 %v26521_v56 }
 0xcba   :  { %22628 = vmatprep.subr.bf16.mxu1 %v26522_v34 }
 0xcbd   :  { %22629 = vmatpush3.bf16.msra.mxu1 %v26523_v21  ;;  %v16222_v21 = vrot.slane %v16201_v13, %v2336_v45 }
 0xcbe   :  { %22630 = vmatprep.subr.bf16.mxu1 %v26524_v33 }
 0xcc1   :  { %22631 = vmatpush3.bf16.msra.mxu1 %v26525_v50 }
 0xcc2   :  { %22632 = vmatprep.subr.bf16.mxu1 %v26526_v30 }
 0xcc5   :  { %22633 = vmatpush3.bf16.msra.mxu1 %v26527_v32 }
 0xcc6   :  { %22640 = vmatprep.subr.bf16.mxu1 %v26528_v41 }
 0xcc8   :  { %19188 = vmatmul.mubr.bf16.vlgmr.msra.gmra.mrb[76].mxu1 %v27578_v25  ;;  %v26539_v25 = vld [vmem:[#allocation6 + $0xad8] ss:$20 sps:$4 sm:$0xff]  }
 0xcc9   :  { %22641 = vmatpush3.bf16.msra.mxu1 %v26529_v22  ;;  %19228 = vmatprep.mubr.bf16.mxu1 %v27589_v1 }
 0xcca   :  { %22642 = vmatprep.subr.bf16.mxu1 %v26530_v59 }
 0xccd   :  { %22643 = vmatpush3.bf16.msra.mxu1 %v26531_v26 }
 0xcce   :  { %22644 = vmatprep.subr.bf16.mxu1 %v26532_v63 }
 0xcd1   :  { %22645 = vmatpush3.bf16.msra.mxu1 %v26533_v38 }
 0xcd2   :  { %22646 = vmatprep.subr.bf16.mxu1 %v26534_v12 }
 0xcd5   :  { %22647 = vmatpush3.bf16.msra.mxu1 %v26535_v5 }
 0xcd6   :  { %22648 = vmatprep.subr.bf16.mxu1 %v26536_v53 }
 0xcd9   :  { %22649 = vmatpush3.bf16.msra.mxu1 %v26537_v35 }
 0xcda   :  { %22650 = vmatprep.subr.bf16.mxu1 %v26538_v10 }
 0xcdc   :  { %v18980_v1 = vpop.f32.mrb[12].mxu0 }
 0xcdd   :  { %v18982_v29 = vpop.f32.mrb[13].mxu0  ;;  %22651 = vmatpush3.bf16.msra.mxu1 %v26539_v25  ;;  %v22798_v20 = vadd.f32 %v18980_v1, %v16214_v16 }
 0xcde   :  { %v18984_v15 = vpop.f32.mrb[14].mxu0  ;;  %22652 = vmatprep.subr.bf16.mxu1 %v26540_v44  ;;  %v22800_v23 = vadd.f32 %v18982_v29, %v16218_v11 }
 0xcdf   :  { %v18986_v40 = vpop.f32.mrb[15].mxu0  ;;  %v22802_v52 = vadd.f32 %v18984_v15, %v16214_v16  ;;  %v16206_v16 = vrot.slane %v16201_v13, %v27335_v3 }
 0xce0   :  { %v22804_v51 = vadd.f32 %v18986_v40, %v16218_v11  ;;  %v15484_v11 = vadd.s32 512, %v27374_v57 }
 0xce1   :  { %22653 = vmatpush3.bf16.msra.mxu1 %v26541_v28 }
 0xce2   :  { %22654 = vmatprep.subr.bf16.mxu1 %v26542_v58  ;;  %vm19282_vm4 = vcmp.lt.s32.totalorder %v15484_v11, 600 }
 0xce5   :  { %22655 = vmatpush3.bf16.msra.mxu1 %v26543_v9 }
 0xce6   :  { %22734 = vmatprep.subr.bf16.mxu1 %v26825_v46 }
 0xce8   :  { %19229 = vmatmul.mubr.bf16.vlgmr.msra.gmra.mrb[80].mxu1 %v27591_v19  ;;  %v26549_v19 = vld [vmem:[#allocation6 + $0xd58] ss:$20 sps:$4 sm:$0xff]  }
 0xce9   :  { %22735 = vmatpush3.bf16.msra.mxu1 %v26544_v49  ;;  %22750 = vmatprep.mubr.msk.bf16.mxu1 %vm26826_vm2, %v26825_v46 }
 0xcea   :  { %22736 = vmatprep.subr.bf16.mxu1 %v26825_v46 }
 0xced   :  { %22737 = vmatpush3.bf16.msra.mxu1 %v26545_v42 }
 0xcee   :  { %22738 = vmatprep.subr.bf16.mxu1 %v26825_v46 }
 0xcf1   :  { %22739 = vmatpush3.bf16.msra.mxu1 %v26546_v4 }
 0xcf2   :  { %22740 = vmatprep.subr.bf16.mxu1 %v26825_v46 }
 0xcf5   :  { %22741 = vmatpush3.bf16.msra.mxu1 %v26547_v54 }
 0xcf6   :  { %22742 = vmatprep.subr.bf16.mxu1 %v26825_v46 }
 0xcf9   :  { %22743 = vmatpush3.bf16.msra.mxu1 %v26548_v17 }
 0xcfa   :  { %22744 = vmatprep.subr.bf16.mxu1 %v26825_v46 }
 0xcfb   :  { %v27633_v7 = vpop.f32.mrb[56].mxu1 }
 0xcfc   :  { %v27635_v24 = vpop.f32.mrb[57].mxu1 }
 0xcfd   :  { %v27637_v47 = vpop.f32.mrb[58].mxu1  ;;  %22745 = vmatpush3.bf16.msra.mxu1 %v26549_v19 }
 0xcfe   :  { %v27639_v8 = vpop.f32.mrb[59].mxu1  ;;  %22746 = vmatprep.subr.bf16.mxu1 %v26825_v46 }
 0xd01   :  { %22747 = vmatpush3.bf16.msra.mxu1 %v26550_v14 }
 0xd02   :  { %22748 = vmatprep.subr.bf16.mxu1 %v26825_v46 }
 0xd05   :  { %22749 = vmatpush3.bf16.msra.mxu1 %v26551_v18 }
 0xd08   :  { %22751 = vmatmul.mubr.bf16.vlgmr.msra.gmra.mrb[84].mxu1 %v27593_v39 }
 0xd1b   :  { %v19023_v31 = vpop.f32.mrb[60].mxu1 }
 0xd1c   :  { %v27647_v37 = vadd.f32 %v22798_v20, %v19023_v31  ;;  %v19025_v60 = vpop.f32.mrb[61].mxu1  ;;  %v16210_v20 = vrot.slane %v16201_v13, %v27338_v43 }
 0xd1d   :  { %v27649_v61 = vadd.f32 %v22800_v23, %v19025_v60  ;;  %v19027_v55 = vpop.f32.mrb[62].mxu1  ;;  %v22794_v23 = vadd.f32 %v27633_v7, %v16206_v16 }
 0xd1e   :  { %v27651_v48 = vadd.f32 %v22802_v52, %v19027_v55  ;;  %v19029_v39 = vpop.f32.mrb[63].mxu1  ;;  %v22796_v55 = vadd.f32 %v27637_v47, %v16206_v16 }
 0xd1f   :  { %v27653_v27 = vadd.f32 %v22804_v51, %v19029_v39  ;;  %v22795_v51 = vadd.f32 %v27635_v24, %v16210_v20  ;;  %v19293_v39 = vmax.f32 %v22794_v23, %v27647_v37 }
 0xd20   :  { %v19299_v7 = vmax.f32 %v22796_v55, %v27651_v48 }
 0xd21   :  { %v19294_v43 = vmax.f32 %v22795_v51, %v27649_v61 }
 0xd3b   :  { %v22568_v2 = vpop.f32.mrb[64].mxu1 }
 0xd3c   :  { %v22569_v6 = vpop.f32.mrb[65].mxu1 }
 0xd3d   :  { %v22570_v62 = vadd.f32 %v22569_v6, %v22568_v2  ;;  %v22571_v36 = vpop.f32.mrb[66].mxu1 }
 0xd3e   :  { %v22572_v56 = vpop.f32.mrb[67].mxu1 }
 0xd3f   :  { %v22573_v34 = vadd.f32 %v22572_v56, %v22571_v36  ;;  %v19067_v30 = vadd.f32 %v22570_v62, %v16222_v21  ;;  %v22797_v36 = vadd.f32 %v27639_v8, %v16210_v20  ;;  %v26556_v8 = vld [vmem:[#allocation9 + $0x50] sm:$0xff]  }
 0xd41   :  { %v19070_v59 = vadd.f32 %v22573_v34, %v16222_v21  ;;  %v19300_v34 = vmax.f32 %v22797_v36, %v27653_v27 }
 0xd5b   :  { %v22590_v33 = vpop.f32.mrb[68].mxu1 }
 0xd5c   :  { %v22591_v50 = vpop.f32.mrb[69].mxu1 }
 0xd5d   :  { %v22592_v32 = vadd.f32 %v22591_v50, %v22590_v33  ;;  %v22593_v41 = vpop.f32.mrb[70].mxu1  ;;  %v26552_v33 = vld [vmem:[#allocation9 + $0x40] sm:$0xff]  }
 0xd5e   :  { %v22594_v22 = vpop.f32.mrb[71].mxu1  ;;  %v26553_v50 = vld [vmem:[#allocation9] sm:$0xff]   ;;  %22671 = vmatprep.subr.bf16.mxu1 %v26552_v33 }
 0xd5f   :  { %v19108_v26 = vadd.f32 %v22592_v32, %v19067_v30  ;;  %v22595_v63 = vadd.f32 %v22594_v22, %v22593_v41  ;;  %v26554_v30 = vld [vmem:[#allocation9 + $0x48] sm:$0xff]   ;;  %22672 = vmatpush3.bf16.msra.mxu1 %v26553_v50  ;;  %v26557_v41 = vld [vmem:[#allocation9 + $0x10] sm:$0xff]   ;;  %v26558_v22 = vld [vmem:[#allocation9 + $0x58] sm:$0xff]  }
 0xd60   :  { %v26555_v32 = vld [vmem:[#allocation9 + $0x8] sm:$0xff]   ;;  %22673 = vmatprep.subr.bf16.mxu1 %v26554_v30 }
 0xd61   :  { %v19111_v38 = vadd.f32 %v22595_v63, %v19070_v59  ;;  %v26559_v59 = vld [vmem:[#allocation9 + $0x18] sm:$0xff]  }
 0xd63   :  { %22674 = vmatpush3.bf16.msra.mxu1 %v26555_v32 }
 0xd64   :  { %22675 = vmatprep.subr.bf16.mxu1 %v26556_v8 }
 0xd67   :  { %22676 = vmatpush3.bf16.msra.mxu1 %v26557_v41 }
 0xd68   :  { %22677 = vmatprep.subr.bf16.mxu1 %v26558_v22 }
 0xd6b   :  { %22678 = vmatpush3.bf16.msra.mxu1 %v26559_v59 }
 0xd7b   :  { %v22612_v12 = vpop.f32.mrb[72].mxu1 }
 0xd7c   :  { %v22613_v5 = vpop.f32.mrb[73].mxu1 }
 0xd7d   :  { %v22614_v53 = vadd.f32 %v22613_v5, %v22612_v12  ;;  %v22615_v35 = vpop.f32.mrb[74].mxu1 }
 0xd7e   :  { %v22616_v10 = vpop.f32.mrb[75].mxu1 }
 0xd7f   :  { %v19149_v25 = vadd.f32 %v22614_v53, %v19108_v26  ;;  %v22617_v44 = vadd.f32 %v22616_v10, %v22615_v35 }
 0xd81   :  { %v19152_v1 = vadd.f32 %v22617_v44, %v19111_v38 }
 0xd9b   :  { %v22634_v0 = vpop.f32.mrb[76].mxu1 }
 0xd9c   :  { %v22635_v45 = vpop.f32.mrb[77].mxu1 }
 0xd9d   :  { %v22636_v29 = vadd.f32 %v22635_v45, %v22634_v0  ;;  %v22637_v28 = vpop.f32.mrb[78].mxu1 }
 0xd9e   :  { %v22638_v15 = vpop.f32.mrb[79].mxu1 }
 0xd9f   :  { %v19190_v58 = vadd.f32 %v22636_v29, %v19149_v25  ;;  %v22639_v40 = vadd.f32 %v22638_v15, %v22637_v28 }
 0xda1   :  { %v19193_v9 = vadd.f32 %v22639_v40, %v19152_v1 }
 0xdbb   :  { %v22656_v49 = vpop.f32.mrb[80].mxu1 }
 0xdbc   :  { %v22657_v42 = vpop.f32.mrb[81].mxu1 }
 0xdbd   :  { %v22658_v4 = vadd.f32 %v22657_v42, %v22656_v49  ;;  %v22659_v54 = vpop.f32.mrb[82].mxu1 }
 0xdbe   :  { %v22660_v17 = vpop.f32.mrb[83].mxu1 }
 0xdbf   :  { %v22661_v19 = vadd.f32 %v22660_v17, %v22659_v54  ;;  %v19231_v14 = vadd.f32 %v22658_v4, %v19190_v58 }
 0xdc1   :  { %v19234_v18 = vadd.f32 %v22661_v19, %v19193_v9 }
 0xddb   :  { %v19271_v31 = vpop.f32.mrb[84].mxu1 }
 0xddc   :  { %v19272_v52 = vadd.f32 %v19271_v31, %v19231_v14  ;;  %v22752_v60 = vpop.f32.mrb[85].mxu1 }
 0xddd   :  { %v19274_v2 = vpop.f32.mrb[86].mxu1 }
 0xdde   :  { %v19287_v6 = vsel %vm19282_vm4, %v19272_v52, -inf  ;;  %v19275_v62 = vadd.f32 %v19274_v2, %v19234_v18  ;;  %v22753_v3 = vpop.f32.mrb[87].mxu1  ;;  %v26561_v2 = vld [vmem:[#allocation9 + $0x20] sm:$0xff]  }
 0xddf   :  { %v19295_v13 = vmax.f32 %v19293_v39, %v19287_v6  ;;  %v26560_v39 = vld [vmem:[#allocation9 + $0x60] sm:$0xff]   ;;  %v26564_v3 = vld [vmem:[#allocation9 + $0x70] sm:$0xff]  }
 0xde0   :  { %v19292_v56 = vsel %vm19282_vm4, %v19275_v62, -inf  ;;  %22679 = vmatprep.subr.bf16.mxu1 %v26560_v39  ;;  %v26563_v62 = vld [vmem:[#allocation9 + $0x28] sm:$0xff]  }
 0xde1   :  { %v19296_v21 = vmax.f32 %v19295_v13, %v19294_v43  ;;  %v19301_v24 = vmax.f32 %v19299_v7, %v19292_v56  ;;  %22680 = vmatpush3.bf16.msra.mxu1 %v26561_v2  ;;  %v26566_v43 = vld [vmem:[#allocation9 + $0x78] sm:$0xff]   ;;  %v26568_v13 = vld [vmem:[#allocation9 + $0xc0] sm:$0xff]  }
 0xde2   :  { %v26567_v7 = vld [vmem:[#allocation9 + $0x38] sm:$0xff]  }
 0xde3   :  { %19297 = vmax.xlane.f32.xlu0 %v19296_v21  ;;  %v19302_v47 = vmax.f32 %v19301_v24, %v19300_v34 }
 0xde5   :  { %19303 = vmax.xlane.f32.xlu1 %v19302_v47 }
 0xe70   :  { %v19298_v26 = vpop.xlane.xlu0 %19297 }
 0xe71   :  { %v19305_v63 = vsub.f32 %v22794_v23, %v19298_v26  ;;  %v19306_v38 = vsub.f32 %v22795_v51, %v19298_v26  ;;  %v19307_v12 = vsub.f32 %v27647_v37, %v19298_v26  ;;  %v19308_v5 = vsub.f32 %v27649_v61, %v19298_v26 }
 0xe72   :  { %v19304_v53 = vpop.xlane.xlu1 %19303  ;;  %v19309_v44 = vsub.f32 %v19287_v6, %v19298_v26  ;;  %v26562_v6 = vld [vmem:[#allocation9 + $0x68] sm:$0xff]   ;;  %v26569_v26 = vld [vmem:[#allocation9 + $0x80] sm:$0xff]  }
 0xe73   :  { %v19315_v35 = vmul.f32 1.442695, %v19305_v63  ;;  %v19317_v10 = vmul.f32 1.442695, %v19306_v38  ;;  %v19310_v25 = vsub.f32 %v22796_v55, %v19304_v53  ;;  %v19319_v1 = vmul.f32 1.442695, %v19307_v12  ;;  %22681 = vmatprep.subr.bf16.mxu1 %v26562_v6 }
 0xe74   :  { %v19311_v0 = vsub.f32 %v22797_v36, %v19304_v53  ;;  %v19321_v45 = vmul.f32 1.442695, %v19308_v5  ;;  %v19312_v29 = vsub.f32 %v27651_v48, %v19304_v53  ;;  %v19313_v15 = vsub.f32 %v27653_v27, %v19304_v53  ;;  %22682 = vmatpush3.bf16.msra.mxu1 %v26563_v62  ;;  %v26565_v36 = vld [vmem:[#allocation9 + $0x30] sm:$0xff]   ;;  %v26570_v38 = vld [vmem:[#allocation9 + $0xc8] sm:$0xff]  }
 0xe75   :  { %26640 = vpow2.f32 %v19315_v35  ;;  %v19325_v28 = vmul.f32 1.442695, %v19310_v25  ;;  %v19323_v37 = vmul.f32 1.442695, %v19309_v44  ;;  %v19314_v61 = vsub.f32 %v19292_v56, %v19304_v53  ;;  %22683 = vmatprep.subr.bf16.mxu1 %v26564_v3  ;;  %v26571_v53 = vld [vmem:[#allocation9 + $0x88] sm:$0xff]   ;;  %v26572_v35 = vld [vmem:[#allocation9 + $0xd0] sm:$0xff]  }
 0xe76   :  { %26642 = vpow2.f32 %v19317_v10  ;;  %v19327_v58 = vmul.f32 1.442695, %v19311_v0  ;;  %v19329_v40 = vmul.f32 1.442695, %v19312_v29  ;;  %v19331_v9 = vmul.f32 1.442695, %v19313_v15 }
 0xe77   :  { %26644 = vpow2.f32 %v19319_v1  ;;  %v19333_v49 = vmul.f32 1.442695, %v19314_v61  ;;  %v26573_v10 = vld [vmem:[#allocation9 + $0x90] sm:$0xff]   ;;  %v26574_v25 = vld [vmem:[#allocation9 + $0xd8] sm:$0xff]   ;;  %v26576_v1 = vld [vmem:[#allocation9 + $0xe0] sm:$0xff]  }
 0xe78   :  { %26646 = vpow2.f32 %v19321_v45  ;;  %22684 = vmatpush3.bf16.msra.mxu1 %v26565_v36  ;;  %v26575_v44 = vld [vmem:[#allocation9 + $0x98] sm:$0xff]   ;;  %v26577_v0 = vld [vmem:[#allocation9 + $0xa0] sm:$0xff]   ;;  %v26578_v45 = vld [vmem:[#allocation9 + $0xe8] sm:$0xff]  }
 0xe79   :  { %26648 = vpow2.f32 %v19325_v28  ;;  %22685 = vmatprep.subr.bf16.mxu1 %v26566_v43  ;;  %v26579_v29 = vld [vmem:[#allocation9 + $0xa8] sm:$0xff]   ;;  %v26580_v28 = vld [vmem:[#allocation9 + $0xf0] sm:$0xff]  }
 0xe7a   :  { %26650 = vpow2.f32 %v19327_v58  ;;  %v26581_v15 = vld [vmem:[#allocation9 + $0xb0] sm:$0xff]   ;;  %v26582_v58 = vld [vmem:[#allocation9 + $0xf8] sm:$0xff]  }
 0xe7b   :  { %26652 = vpow2.f32 %v19323_v37  ;;  %v26583_v37 = vld [vmem:[#allocation9 + $0xb8] sm:$0xff]  }
 0xe7c   :  { %26654 = vpow2.f32 %v19329_v40  ;;  %22686 = vmatpush3.bf16.msra.mxu1 %v26567_v7 }
 0xe7d   :  { %26656 = vpow2.f32 %v19331_v9  ;;  %22693 = vmatprep.subr.bf16.mxu1 %v26568_v13  ;;  %v26584_v9 = vld [vmem:[#allocation9 + $0x100] sm:$0xff]  }
 0xe7e   :  { %26658 = vpow2.f32 %v19333_v49 }
 0xe7f   :  { %v26641_v42 = vpop.eup %26640 }
 0xe80   :  { %v26643_v4 = vpop.eup %26642 }
 0xe81   :  { %v19335_v48 = vadd.f32 %v26643_v4, %v26641_v42  ;;  %v27672_v54 = vpop.eup %26644 }
 0xe82   :  { %v26647_v27 = vpop.eup %26646 }
 0xe83   :  { %v19336_v17 = vadd.f32 %v27672_v54, %v19335_v48  ;;  %v26649_v19 = vpop.eup %26648  ;;  %v26587_v48 = vld [vmem:[#allocation9 + $0x118] sm:$0xff]  }
 0xe84   :  { %v26651_v14 = vpop.eup %26650 }
 0xe85   :  { %v19337_v18 = vadd.f32 %v26647_v27, %v19336_v17  ;;  %v26653_v16 = vpop.eup %26652  ;;  %v19341_v11 = vadd.f32 %v26651_v14, %v26649_v19  ;;  %v26590_v17 = vld [vmem:[#allocation9 + $0x130] sm:$0xff]  }
 0xe86   :  { %v27675_v20 = vpop.eup %26654 }
 0xe87   :  { %v19338_v23 = vadd.f32 %v26653_v16, %v19337_v18  ;;  %v19342_v31 = vadd.f32 %v27675_v20, %v19341_v11  ;;  %v26657_v52 = vpop.eup %26656 }
 0xe88   :  { %v26659_v51 = vpop.eup %26658 }
 0xe89   :  { %19339 = vadd.xlane.f32.xlu0 %v19338_v23  ;;  %v19343_v60 = vadd.f32 %v26657_v52, %v19342_v31  ;;  %v22265_v31 = vld [vmem:[#allocation10] ss:$0 sm:$0xff] }
 0xe8b   :  { %v19344_v55 = vadd.f32 %v26659_v51, %v19343_v60 }
 0xe8d   :  { %19345 = vadd.xlane.f32.xlu1 %v19344_v55 }
 0xf16   :  { %v19340_v56 = vpop.xlane.xlu0 %19339 }
 0xf17   :  { %26660 = vrcp.f32 %v19340_v56 }
 0xf1a   :  { %v19346_v34 = vpop.xlane.xlu1 %19345 }
 0xf1b   :  { %26662 = vrcp.f32 %v19346_v34 }
 0xf21   :  { %v26661_v21 = vpop.eup %26660 }
 0xf22   :  { %v19349_v47 = vmul.f32 %v26661_v21, %v26643_v4  ;;  %v19348_v50 = vmul.f32 %v26661_v21, %v26641_v42  ;;  %v27678_v8 = vmul.f32 %v26661_v21, %v26653_v16  ;;  %v19351_v63 = vmul.f32 %v26661_v21, %v26647_v27  ;;  %v26585_v42 = vld [vmem:[#allocation9 + $0x108] sm:$0xff]   ;;  %v26586_v4 = vld [vmem:[#allocation9 + $0x110] sm:$0xff]  }
 0xf23   :  { %v19350_v40 = vmul.f32 %v26661_v21, %v27672_v54  ;;  %v26588_v54 = vld [vmem:[#allocation9 + $0x120] sm:$0xff]   ;;  %v26589_v27 = vld [vmem:[#allocation9 + $0x128] sm:$0xff]  }
 0xf25   :  { %v26663_v24 = vpop.eup %26662 }
 0xf26   :  { %v19355_v33 = vmul.f32 %v26663_v24, %v26651_v14  ;;  %v19354_v30 = vmul.f32 %v26663_v24, %v26649_v19  ;;  %v19357_v32 = vmul.f32 %v26663_v24, %v26657_v52  ;;  %v27680_v41 = vmul.f32 %v26663_v24, %v26659_v51  ;;  %v26591_v19 = vld [vmem:[#allocation9 + $0x138] sm:$0xff]  }
 0xf27   :  { %v19356_v61 = vmul.f32 %v26663_v24, %v27675_v20 }
 0xf28   :  { %v19360_v22 = vpack.c.bf16 %v19355_v33, %v19349_v47  ;;  %v19359_v59 = vpack.c.bf16 %v19354_v30, %v19348_v50  ;;  %v19363_v12 = vpack.c.bf16 %v27680_v41, %v27678_v8  ;;  %v19362_v5 = vpack.c.bf16 %v19357_v32, %v19351_v63 }
 0xf29   :  { %v19361_v49 = vpack.c.bf16 %v19356_v61, %v19350_v40 }
 0xf2a   :  { %19723 = vmatprep.mubr.bf16.mxu1 %v19360_v22 }
 0xf2b   :  { %19724 = vmatmul.mubr.bf16.vlgmr.msra.gmra.mrb[88].mxu1 %v19359_v59 }
 0xf2c   :  { %22694 = vmatpush3.bf16.msra.mxu1 %v26569_v26  ;;  %19764 = vmatprep.mubr.bf16.mxu1 %v19362_v5 }
 0xf2d   :  { %22695 = vmatprep.subr.bf16.mxu1 %v26570_v38 }
 0xf30   :  { %22696 = vmatpush3.bf16.msra.mxu1 %v26571_v53 }
 0xf31   :  { %22697 = vmatprep.subr.bf16.mxu1 %v26572_v35 }
 0xf34   :  { %22698 = vmatpush3.bf16.msra.mxu1 %v26573_v10 }
 0xf35   :  { %22699 = vmatprep.subr.bf16.mxu1 %v26574_v25 }
 0xf38   :  { %22700 = vmatpush3.bf16.msra.mxu1 %v26575_v44 }
 0xf39   :  { %22701 = vmatprep.subr.bf16.mxu1 %v26576_v1 }
 0xf3c   :  { %22702 = vmatpush3.bf16.msra.mxu1 %v26577_v0 }
 0xf3d   :  { %22703 = vmatprep.subr.bf16.mxu1 %v26578_v45 }
 0xf40   :  { %22704 = vmatpush3.bf16.msra.mxu1 %v26579_v29 }
 0xf41   :  { %22705 = vmatprep.subr.bf16.mxu1 %v26580_v28 }
 0xf44   :  { %22706 = vmatpush3.bf16.msra.mxu1 %v26581_v15 }
 0xf45   :  { %22707 = vmatprep.subr.bf16.mxu1 %v26582_v58 }
 0xf48   :  { %22708 = vmatpush3.bf16.msra.mxu1 %v26583_v37 }
 0xf49   :  { %22754 = vmatprep.subr.bf16.mxu1 %v26825_v46 }
 0xf4b   :  { %19765 = vmatmul.mubr.bf16.vlgmr.msra.gmra.mrb[92].mxu1 %v19361_v49 }
 0xf4c   :  { %22755 = vmatpush3.bf16.msra.mxu1 %v26584_v9  ;;  %22770 = vmatprep.mubr.msk.bf16.mxu1 %vm26826_vm2, %v26825_v46 }
 0xf4d   :  { %22756 = vmatprep.subr.bf16.mxu1 %v26825_v46 }
 0xf50   :  { %22757 = vmatpush3.bf16.msra.mxu1 %v26585_v42 }
 0xf51   :  { %22758 = vmatprep.subr.bf16.mxu1 %v26825_v46 }
 0xf54   :  { %22759 = vmatpush3.bf16.msra.mxu1 %v26586_v4 }
 0xf55   :  { %22760 = vmatprep.subr.bf16.mxu1 %v26825_v46 }
 0xf58   :  { %22761 = vmatpush3.bf16.msra.mxu1 %v26587_v48 }
 0xf59   :  { %22762 = vmatprep.subr.bf16.mxu1 %v26825_v46 }
 0xf5c   :  { %22763 = vmatpush3.bf16.msra.mxu1 %v26588_v54 }
 0xf5d   :  { %22764 = vmatprep.subr.bf16.mxu1 %v26825_v46 }
 0xf60   :  { %22765 = vmatpush3.bf16.msra.mxu1 %v26589_v27 }
 0xf61   :  { %22766 = vmatprep.subr.bf16.mxu1 %v26825_v46 }
 0xf64   :  { %22767 = vmatpush3.bf16.msra.mxu1 %v26590_v17 }
 0xf65   :  { %22768 = vmatprep.subr.bf16.mxu1 %v26825_v46 }
 0xf68   :  { %22769 = vmatpush3.bf16.msra.mxu1 %v26591_v19 }
 0xf6b   :  { %22771 = vmatmul.mubr.bf16.vlgmr.msra.gmra.mrb[96].mxu1 %v19363_v12 }
 0xffe   :  { %v22687_v14 = vpop.f32.mrb[88].mxu1 }
 0xfff   :  { %v22688_v18 = vpop.f32.mrb[89].mxu1 }
0x1000   :  { %v22689_v16 = vadd.f32 %v22688_v18, %v22687_v14  ;;  %v22690_v11 = vpop.f32.mrb[90].mxu1 }
0x1001   :  { %v22691_v20 = vpop.f32.mrb[91].mxu1 }
0x1002   :  { %v22692_v23 = vadd.f32 %v22691_v20, %v22690_v11  ;;  %v19726_v51 = vadd.f32 %v22689_v16, %v22265_v31 }
0x1004   :  { %v19729_v6 = vadd.f32 %v22692_v23, %v22265_v31 }
0x101e   :  { %v22709_v52 = vpop.f32.mrb[92].mxu1 }
0x101f   :  { %v22710_v60 = vpop.f32.mrb[93].mxu1 }
0x1020   :  { %v22711_v55 = vadd.f32 %v22710_v60, %v22709_v52  ;;  %v22712_v39 = vpop.f32.mrb[94].mxu1 }
0x1021   :  { %v22713_v2 = vpop.f32.mrb[95].mxu1 }
0x1022   :  { %v22714_v62 = vadd.f32 %v22713_v2, %v22712_v39  ;;  %v19767_v3 = vadd.f32 %v22711_v55, %v19726_v51 }
0x1024   :  { %v19770_v36 = vadd.f32 %v22714_v62, %v19729_v6 }
0x103e   :  { %v19807_v46 = vpop.f32.mrb[96].mxu1 }
0x103f   :  { %v19808_v43 = vadd.f32 %v19807_v46, %v19767_v3  ;;  %v22772_v7 = vpop.f32.mrb[97].mxu1 }
0x1040   :  { %v19810_v13 = vpop.f32.mrb[98].mxu1 }
0x1041   :  { %v19811_v56 = vadd.f32 %v19810_v13, %v19770_v36  ;;  %v22773_v34 = vpop.f32.mrb[99].mxu1  ;;  %v19815_v21 = vsel %vm19814_vm5, %v19808_v43, -inf }
0x1042   :  { %19817 = vmax.xlane.f32.xlu0 %v19815_v21 }
0x1043   :  { %v19816_v24 = vsel %vm19814_vm5, %v19811_v56, -inf }
0x1044   :  { %19819 = vmax.xlane.f32.xlu1 %v19816_v24 }
0x10cf   :  { %v19818_v47 = vpop.xlane.xlu0 %19817 }
0x10d0   :  { %v19821_v33 = vsub.f32 %v19815_v21, %v19818_v47 }
0x10d1   :  { %v19820_v50 = vpop.xlane.xlu1 %19819 }
0x10d2   :  { %v19823_v30 = vmul.f32 1.442695, %v19821_v33  ;;  %v19822_v32 = vsub.f32 %v19816_v24, %v19820_v50 }
0x10d4   :  { %26664 = vpow2.f32 %v19823_v30  ;;  %v19825_v8 = vmul.f32 1.442695, %v19822_v32 }
0x10d6   :  { %26666 = vpow2.f32 %v19825_v8 }
0x10de   :  { %v26665_v41 = vpop.eup %26664 }
0x10df   :  { %19827 = vadd.xlane.f32.xlu0 %v26665_v41 }
0x10e0   :  { %v26667_v57 = vpop.eup %26666 }
0x10e1   :  { %19829 = vadd.xlane.f32.xlu1 %v26667_v57 }
0x116c   :  { %v19828_v22 = vpop.xlane.xlu0 %19827 }
0x116d   :  { %26668 = vrcp.f32 %v19828_v22 }
0x116e   :  { %v19830_v59 = vpop.xlane.xlu1 %19829 }
0x116f   :  { %26670 = vrcp.f32 %v19830_v59 }
0x1177   :  { %v26669_v26 = vpop.eup %26668 }
0x1178   :  { %v19832_v63 = vmul.f32 %v26669_v26, %v26665_v41 }
0x1179   :  { %v26671_v38 = vpop.eup %26670 }
0x117a   :  { %19835 = vst [vmem:[%s27710_s7] sm:$0xff] %v19832_v63  ;;  %v19834_v12 = vmul.f32 %v26671_v38, %v26667_v57 }
0x117c   :  { %19836 = vst [vmem:[%s27710_s7 + $0x8] sm:$0xff] %v19834_v12 }
0x117d   :  { %19841 = vsyncpa [#allocation3], 1 }
0x117e   :  { %19842 = vsyncpa [#allocation5], 1 }
0x117f   :  { %19843 = vsyncpa [#allocation8], 1 }
0x1180   :  { %19844 = vsyncpa [#allocation11], 1 }

</bundles_post_ra>
